<compile_context>
chip_gen: v7x
topology: tpu7x:2x2x1
jax: 0.10.0
libtpu: 0.0.40
codegen_flags: <defaults>
</compile_context>

<pallas_src>
import functools

import jax
import jax.numpy as jnp
from jax import lax
from jax.experimental import pallas as pl
from jax.experimental.pallas import tpu as pltpu


def _round_up(x, m):
    return ((x + m - 1) // m) * m


# ----------------------------------------------------------------------------
# Kernel: one grid step == one LSTM layer.  Scratch persists across steps.
# ----------------------------------------------------------------------------
def _lstm_model_kernel(x_ref, w_ih0_ref, b0_ref, w_ih_nxt_ref, b_nxt_ref,
                       w_hh_ref, fcw_ref, fcb_ref, out_ref,
                       xw_scr, h_scr, c_scr, *, T, Bp, Hp, L, unroll):
    """Per-grid-step (layer l) view:
      x_ref       : (T*Bp, P)   layer-0 input (constant block, fetched once)
      w_ih0_ref   : (P, 4*Hp)   layer-0 input->gate weights (constant block)
      b0_ref      : (1, 4*Hp)   layer-0 bias (b_ih + b_hh), f32
      w_ih_nxt_ref: (1, Hp, 4*Hp) layer (l+1) input->gate weights
      b_nxt_ref   : (1, 1, 4*Hp)  layer (l+1) bias, f32
      w_hh_ref    : (1, Hp, 4*Hp) layer l hidden->gate weights
      fcw_ref     : (Hp, 128)   fc weight (transposed; only col 0 is real)
      fcb_ref     : (1, 128)    fc bias (f32; only col 0 is real)
      out_ref     : (Bp, 128)   fc(h_last); wrapper slices [:B, :1]
      xw_scr      : (T*Bp, 4*Hp) f32; holds layer l's input projection on
                    entry and is overwritten in-place (row block by row block)
                    with layer l+1's projection as the recurrence consumes it.
      h_scr, c_scr: (Bp, Hp) f32 per-layer hidden / cell state.
    All gate blocks are padded H -> Hp (multiple of 128); padded columns have
    zero weights/biases so padded h/c stay exactly 0.
    """
    l = pl.program_id(0)
    cdt = w_hh_ref.dtype            # matmul operand dtype (f32 or bf16)

    # ---- Layer-0 input projection: hoisted over all T steps (one matmul). --
    @pl.when(l == 0)
    def _():
        xw_scr[...] = (
            jnp.dot(x_ref[...], w_ih0_ref[...],
                    preferred_element_type=jnp.float32)
            + b0_ref[...])

    # ---- Zero (h, c) for this layer (h0 = c0 = 0 per PyTorch forward). -----
    h_scr[...] = jnp.zeros_like(h_scr)
    c_scr[...] = jnp.zeros_like(c_scr)

    not_last = l < L - 1

    def step(t, carry):
        row = pl.multiple_of(t * Bp, 8)       # sublane-aligned dynamic offset
        h = h_scr[...]
        # TODO(synk): push W_hh into the MXU once per layer
        # (pltpu.matmul_push_rhs / matmul_acc_lhs / matmul_pop) so the serial
        # recurrence does not reload the RHS weight tiles every time step.
        gates = xw_scr[pl.ds(row, Bp), :] + jnp.dot(
            h.astype(cdt), w_hh_ref[0], preferred_element_type=jnp.float32)
        # Lane-aligned (multiples of 128) static slices -> free views.
        i_g = jax.nn.sigmoid(gates[:, 0 * Hp:1 * Hp])
        f_g = jax.nn.sigmoid(gates[:, 1 * Hp:2 * Hp])
        g_g = jnp.tanh(gates[:, 2 * Hp:3 * Hp])
        o_g = jax.nn.sigmoid(gates[:, 3 * Hp:4 * Hp])
        c = f_g * c_scr[...] + i_g * g_g
        h_new = o_g * jnp.tanh(c)
        c_scr[...] = c
        h_scr[...] = h_new

        # Fused next-layer input projection: the xw rows for time t were just
        # consumed, so overwrite them in place with layer (l+1)'s projection.
        # This runs in MXU slack of the latency-bound recurrence.
        @pl.when(not_last)
        def _():
            xw_scr[pl.ds(row, Bp), :] = (
                jnp.dot(h_new.astype(cdt), w_ih_nxt_ref[0],
                        preferred_element_type=jnp.float32)
                + b_nxt_ref[0])

        return carry

    lax.fori_loop(0, T, step, 0, unroll=unroll)

    # ---- Fused fc(hidden_size, 1): one lane-dense (Bp, 128) store. ---------
    @pl.when(l == L - 1)
    def _():
        out_ref[...] = (
            jnp.dot(h_scr[...].astype(cdt), fcw_ref[...],
                    preferred_element_type=jnp.float32)
            + fcb_ref[...]).astype(out_ref.dtype)


# ----------------------------------------------------------------------------
# One-time parameter packing (hoisted out of the jitted forward).
# ----------------------------------------------------------------------------
def pack_params(params, dtype=jnp.float32):
    """Repack PyTorch-layout LSTM params into the kernel layout.

    dtype selects the matmul-operand dtype (jnp.float32 or jnp.bfloat16);
    biases stay f32.  Call once at model-load time.
    """
    H = params["fc_w"].shape[1]
    L = len(params["layers"])
    D = params["layers"][0][0].shape[1]
    Hp = _round_up(H, 128)
    P = max(Hp, _round_up(D, 128))
    G = 4 * Hp

    def pack_w(w, d_in, rows):
        # (4H, d_in) -> transposed, gate-padded (rows, 4*Hp).
        wt = jnp.transpose(w.reshape(4, H, d_in), (2, 0, 1))      # (d_in,4,H)
        wt = jnp.pad(wt, ((0, rows - d_in), (0, 0), (0, Hp - H)))
        return wt.reshape(rows, G).astype(dtype)

    def pack_b(b_ih, b_hh):
        bb = jnp.pad((b_ih + b_hh).reshape(4, H), ((0, 0), (0, Hp - H)))
        return bb.reshape(1, G).astype(jnp.float32)

    layers = params["layers"]
    w_ih0 = pack_w(layers[0][0], D, P)                             # (P, G)
    b0 = pack_b(layers[0][2], layers[0][3])                        # (1, G)
    w_hh = jnp.stack([pack_w(ly[1], H, Hp) for ly in layers])      # (L, Hp, G)
    if L > 1:
        w_ih_nxt = jnp.stack([pack_w(layers[i][0], H, Hp)
                              for i in range(1, L)])               # (L-1,Hp,G)
        b_nxt = jnp.stack([pack_b(layers[i][2], layers[i][3])
                           for i in range(1, L)])                  # (L-1,1,G)
    else:
        w_ih_nxt = jnp.zeros((1, Hp, G), dtype)                    # unused
        b_nxt = jnp.zeros((1, 1, G), jnp.float32)                  # unused

    fcw = jnp.pad(params["fc_w"].T, ((0, Hp - H), (0, 127))).astype(dtype)
    fcb = jnp.pad(params["fc_b"].reshape(1, 1), ((0, 0), (0, 127)))

    return {"w_ih0": w_ih0, "b0": b0, "w_ih_nxt": w_ih_nxt, "b_nxt": b_nxt,
            "w_hh": w_hh, "fcw": fcw, "fcb": fcb}


# ----------------------------------------------------------------------------
# Forward pass: pad/transpose x + single pallas_call with grid over layers.
# ----------------------------------------------------------------------------
@jax.jit
def lstm_model_forward(x_btd, packed):
    B, T, D = x_btd.shape
    w_hh = packed["w_hh"]
    L, Hp, G = w_hh.shape
    P = packed["w_ih0"].shape[0]
    Bp = _round_up(B, 8)
    cdt = w_hh.dtype

    # Batch-first -> time-major, pad batch/features, flatten, cast operands.
    x_t = jnp.transpose(x_btd, (1, 0, 2))                     # (T, B, D)
    x_t = jnp.pad(x_t, ((0, 0), (0, Bp - B), (0, P - D)))     # (T, Bp, P)
    x2d = x_t.reshape(T * Bp, P).astype(cdt)

    # VMEM budget: inputs/outputs double-buffered by the pipeline + scratch.
    itm = w_hh.dtype.itemsize
    vmem_in = ((T * Bp * P + P * G + 2 * Hp * G + Hp * 128) * itm
               + (2 * G + 128) * 4)
    vmem_out = Bp * 128 * 4
    vmem_scr = (T * Bp * G + 2 * Bp * Hp) * 4
    needed = 2 * (vmem_in + vmem_out) + vmem_scr
    vmem_limit = int(min(96 * 2 ** 20,
                         max(32 * 2 ** 20, needed * 5 // 4 + (1 << 20))))

    nL = max(L - 1, 1)   # size of the "next layer" weight stacks

    kernel = functools.partial(_lstm_model_kernel, T=T, Bp=Bp, Hp=Hp, L=L,
                               unroll=min(T, 8))

    grid_spec = pltpu.PrefetchScalarGridSpec(
        num_scalar_prefetch=0,
        grid=(L,),
        in_specs=[
            pl.BlockSpec((T * Bp, P), lambda l: (0, 0)),       # x (layer 0)
            pl.BlockSpec((P, G), lambda l: (0, 0)),            # W_ih layer 0
            pl.BlockSpec((1, G), lambda l: (0, 0)),            # b layer 0
            pl.BlockSpec((1, Hp, G),                           # W_ih layer l+1
                         lambda l: (jnp.minimum(l, nL - 1), 0, 0)),
            pl.BlockSpec((1, 1, G),                            # b layer l+1
                         lambda l: (jnp.minimum(l, nL - 1), 0, 0)),
            pl.BlockSpec((1, Hp, G), lambda l: (l, 0, 0)),     # W_hh layer l
            pl.BlockSpec((Hp, 128), lambda l: (0, 0)),         # fc weight
            pl.BlockSpec((1, 128), lambda l: (0, 0)),          # fc bias
        ],
        out_specs=pl.BlockSpec((Bp, 128), lambda l: (0, 0)),
        scratch_shapes=[
            pltpu.VMEM((T * Bp, G), jnp.float32),   # input projection (in-place)
            pltpu.VMEM((Bp, Hp), jnp.float32),      # h
            pltpu.VMEM((Bp, Hp), jnp.float32),      # c
        ],
    )

    out_p = pl.pallas_call(
        kernel,
        out_shape=jax.ShapeDtypeStruct((Bp, 128), jnp.float32),
        grid_spec=grid_spec,
        compiler_params=pltpu.CompilerParams(
            dimension_semantics=("arbitrary",),    # layers are sequential
            vmem_limit_bytes=vmem_limit,
        ),
    )(x2d, packed["w_ih0"], packed["b0"], packed["w_ih_nxt"],
      packed["b_nxt"], w_hh, packed["fcw"], packed["fcb"])

    return out_p[:B, :1]


# ----------------------------------------------------------------------------
# Parameter init (PyTorch-style layout) and pure-JAX reference.
# ----------------------------------------------------------------------------
def init_params(key, input_size, hidden_size, num_layers):
    bound = 1.0 / jnp.sqrt(hidden_size)
    layers = []
    for layer in range(num_layers):
        d_in = input_size if layer == 0 else hidden_size
        key, k1, k2, k3, k4 = jax.random.split(key, 5)
        layers.append((
            jax.random.uniform(k1, (4 * hidden_size, d_in), jnp.float32, -bound, bound),
            jax.random.uniform(k2, (4 * hidden_size, hidden_size), jnp.float32, -bound, bound),
            jax.random.uniform(k3, (4 * hidden_size,), jnp.float32, -bound, bound),
            jax.random.uniform(k4, (4 * hidden_size,), jnp.float32, -bound, bound),
        ))
    key, k5, k6 = jax.random.split(key, 3)
    fc_w = jax.random.uniform(k5, (1, hidden_size), jnp.float32, -bound, bound)
    fc_b = jax.random.uniform(k6, (1,), jnp.float32, -bound, bound)
    return {"layers": layers, "fc_w": fc_w, "fc_b": fc_b}


def reference_forward(x_btd, params):
    B, T, _ = x_btd.shape
    H = params["fc_w"].shape[1]
    seq = x_btd
    for (w_ih, w_hh, b_ih, b_hh) in params["layers"]:
        h = jnp.zeros((B, H), jnp.float32)
        c = jnp.zeros((B, H), jnp.float32)
        outs = []
        for t in range(T):
            gates = seq[:, t, :] @ w_ih.T + h @ w_hh.T + b_ih + b_hh
            i = jax.nn.sigmoid(gates[:, 0 * H:1 * H])
            f = jax.nn.sigmoid(gates[:, 1 * H:2 * H])
            g = jnp.tanh(gates[:, 2 * H:3 * H])
            o = jax.nn.sigmoid(gates[:, 3 * H:4 * H])
            c = f * c + i * g
            h = o * jnp.tanh(c)
            outs.append(h)
        seq = jnp.stack(outs, axis=1)
    return seq[:, -1, :] @ params["fc_w"].T + params["fc_b"]


if __name__ == "__main__":
    batch, seq_len, input_size, hidden_size, num_layers = 2, 8, 4, 32, 2

    key = jax.random.PRNGKey(0)
    kx, kp = jax.random.split(key)
    x = jax.random.normal(kx, (batch, seq_len, input_size), jnp.float32)
    params = init_params(kp, input_size, hidden_size, num_layers)
    ref = reference_forward(x, params)

    # f32 matmul operands: exact-ish match to the f32 reference.
    packed_f32 = pack_params(params, dtype=jnp.float32)
    out = jax.block_until_ready(lstm_model_forward(x, packed_f32))
    assert out.shape == (batch, 1), out.shape
    assert jnp.allclose(out, ref, atol=1e-4, rtol=1e-4), (out, ref)

    # bf16 matmul operands (production setting on v6e/v7x): looser tolerance
    # since the recurrence accumulates bf16-operand rounding over time steps.
    packed_bf16 = pack_params(params, dtype=jnp.bfloat16)
    out_bf16 = jax.block_until_ready(lstm_model_forward(x, packed_bf16))
    assert out_bf16.shape == (batch, 1), out_bf16.shape
    assert jnp.allclose(out_bf16, ref, atol=1e-1, rtol=1e-1), (out_bf16, ref)

    print("KERNEL_OK")
</pallas_src>

<mosaic_0001>
module attributes {stable_mosaic.version = 11 : i64} {
  func.func @_lstm_model_kernel(%arg0: i32, %arg1: memref<64x128xf32, #tpu.memory_space<vmem>>, %arg2: memref<128x512xf32, #tpu.memory_space<vmem>>, %arg3: memref<1x512xf32, #tpu.memory_space<vmem>>, %arg4: memref<1x128x512xf32, #tpu.memory_space<vmem>>, %arg5: memref<1x1x512xf32, #tpu.memory_space<vmem>>, %arg6: memref<1x128x512xf32, #tpu.memory_space<vmem>>, %arg7: memref<128x128xf32, #tpu.memory_space<vmem>>, %arg8: memref<1x128xf32, #tpu.memory_space<vmem>>, %arg9: memref<8x128xf32, #tpu.memory_space<vmem>>, %arg10: memref<64x512xf32, #tpu.memory_space<vmem>>, %arg11: memref<8x128xf32, #tpu.memory_space<vmem>>, %arg12: memref<8x128xf32, #tpu.memory_space<vmem>>) attributes {dimension_semantics = [#tpu.dimension_semantics<arbitrary>], iteration_bounds = array<i64: 2>, scalar_prefetch = 0 : i64, scratch_operands = 3 : i64, tpu.core_type = #tpu.core_type<tc>, window_params = [{pipeline_mode = #tpu.pipeline_mode<synchronous>, transform_indices = @transform_0, window_bounds = array<i64: 64, 128>}, {pipeline_mode = #tpu.pipeline_mode<synchronous>, transform_indices = @transform_1, window_bounds = array<i64: 128, 512>}, {pipeline_mode = #tpu.pipeline_mode<synchronous>, transform_indices = @transform_2, window_bounds = array<i64: 1, 512>}, {transform_indices = @transform_3, window_bounds = array<i64: 1, 128, 512>}, {transform_indices = @transform_4, window_bounds = array<i64: 1, 1, 512>}, {transform_indices = @transform_5, window_bounds = array<i64: 1, 128, 512>}, {pipeline_mode = #tpu.pipeline_mode<synchronous>, transform_indices = @transform_6, window_bounds = array<i64: 128, 128>}, {pipeline_mode = #tpu.pipeline_mode<synchronous>, transform_indices = @transform_7, window_bounds = array<i64: 1, 128>}, {pipeline_mode = #tpu.pipeline_mode<synchronous>, transform_indices = @transform_8, window_bounds = array<i64: 8, 128>}]} {
    %c0_i32 = arith.constant 0 : i32
    %0 = arith.cmpi eq, %arg0, %c0_i32 : i32
    %1 = arith.extui %0 : i1 to i32
    %c0_i32_0 = arith.constant 0 : i32
    %2 = arith.cmpi ne, %1, %c0_i32_0 : i32
    scf.if %2 {
      %c0_153 = arith.constant 0 : index
      %c0_154 = arith.constant 0 : index
      %323 = vector.load %arg1[%c0_153, %c0_154] : memref<64x128xf32, #tpu.memory_space<vmem>>, vector<64x128xf32>
      %c0_155 = arith.constant 0 : index
      %c0_156 = arith.constant 0 : index
      %324 = vector.load %arg2[%c0_155, %c0_156] : memref<128x512xf32, #tpu.memory_space<vmem>>, vector<128x512xf32>
      %cst_157 = arith.constant dense<0.000000e+00> : vector<64x512xf32>
      %325 = tpu.matmul %323, %324, %cst_157 {dimension_numbers = #tpu.dot_dimension_numbers<[1], [0], [0], [1], [0, 0, 1, 1], [], []>} : vector<64x128xf32>, vector<128x512xf32>, vector<64x512xf32> -> vector<64x512xf32>
      %c0_158 = arith.constant 0 : index
      %c0_159 = arith.constant 0 : index
      %326 = vector.load %arg3[%c0_158, %c0_159] : memref<1x512xf32, #tpu.memory_space<vmem>>, vector<1x512xf32>
      %327 = vector.broadcast %326 : vector<1x512xf32> to vector<64x512xf32>
      %328 = arith.addf %325, %327 : vector<64x512xf32>
      %c0_160 = arith.constant 0 : index
      %c0_161 = arith.constant 0 : index
      %329 = vector.load %arg10[%c0_160, %c0_161] : memref<64x512xf32, #tpu.memory_space<vmem>>, vector<64x512xf32>
      tpu.vector_store %arg10[%c0_160, %c0_161], %328 {strides = array<i32>} : memref<64x512xf32, #tpu.memory_space<vmem>>, vector<64x512xf32>,
    } else {
    }
    %cst = arith.constant 0.000000e+00 : f32
    %3 = vector.broadcast %cst : f32 to vector<8x128xf32>
    %c0 = arith.constant 0 : index
    %c0_1 = arith.constant 0 : index
    %4 = vector.load %arg11[%c0, %c0_1] : memref<8x128xf32, #tpu.memory_space<vmem>>, vector<8x128xf32>
    tpu.vector_store %arg11[%c0, %c0_1], %3 {strides = array<i32>} : memref<8x128xf32, #tpu.memory_space<vmem>>, vector<8x128xf32>,
    %cst_2 = arith.constant 0.000000e+00 : f32
    %5 = vector.broadcast %cst_2 : f32 to vector<8x128xf32>
    %c0_3 = arith.constant 0 : index
    %c0_4 = arith.constant 0 : index
    %6 = vector.load %arg12[%c0_3, %c0_4] : memref<8x128xf32, #tpu.memory_space<vmem>>, vector<8x128xf32>
    tpu.vector_store %arg12[%c0_3, %c0_4], %5 {strides = array<i32>} : memref<8x128xf32, #tpu.memory_space<vmem>>, vector<8x128xf32>,
    %c1_i32 = arith.constant 1 : i32
    %7 = arith.cmpi slt, %arg0, %c1_i32 : i32
    %c0_i32_5 = arith.constant 0 : i32
    %c8_i32 = arith.constant 8 : i32
    %8 = arith.muli %c0_i32_5, %c8_i32 : i32
    %9 = tpu.assume_multiple %8, 8 : i32
    %c0_6 = arith.constant 0 : index
    %c0_7 = arith.constant 0 : index
    %10 = vector.load %arg11[%c0_6, %c0_7] : memref<8x128xf32, #tpu.memory_space<vmem>>, vector<8x128xf32>
    %11 = arith.index_cast %9 : i32 to index
    %c0_8 = arith.constant 0 : index
    %12 = vector.load %arg10[%11, %c0_8] : memref<64x512xf32, #tpu.memory_space<vmem>>, vector<8x512xf32>
    %c0_9 = arith.constant 0 : index
    %c0_10 = arith.constant 0 : index
    %c0_11 = arith.constant 0 : index
    %13 = vector.load %arg6[%c0_9, %c0_10, %c0_11] : memref<1x128x512xf32, #tpu.memory_space<vmem>>, vector<1x128x512xf32>
    %14 = vector.shape_cast %13 : vector<1x128x512xf32> to vector<128x512xf32>
    %cst_12 = arith.constant dense<0.000000e+00> : vector<8x512xf32>
    %15 = tpu.matmul %10, %14, %cst_12 {dimension_numbers = #tpu.dot_dimension_numbers<[1], [0], [0], [1], [0, 0, 1, 1], [], []>} : vector<8x128xf32>, vector<128x512xf32>, vector<8x512xf32> -> vector<8x512xf32>
    %16 = arith.addf %12, %15 : vector<8x512xf32>
    %17 = vector.extract_strided_slice %16 {offsets = [0, 0], sizes = [8, 128], strides = [1, 1]} : vector<8x512xf32> to vector<8x128xf32>
    %18 = arith.negf %17 : vector<8x128xf32>
    %19 = math.exp %18 : vector<8x128xf32>
    %cst_13 = arith.constant 1.000000e+00 : f32
    %20 = vector.broadcast %cst_13 : f32 to vector<8x128xf32>
    %21 = arith.addf %20, %19 : vector<8x128xf32>
    %22 = arith.divf %20, %21 : vector<8x128xf32>
    %23 = vector.extract_strided_slice %16 {offsets = [0, 128], sizes = [8, 128], strides = [1, 1]} : vector<8x512xf32> to vector<8x128xf32>
    %24 = arith.negf %23 : vector<8x128xf32>
    %25 = math.exp %24 : vector<8x128xf32>
    %cst_14 = arith.constant 1.000000e+00 : f32
    %26 = vector.broadcast %cst_14 : f32 to vector<8x128xf32>
    %27 = arith.addf %26, %25 : vector<8x128xf32>
    %28 = arith.divf %26, %27 : vector<8x128xf32>
    %29 = vector.extract_strided_slice %16 {offsets = [0, 256], sizes = [8, 128], strides = [1, 1]} : vector<8x512xf32> to vector<8x128xf32>
    %30 = math.tanh %29 : vector<8x128xf32>
    %31 = vector.extract_strided_slice %16 {offsets = [0, 384], sizes = [8, 128], strides = [1, 1]} : vector<8x512xf32> to vector<8x128xf32>
    %32 = arith.negf %31 : vector<8x128xf32>
    %33 = math.exp %32 : vector<8x128xf32>
    %cst_15 = arith.constant 1.000000e+00 : f32
    %34 = vector.broadcast %cst_15 : f32 to vector<8x128xf32>
    %35 = arith.addf %34, %33 : vector<8x128xf32>
    %36 = arith.divf %34, %35 : vector<8x128xf32>
    %c0_16 = arith.constant 0 : index
    %c0_17 = arith.constant 0 : index
    %37 = vector.load %arg12[%c0_16, %c0_17] : memref<8x128xf32, #tpu.memory_space<vmem>>, vector<8x128xf32>
    %38 = arith.mulf %28, %37 : vector<8x128xf32>
    %39 = arith.mulf %22, %30 : vector<8x128xf32>
    %40 = arith.addf %38, %39 : vector<8x128xf32>
    %41 = math.tanh %40 : vector<8x128xf32>
    %42 = arith.mulf %36, %41 : vector<8x128xf32>
    %c0_18 = arith.constant 0 : index
    %c0_19 = arith.constant 0 : index
    %43 = vector.load %arg12[%c0_18, %c0_19] : memref<8x128xf32, #tpu.memory_space<vmem>>, vector<8x128xf32>
    tpu.vector_store %arg12[%c0_18, %c0_19], %40 {strides = array<i32>} : memref<8x128xf32, #tpu.memory_space<vmem>>, vector<8x128xf32>,
    %c0_20 = arith.constant 0 : index
    %c0_21 = arith.constant 0 : index
    %44 = vector.load %arg11[%c0_20, %c0_21] : memref<8x128xf32, #tpu.memory_space<vmem>>, vector<8x128xf32>
    tpu.vector_store %arg11[%c0_20, %c0_21], %42 {strides = array<i32>} : memref<8x128xf32, #tpu.memory_space<vmem>>, vector<8x128xf32>,
    %45 = arith.extui %7 : i1 to i32
    %c0_i32_22 = arith.constant 0 : i32
    %46 = arith.cmpi ne, %45, %c0_i32_22 : i32
    scf.if %46 {
      %c0_153 = arith.constant 0 : index
      %c0_154 = arith.constant 0 : index
      %c0_155 = arith.constant 0 : index
      %323 = vector.load %arg4[%c0_153, %c0_154, %c0_155] : memref<1x128x512xf32, #tpu.memory_space<vmem>>, vector<1x128x512xf32>
      %324 = vector.shape_cast %323 : vector<1x128x512xf32> to vector<128x512xf32>
      %cst_156 = arith.constant dense<0.000000e+00> : vector<8x512xf32>
      %325 = tpu.matmul %42, %324, %cst_156 {dimension_numbers = #tpu.dot_dimension_numbers<[1], [0], [0], [1], [0, 0, 1, 1], [], []>} : vector<8x128xf32>, vector<128x512xf32>, vector<8x512xf32> -> vector<8x512xf32>
      %c0_157 = arith.constant 0 : index
      %c0_158 = arith.constant 0 : index
      %c0_159 = arith.constant 0 : index
      %326 = vector.load %arg5[%c0_157, %c0_158, %c0_159] : memref<1x1x512xf32, #tpu.memory_space<vmem>>, vector<1x1x512xf32>
      %327 = vector.shape_cast %326 : vector<1x1x512xf32> to vector<1x512xf32>
      %328 = vector.broadcast %327 : vector<1x512xf32> to vector<8x512xf32>
      %329 = arith.addf %325, %328 : vector<8x512xf32>
      %330 = arith.index_cast %9 : i32 to index
      %c0_160 = arith.constant 0 : index
      %331 = vector.load %arg10[%330, %c0_160] : memref<64x512xf32, #tpu.memory_space<vmem>>, vector<8x512xf32>
      tpu.vector_store %arg10[%330, %c0_160], %329 {strides = array<i32>} : memref<64x512xf32, #tpu.memory_space<vmem>>, vector<8x512xf32>,
    } else {
    }
    %c1_i32_23 = arith.constant 1 : i32
    %c8_i32_24 = arith.constant 8 : i32
    %47 = arith.muli %c1_i32_23, %c8_i32_24 : i32
    %48 = tpu.assume_multiple %47, 8 : i32
    %c0_25 = arith.constant 0 : index
    %c0_26 = arith.constant 0 : index
    %49 = vector.load %arg11[%c0_25, %c0_26] : memref<8x128xf32, #tpu.memory_space<vmem>>, vector<8x128xf32>
    %50 = arith.index_cast %48 : i32 to index
    %c0_27 = arith.constant 0 : index
    %51 = vector.load %arg10[%50, %c0_27] : memref<64x512xf32, #tpu.memory_space<vmem>>, vector<8x512xf32>
    %c0_28 = arith.constant 0 : index
    %c0_29 = arith.constant 0 : index
    %c0_30 = arith.constant 0 : index
    %52 = vector.load %arg6[%c0_28, %c0_29, %c0_30] : memref<1x128x512xf32, #tpu.memory_space<vmem>>, vector<1x128x512xf32>
    %53 = vector.shape_cast %52 : vector<1x128x512xf32> to vector<128x512xf32>
    %cst_31 = arith.constant dense<0.000000e+00> : vector<8x512xf32>
    %54 = tpu.matmul %49, %53, %cst_31 {dimension_numbers = #tpu.dot_dimension_numbers<[1], [0], [0], [1], [0, 0, 1, 1], [], []>} : vector<8x128xf32>, vector<128x512xf32>, vector<8x512xf32> -> vector<8x512xf32>
    %55 = arith.addf %51, %54 : vector<8x512xf32>
    %56 = vector.extract_strided_slice %55 {offsets = [0, 0], sizes = [8, 128], strides = [1, 1]} : vector<8x512xf32> to vector<8x128xf32>
    %57 = arith.negf %56 : vector<8x128xf32>
    %58 = math.exp %57 : vector<8x128xf32>
    %cst_32 = arith.constant 1.000000e+00 : f32
    %59 = vector.broadcast %cst_32 : f32 to vector<8x128xf32>
    %60 = arith.addf %59, %58 : vector<8x128xf32>
    %61 = arith.divf %59, %60 : vector<8x128xf32>
    %62 = vector.extract_strided_slice %55 {offsets = [0, 128], sizes = [8, 128], strides = [1, 1]} : vector<8x512xf32> to vector<8x128xf32>
    %63 = arith.negf %62 : vector<8x128xf32>
    %64 = math.exp %63 : vector<8x128xf32>
    %cst_33 = arith.constant 1.000000e+00 : f32
    %65 = vector.broadcast %cst_33 : f32 to vector<8x128xf32>
    %66 = arith.addf %65, %64 : vector<8x128xf32>
    %67 = arith.divf %65, %66 : vector<8x128xf32>
    %68 = vector.extract_strided_slice %55 {offsets = [0, 256], sizes = [8, 128], strides = [1, 1]} : vector<8x512xf32> to vector<8x128xf32>
    %69 = math.tanh %68 : vector<8x128xf32>
    %70 = vector.extract_strided_slice %55 {offsets = [0, 384], sizes = [8, 128], strides = [1, 1]} : vector<8x512xf32> to vector<8x128xf32>
    %71 = arith.negf %70 : vector<8x128xf32>
    %72 = math.exp %71 : vector<8x128xf32>
    %cst_34 = arith.constant 1.000000e+00 : f32
    %73 = vector.broadcast %cst_34 : f32 to vector<8x128xf32>
    %74 = arith.addf %73, %72 : vector<8x128xf32>
    %75 = arith.divf %73, %74 : vector<8x128xf32>
    %c0_35 = arith.constant 0 : index
    %c0_36 = arith.constant 0 : index
    %76 = vector.load %arg12[%c0_35, %c0_36] : memref<8x128xf32, #tpu.memory_space<vmem>>, vector<8x128xf32>
    %77 = arith.mulf %67, %76 : vector<8x128xf32>
    %78 = arith.mulf %61, %69 : vector<8x128xf32>
    %79 = arith.addf %77, %78 : vector<8x128xf32>
    %80 = math.tanh %79 : vector<8x128xf32>
    %81 = arith.mulf %75, %80 : vector<8x128xf32>
    %c0_37 = arith.constant 0 : index
    %c0_38 = arith.constant 0 : index
    %82 = vector.load %arg12[%c0_37, %c0_38] : memref<8x128xf32, #tpu.memory_space<vmem>>, vector<8x128xf32>
    tpu.vector_store %arg12[%c0_37, %c0_38], %79 {strides = array<i32>} : memref<8x128xf32, #tpu.memory_space<vmem>>, vector<8x128xf32>,
    %c0_39 = arith.constant 0 : index
    %c0_40 = arith.constant 0 : index
    %83 = vector.load %arg11[%c0_39, %c0_40] : memref<8x128xf32, #tpu.memory_space<vmem>>, vector<8x128xf32>
    tpu.vector_store %arg11[%c0_39, %c0_40], %81 {strides = array<i32>} : memref<8x128xf32, #tpu.memory_space<vmem>>, vector<8x128xf32>,
    %84 = arith.extui %7 : i1 to i32
    %c0_i32_41 = arith.constant 0 : i32
    %85 = arith.cmpi ne, %84, %c0_i32_41 : i32
    scf.if %85 {
      %c0_153 = arith.constant 0 : index
      %c0_154 = arith.constant 0 : index
      %c0_155 = arith.constant 0 : index
      %323 = vector.load %arg4[%c0_153, %c0_154, %c0_155] : memref<1x128x512xf32, #tpu.memory_space<vmem>>, vector<1x128x512xf32>
      %324 = vector.shape_cast %323 : vector<1x128x512xf32> to vector<128x512xf32>
      %cst_156 = arith.constant dense<0.000000e+00> : vector<8x512xf32>
      %325 = tpu.matmul %81, %324, %cst_156 {dimension_numbers = #tpu.dot_dimension_numbers<[1], [0], [0], [1], [0, 0, 1, 1], [], []>} : vector<8x128xf32>, vector<128x512xf32>, vector<8x512xf32> -> vector<8x512xf32>
      %c0_157 = arith.constant 0 : index
      %c0_158 = arith.constant 0 : index
      %c0_159 = arith.constant 0 : index
      %326 = vector.load %arg5[%c0_157, %c0_158, %c0_159] : memref<1x1x512xf32, #tpu.memory_space<vmem>>, vector<1x1x512xf32>
      %327 = vector.shape_cast %326 : vector<1x1x512xf32> to vector<1x512xf32>
      %328 = vector.broadcast %327 : vector<1x512xf32> to vector<8x512xf32>
      %329 = arith.addf %325, %328 : vector<8x512xf32>
      %330 = arith.index_cast %48 : i32 to index
      %c0_160 = arith.constant 0 : index
      %331 = vector.load %arg10[%330, %c0_160] : memref<64x512xf32, #tpu.memory_space<vmem>>, vector<8x512xf32>
      tpu.vector_store %arg10[%330, %c0_160], %329 {strides = array<i32>} : memref<64x512xf32, #tpu.memory_space<vmem>>, vector<8x512xf32>,
    } else {
    }
    %c2_i32 = arith.constant 2 : i32
    %c8_i32_42 = arith.constant 8 : i32
    %86 = arith.muli %c2_i32, %c8_i32_42 : i32
    %87 = tpu.assume_multiple %86, 8 : i32
    %c0_43 = arith.constant 0 : index
    %c0_44 = arith.constant 0 : index
    %88 = vector.load %arg11[%c0_43, %c0_44] : memref<8x128xf32, #tpu.memory_space<vmem>>, vector<8x128xf32>
    %89 = arith.index_cast %87 : i32 to index
    %c0_45 = arith.constant 0 : index
    %90 = vector.load %arg10[%89, %c0_45] : memref<64x512xf32, #tpu.memory_space<vmem>>, vector<8x512xf32>
    %c0_46 = arith.constant 0 : index
    %c0_47 = arith.constant 0 : index
    %c0_48 = arith.constant 0 : index
    %91 = vector.load %arg6[%c0_46, %c0_47, %c0_48] : memref<1x128x512xf32, #tpu.memory_space<vmem>>, vector<1x128x512xf32>
    %92 = vector.shape_cast %91 : vector<1x128x512xf32> to vector<128x512xf32>
    %cst_49 = arith.constant dense<0.000000e+00> : vector<8x512xf32>
    %93 = tpu.matmul %88, %92, %cst_49 {dimension_numbers = #tpu.dot_dimension_numbers<[1], [0], [0], [1], [0, 0, 1, 1], [], []>} : vector<8x128xf32>, vector<128x512xf32>, vector<8x512xf32> -> vector<8x512xf32>
    %94 = arith.addf %90, %93 : vector<8x512xf32>
    %95 = vector.extract_strided_slice %94 {offsets = [0, 0], sizes = [8, 128], strides = [1, 1]} : vector<8x512xf32> to vector<8x128xf32>
    %96 = arith.negf %95 : vector<8x128xf32>
    %97 = math.exp %96 : vector<8x128xf32>
    %cst_50 = arith.constant 1.000000e+00 : f32
    %98 = vector.broadcast %cst_50 : f32 to vector<8x128xf32>
    %99 = arith.addf %98, %97 : vector<8x128xf32>
    %100 = arith.divf %98, %99 : vector<8x128xf32>
    %101 = vector.extract_strided_slice %94 {offsets = [0, 128], sizes = [8, 128], strides = [1, 1]} : vector<8x512xf32> to vector<8x128xf32>
    %102 = arith.negf %101 : vector<8x128xf32>
    %103 = math.exp %102 : vector<8x128xf32>
    %cst_51 = arith.constant 1.000000e+00 : f32
    %104 = vector.broadcast %cst_51 : f32 to vector<8x128xf32>
    %105 = arith.addf %104, %103 : vector<8x128xf32>
    %106 = arith.divf %104, %105 : vector<8x128xf32>
    %107 = vector.extract_strided_slice %94 {offsets = [0, 256], sizes = [8, 128], strides = [1, 1]} : vector<8x512xf32> to vector<8x128xf32>
    %108 = math.tanh %107 : vector<8x128xf32>
    %109 = vector.extract_strided_slice %94 {offsets = [0, 384], sizes = [8, 128], strides = [1, 1]} : vector<8x512xf32> to vector<8x128xf32>
    %110 = arith.negf %109 : vector<8x128xf32>
    %111 = math.exp %110 : vector<8x128xf32>
    %cst_52 = arith.constant 1.000000e+00 : f32
    %112 = vector.broadcast %cst_52 : f32 to vector<8x128xf32>
    %113 = arith.addf %112, %111 : vector<8x128xf32>
    %114 = arith.divf %112, %113 : vector<8x128xf32>
    %c0_53 = arith.constant 0 : index
    %c0_54 = arith.constant 0 : index
    %115 = vector.load %arg12[%c0_53, %c0_54] : memref<8x128xf32, #tpu.memory_space<vmem>>, vector<8x128xf32>
    %116 = arith.mulf %106, %115 : vector<8x128xf32>
    %117 = arith.mulf %100, %108 : vector<8x128xf32>
    %118 = arith.addf %116, %117 : vector<8x128xf32>
    %119 = math.tanh %118 : vector<8x128xf32>
    %120 = arith.mulf %114, %119 : vector<8x128xf32>
    %c0_55 = arith.constant 0 : index
    %c0_56 = arith.constant 0 : index
    %121 = vector.load %arg12[%c0_55, %c0_56] : memref<8x128xf32, #tpu.memory_space<vmem>>, vector<8x128xf32>
    tpu.vector_store %arg12[%c0_55, %c0_56], %118 {strides = array<i32>} : memref<8x128xf32, #tpu.memory_space<vmem>>, vector<8x128xf32>,
    %c0_57 = arith.constant 0 : index
    %c0_58 = arith.constant 0 : index
    %122 = vector.load %arg11[%c0_57, %c0_58] : memref<8x128xf32, #tpu.memory_space<vmem>>, vector<8x128xf32>
    tpu.vector_store %arg11[%c0_57, %c0_58], %120 {strides = array<i32>} : memref<8x128xf32, #tpu.memory_space<vmem>>, vector<8x128xf32>,
    %123 = arith.extui %7 : i1 to i32
    %c0_i32_59 = arith.constant 0 : i32
    %124 = arith.cmpi ne, %123, %c0_i32_59 : i32
    scf.if %124 {
      %c0_153 = arith.constant 0 : index
      %c0_154 = arith.constant 0 : index
      %c0_155 = arith.constant 0 : index
      %323 = vector.load %arg4[%c0_153, %c0_154, %c0_155] : memref<1x128x512xf32, #tpu.memory_space<vmem>>, vector<1x128x512xf32>
      %324 = vector.shape_cast %323 : vector<1x128x512xf32> to vector<128x512xf32>
      %cst_156 = arith.constant dense<0.000000e+00> : vector<8x512xf32>
      %325 = tpu.matmul %120, %324, %cst_156 {dimension_numbers = #tpu.dot_dimension_numbers<[1], [0], [0], [1], [0, 0, 1, 1], [], []>} : vector<8x128xf32>, vector<128x512xf32>, vector<8x512xf32> -> vector<8x512xf32>
      %c0_157 = arith.constant 0 : index
      %c0_158 = arith.constant 0 : index
      %c0_159 = arith.constant 0 : index
      %326 = vector.load %arg5[%c0_157, %c0_158, %c0_159] : memref<1x1x512xf32, #tpu.memory_space<vmem>>, vector<1x1x512xf32>
      %327 = vector.shape_cast %326 : vector<1x1x512xf32> to vector<1x512xf32>
      %328 = vector.broadcast %327 : vector<1x512xf32> to vector<8x512xf32>
      %329 = arith.addf %325, %328 : vector<8x512xf32>
      %330 = arith.index_cast %87 : i32 to index
      %c0_160 = arith.constant 0 : index
      %331 = vector.load %arg10[%330, %c0_160] : memref<64x512xf32, #tpu.memory_space<vmem>>, vector<8x512xf32>
      tpu.vector_store %arg10[%330, %c0_160], %329 {strides = array<i32>} : memref<64x512xf32, #tpu.memory_space<vmem>>, vector<8x512xf32>,
    } else {
    }
    %c3_i32 = arith.constant 3 : i32
    %c8_i32_60 = arith.constant 8 : i32
    %125 = arith.muli %c3_i32, %c8_i32_60 : i32
    %126 = tpu.assume_multiple %125, 8 : i32
    %c0_61 = arith.constant 0 : index
    %c0_62 = arith.constant 0 : index
    %127 = vector.load %arg11[%c0_61, %c0_62] : memref<8x128xf32, #tpu.memory_space<vmem>>, vector<8x128xf32>
    %128 = arith.index_cast %126 : i32 to index
    %c0_63 = arith.constant 0 : index
    %129 = vector.load %arg10[%128, %c0_63] : memref<64x512xf32, #tpu.memory_space<vmem>>, vector<8x512xf32>
    %c0_64 = arith.constant 0 : index
    %c0_65 = arith.constant 0 : index
    %c0_66 = arith.constant 0 : index
    %130 = vector.load %arg6[%c0_64, %c0_65, %c0_66] : memref<1x128x512xf32, #tpu.memory_space<vmem>>, vector<1x128x512xf32>
    %131 = vector.shape_cast %130 : vector<1x128x512xf32> to vector<128x512xf32>
    %cst_67 = arith.constant dense<0.000000e+00> : vector<8x512xf32>
    %132 = tpu.matmul %127, %131, %cst_67 {dimension_numbers = #tpu.dot_dimension_numbers<[1], [0], [0], [1], [0, 0, 1, 1], [], []>} : vector<8x128xf32>, vector<128x512xf32>, vector<8x512xf32> -> vector<8x512xf32>
    %133 = arith.addf %129, %132 : vector<8x512xf32>
    %134 = vector.extract_strided_slice %133 {offsets = [0, 0], sizes = [8, 128], strides = [1, 1]} : vector<8x512xf32> to vector<8x128xf32>
    %135 = arith.negf %134 : vector<8x128xf32>
    %136 = math.exp %135 : vector<8x128xf32>
    %cst_68 = arith.constant 1.000000e+00 : f32
    %137 = vector.broadcast %cst_68 : f32 to vector<8x128xf32>
    %138 = arith.addf %137, %136 : vector<8x128xf32>
    %139 = arith.divf %137, %138 : vector<8x128xf32>
    %140 = vector.extract_strided_slice %133 {offsets = [0, 128], sizes = [8, 128], strides = [1, 1]} : vector<8x512xf32> to vector<8x128xf32>
    %141 = arith.negf %140 : vector<8x128xf32>
    %142 = math.exp %141 : vector<8x128xf32>
    %cst_69 = arith.constant 1.000000e+00 : f32
    %143 = vector.broadcast %cst_69 : f32 to vector<8x128xf32>
    %144 = arith.addf %143, %142 : vector<8x128xf32>
    %145 = arith.divf %143, %144 : vector<8x128xf32>
    %146 = vector.extract_strided_slice %133 {offsets = [0, 256], sizes = [8, 128], strides = [1, 1]} : vector<8x512xf32> to vector<8x128xf32>
    %147 = math.tanh %146 : vector<8x128xf32>
    %148 = vector.extract_strided_slice %133 {offsets = [0, 384], sizes = [8, 128], strides = [1, 1]} : vector<8x512xf32> to vector<8x128xf32>
    %149 = arith.negf %148 : vector<8x128xf32>
    %150 = math.exp %149 : vector<8x128xf32>
    %cst_70 = arith.constant 1.000000e+00 : f32
    %151 = vector.broadcast %cst_70 : f32 to vector<8x128xf32>
    %152 = arith.addf %151, %150 : vector<8x128xf32>
    %153 = arith.divf %151, %152 : vector<8x128xf32>
    %c0_71 = arith.constant 0 : index
    %c0_72 = arith.constant 0 : index
    %154 = vector.load %arg12[%c0_71, %c0_72] : memref<8x128xf32, #tpu.memory_space<vmem>>, vector<8x128xf32>
    %155 = arith.mulf %145, %154 : vector<8x128xf32>
    %156 = arith.mulf %139, %147 : vector<8x128xf32>
    %157 = arith.addf %155, %156 : vector<8x128xf32>
    %158 = math.tanh %157 : vector<8x128xf32>
    %159 = arith.mulf %153, %158 : vector<8x128xf32>
    %c0_73 = arith.constant 0 : index
    %c0_74 = arith.constant 0 : index
    %160 = vector.load %arg12[%c0_73, %c0_74] : memref<8x128xf32, #tpu.memory_space<vmem>>, vector<8x128xf32>
    tpu.vector_store %arg12[%c0_73, %c0_74], %157 {strides = array<i32>} : memref<8x128xf32, #tpu.memory_space<vmem>>, vector<8x128xf32>,
    %c0_75 = arith.constant 0 : index
    %c0_76 = arith.constant 0 : index
    %161 = vector.load %arg11[%c0_75, %c0_76] : memref<8x128xf32, #tpu.memory_space<vmem>>, vector<8x128xf32>
    tpu.vector_store %arg11[%c0_75, %c0_76], %159 {strides = array<i32>} : memref<8x128xf32, #tpu.memory_space<vmem>>, vector<8x128xf32>,
    %162 = arith.extui %7 : i1 to i32
    %c0_i32_77 = arith.constant 0 : i32
    %163 = arith.cmpi ne, %162, %c0_i32_77 : i32
    scf.if %163 {
      %c0_153 = arith.constant 0 : index
      %c0_154 = arith.constant 0 : index
      %c0_155 = arith.constant 0 : index
      %323 = vector.load %arg4[%c0_153, %c0_154, %c0_155] : memref<1x128x512xf32, #tpu.memory_space<vmem>>, vector<1x128x512xf32>
      %324 = vector.shape_cast %323 : vector<1x128x512xf32> to vector<128x512xf32>
      %cst_156 = arith.constant dense<0.000000e+00> : vector<8x512xf32>
      %325 = tpu.matmul %159, %324, %cst_156 {dimension_numbers = #tpu.dot_dimension_numbers<[1], [0], [0], [1], [0, 0, 1, 1], [], []>} : vector<8x128xf32>, vector<128x512xf32>, vector<8x512xf32> -> vector<8x512xf32>
      %c0_157 = arith.constant 0 : index
      %c0_158 = arith.constant 0 : index
      %c0_159 = arith.constant 0 : index
      %326 = vector.load %arg5[%c0_157, %c0_158, %c0_159] : memref<1x1x512xf32, #tpu.memory_space<vmem>>, vector<1x1x512xf32>
      %327 = vector.shape_cast %326 : vector<1x1x512xf32> to vector<1x512xf32>
      %328 = vector.broadcast %327 : vector<1x512xf32> to vector<8x512xf32>
      %329 = arith.addf %325, %328 : vector<8x512xf32>
      %330 = arith.index_cast %126 : i32 to index
      %c0_160 = arith.constant 0 : index
      %331 = vector.load %arg10[%330, %c0_160] : memref<64x512xf32, #tpu.memory_space<vmem>>, vector<8x512xf32>
      tpu.vector_store %arg10[%330, %c0_160], %329 {strides = array<i32>} : memref<64x512xf32, #tpu.memory_space<vmem>>, vector<8x512xf32>,
    } else {
    }
    %c4_i32 = arith.constant 4 : i32
    %c8_i32_78 = arith.constant 8 : i32
    %164 = arith.muli %c4_i32, %c8_i32_78 : i32
    %165 = tpu.assume_multiple %164, 8 : i32
    %c0_79 = arith.constant 0 : index
    %c0_80 = arith.constant 0 : index
    %166 = vector.load %arg11[%c0_79, %c0_80] : memref<8x128xf32, #tpu.memory_space<vmem>>, vector<8x128xf32>
    %167 = arith.index_cast %165 : i32 to index
    %c0_81 = arith.constant 0 : index
    %168 = vector.load %arg10[%167, %c0_81] : memref<64x512xf32, #tpu.memory_space<vmem>>, vector<8x512xf32>
    %c0_82 = arith.constant 0 : index
    %c0_83 = arith.constant 0 : index
    %c0_84 = arith.constant 0 : index
    %169 = vector.load %arg6[%c0_82, %c0_83, %c0_84] : memref<1x128x512xf32, #tpu.memory_space<vmem>>, vector<1x128x512xf32>
    %170 = vector.shape_cast %169 : vector<1x128x512xf32> to vector<128x512xf32>
    %cst_85 = arith.constant dense<0.000000e+00> : vector<8x512xf32>
    %171 = tpu.matmul %166, %170, %cst_85 {dimension_numbers = #tpu.dot_dimension_numbers<[1], [0], [0], [1], [0, 0, 1, 1], [], []>} : vector<8x128xf32>, vector<128x512xf32>, vector<8x512xf32> -> vector<8x512xf32>
    %172 = arith.addf %168, %171 : vector<8x512xf32>
    %173 = vector.extract_strided_slice %172 {offsets = [0, 0], sizes = [8, 128], strides = [1, 1]} : vector<8x512xf32> to vector<8x128xf32>
    %174 = arith.negf %173 : vector<8x128xf32>
    %175 = math.exp %174 : vector<8x128xf32>
    %cst_86 = arith.constant 1.000000e+00 : f32
    %176 = vector.broadcast %cst_86 : f32 to vector<8x128xf32>
    %177 = arith.addf %176, %175 : vector<8x128xf32>
    %178 = arith.divf %176, %177 : vector<8x128xf32>
    %179 = vector.extract_strided_slice %172 {offsets = [0, 128], sizes = [8, 128], strides = [1, 1]} : vector<8x512xf32> to vector<8x128xf32>
    %180 = arith.negf %179 : vector<8x128xf32>
    %181 = math.exp %180 : vector<8x128xf32>
    %cst_87 = arith.constant 1.000000e+00 : f32
    %182 = vector.broadcast %cst_87 : f32 to vector<8x128xf32>
    %183 = arith.addf %182, %181 : vector<8x128xf32>
    %184 = arith.divf %182, %183 : vector<8x128xf32>
    %185 = vector.extract_strided_slice %172 {offsets = [0, 256], sizes = [8, 128], strides = [1, 1]} : vector<8x512xf32> to vector<8x128xf32>
    %186 = math.tanh %185 : vector<8x128xf32>
    %187 = vector.extract_strided_slice %172 {offsets = [0, 384], sizes = [8, 128], strides = [1, 1]} : vector<8x512xf32> to vector<8x128xf32>
    %188 = arith.negf %187 : vector<8x128xf32>
    %189 = math.exp %188 : vector<8x128xf32>
    %cst_88 = arith.constant 1.000000e+00 : f32
    %190 = vector.broadcast %cst_88 : f32 to vector<8x128xf32>
    %191 = arith.addf %190, %189 : vector<8x128xf32>
    %192 = arith.divf %190, %191 : vector<8x128xf32>
    %c0_89 = arith.constant 0 : index
    %c0_90 = arith.constant 0 : index
    %193 = vector.load %arg12[%c0_89, %c0_90] : memref<8x128xf32, #tpu.memory_space<vmem>>, vector<8x128xf32>
    %194 = arith.mulf %184, %193 : vector<8x128xf32>
    %195 = arith.mulf %178, %186 : vector<8x128xf32>
    %196 = arith.addf %194, %195 : vector<8x128xf32>
    %197 = math.tanh %196 : vector<8x128xf32>
    %198 = arith.mulf %192, %197 : vector<8x128xf32>
    %c0_91 = arith.constant 0 : index
    %c0_92 = arith.constant 0 : index
    %199 = vector.load %arg12[%c0_91, %c0_92] : memref<8x128xf32, #tpu.memory_space<vmem>>, vector<8x128xf32>
    tpu.vector_store %arg12[%c0_91, %c0_92], %196 {strides = array<i32>} : memref<8x128xf32, #tpu.memory_space<vmem>>, vector<8x128xf32>,
    %c0_93 = arith.constant 0 : index
    %c0_94 = arith.constant 0 : index
    %200 = vector.load %arg11[%c0_93, %c0_94] : memref<8x128xf32, #tpu.memory_space<vmem>>, vector<8x128xf32>
    tpu.vector_store %arg11[%c0_93, %c0_94], %198 {strides = array<i32>} : memref<8x128xf32, #tpu.memory_space<vmem>>, vector<8x128xf32>,
    %201 = arith.extui %7 : i1 to i32
    %c0_i32_95 = arith.constant 0 : i32
    %202 = arith.cmpi ne, %201, %c0_i32_95 : i32
    scf.if %202 {
      %c0_153 = arith.constant 0 : index
      %c0_154 = arith.constant 0 : index
      %c0_155 = arith.constant 0 : index
      %323 = vector.load %arg4[%c0_153, %c0_154, %c0_155] : memref<1x128x512xf32, #tpu.memory_space<vmem>>, vector<1x128x512xf32>
      %324 = vector.shape_cast %323 : vector<1x128x512xf32> to vector<128x512xf32>
      %cst_156 = arith.constant dense<0.000000e+00> : vector<8x512xf32>
      %325 = tpu.matmul %198, %324, %cst_156 {dimension_numbers = #tpu.dot_dimension_numbers<[1], [0], [0], [1], [0, 0, 1, 1], [], []>} : vector<8x128xf32>, vector<128x512xf32>, vector<8x512xf32> -> vector<8x512xf32>
      %c0_157 = arith.constant 0 : index
      %c0_158 = arith.constant 0 : index
      %c0_159 = arith.constant 0 : index
      %326 = vector.load %arg5[%c0_157, %c0_158, %c0_159] : memref<1x1x512xf32, #tpu.memory_space<vmem>>, vector<1x1x512xf32>
      %327 = vector.shape_cast %326 : vector<1x1x512xf32> to vector<1x512xf32>
      %328 = vector.broadcast %327 : vector<1x512xf32> to vector<8x512xf32>
      %329 = arith.addf %325, %328 : vector<8x512xf32>
      %330 = arith.index_cast %165 : i32 to index
      %c0_160 = arith.constant 0 : index
      %331 = vector.load %arg10[%330, %c0_160] : memref<64x512xf32, #tpu.memory_space<vmem>>, vector<8x512xf32>
      tpu.vector_store %arg10[%330, %c0_160], %329 {strides = array<i32>} : memref<64x512xf32, #tpu.memory_space<vmem>>, vector<8x512xf32>,
    } else {
    }
    %c5_i32 = arith.constant 5 : i32
    %c8_i32_96 = arith.constant 8 : i32
    %203 = arith.muli %c5_i32, %c8_i32_96 : i32
    %204 = tpu.assume_multiple %203, 8 : i32
    %c0_97 = arith.constant 0 : index
    %c0_98 = arith.constant 0 : index
    %205 = vector.load %arg11[%c0_97, %c0_98] : memref<8x128xf32, #tpu.memory_space<vmem>>, vector<8x128xf32>
    %206 = arith.index_cast %204 : i32 to index
    %c0_99 = arith.constant 0 : index
    %207 = vector.load %arg10[%206, %c0_99] : memref<64x512xf32, #tpu.memory_space<vmem>>, vector<8x512xf32>
    %c0_100 = arith.constant 0 : index
    %c0_101 = arith.constant 0 : index
    %c0_102 = arith.constant 0 : index
    %208 = vector.load %arg6[%c0_100, %c0_101, %c0_102] : memref<1x128x512xf32, #tpu.memory_space<vmem>>, vector<1x128x512xf32>
    %209 = vector.shape_cast %208 : vector<1x128x512xf32> to vector<128x512xf32>
    %cst_103 = arith.constant dense<0.000000e+00> : vector<8x512xf32>
    %210 = tpu.matmul %205, %209, %cst_103 {dimension_numbers = #tpu.dot_dimension_numbers<[1], [0], [0], [1], [0, 0, 1, 1], [], []>} : vector<8x128xf32>, vector<128x512xf32>, vector<8x512xf32> -> vector<8x512xf32>
    %211 = arith.addf %207, %210 : vector<8x512xf32>
    %212 = vector.extract_strided_slice %211 {offsets = [0, 0], sizes = [8, 128], strides = [1, 1]} : vector<8x512xf32> to vector<8x128xf32>
    %213 = arith.negf %212 : vector<8x128xf32>
    %214 = math.exp %213 : vector<8x128xf32>
    %cst_104 = arith.constant 1.000000e+00 : f32
    %215 = vector.broadcast %cst_104 : f32 to vector<8x128xf32>
    %216 = arith.addf %215, %214 : vector<8x128xf32>
    %217 = arith.divf %215, %216 : vector<8x128xf32>
    %218 = vector.extract_strided_slice %211 {offsets = [0, 128], sizes = [8, 128], strides = [1, 1]} : vector<8x512xf32> to vector<8x128xf32>
    %219 = arith.negf %218 : vector<8x128xf32>
    %220 = math.exp %219 : vector<8x128xf32>
    %cst_105 = arith.constant 1.000000e+00 : f32
    %221 = vector.broadcast %cst_105 : f32 to vector<8x128xf32>
    %222 = arith.addf %221, %220 : vector<8x128xf32>
    %223 = arith.divf %221, %222 : vector<8x128xf32>
    %224 = vector.extract_strided_slice %211 {offsets = [0, 256], sizes = [8, 128], strides = [1, 1]} : vector<8x512xf32> to vector<8x128xf32>
    %225 = math.tanh %224 : vector<8x128xf32>
    %226 = vector.extract_strided_slice %211 {offsets = [0, 384], sizes = [8, 128], strides = [1, 1]} : vector<8x512xf32> to vector<8x128xf32>
    %227 = arith.negf %226 : vector<8x128xf32>
    %228 = math.exp %227 : vector<8x128xf32>
    %cst_106 = arith.constant 1.000000e+00 : f32
    %229 = vector.broadcast %cst_106 : f32 to vector<8x128xf32>
    %230 = arith.addf %229, %228 : vector<8x128xf32>
    %231 = arith.divf %229, %230 : vector<8x128xf32>
    %c0_107 = arith.constant 0 : index
    %c0_108 = arith.constant 0 : index
    %232 = vector.load %arg12[%c0_107, %c0_108] : memref<8x128xf32, #tpu.memory_space<vmem>>, vector<8x128xf32>
    %233 = arith.mulf %223, %232 : vector<8x128xf32>
    %234 = arith.mulf %217, %225 : vector<8x128xf32>
    %235 = arith.addf %233, %234 : vector<8x128xf32>
    %236 = math.tanh %235 : vector<8x128xf32>
    %237 = arith.mulf %231, %236 : vector<8x128xf32>
    %c0_109 = arith.constant 0 : index
    %c0_110 = arith.constant 0 : index
    %238 = vector.load %arg12[%c0_109, %c0_110] : memref<8x128xf32, #tpu.memory_space<vmem>>, vector<8x128xf32>
    tpu.vector_store %arg12[%c0_109, %c0_110], %235 {strides = array<i32>} : memref<8x128xf32, #tpu.memory_space<vmem>>, vector<8x128xf32>,
    %c0_111 = arith.constant 0 : index
    %c0_112 = arith.constant 0 : index
    %239 = vector.load %arg11[%c0_111, %c0_112] : memref<8x128xf32, #tpu.memory_space<vmem>>, vector<8x128xf32>
    tpu.vector_store %arg11[%c0_111, %c0_112], %237 {strides = array<i32>} : memref<8x128xf32, #tpu.memory_space<vmem>>, vector<8x128xf32>,
    %240 = arith.extui %7 : i1 to i32
    %c0_i32_113 = arith.constant 0 : i32
    %241 = arith.cmpi ne, %240, %c0_i32_113 : i32
    scf.if %241 {
      %c0_153 = arith.constant 0 : index
      %c0_154 = arith.constant 0 : index
      %c0_155 = arith.constant 0 : index
      %323 = vector.load %arg4[%c0_153, %c0_154, %c0_155] : memref<1x128x512xf32, #tpu.memory_space<vmem>>, vector<1x128x512xf32>
      %324 = vector.shape_cast %323 : vector<1x128x512xf32> to vector<128x512xf32>
      %cst_156 = arith.constant dense<0.000000e+00> : vector<8x512xf32>
      %325 = tpu.matmul %237, %324, %cst_156 {dimension_numbers = #tpu.dot_dimension_numbers<[1], [0], [0], [1], [0, 0, 1, 1], [], []>} : vector<8x128xf32>, vector<128x512xf32>, vector<8x512xf32> -> vector<8x512xf32>
      %c0_157 = arith.constant 0 : index
      %c0_158 = arith.constant 0 : index
      %c0_159 = arith.constant 0 : index
      %326 = vector.load %arg5[%c0_157, %c0_158, %c0_159] : memref<1x1x512xf32, #tpu.memory_space<vmem>>, vector<1x1x512xf32>
      %327 = vector.shape_cast %326 : vector<1x1x512xf32> to vector<1x512xf32>
      %328 = vector.broadcast %327 : vector<1x512xf32> to vector<8x512xf32>
      %329 = arith.addf %325, %328 : vector<8x512xf32>
      %330 = arith.index_cast %204 : i32 to index
      %c0_160 = arith.constant 0 : index
      %331 = vector.load %arg10[%330, %c0_160] : memref<64x512xf32, #tpu.memory_space<vmem>>, vector<8x512xf32>
      tpu.vector_store %arg10[%330, %c0_160], %329 {strides = array<i32>} : memref<64x512xf32, #tpu.memory_space<vmem>>, vector<8x512xf32>,
    } else {
    }
    %c6_i32 = arith.constant 6 : i32
    %c8_i32_114 = arith.constant 8 : i32
    %242 = arith.muli %c6_i32, %c8_i32_114 : i32
    %243 = tpu.assume_multiple %242, 8 : i32
    %c0_115 = arith.constant 0 : index
    %c0_116 = arith.constant 0 : index
    %244 = vector.load %arg11[%c0_115, %c0_116] : memref<8x128xf32, #tpu.memory_space<vmem>>, vector<8x128xf32>
    %245 = arith.index_cast %243 : i32 to index
    %c0_117 = arith.constant 0 : index
    %246 = vector.load %arg10[%245, %c0_117] : memref<64x512xf32, #tpu.memory_space<vmem>>, vector<8x512xf32>
    %c0_118 = arith.constant 0 : index
    %c0_119 = arith.constant 0 : index
    %c0_120 = arith.constant 0 : index
    %247 = vector.load %arg6[%c0_118, %c0_119, %c0_120] : memref<1x128x512xf32, #tpu.memory_space<vmem>>, vector<1x128x512xf32>
    %248 = vector.shape_cast %247 : vector<1x128x512xf32> to vector<128x512xf32>
    %cst_121 = arith.constant dense<0.000000e+00> : vector<8x512xf32>
    %249 = tpu.matmul %244, %248, %cst_121 {dimension_numbers = #tpu.dot_dimension_numbers<[1], [0], [0], [1], [0, 0, 1, 1], [], []>} : vector<8x128xf32>, vector<128x512xf32>, vector<8x512xf32> -> vector<8x512xf32>
    %250 = arith.addf %246, %249 : vector<8x512xf32>
    %251 = vector.extract_strided_slice %250 {offsets = [0, 0], sizes = [8, 128], strides = [1, 1]} : vector<8x512xf32> to vector<8x128xf32>
    %252 = arith.negf %251 : vector<8x128xf32>
    %253 = math.exp %252 : vector<8x128xf32>
    %cst_122 = arith.constant 1.000000e+00 : f32
    %254 = vector.broadcast %cst_122 : f32 to vector<8x128xf32>
    %255 = arith.addf %254, %253 : vector<8x128xf32>
    %256 = arith.divf %254, %255 : vector<8x128xf32>
    %257 = vector.extract_strided_slice %250 {offsets = [0, 128], sizes = [8, 128], strides = [1, 1]} : vector<8x512xf32> to vector<8x128xf32>
    %258 = arith.negf %257 : vector<8x128xf32>
    %259 = math.exp %258 : vector<8x128xf32>
    %cst_123 = arith.constant 1.000000e+00 : f32
    %260 = vector.broadcast %cst_123 : f32 to vector<8x128xf32>
    %261 = arith.addf %260, %259 : vector<8x128xf32>
    %262 = arith.divf %260, %261 : vector<8x128xf32>
    %263 = vector.extract_strided_slice %250 {offsets = [0, 256], sizes = [8, 128], strides = [1, 1]} : vector<8x512xf32> to vector<8x128xf32>
    %264 = math.tanh %263 : vector<8x128xf32>
    %265 = vector.extract_strided_slice %250 {offsets = [0, 384], sizes = [8, 128], strides = [1, 1]} : vector<8x512xf32> to vector<8x128xf32>
    %266 = arith.negf %265 : vector<8x128xf32>
    %267 = math.exp %266 : vector<8x128xf32>
    %cst_124 = arith.constant 1.000000e+00 : f32
    %268 = vector.broadcast %cst_124 : f32 to vector<8x128xf32>
    %269 = arith.addf %268, %267 : vector<8x128xf32>
    %270 = arith.divf %268, %269 : vector<8x128xf32>
    %c0_125 = arith.constant 0 : index
    %c0_126 = arith.constant 0 : index
    %271 = vector.load %arg12[%c0_125, %c0_126] : memref<8x128xf32, #tpu.memory_space<vmem>>, vector<8x128xf32>
    %272 = arith.mulf %262, %271 : vector<8x128xf32>
    %273 = arith.mulf %256, %264 : vector<8x128xf32>
    %274 = arith.addf %272, %273 : vector<8x128xf32>
    %275 = math.tanh %274 : vector<8x128xf32>
    %276 = arith.mulf %270, %275 : vector<8x128xf32>
    %c0_127 = arith.constant 0 : index
    %c0_128 = arith.constant 0 : index
    %277 = vector.load %arg12[%c0_127, %c0_128] : memref<8x128xf32, #tpu.memory_space<vmem>>, vector<8x128xf32>
    tpu.vector_store %arg12[%c0_127, %c0_128], %274 {strides = array<i32>} : memref<8x128xf32, #tpu.memory_space<vmem>>, vector<8x128xf32>,
    %c0_129 = arith.constant 0 : index
    %c0_130 = arith.constant 0 : index
    %278 = vector.load %arg11[%c0_129, %c0_130] : memref<8x128xf32, #tpu.memory_space<vmem>>, vector<8x128xf32>
    tpu.vector_store %arg11[%c0_129, %c0_130], %276 {strides = array<i32>} : memref<8x128xf32, #tpu.memory_space<vmem>>, vector<8x128xf32>,
    %279 = arith.extui %7 : i1 to i32
    %c0_i32_131 = arith.constant 0 : i32
    %280 = arith.cmpi ne, %279, %c0_i32_131 : i32
    scf.if %280 {
      %c0_153 = arith.constant 0 : index
      %c0_154 = arith.constant 0 : index
      %c0_155 = arith.constant 0 : index
      %323 = vector.load %arg4[%c0_153, %c0_154, %c0_155] : memref<1x128x512xf32, #tpu.memory_space<vmem>>, vector<1x128x512xf32>
      %324 = vector.shape_cast %323 : vector<1x128x512xf32> to vector<128x512xf32>
      %cst_156 = arith.constant dense<0.000000e+00> : vector<8x512xf32>
      %325 = tpu.matmul %276, %324, %cst_156 {dimension_numbers = #tpu.dot_dimension_numbers<[1], [0], [0], [1], [0, 0, 1, 1], [], []>} : vector<8x128xf32>, vector<128x512xf32>, vector<8x512xf32> -> vector<8x512xf32>
      %c0_157 = arith.constant 0 : index
      %c0_158 = arith.constant 0 : index
      %c0_159 = arith.constant 0 : index
      %326 = vector.load %arg5[%c0_157, %c0_158, %c0_159] : memref<1x1x512xf32, #tpu.memory_space<vmem>>, vector<1x1x512xf32>
      %327 = vector.shape_cast %326 : vector<1x1x512xf32> to vector<1x512xf32>
      %328 = vector.broadcast %327 : vector<1x512xf32> to vector<8x512xf32>
      %329 = arith.addf %325, %328 : vector<8x512xf32>
      %330 = arith.index_cast %243 : i32 to index
      %c0_160 = arith.constant 0 : index
      %331 = vector.load %arg10[%330, %c0_160] : memref<64x512xf32, #tpu.memory_space<vmem>>, vector<8x512xf32>
      tpu.vector_store %arg10[%330, %c0_160], %329 {strides = array<i32>} : memref<64x512xf32, #tpu.memory_space<vmem>>, vector<8x512xf32>,
    } else {
    }
    %c7_i32 = arith.constant 7 : i32
    %c8_i32_132 = arith.constant 8 : i32
    %281 = arith.muli %c7_i32, %c8_i32_132 : i32
    %282 = tpu.assume_multiple %281, 8 : i32
    %c0_133 = arith.constant 0 : index
    %c0_134 = arith.constant 0 : index
    %283 = vector.load %arg11[%c0_133, %c0_134] : memref<8x128xf32, #tpu.memory_space<vmem>>, vector<8x128xf32>
    %284 = arith.index_cast %282 : i32 to index
    %c0_135 = arith.constant 0 : index
    %285 = vector.load %arg10[%284, %c0_135] : memref<64x512xf32, #tpu.memory_space<vmem>>, vector<8x512xf32>
    %c0_136 = arith.constant 0 : index
    %c0_137 = arith.constant 0 : index
    %c0_138 = arith.constant 0 : index
    %286 = vector.load %arg6[%c0_136, %c0_137, %c0_138] : memref<1x128x512xf32, #tpu.memory_space<vmem>>, vector<1x128x512xf32>
    %287 = vector.shape_cast %286 : vector<1x128x512xf32> to vector<128x512xf32>
    %cst_139 = arith.constant dense<0.000000e+00> : vector<8x512xf32>
    %288 = tpu.matmul %283, %287, %cst_139 {dimension_numbers = #tpu.dot_dimension_numbers<[1], [0], [0], [1], [0, 0, 1, 1], [], []>} : vector<8x128xf32>, vector<128x512xf32>, vector<8x512xf32> -> vector<8x512xf32>
    %289 = arith.addf %285, %288 : vector<8x512xf32>
    %290 = vector.extract_strided_slice %289 {offsets = [0, 0], sizes = [8, 128], strides = [1, 1]} : vector<8x512xf32> to vector<8x128xf32>
    %291 = arith.negf %290 : vector<8x128xf32>
    %292 = math.exp %291 : vector<8x128xf32>
    %cst_140 = arith.constant 1.000000e+00 : f32
    %293 = vector.broadcast %cst_140 : f32 to vector<8x128xf32>
    %294 = arith.addf %293, %292 : vector<8x128xf32>
    %295 = arith.divf %293, %294 : vector<8x128xf32>
    %296 = vector.extract_strided_slice %289 {offsets = [0, 128], sizes = [8, 128], strides = [1, 1]} : vector<8x512xf32> to vector<8x128xf32>
    %297 = arith.negf %296 : vector<8x128xf32>
    %298 = math.exp %297 : vector<8x128xf32>
    %cst_141 = arith.constant 1.000000e+00 : f32
    %299 = vector.broadcast %cst_141 : f32 to vector<8x128xf32>
    %300 = arith.addf %299, %298 : vector<8x128xf32>
    %301 = arith.divf %299, %300 : vector<8x128xf32>
    %302 = vector.extract_strided_slice %289 {offsets = [0, 256], sizes = [8, 128], strides = [1, 1]} : vector<8x512xf32> to vector<8x128xf32>
    %303 = math.tanh %302 : vector<8x128xf32>
    %304 = vector.extract_strided_slice %289 {offsets = [0, 384], sizes = [8, 128], strides = [1, 1]} : vector<8x512xf32> to vector<8x128xf32>
    %305 = arith.negf %304 : vector<8x128xf32>
    %306 = math.exp %305 : vector<8x128xf32>
    %cst_142 = arith.constant 1.000000e+00 : f32
    %307 = vector.broadcast %cst_142 : f32 to vector<8x128xf32>
    %308 = arith.addf %307, %306 : vector<8x128xf32>
    %309 = arith.divf %307, %308 : vector<8x128xf32>
    %c0_143 = arith.constant 0 : index
    %c0_144 = arith.constant 0 : index
    %310 = vector.load %arg12[%c0_143, %c0_144] : memref<8x128xf32, #tpu.memory_space<vmem>>, vector<8x128xf32>
    %311 = arith.mulf %301, %310 : vector<8x128xf32>
    %312 = arith.mulf %295, %303 : vector<8x128xf32>
    %313 = arith.addf %311, %312 : vector<8x128xf32>
    %314 = math.tanh %313 : vector<8x128xf32>
    %315 = arith.mulf %309, %314 : vector<8x128xf32>
    %c0_145 = arith.constant 0 : index
    %c0_146 = arith.constant 0 : index
    %316 = vector.load %arg12[%c0_145, %c0_146] : memref<8x128xf32, #tpu.memory_space<vmem>>, vector<8x128xf32>
    tpu.vector_store %arg12[%c0_145, %c0_146], %313 {strides = array<i32>} : memref<8x128xf32, #tpu.memory_space<vmem>>, vector<8x128xf32>,
    %c0_147 = arith.constant 0 : index
    %c0_148 = arith.constant 0 : index
    %317 = vector.load %arg11[%c0_147, %c0_148] : memref<8x128xf32, #tpu.memory_space<vmem>>, vector<8x128xf32>
    tpu.vector_store %arg11[%c0_147, %c0_148], %315 {strides = array<i32>} : memref<8x128xf32, #tpu.memory_space<vmem>>, vector<8x128xf32>,
    %318 = arith.extui %7 : i1 to i32
    %c0_i32_149 = arith.constant 0 : i32
    %319 = arith.cmpi ne, %318, %c0_i32_149 : i32
    scf.if %319 {
      %c0_153 = arith.constant 0 : index
      %c0_154 = arith.constant 0 : index
      %c0_155 = arith.constant 0 : index
      %323 = vector.load %arg4[%c0_153, %c0_154, %c0_155] : memref<1x128x512xf32, #tpu.memory_space<vmem>>, vector<1x128x512xf32>
      %324 = vector.shape_cast %323 : vector<1x128x512xf32> to vector<128x512xf32>
      %cst_156 = arith.constant dense<0.000000e+00> : vector<8x512xf32>
      %325 = tpu.matmul %315, %324, %cst_156 {dimension_numbers = #tpu.dot_dimension_numbers<[1], [0], [0], [1], [0, 0, 1, 1], [], []>} : vector<8x128xf32>, vector<128x512xf32>, vector<8x512xf32> -> vector<8x512xf32>
      %c0_157 = arith.constant 0 : index
      %c0_158 = arith.constant 0 : index
      %c0_159 = arith.constant 0 : index
      %326 = vector.load %arg5[%c0_157, %c0_158, %c0_159] : memref<1x1x512xf32, #tpu.memory_space<vmem>>, vector<1x1x512xf32>
      %327 = vector.shape_cast %326 : vector<1x1x512xf32> to vector<1x512xf32>
      %328 = vector.broadcast %327 : vector<1x512xf32> to vector<8x512xf32>
      %329 = arith.addf %325, %328 : vector<8x512xf32>
      %330 = arith.index_cast %282 : i32 to index
      %c0_160 = arith.constant 0 : index
      %331 = vector.load %arg10[%330, %c0_160] : memref<64x512xf32, #tpu.memory_space<vmem>>, vector<8x512xf32>
      tpu.vector_store %arg10[%330, %c0_160], %329 {strides = array<i32>} : memref<64x512xf32, #tpu.memory_space<vmem>>, vector<8x512xf32>,
    } else {
    }
    %c8_i32_150 = arith.constant 8 : i32
    %c1_i32_151 = arith.constant 1 : i32
    %320 = arith.cmpi eq, %arg0, %c1_i32_151 : i32
    %321 = arith.extui %320 : i1 to i32
    %c0_i32_152 = arith.constant 0 : i32
    %322 = arith.cmpi ne, %321, %c0_i32_152 : i32
    scf.if %322 {
      %c0_153 = arith.constant 0 : index
      %c0_154 = arith.constant 0 : index
      %323 = vector.load %arg11[%c0_153, %c0_154] : memref<8x128xf32, #tpu.memory_space<vmem>>, vector<8x128xf32>
      %c0_155 = arith.constant 0 : index
      %c0_156 = arith.constant 0 : index
      %324 = vector.load %arg7[%c0_155, %c0_156] : memref<128x128xf32, #tpu.memory_space<vmem>>, vector<128x128xf32>
      %cst_157 = arith.constant dense<0.000000e+00> : vector<8x128xf32>
      %325 = tpu.matmul %323, %324, %cst_157 {dimension_numbers = #tpu.dot_dimension_numbers<[1], [0], [0], [1], [0, 0, 1, 1], [], []>} : vector<8x128xf32>, vector<128x128xf32>, vector<8x128xf32> -> vector<8x128xf32>
      %c0_158 = arith.constant 0 : index
      %c0_159 = arith.constant 0 : index
      %326 = vector.load %arg8[%c0_158, %c0_159] : memref<1x128xf32, #tpu.memory_space<vmem>>, vector<1x128xf32>
      %327 = vector.broadcast %326 : vector<1x128xf32> to vector<8x128xf32>
      %328 = arith.addf %325, %327 : vector<8x128xf32>
      %c0_160 = arith.constant 0 : index
      %c0_161 = arith.constant 0 : index
      %329 = vector.load %arg9[%c0_160, %c0_161] : memref<8x128xf32, #tpu.memory_space<vmem>>, vector<8x128xf32>
      tpu.vector_store %arg9[%c0_160, %c0_161], %328 {strides = array<i32>} : memref<8x128xf32, #tpu.memory_space<vmem>>, vector<8x128xf32>,
    } else {
    }
    return
  }
  func.func @transform_0(%arg0: i32) -> (i32, i32) {
    %c0_i32 = arith.constant 0 : i32
    %c0_i32_0 = arith.constant 0 : i32
    %c0_i32_1 = arith.constant 0 : i32
    return %c0_i32, %c0_i32_0 : i32, i32
  }
  func.func @transform_1(%arg0: i32) -> (i32, i32) {
    %c0_i32 = arith.constant 0 : i32
    %c0_i32_0 = arith.constant 0 : i32
    %c0_i32_1 = arith.constant 0 : i32
    return %c0_i32, %c0_i32_0 : i32, i32
  }
  func.func @transform_2(%arg0: i32) -> (i32, i32) {
    %c0_i32 = arith.constant 0 : i32
    %c0_i32_0 = arith.constant 0 : i32
    %c0_i32_1 = arith.constant 0 : i32
    return %c0_i32, %c0_i32_0 : i32, i32
  }
  func.func @transform_3(%arg0: i32) -> (i32, i32, i32) {
    %c0_i32 = arith.constant 0 : i32
    %0 = arith.minsi %arg0, %c0_i32 : i32
    %c0_i32_0 = arith.constant 0 : i32
    %c0_i32_1 = arith.constant 0 : i32
    %c0_i32_2 = arith.constant 0 : i32
    return %0, %c0_i32_0, %c0_i32_1 : i32, i32, i32
  }
  func.func @transform_4(%arg0: i32) -> (i32, i32, i32) {
    %c0_i32 = arith.constant 0 : i32
    %0 = arith.minsi %arg0, %c0_i32 : i32
    %c0_i32_0 = arith.constant 0 : i32
    %c0_i32_1 = arith.constant 0 : i32
    %c0_i32_2 = arith.constant 0 : i32
    return %0, %c0_i32_0, %c0_i32_1 : i32, i32, i32
  }
  func.func @transform_5(%arg0: i32) -> (i32, i32, i32) {
    %c0_i32 = arith.constant 0 : i32
    %c0_i32_0 = arith.constant 0 : i32
    %c0_i32_1 = arith.constant 0 : i32
    return %arg0, %c0_i32, %c0_i32_0 : i32, i32, i32
  }
  func.func @transform_6(%arg0: i32) -> (i32, i32) {
    %c0_i32 = arith.constant 0 : i32
    %c0_i32_0 = arith.constant 0 : i32
    %c0_i32_1 = arith.constant 0 : i32
    return %c0_i32, %c0_i32_0 : i32, i32
  }
  func.func @transform_7(%arg0: i32) -> (i32, i32) {
    %c0_i32 = arith.constant 0 : i32
    %c0_i32_0 = arith.constant 0 : i32
    %c0_i32_1 = arith.constant 0 : i32
    return %c0_i32, %c0_i32_0 : i32, i32
  }
  func.func @transform_8(%arg0: i32) -> (i32, i32) {
    %c0_i32 = arith.constant 0 : i32
    %c0_i32_0 = arith.constant 0 : i32
    %c0_i32_1 = arith.constant 0 : i32
    return %c0_i32, %c0_i32_0 : i32, i32
  }
}

</mosaic_0001>

<bundles_post_ra>
// kernel: lstm_model_forward.1
= control target key start
LH: loop header
LB: loop body
LE: loop exit
PB: predicated region body
PF: predicated region fallthrough
CT: control target
= control target key end

     0   :  { %s8024_s0 = inlined_call_operand.vmem [shape: f32[64,128], index: 0, kind: input, shape index: {}]   ;;  %s8025_s1 = inlined_call_operand.hbm [shape: f32[128,512], index: 1, kind: input, shape index: {}]   ;;  %s8026_s2 = inlined_call_operand.vmem [shape: f32[1,512], index: 2, kind: input, shape index: {}]   ;;  %s8027_s3 = inlined_call_operand.hbm [shape: f32[1,128,512], index: 3, kind: input, shape index: {}]   ;;  %s8028_s4 = inlined_call_operand.vmem [shape: f32[1,1,512], index: 4, kind: input, shape index: {}]   ;;  %s8029_s5 = inlined_call_operand.hbm [shape: f32[2,128,512], index: 5, kind: input, shape index: {}]   ;;  %s8030_s6 = inlined_call_operand.hbm [shape: f32[128,128], index: 6, kind: input, shape index: {}]   ;;  %s8031_s7 = inlined_call_operand.vmem [shape: f32[1,128], index: 7, kind: input, shape index: {}]   ;;  %s8032_s8 = inlined_call_operand.vmem [shape: f32[8,128], index: 8, kind: output, shape index: {}]  }
   0x1   :  { %8046 = sst [smem:[#allocation19_spill]] %s8025_s1 }
   0x2   :  { %8047 = sst [smem:[#allocation20_spill]] %s8027_s3 }
   0x3   :  { %8048 = sst [smem:[#allocation21_spill]] %s8031_s7 }
   0x4   :  { %8049 = sst [smem:[#allocation22_spill]] %s8032_s8 }
   0x5   :  { %13 = vsyncpa [#allocation6], 0 }
   0x6   :  { %14 = vsyncpa [#allocation8], 0 }
   0x7   :  { %16 = vsyncpa [#allocation8 + $0x1], 0 }
   0x8   :  { %17 = vsyncpa [#allocation11], 0  ;;  %s6526_s27 = smov 0   ;;  %s6528_s28 = smov 0  }
   0x9   :  { %s6530_s29 = smov 0   ;;  %s6532_s30 = smov 0  }
   0xa   :  { %s6534_s9 = smov 0   ;;  %s6536_s10 = smov 0  }
   0xb   :  { %s6538_s11 = smov 0  }
   0xc LB: > { %8050 = sst [smem:[#allocation16_spill]] %s6454_s10  ;;  %s6562_s12 = sadd.s32 1, %s6458_s11   ;;  %s6458_s11 = sphi %s6538_s11, %s8077_s11   ;;  %s6454_s10 = sphi %s6536_s10, %s8080_s10   ;;  %s6450_s9 = sphi %s6534_s9, %s8085_s9   ;;  %s6446_s30 = sphi %s6532_s30, %s8084_s30   ;;  %s6442_s29 = sphi %s6530_s29, %s8083_s29   ;;  %s6438_s28 = sphi %s6528_s28, %s8082_s28   ;;  %s6434_s27 = sphi %s6526_s27, %s8081_s27  }
   0xd   : > { %8051 = sst [smem:[#allocation17_spill]] %s6562_s12  ;;  %p90_p0 = scmp.lt.s32.totalorder %s6458_s11, 0 }
   0xe   : > { %p92_p1 = scmp.lt.s32.totalorder %s6562_s12, 0  ;;  %s97_s13 = sadd.s32 1, %s6454_s10 }
   0xf   : > { %s91_s14 = scalar_select %p90_p0, %s6458_s11, 0 }
  0x10   : > { %s93_s15 = scalar_select %p92_p1, %s6562_s12, 0 }
  0x11   : > { %p104_p2 = scmp.ne.s32.totalorder %s6454_s10, %s6450_s9  ;;  %p8034_p3 = scmp.eq.s32.totalorder %s6458_s11, 0 }
  0x12   : > { %s94_s16 = ssub.s32 %s91_s14, %s93_s15  ;;  %s150_s17 = ssub.s32 %s6458_s11, %s6562_s12 }
  0x13   : > { %p95_p4 = scmp.eq.s32.totalorder %s94_s16, 0  ;;  %p106_p5 = por %p8034_p3, %p104_p2 }
  0x14   : > { %p6576_p6 = scmp.eq.s32.totalorder %s150_s17, 0  ;;  %p8033_p7 = scmp.lt.s32.totalorder %s6458_s11, 2 }
  0x15   : > { %s6581_s19 = scalar_select %p95_p4, %s6454_s10, %s97_s13  }
  0x16   : > { %s8052_s18 = scalar_select %p6576_p6, 1, 0 }
  0x17   : > { %8053 = sst [smem:[#allocation18_spill]] %s6581_s19  ;;  %s288_s20 = sand.u32 1, %s6458_s11  }
  0x18   : > { %s290_s21 = sand.u32 1, %s6454_s10   ;;  %s4872_s23 = sshll.u32 %s91_s14, 13 }
  0x19   : > { %s4820_s22 = sshll.u32 %s290_s21, 9  ;;  %s8054_s3 = sld [smem:[#allocation20_spill]] }
  0x1a   : > { %s292_s15 = scalar_lea.vmem [#allocation7], %s4820_s22  ;;  %p6593_p8 = pnand %p8033_p7, %p106_p5 }
  0x1b   : > { %s301_s16 = sshll.u32 %s292_s15, 4  ;;  %s6599_s14 = scalar_lea.sflag [#allocation8], %s288_s20  ;;  %s6597_s16 = int_to_ptr.vmem [resolvable:$true] %s301_s16 }
  0x1c   : > { %p6274_p10 = pneg %p6593_p8 }
  0x1f   : > { %s6589_s26 = scalar_lea.hbm %s8054_s3, %s4872_s23  ;;  %s6277_s23 = scalar_lea.hbm %s8054_s3, 8192 }
  0x20   : > { %s6272_s17 = scalar_lea.hbm %s6589_s26, 8192  ;;  %p6278_p13 = scmp.lt.u32.totalorder %s6589_s26, %s8054_s3 }
  0x21   : > { %p6273_p9 = scmp.ne.s32.totalorder %s6589_s26, %s6272_s17  ;;  %p6279_p0 = scmp.lt.u32.totalorder %s6277_s23, %s6272_s17 }
  0x22   : > { %p6281_p2 = scmp.lt.u32.totalorder %s6272_s17, %s6589_s26 }
  0x23   : > { %p6275_p11 = pnand %p6274_p10, %p6273_p9  ;;  %p6280_p1 = por %p6279_p0, %p6278_p13 }
  0x25   : > { %p6276_p12 = pneg %p6275_p11  ;;  %p6282_p4 = por %p6281_p2, %p6280_p1 }
  0x27   : > { %p6283_p5 = pnand %p6282_p4, %p6276_p12 }
  0x29   : > { %6286 = shalt.err (!%p6283_p5)
}
  0x2a   : > { %s6287_s20 = scalar_lea.vmem %s6597_s16, 8192  ;;  %s6460_s15 = smov [#allocation7]  }
  0x2b   : > { %p6288_p9 = scmp.ne.s32.totalorder %s6597_s16, %s6287_s20  ;;  %s6292_s21 = sshll.u32 %s6460_s15, 4  ;;  %s6293_s21 = int_to_ptr.vmem [resolvable:$false] %s6292_s21 }
  0x2c   : > { %s6294_s22 = scalar_lea.vmem %s6293_s21, 16384  ;;  %p6295_p3 = scmp.lt.s32.totalorder %s6597_s16, %s6293_s21 }
  0x2d   : > { %p6290_p11 = pnand %p6288_p9, %p6274_p10  ;;  %p6296_p13 = scmp.lt.s32.totalorder %s6294_s22, %s6287_s20 }
  0x2f   : > { %p6291_p7 = pneg %p6290_p11  ;;  %p6297_p0 = por %p6296_p13, %p6295_p3 }
  0x31   : > { %p6298_p1 = pnand %p6297_p0, %p6291_p7 }
  0x33   : > { %6301 = shalt.err (!%p6298_p1)
}
  0x34   : > { %s8035_s17 = smov 512   ;;  %s8037_s23 = smov 32  }
  0x35   : > { %6060 = dma.hbm_to_vmem [thread:$0]  (!%p6593_p8), %s6589_s26, 8192, %s6597_s16, %s6599_s14, %s8035_s17, %s8035_s17, %s8037_s23  }
  0x36   : > { %s6631_s24 = sadd.s32 4294967295, %s6458_s11   ;;  %p110_p3 = scmp.ne.s32.totalorder %s6450_s9, %s6446_s30 }
  0x37   : > { %p8039_p7 = scmp.eq.s32.totalorder %s6631_s24, 0  ;;  %p166_p10 = scmp.ne.s32.totalorder %s6438_s28, %s6434_s27 }
  0x38   : > { %p4816_p12 = scmp.ge.s32.totalorder %s6458_s11, 1  ;;  %p240_p2 = scmp.lt.s32.totalorder %s6458_s11, 3 }
  0x39   : > { %p6642_p4 = por %p8039_p7, %p110_p3  ;;  %p6648_p5 = por %p166_p10, %p8039_p7 }
  0x3a   : > { %p6652_p8 = pnand %p4816_p12, %p240_p2  ;;  %s6463_s27 = smov [#allocation5]  }
  0x3b   : > { %s8056_s25 = scalar_select %p6642_p4, 1, 0 }
  0x3c   : > { %s8057_s26 = scalar_select %p6648_p5, 1, 0 }
  0x3d   : > { %s8058_s16 = scalar_select %p6652_p8, 1, 0 }
  0x3e   : > { %p6050_p11 = pneg %p6652_p8  ;;  %s255_s30 = sshll.u32 %s6463_s27, 4  ;;  %s256_s30 = int_to_ptr.vmem [resolvable:$true] %s255_s30 }
  0x3f   : > { %s6464_s13 = smov [#allocation10]   ;;  %s8060_s1 = sld [smem:[#allocation19_spill]] }
  0x40   : > { %s271_s20 = sshll.u32 %s6464_s13, 4  ;;  %p6661_p13 = pnand %p6050_p11, %p8039_p7  ;;  %s6665_s20 = int_to_ptr.vmem [resolvable:$true] %s271_s20 }
  0x42   : > { %p6304_p1 = pneg %p6661_p13 }
  0x45   : > { %s6302_s17 = scalar_lea.hbm %s8060_s1, 8192 }
  0x46   : > { %p6303_p0 = scmp.ne.s32.totalorder %s8060_s1, %s6302_s17  ;;  %p6309_p12 = scmp.lt.u32.totalorder %s6302_s17, %s8060_s1 }
  0x48   : > { %p6305_p3 = pnand %p6304_p1, %p6303_p0 }
  0x4a   : > { %p6306_p10 = pneg %p6305_p3 }
  0x4c   : > { %p6311_p2 = pnand %p6309_p12, %p6306_p10 }
  0x4e   : > { %6314 = shalt.err (!%p6311_p2)
}
  0x4f   : > { %s6315_s19 = scalar_lea.vmem %s256_s30, 8192  ;;  %p6323_p5 = scmp.lt.s32.totalorder %s256_s30, %s256_s30 }
  0x50   : > { %p6316_p11 = scmp.ne.s32.totalorder %s256_s30, %s6315_s19  ;;  %p6324_p4 = scmp.lt.s32.totalorder %s6315_s19, %s6315_s19 }
  0x52   : > { %p6318_p9 = pnand %p6316_p11, %p6304_p1  ;;  %p6325_p8 = por %p6324_p4, %p6323_p5 }
  0x54   : > { %p6319_p7 = pneg %p6318_p9 }
  0x56   : > { %p6326_p6 = pnand %p6325_p8, %p6319_p7 }
  0x58   : > { %6329 = shalt.err (!%p6326_p6)
}
  0x59   : > { %s8061_s3 = smov 32   ;;  %s8062_s23 = smov 512  }
  0x5a   : > { %6053 = dma.hbm_to_vmem [thread:$0]  (!%p6661_p13), %s8060_s1, 8192, %s256_s30, [#allocation6], %s8062_s23, %s8062_s23, %s8061_s3  }
  0x5b   : > { %s6330_s13 = scalar_lea.hbm %s8030_s6, 2048 }
  0x5c   : > { %p6331_p4 = scmp.ne.s32.totalorder %s8030_s6, %s6330_s13  ;;  %p6337_p5 = scmp.lt.u32.totalorder %s6330_s13, %s8030_s6 }
  0x5e   : > { %p6333_p6 = pnand %p6331_p4, %p6304_p1 }
  0x60   : > { %p6334_p7 = pneg %p6333_p6 }
  0x62   : > { %p6339_p8 = pnand %p6337_p5, %p6334_p7 }
  0x64   : > { %6342 = shalt.err (!%p6339_p8)
}
  0x65   : > { %s6343_s30 = scalar_lea.vmem %s6665_s20, 2048  ;;  %p6351_p10 = scmp.lt.s32.totalorder %s6665_s20, %s6665_s20 }
  0x66   : > { %p6344_p9 = scmp.ne.s32.totalorder %s6665_s20, %s6343_s30  ;;  %p6352_p12 = scmp.lt.s32.totalorder %s6343_s30, %s6343_s30 }
  0x68   : > { %p6346_p0 = pnand %p6344_p9, %p6304_p1  ;;  %p6353_p2 = por %p6352_p12, %p6351_p10 }
  0x6a   : > { %p6347_p3 = pneg %p6346_p0 }
  0x6c   : > { %p6354_p11 = pnand %p6353_p2, %p6347_p3 }
  0x6e   : > { %6357 = shalt.err (!%p6354_p11)
}
  0x6f   : > { %s6465_s8 = smov 128   ;;  %s6466_s10 = smov 8  }
  0x70   : > { %6056 = dma.hbm_to_vmem [thread:$0]  (!%p6661_p13), %s8030_s6, 2048, %s6665_s20, [#allocation11], %s6465_s8, %s6465_s8, %s6466_s10  }
  0x71   : > { %s4873_s21 = sshll.u32 %s6458_s11, 13  ;;  %s153_s22 = sadd.s32 1, %s6442_s29 }
  0x72   : > { %p160_p1 = scmp.ne.s32.totalorder %s6442_s29, %s6438_s28  ;;  %p8063_p4 = scmp.ne.s32.totalorder %s8052_s18, 0 }
  0x73   : > { %p8064_p6 = scmp.eq.s32.totalorder %s6458_s11, 0  ;;  %s324_s13 = sand.u32 1, %s6442_s29  }
  0x74   : > { %s6724_s27 = scalar_select %p8063_p4, %s6442_s29, %s153_s22  }
  0x75   : > { %p162_p7 = por %p160_p1, %p8064_p6  ;;  %s4823_s19 = sshll.u32 %s324_s13, 9 }
  0x76   : > { %s6732_s7 = scalar_lea.hbm %s8029_s5, %s4873_s21  ;;  %p8065_p5 = scmp.lt.s32.totalorder %s6458_s11, 2 }
  0x77   : > { %s326_s18 = scalar_lea.vmem [#allocation9], %s4823_s19  ;;  %s6358_s8 = scalar_lea.hbm %s6732_s7, 8192 }
  0x78   : > { %p6736_p13 = pnand %p8065_p5, %p162_p7  ;;  %s333_s15 = sshll.u32 %s326_s18, 4  ;;  %s6740_s15 = int_to_ptr.vmem [resolvable:$true] %s333_s15 }
  0x79   : > { %p6359_p8 = scmp.ne.s32.totalorder %s6732_s7, %s6358_s8  ;;  %s6363_s10 = scalar_lea.hbm %s8029_s5, 16384 }
  0x7a   : > { %p6360_p9 = pneg %p6736_p13  ;;  %p6364_p10 = scmp.lt.u32.totalorder %s6732_s7, %s8029_s5 }
  0x7b   : > { %p6365_p12 = scmp.lt.u32.totalorder %s6363_s10, %s6358_s8  ;;  %p6367_p11 = scmp.lt.u32.totalorder %s6358_s8, %s6732_s7 }
  0x7c   : > { %p6361_p0 = pnand %p6360_p9, %p6359_p8 }
  0x7d   : > { %p6366_p2 = por %p6365_p12, %p6364_p10 }
  0x7e   : > { %p6362_p3 = pneg %p6361_p0 }
  0x7f   : > { %p6368_p1 = por %p6367_p11, %p6366_p2 }
  0x81   : > { %p6369_p4 = pnand %p6368_p1, %p6362_p3 }
  0x83   : > { %6372 = shalt.err (!%p6369_p4)
}
  0x84   : > { %s6373_s21 = scalar_lea.vmem %s6740_s15, 8192  ;;  %s6467_s22 = smov [#allocation9]  }
  0x85   : > { %p6374_p6 = scmp.ne.s32.totalorder %s6740_s15, %s6373_s21  ;;  %s6378_s13 = sshll.u32 %s6467_s22, 4  ;;  %s6379_s13 = int_to_ptr.vmem [resolvable:$false] %s6378_s13 }
  0x86   : > { %s6380_s19 = scalar_lea.vmem %s6379_s13, 16384  ;;  %p6381_p8 = scmp.lt.s32.totalorder %s6740_s15, %s6379_s13 }
  0x87   : > { %p6376_p7 = pnand %p6374_p6, %p6360_p9  ;;  %p6382_p0 = scmp.lt.s32.totalorder %s6380_s19, %s6373_s21 }
  0x89   : > { %p6377_p5 = pneg %p6376_p7  ;;  %p6383_p10 = por %p6382_p0, %p6381_p8 }
  0x8b   : > { %p6384_p12 = pnand %p6383_p10, %p6377_p5 }
  0x8d   : > { %6387 = shalt.err (!%p6384_p12)
}
  0x8e   : > { %6063 = dma.hbm_to_vmem [thread:$0]  (!%p6736_p13), %s6732_s7, 8192, %s6740_s15, %s6599_s14, %s8062_s23, %s8062_s23, %s8061_s3  }
  0x8f   : > { %p8067_p9 = scmp.ne.s32.totalorder %s8058_s16, 0 }
  0x90   : > { %p8068_p3 = scmp.eq.s32.totalorder (!%p8067_p9), %s6631_s24, 0 }
  0x91   : > { %345 = sbr.rel (%p8067_p9) target bundleno = 4883 (0x1313), region = 52 }
  0x98   : > { %6417 = dma.done.wait (%p8068_p3), [#allocation6], 8192   ;;  %p8069_p2 = pmov %p8068_p3 }
  0x99   : > { %s351_s30 = sand.u32 1, %s6631_s24   ;;  %s353_s20 = sand.u32 1, %s6450_s9  }
  0x9a   : > { %6419 = vsyncadd (%p8069_p2), [#allocation6], 4294959104  ;;  %s4828_s18 = sshll.u32 %s353_s20, 9  ;;  %s352_s8 = scalar_lea.sflag [#allocation8], %s351_s30 }
  0x9b   : > { %s6779_s1 = scalar_lea.vmem [#allocation7], %s4828_s18  ;;  %p8070_p11 = scmp.ne.s32.totalorder %s8056_s25, 0 }
  0x9d   : > { %6421 = dma.done.wait (%p8070_p11), %s352_s8, 8192  }
  0x9e   : > { %6423 = vsyncadd (%p8070_p11), %s352_s8, 4294959104  ;;  %s362_s7 = sand.u32 1, %s6438_s28   ;;  %p8071_p13 = scmp.ne.s32.totalorder %s8057_s26, 0 }
  0x9f   : > { %s4829_s14 = sshll.u32 %s362_s7, 9 }
  0xa0   : > { %s6786_s16 = scalar_lea.vmem [#allocation9], %s4829_s14 }
  0xa1   : > { %6425 = dma.done.wait (%p8071_p13), %s352_s8, 8192  }
  0xa2   : > { %6427 = vsyncadd (%p8071_p13), %s352_s8, 4294959104  ;;  %p8072_p1 = pmov %p8069_p2 }
  0xa4   : > { %6429 = dma.done.wait (%p8072_p1), [#allocation11], 2048   ;;  %p8073_p4 = pmov %p8072_p1 }
  0xa5   : > { %p409_p6 = scmp.lt.s32.totalorder %s6631_s24, 0  ;;  %p8074_p7 = scmp.ne.s32.totalorder %s6631_s24, 0 }
  0xa6   : > { %6431 = vsyncadd (%p8073_p4), [#allocation11], 4294965248  ;;  %v430_v0 = vld [vmem:[#allocation5 + $0x8] sm:$0xff] (!%p8074_p7)  ;;  %v432_v2 = vld [vmem:[#allocation5 + $0x18] sm:$0xff] (!%p8074_p7)  ;;  %v6468_v7 = vmov (!%p8074_p7), 0.0  }
  0xa7   : > { %s410_s25 = scalar_select %p409_p6, %s6631_s24, 0 }
  0xa8   : > { %420 = sbr.rel (%p8074_p7) target bundleno = 448 (0x1c0), region = 72  ;;  %v434_v1 = vld [vmem:[#allocation5 + $0x28] sm:$0xff] (!%p8074_p7)  ;;  %v436_v4 = vld [vmem:[#allocation5 + $0x38] sm:$0xff] (!%p8074_p7)  ;;  %v429_v5 = vld [vmem:[#allocation5] sm:$0xff] (!%p8074_p7)  ;;  %579 = vmatprep.mubr.f32.mxu0 (!%p8074_p7), %v6468_v7  ;;  %692 = vmatprep.mubr.f32.mxu1 (!%p8074_p7), %v6468_v7 }
  0xa9   : > { %s8087_s25 = smov (!%p409_p6, %s410_s25), 0  ;;  %v4926_v3 = vpack.c.bf16 (!%p8074_p7), %v434_v1, %v430_v0  ;;  %v433_v6 = vld [vmem:[#allocation5 + $0x20] sm:$0xff] (!%p8074_p7)  ;;  %v4958_v8 = vpack.c.bf16 (!%p8074_p7), %v436_v4, %v432_v2  ;;  %v431_v10 = vld [vmem:[#allocation5 + $0x10] sm:$0xff] (!%p8074_p7)  ;;  %v438_v12 = vld [vmem:[#allocation5 + $0x48] sm:$0xff] (!%p8074_p7) }
  0xaa   : > { %s4834_s3 = sshll.u32 %s8087_s25, 2  ;;  %v4928_v9 = vpack.c.bf16 (!%p8074_p7), %v433_v6, %v429_v5  ;;  %v435_v11 = vld [vmem:[#allocation5 + $0x30] sm:$0xff] (!%p8074_p7)  ;;  %v442_v14 = vld [vmem:[#allocation5 + $0x68] sm:$0xff] (!%p8074_p7)  ;;  %v440_v15 = vld [vmem:[#allocation5 + $0x58] sm:$0xff] (!%p8074_p7) }
  0xab   : > { %s6801_s11 = scalar_lea.vmem %s8028_s4, %s4834_s3  ;;  %4927 = vmatprep.subr.bf16.mxu0 (!%p8074_p7), %v4926_v3  ;;  %v4960_v13 = vpack.c.bf16 (!%p8074_p7), %v435_v11, %v431_v10  ;;  %v444_v16 = vld [vmem:[#allocation5 + $0x78] sm:$0xff] (!%p8074_p7)  ;;  %4959 = vmatprep.subr.bf16.mxu1 (!%p8074_p7), %v4958_v8  ;;  %v4930_v17 = vpack.c.bf16 (!%p8074_p7), %v442_v14, %v438_v12  ;;  %v437_v19 = vld [vmem:[#allocation5 + $0x40] sm:$0xff] (!%p8074_p7)  ;;  %v439_v21 = vld [vmem:[#allocation5 + $0x50] sm:$0xff] (!%p8074_p7) }
  0xac   : > { %4929 = vmatpush1.bf16.msra.mxu0 (!%p8074_p7), %v4928_v9  ;;  %v4962_v18 = vpack.c.bf16 (!%p8074_p7), %v444_v16, %v440_v15  ;;  %v441_v20 = vld [vmem:[#allocation5 + $0x60] sm:$0xff] (!%p8074_p7)  ;;  %v443_v23 = vld [vmem:[#allocation5 + $0x70] sm:$0xff] (!%p8074_p7)  ;;  %v446_v24 = vld [vmem:[#allocation5 + $0x88] sm:$0xff] (!%p8074_p7) }
  0xad   : > { %4961 = vmatpush1.bf16.msra.mxu1 (!%p8074_p7), %v4960_v13  ;;  %v4932_v22 = vpack.c.bf16 (!%p8074_p7), %v441_v20, %v437_v19  ;;  %v450_v25 = vld [vmem:[#allocation5 + $0xa8] sm:$0xff] (!%p8074_p7)  ;;  %4931 = vmatprep.subr.bf16.mxu0 (!%p8074_p7), %v4930_v17  ;;  %v4964_v26 = vpack.c.bf16 (!%p8074_p7), %v443_v23, %v439_v21  ;;  %v448_v28 = vld [vmem:[#allocation5 + $0x98] sm:$0xff] (!%p8074_p7)  ;;  %v445_v30 = vld [vmem:[#allocation5 + $0x80] sm:$0xff] (!%p8074_p7) }
  0xae   : > { %4963 = vmatprep.subr.bf16.mxu1 (!%p8074_p7), %v4962_v18  ;;  %v4934_v27 = vpack.c.bf16 (!%p8074_p7), %v450_v25, %v446_v24  ;;  %v452_v29 = vld [vmem:[#allocation5 + $0xb8] sm:$0xff] (!%p8074_p7)  ;;  %v449_v32 = vld [vmem:[#allocation5 + $0xa0] sm:$0xff] (!%p8074_p7)  ;;  %v447_v33 = vld [vmem:[#allocation5 + $0x90] sm:$0xff] (!%p8074_p7) }
  0xaf   : > { %v4966_v31 = vpack.c.bf16 %v452_v29, %v448_v28  ;;  %v451_v34 = vld [vmem:[#allocation5 + $0xb0] sm:$0xff]  ;;  %v4936_v35 = vpack.c.bf16 %v449_v32, %v445_v30  ;;  %v454_v36 = vld [vmem:[#allocation5 + $0xc8] sm:$0xff]  ;;  %v456_v38 = vld [vmem:[#allocation5 + $0xd8] sm:$0xff] }
  0xb0   : > { %4933 = vmatpush1.bf16.msra.mxu0 %v4932_v22  ;;  %v458_v37 = vld [vmem:[#allocation5 + $0xe8] sm:$0xff]  ;;  %v4968_v39 = vpack.c.bf16 %v451_v34, %v447_v33  ;;  %v460_v41 = vld [vmem:[#allocation5 + $0xf8] sm:$0xff]  ;;  %v453_v42 = vld [vmem:[#allocation5 + $0xc0] sm:$0xff] }
  0xb1   : > { %4965 = vmatpush1.bf16.msra.mxu1 %v4964_v26  ;;  %4935 = vmatprep.subr.bf16.mxu0 %v4934_v27  ;;  %v4938_v40 = vpack.c.bf16 %v458_v37, %v454_v36  ;;  %v457_v43 = vld [vmem:[#allocation5 + $0xe0] sm:$0xff]  ;;  %v4970_v44 = vpack.c.bf16 %v460_v41, %v456_v38  ;;  %v455_v45 = vld [vmem:[#allocation5 + $0xd0] sm:$0xff]  ;;  %v462_v47 = vld [vmem:[#allocation5 + $0x108] sm:$0xff] }
  0xb2   : > { %4967 = vmatprep.subr.bf16.mxu1 %v4966_v31  ;;  %v459_v46 = vld [vmem:[#allocation5 + $0xf0] sm:$0xff]  ;;  %v466_v48 = vld [vmem:[#allocation5 + $0x128] sm:$0xff]  ;;  %v464_v49 = vld [vmem:[#allocation5 + $0x118] sm:$0xff]  ;;  %v4940_v51 = vpack.c.bf16 %v457_v43, %v453_v42  ;;  %v495_v42 = vlaneseq }
  0xb3   : > { %v468_v50 = vld [vmem:[#allocation5 + $0x138] sm:$0xff]  ;;  %v4972_v52 = vpack.c.bf16 %v459_v46, %v455_v45  ;;  %v4942_v53 = vpack.c.bf16 %v466_v48, %v462_v47  ;;  %v461_v54 = vld [vmem:[#allocation5 + $0x100] sm:$0xff]  ;;  %v463_v56 = vld [vmem:[#allocation5 + $0x110] sm:$0xff] }
  0xb4   : > { %4937 = vmatpush1.bf16.msra.mxu0 %v4936_v35  ;;  %v465_v55 = vld [vmem:[#allocation5 + $0x120] sm:$0xff]  ;;  %v4974_v57 = vpack.c.bf16 %v468_v50, %v464_v49  ;;  %v467_v58 = vld [vmem:[#allocation5 + $0x130] sm:$0xff]  ;;  %v470_v59 = vld [vmem:[#allocation5 + $0x148] sm:$0xff]  ;;  %v496_v43 = vshrl.u32 %v495_v42, 7 }
  0xb5   : > { %4969 = vmatpush1.bf16.msra.mxu1 %v4968_v39  ;;  %4939 = vmatprep.subr.bf16.mxu0 %v4938_v40  ;;  %v474_v60 = vld [vmem:[#allocation5 + $0x168] sm:$0xff]  ;;  %v472_v61 = vld [vmem:[#allocation5 + $0x158] sm:$0xff]  ;;  %v4944_v63 = vpack.c.bf16 %v465_v55, %v461_v54  ;;  %v4976_v0 = vpack.c.bf16 %v467_v58, %v463_v56  ;;  %v469_v2 = vld [vmem:[#allocation5 + $0x140] sm:$0xff] }
  0xb6   : > { %4971 = vmatprep.subr.bf16.mxu1 %v4970_v44  ;;  %v476_v62 = vld [vmem:[#allocation5 + $0x178] sm:$0xff]  ;;  %v4946_v1 = vpack.c.bf16 %v474_v60, %v470_v59  ;;  %v473_v3 = vld [vmem:[#allocation5 + $0x160] sm:$0xff]  ;;  %v471_v4 = vld [vmem:[#allocation5 + $0x150] sm:$0xff]  ;;  %v497_v44 = vsub.s32 0, %v496_v43  ;;  %v505_v46 = vsub.s32 2, %v496_v43  ;;  %v501_v47 = vsub.s32 1, %v496_v43 }
  0xb7   : > { %v4978_v5 = vpack.c.bf16 %v476_v62, %v472_v61  ;;  %v475_v6 = vld [vmem:[#allocation5 + $0x170] sm:$0xff]  ;;  %v478_v8 = vld [vmem:[#allocation5 + $0x188] sm:$0xff]  ;;  %v480_v10 = vld [vmem:[#allocation5 + $0x198] sm:$0xff]  ;;  %v4948_v12 = vpack.c.bf16 %v473_v3, %v469_v2  ;;  %v509_v48 = vsub.s32 3, %v496_v43 }
  0xb8   : > { %4941 = vmatpush1.bf16.msra.mxu0 %v4940_v51  ;;  %v482_v9 = vld [vmem:[#allocation5 + $0x1a8] sm:$0xff]  ;;  %v484_v11 = vld [vmem:[#allocation5 + $0x1b8] sm:$0xff]  ;;  %v4980_v13 = vpack.c.bf16 %v475_v6, %v471_v4  ;;  %v477_v15 = vld [vmem:[#allocation5 + $0x180] sm:$0xff] }
  0xb9   : > { %4973 = vmatpush1.bf16.msra.mxu1 %v4972_v52  ;;  %4943 = vmatprep.subr.bf16.mxu0 %v4942_v53  ;;  %v4950_v14 = vpack.c.bf16 %v482_v9, %v478_v8  ;;  %v481_v16 = vld [vmem:[#allocation5 + $0x1a0] sm:$0xff]  ;;  %v479_v17 = vld [vmem:[#allocation5 + $0x190] sm:$0xff]  ;;  %v4982_v18 = vpack.c.bf16 %v484_v11, %v480_v10  ;;  %v486_v20 = vld [vmem:[#allocation5 + $0x1c8] sm:$0xff] }
  0xba   : > { %4975 = vmatprep.subr.bf16.mxu1 %v4974_v57  ;;  %v483_v19 = vld [vmem:[#allocation5 + $0x1b0] sm:$0xff]  ;;  %v490_v21 = vld [vmem:[#allocation5 + $0x1e8] sm:$0xff]  ;;  %v488_v22 = vld [vmem:[#allocation5 + $0x1d8] sm:$0xff]  ;;  %v4952_v24 = vpack.c.bf16 %v481_v16, %v477_v15 }
  0xbb   : > { %v492_v23 = vld [vmem:[#allocation5 + $0x1f8] sm:$0xff]  ;;  %v4984_v25 = vpack.c.bf16 %v483_v19, %v479_v17  ;;  %v4954_v26 = vpack.c.bf16 %v490_v21, %v486_v20  ;;  %v485_v27 = vld [vmem:[#allocation5 + $0x1c0] sm:$0xff]  ;;  %v487_v30 = vld [vmem:[#allocation5 + $0x1d0] sm:$0xff] }
  0xbc   : > { %4945 = vmatpush1.bf16.msra.mxu0 %v4944_v63  ;;  %v489_v28 = vld [vmem:[#allocation5 + $0x1e0] sm:$0xff]  ;;  %v4986_v29 = vpack.c.bf16 %v492_v23, %v488_v22  ;;  %v491_v31 = vld [vmem:[#allocation5 + $0x1f0] sm:$0xff]  ;;  %v422_v35 = vld [vmem:[%s8024_s0 + $0x8] sm:$0xff] }
  0xbd   : > { %4977 = vmatpush1.bf16.msra.mxu1 %v4976_v0  ;;  %4947 = vmatprep.subr.bf16.mxu0 %v4946_v1  ;;  %v4956_v32 = vpack.c.bf16 %v489_v28, %v485_v27  ;;  %v4988_v33 = vpack.c.bf16 %v491_v31, %v487_v30  ;;  %v421_v34 = vld [vmem:[%s8024_s0] sm:$0xff]  ;;  %v423_v36 = vld [vmem:[%s8024_s0 + $0x10] sm:$0xff]  ;;  %v424_v37 = vld [vmem:[%s8024_s0 + $0x18] sm:$0xff] }
  0xbe   : > { %4979 = vmatprep.subr.bf16.mxu1 %v4978_v5  ;;  %v425_v38 = vld [vmem:[%s8024_s0 + $0x20] sm:$0xff]  ;;  %v426_v39 = vld [vmem:[%s8024_s0 + $0x28] sm:$0xff]  ;;  %v427_v40 = vld [vmem:[%s8024_s0 + $0x30] sm:$0xff] }
  0xbf   : > { %v428_v41 = vld [vmem:[%s8024_s0 + $0x38] sm:$0xff]  ;;  %v493_v45 = vld [vmem:[%s8026_s2] sm:$0xf] }
  0xc0   : > { %4949 = vmatpush1.bf16.msra.mxu0 %v4948_v12  ;;  %v6848_v49 = vrot.slane %v493_v45, %v497_v44  ;;  %v6850_v50 = vrot.slane %v493_v45, %v505_v46  ;;  %v6852_v51 = vrot.slane %v493_v45, %v501_v47  ;;  %v6854_v52 = vrot.slane %v493_v45, %v509_v48 }
  0xc1   : > { %4981 = vmatpush1.bf16.msra.mxu1 %v4980_v13  ;;  %4951 = vmatprep.subr.bf16.mxu0 %v4950_v14 }
  0xc2   : > { %4983 = vmatprep.subr.bf16.mxu1 %v4982_v18 }
  0xc4   : > { %4953 = vmatpush1.bf16.msra.mxu0 %v4952_v24 }
  0xc5   : > { %4985 = vmatpush1.bf16.msra.mxu1 %v4984_v25  ;;  %4955 = vmatprep.subr.bf16.mxu0 %v4954_v26 }
  0xc6   : > { %4987 = vmatprep.subr.bf16.mxu1 %v4986_v29 }
  0xc8   : > { %4957 = vmatpush1.bf16.msra.mxu0 %v4956_v32 }
  0xc9   : > { %4989 = vmatpush1.bf16.msra.mxu1 %v4988_v33 }
  0xcb   : > { %580 = vmatmul.mubr.f32.vlgmr.msra.gmra.mrb[0].mxu0 %v421_v34 }
  0xcc   : > { %693 = vmatmul.mubr.f32.vlgmr.msra.gmra.mrb[0].mxu1 %v421_v34  ;;  %585 = vmatprep.mubr.f32.mxu0 %v6468_v7 }
  0xcd   : > { %698 = vmatprep.mubr.f32.mxu1 %v6468_v7 }
  0xcf   : > { %586 = vmatmul.mubr.f32.gmra.mrb[2].mxu0 %v422_v35 }
  0xd0   : > { %699 = vmatmul.mubr.f32.gmra.mrb[2].mxu1 %v422_v35  ;;  %591 = vmatprep.mubr.f32.mxu0 %v6468_v7 }
  0xd1   : > { %704 = vmatprep.mubr.f32.mxu1 %v6468_v7 }
  0xd3   : > { %592 = vmatmul.mubr.f32.gmra.mrb[4].mxu0 %v423_v36 }
  0xd4   : > { %705 = vmatmul.mubr.f32.gmra.mrb[4].mxu1 %v423_v36  ;;  %597 = vmatprep.mubr.f32.mxu0 %v6468_v7 }
  0xd5   : > { %710 = vmatprep.mubr.f32.mxu1 %v6468_v7 }
  0xd7   : > { %598 = vmatmul.mubr.f32.gmra.mrb[6].mxu0 %v424_v37 }
  0xd8   : > { %711 = vmatmul.mubr.f32.gmra.mrb[6].mxu1 %v424_v37  ;;  %603 = vmatprep.mubr.f32.mxu0 %v6468_v7 }
  0xd9   : > { %716 = vmatprep.mubr.f32.mxu1 %v6468_v7 }
  0xdb   : > { %604 = vmatmul.mubr.f32.gmra.mrb[8].mxu0 %v425_v38 }
  0xdc   : > { %717 = vmatmul.mubr.f32.gmra.mrb[8].mxu1 %v425_v38  ;;  %609 = vmatprep.mubr.f32.mxu0 %v6468_v7 }
  0xdd   : > { %722 = vmatprep.mubr.f32.mxu1 %v6468_v7 }
  0xdf   : > { %610 = vmatmul.mubr.f32.gmra.mrb[10].mxu0 %v426_v39 }
  0xe0   : > { %723 = vmatmul.mubr.f32.gmra.mrb[10].mxu1 %v426_v39  ;;  %615 = vmatprep.mubr.f32.mxu0 %v6468_v7 }
  0xe1   : > { %728 = vmatprep.mubr.f32.mxu1 %v6468_v7 }
  0xe3   : > { %616 = vmatmul.mubr.f32.gmra.mrb[12].mxu0 %v427_v40 }
  0xe4   : > { %729 = vmatmul.mubr.f32.gmra.mrb[12].mxu1 %v427_v40  ;;  %621 = vmatprep.mubr.f32.mxu0 %v6468_v7 }
  0xe5   : > { %734 = vmatprep.mubr.f32.mxu1 %v6468_v7 }
  0xe7   : > { %622 = vmatmul.mubr.f32.gmra.mrb[14].mxu0 %v428_v41 }
  0xe8   : > { %735 = vmatmul.mubr.f32.gmra.mrb[14].mxu1 %v428_v41 }
 0x19e   : > { %v581_v7 = vpop.f32.mrb[0].mxu0 }
 0x19f   : > { %v582_v53 = vadd.f32 %v581_v7, %v6848_v49  ;;  %v694_v54 = vpop.f32.mrb[0].mxu1  ;;  %v583_v55 = vpop.f32.mrb[1].mxu0 }
 0x1a0   : > { %v695_v56 = vadd.f32 %v694_v54, %v6850_v50  ;;  %v584_v57 = vadd.f32 %v583_v55, %v6852_v51  ;;  %v696_v58 = vpop.f32.mrb[1].mxu1 }
 0x1a1   : > { %741 = vst [vmem:[#allocation2] sm:$0xff] %v582_v53  ;;  %v697_v59 = vadd.f32 %v696_v58, %v6854_v52 }
 0x1a2   : > { %743 = vst [vmem:[#allocation2 + $0x10] sm:$0xff] %v695_v56  ;;  %742 = vst [vmem:[#allocation2 + $0x8] sm:$0xff] %v584_v57  ;;  %v587_v60 = vpop.f32.mrb[2].mxu0 }
 0x1a3   : > { %744 = vst [vmem:[#allocation2 + $0x18] sm:$0xff] %v697_v59  ;;  %v588_v61 = vadd.f32 %v587_v60, %v6848_v49  ;;  %v700_v62 = vpop.f32.mrb[2].mxu1  ;;  %v589_v63 = vpop.f32.mrb[3].mxu0 }
 0x1a4   : > { %v701_v0 = vadd.f32 %v700_v62, %v6850_v50  ;;  %v590_v1 = vadd.f32 %v589_v63, %v6852_v51  ;;  %v702_v2 = vpop.f32.mrb[3].mxu1 }
 0x1a5   : > { %745 = vst [vmem:[#allocation2 + $0x20] sm:$0xff] %v588_v61  ;;  %v703_v3 = vadd.f32 %v702_v2, %v6854_v52 }
 0x1a6   : > { %747 = vst [vmem:[#allocation2 + $0x30] sm:$0xff] %v701_v0  ;;  %746 = vst [vmem:[#allocation2 + $0x28] sm:$0xff] %v590_v1  ;;  %v593_v4 = vpop.f32.mrb[4].mxu0 }
 0x1a7   : > { %748 = vst [vmem:[#allocation2 + $0x38] sm:$0xff] %v703_v3  ;;  %v594_v5 = vadd.f32 %v593_v4, %v6848_v49  ;;  %v706_v6 = vpop.f32.mrb[4].mxu1  ;;  %v595_v8 = vpop.f32.mrb[5].mxu0 }
 0x1a8   : > { %v707_v9 = vadd.f32 %v706_v6, %v6850_v50  ;;  %v596_v10 = vadd.f32 %v595_v8, %v6852_v51  ;;  %v708_v11 = vpop.f32.mrb[5].mxu1 }
 0x1a9   : > { %749 = vst [vmem:[#allocation2 + $0x40] sm:$0xff] %v594_v5  ;;  %v709_v12 = vadd.f32 %v708_v11, %v6854_v52 }
 0x1aa   : > { %751 = vst [vmem:[#allocation2 + $0x50] sm:$0xff] %v707_v9  ;;  %750 = vst [vmem:[#allocation2 + $0x48] sm:$0xff] %v596_v10  ;;  %v599_v13 = vpop.f32.mrb[6].mxu0 }
 0x1ab   : > { %752 = vst [vmem:[#allocation2 + $0x58] sm:$0xff] %v709_v12  ;;  %v600_v14 = vadd.f32 %v599_v13, %v6848_v49  ;;  %v712_v15 = vpop.f32.mrb[6].mxu1  ;;  %v601_v16 = vpop.f32.mrb[7].mxu0 }
 0x1ac   : > { %v713_v17 = vadd.f32 %v712_v15, %v6850_v50  ;;  %v602_v18 = vadd.f32 %v601_v16, %v6852_v51  ;;  %v714_v19 = vpop.f32.mrb[7].mxu1 }
 0x1ad   : > { %753 = vst [vmem:[#allocation2 + $0x60] sm:$0xff] %v600_v14  ;;  %v715_v20 = vadd.f32 %v714_v19, %v6854_v52 }
 0x1ae   : > { %755 = vst [vmem:[#allocation2 + $0x70] sm:$0xff] %v713_v17  ;;  %754 = vst [vmem:[#allocation2 + $0x68] sm:$0xff] %v602_v18  ;;  %v605_v21 = vpop.f32.mrb[8].mxu0 }
 0x1af   : > { %756 = vst [vmem:[#allocation2 + $0x78] sm:$0xff] %v715_v20  ;;  %v606_v22 = vadd.f32 %v605_v21, %v6848_v49  ;;  %v718_v23 = vpop.f32.mrb[8].mxu1  ;;  %v607_v24 = vpop.f32.mrb[9].mxu0 }
 0x1b0   : > { %v719_v25 = vadd.f32 %v718_v23, %v6850_v50  ;;  %v608_v26 = vadd.f32 %v607_v24, %v6852_v51  ;;  %v720_v27 = vpop.f32.mrb[9].mxu1 }
 0x1b1   : > { %757 = vst [vmem:[#allocation2 + $0x80] sm:$0xff] %v606_v22  ;;  %v721_v28 = vadd.f32 %v720_v27, %v6854_v52 }
 0x1b2   : > { %759 = vst [vmem:[#allocation2 + $0x90] sm:$0xff] %v719_v25  ;;  %758 = vst [vmem:[#allocation2 + $0x88] sm:$0xff] %v608_v26  ;;  %v611_v29 = vpop.f32.mrb[10].mxu0 }
 0x1b3   : > { %760 = vst [vmem:[#allocation2 + $0x98] sm:$0xff] %v721_v28  ;;  %v612_v30 = vadd.f32 %v611_v29, %v6848_v49  ;;  %v724_v31 = vpop.f32.mrb[10].mxu1  ;;  %v613_v32 = vpop.f32.mrb[11].mxu0 }
 0x1b4   : > { %v725_v33 = vadd.f32 %v724_v31, %v6850_v50  ;;  %v614_v34 = vadd.f32 %v613_v32, %v6852_v51  ;;  %v726_v35 = vpop.f32.mrb[11].mxu1 }
 0x1b5   : > { %761 = vst [vmem:[#allocation2 + $0xa0] sm:$0xff] %v612_v30  ;;  %v727_v36 = vadd.f32 %v726_v35, %v6854_v52 }
 0x1b6   : > { %763 = vst [vmem:[#allocation2 + $0xb0] sm:$0xff] %v725_v33  ;;  %762 = vst [vmem:[#allocation2 + $0xa8] sm:$0xff] %v614_v34  ;;  %v617_v37 = vpop.f32.mrb[12].mxu0 }
 0x1b7   : > { %764 = vst [vmem:[#allocation2 + $0xb8] sm:$0xff] %v727_v36  ;;  %v618_v38 = vadd.f32 %v617_v37, %v6848_v49  ;;  %v730_v39 = vpop.f32.mrb[12].mxu1  ;;  %v619_v40 = vpop.f32.mrb[13].mxu0 }
 0x1b8   : > { %v731_v41 = vadd.f32 %v730_v39, %v6850_v50  ;;  %v620_v42 = vadd.f32 %v619_v40, %v6852_v51  ;;  %v732_v43 = vpop.f32.mrb[13].mxu1 }
 0x1b9   : > { %765 = vst [vmem:[#allocation2 + $0xc0] sm:$0xff] %v618_v38  ;;  %v733_v44 = vadd.f32 %v732_v43, %v6854_v52 }
 0x1ba   : > { %767 = vst [vmem:[#allocation2 + $0xd0] sm:$0xff] %v731_v41  ;;  %766 = vst [vmem:[#allocation2 + $0xc8] sm:$0xff] %v620_v42  ;;  %v623_v45 = vpop.f32.mrb[14].mxu0 }
 0x1bb   : > { %768 = vst [vmem:[#allocation2 + $0xd8] sm:$0xff] %v733_v44  ;;  %v624_v46 = vadd.f32 %v623_v45, %v6848_v49  ;;  %v736_v47 = vpop.f32.mrb[14].mxu1  ;;  %v625_v48 = vpop.f32.mrb[15].mxu0 }
 0x1bc   : > { %v737_v7 = vadd.f32 %v736_v47, %v6850_v50  ;;  %v626_v53 = vadd.f32 %v625_v48, %v6852_v51  ;;  %v738_v54 = vpop.f32.mrb[15].mxu1 }
 0x1bd   : > { %769 = vst [vmem:[#allocation2 + $0xe0] sm:$0xff] %v624_v46  ;;  %v739_v55 = vadd.f32 %v738_v54, %v6854_v52 }
 0x1be   : > { %771 = vst [vmem:[#allocation2 + $0xf0] sm:$0xff] %v737_v7  ;;  %770 = vst [vmem:[#allocation2 + $0xe8] sm:$0xff] %v626_v53 }
 0x1bf   : > { %772 = vst [vmem:[#allocation2 + $0xf8] sm:$0xff] %v739_v55 }
 0x1c0 PF: > { %v785_v49 = vld [vmem:[%s6786_s16 + $0x8] sm:$0xff]  ;;  %v784_v51 = vld [vmem:[%s6786_s16] sm:$0xff]  ;;  %v6469_v59 = vmov 0.0   ;;  %v787_v8 = vld [vmem:[%s6786_s16 + $0x18] sm:$0xff]  ;;  %p4839_p5 = scmp.ge.s32.totalorder %s6631_s24, 1 }
 0x1c1   : > { %v789_v50 = vld [vmem:[%s6786_s16 + $0x28] sm:$0xff]  ;;  %v788_v52 = vld [vmem:[%s6786_s16 + $0x20] sm:$0xff]  ;;  %912 = vmatprep.mubr.f32.mxu0 %v6469_v59  ;;  %983 = vmatprep.mubr.f32.mxu1 %v6469_v59  ;;  %v791_v9 = vld [vmem:[%s6786_s16 + $0x38] sm:$0xff] }
 0x1c2   : > { %v4990_v56 = vpack.c.bf16 %v789_v50, %v785_v49  ;;  %v793_v57 = vld [vmem:[%s6786_s16 + $0x48] sm:$0xff]  ;;  %v4992_v60 = vpack.c.bf16 %v788_v52, %v784_v51  ;;  %v792_v62 = vld [vmem:[%s6786_s16 + $0x40] sm:$0xff]  ;;  %v5022_v11 = vpack.c.bf16 %v791_v9, %v787_v8  ;;  %v786_v12 = vld [vmem:[%s6786_s16 + $0x10] sm:$0xff] }
 0x1c3   : > { %v797_v58 = vld [vmem:[%s6786_s16 + $0x68] sm:$0xff]  ;;  %v796_v63 = vld [vmem:[%s6786_s16 + $0x60] sm:$0xff]  ;;  %v790_v13 = vld [vmem:[%s6786_s16 + $0x30] sm:$0xff] }
 0x1c4   : > { %v4994_v61 = vpack.c.bf16 %v797_v58, %v793_v57  ;;  %v801_v0 = vld [vmem:[%s6786_s16 + $0x88] sm:$0xff]  ;;  %4991 = vmatprep.subr.bf16.mxu0 %v4990_v56  ;;  %v4996_v2 = vpack.c.bf16 %v796_v63, %v792_v62  ;;  %v800_v3 = vld [vmem:[%s6786_s16 + $0x80] sm:$0xff]  ;;  %v5024_v14 = vpack.c.bf16 %v790_v13, %v786_v12  ;;  %5023 = vmatprep.subr.bf16.mxu1 %v5022_v11  ;;  %v795_v16 = vld [vmem:[%s6786_s16 + $0x58] sm:$0xff] }
 0x1c5   : > { %v805_v1 = vld [vmem:[%s6786_s16 + $0xa8] sm:$0xff]  ;;  %4993 = vmatpush1.bf16.msra.mxu0 %v4992_v60  ;;  %v804_v4 = vld [vmem:[%s6786_s16 + $0xa0] sm:$0xff]  ;;  %v799_v17 = vld [vmem:[%s6786_s16 + $0x78] sm:$0xff] }
 0x1c6   : > { %4995 = vmatprep.subr.bf16.mxu0 %v4994_v61  ;;  %v4998_v5 = vpack.c.bf16 %v805_v1, %v801_v0  ;;  %v809_v6 = vld [vmem:[%s6786_s16 + $0xc8] sm:$0xff]  ;;  %v5000_v15 = vpack.c.bf16 %v804_v4, %v800_v3  ;;  %v794_v18 = vld [vmem:[%s6786_s16 + $0x50] sm:$0xff]  ;;  %v808_v20 = vld [vmem:[%s6786_s16 + $0xc0] sm:$0xff]  ;;  %5025 = vmatpush1.bf16.msra.mxu1 %v5024_v14  ;;  %v5026_v22 = vpack.c.bf16 %v799_v17, %v795_v16 }
 0x1c7   : > { %v813_v10 = vld [vmem:[%s6786_s16 + $0xe8] sm:$0xff]  ;;  %v812_v21 = vld [vmem:[%s6786_s16 + $0xe0] sm:$0xff]  ;;  %v798_v23 = vld [vmem:[%s6786_s16 + $0x70] sm:$0xff] }
 0x1c8   : > { %v5002_v19 = vpack.c.bf16 %v813_v10, %v809_v6  ;;  %v817_v24 = vld [vmem:[%s6786_s16 + $0x108] sm:$0xff]  ;;  %v5028_v26 = vpack.c.bf16 %v798_v23, %v794_v18  ;;  %v803_v27 = vld [vmem:[%s6786_s16 + $0x98] sm:$0xff]  ;;  %5027 = vmatprep.subr.bf16.mxu1 %v5026_v22  ;;  %v802_v29 = vld [vmem:[%s6786_s16 + $0x90] sm:$0xff]  ;;  %v5004_v31 = vpack.c.bf16 %v812_v21, %v808_v20 }
 0x1c9   : > { %4997 = vmatpush1.bf16.msra.mxu0 %v4996_v2  ;;  %v821_v25 = vld [vmem:[%s6786_s16 + $0x128] sm:$0xff]  ;;  %v807_v28 = vld [vmem:[%s6786_s16 + $0xb8] sm:$0xff]  ;;  %v806_v30 = vld [vmem:[%s6786_s16 + $0xb0] sm:$0xff] }
 0x1ca   : > { %4999 = vmatprep.subr.bf16.mxu0 %v4998_v5  ;;  %v816_v32 = vld [vmem:[%s6786_s16 + $0x100] sm:$0xff]  ;;  %v5030_v34 = vpack.c.bf16 %v807_v28, %v803_v27  ;;  %v5006_v35 = vpack.c.bf16 %v821_v25, %v817_v24  ;;  %5029 = vmatpush1.bf16.msra.mxu1 %v5028_v26  ;;  %v825_v36 = vld [vmem:[%s6786_s16 + $0x148] sm:$0xff]  ;;  %v5032_v37 = vpack.c.bf16 %v806_v30, %v802_v29  ;;  %v811_v38 = vld [vmem:[%s6786_s16 + $0xd8] sm:$0xff] }
 0x1cb   : > { %v820_v33 = vld [vmem:[%s6786_s16 + $0x120] sm:$0xff]  ;;  %v815_v39 = vld [vmem:[%s6786_s16 + $0xf8] sm:$0xff]  ;;  %v829_v40 = vld [vmem:[%s6786_s16 + $0x168] sm:$0xff] }
 0x1cc   : > { %5031 = vmatprep.subr.bf16.mxu1 %v5030_v34  ;;  %v5034_v41 = vpack.c.bf16 %v815_v39, %v811_v38  ;;  %v810_v42 = vld [vmem:[%s6786_s16 + $0xd0] sm:$0xff]  ;;  %v5008_v44 = vpack.c.bf16 %v820_v33, %v816_v32  ;;  %v819_v45 = vld [vmem:[%s6786_s16 + $0x118] sm:$0xff]  ;;  %v5010_v47 = vpack.c.bf16 %v829_v40, %v825_v36  ;;  %v824_v48 = vld [vmem:[%s6786_s16 + $0x140] sm:$0xff] }
 0x1cd   : > { %5001 = vmatpush1.bf16.msra.mxu0 %v5000_v15  ;;  %v814_v43 = vld [vmem:[%s6786_s16 + $0xf0] sm:$0xff]  ;;  %v823_v46 = vld [vmem:[%s6786_s16 + $0x138] sm:$0xff]  ;;  %v828_v7 = vld [vmem:[%s6786_s16 + $0x160] sm:$0xff] }
 0x1ce   : > { %5003 = vmatprep.subr.bf16.mxu0 %v5002_v19  ;;  %5033 = vmatpush1.bf16.msra.mxu1 %v5032_v37  ;;  %v833_v53 = vld [vmem:[%s6786_s16 + $0x188] sm:$0xff]  ;;  %v5036_v54 = vpack.c.bf16 %v814_v43, %v810_v42  ;;  %v5038_v49 = vpack.c.bf16 %v823_v46, %v819_v45  ;;  %v818_v50 = vld [vmem:[%s6786_s16 + $0x110] sm:$0xff]  ;;  %v827_v56 = vld [vmem:[%s6786_s16 + $0x158] sm:$0xff]  ;;  %v5012_v57 = vpack.c.bf16 %v828_v7, %v824_v48 }
 0x1cf   : > { %v837_v55 = vld [vmem:[%s6786_s16 + $0x1a8] sm:$0xff]  ;;  %5035 = vmatprep.subr.bf16.mxu1 %v5034_v41  ;;  %v822_v51 = vld [vmem:[%s6786_s16 + $0x130] sm:$0xff]  ;;  %v831_v52 = vld [vmem:[%s6786_s16 + $0x178] sm:$0xff] }
 0x1d0   : > { %v5014_v58 = vpack.c.bf16 %v837_v55, %v833_v53  ;;  %v832_v60 = vld [vmem:[%s6786_s16 + $0x180] sm:$0xff]  ;;  %v841_v62 = vld [vmem:[%s6786_s16 + $0x1c8] sm:$0xff]  ;;  %v5040_v63 = vpack.c.bf16 %v822_v51, %v818_v50  ;;  %v5042_v1 = vpack.c.bf16 %v831_v52, %v827_v56  ;;  %v826_v2 = vld [vmem:[%s6786_s16 + $0x150] sm:$0xff] }
 0x1d1   : > { %5005 = vmatpush1.bf16.msra.mxu0 %v5004_v31  ;;  %v836_v61 = vld [vmem:[%s6786_s16 + $0x1a0] sm:$0xff]  ;;  %v845_v0 = vld [vmem:[%s6786_s16 + $0x1e8] sm:$0xff]  ;;  %v830_v3 = vld [vmem:[%s6786_s16 + $0x170] sm:$0xff] }
 0x1d2   : > { %5007 = vmatprep.subr.bf16.mxu0 %v5006_v35  ;;  %5037 = vmatpush1.bf16.msra.mxu1 %v5036_v54  ;;  %v835_v4 = vld [vmem:[%s6786_s16 + $0x198] sm:$0xff]  ;;  %v5016_v6 = vpack.c.bf16 %v836_v61, %v832_v60  ;;  %v5018_v8 = vpack.c.bf16 %v845_v0, %v841_v62  ;;  %v840_v9 = vld [vmem:[%s6786_s16 + $0x1c0] sm:$0xff]  ;;  %v5044_v11 = vpack.c.bf16 %v830_v3, %v826_v2  ;;  %v834_v13 = vld [vmem:[%s6786_s16 + $0x190] sm:$0xff]  ;;  %v6470_v60 = vmov (!%p4839_p5), 0.0  }
 0x1d3   : > { %5039 = vmatprep.subr.bf16.mxu1 %v5038_v49  ;;  %v839_v5 = vld [vmem:[%s6786_s16 + $0x1b8] sm:$0xff]  ;;  %v844_v10 = vld [vmem:[%s6786_s16 + $0x1e0] sm:$0xff]  ;;  %v838_v14 = vld [vmem:[%s6786_s16 + $0x1b0] sm:$0xff] }
 0x1d4   : > { %v5046_v12 = vpack.c.bf16 %v839_v5, %v835_v4  ;;  %v843_v15 = vld [vmem:[%s6786_s16 + $0x1d8] sm:$0xff]  ;;  %v5020_v17 = vpack.c.bf16 %v844_v10, %v840_v9  ;;  %v5048_v18 = vpack.c.bf16 %v838_v14, %v834_v13  ;;  %v842_v20 = vld [vmem:[%s6786_s16 + $0x1d0] sm:$0xff]  ;;  %v783_v31 = vld [vmem:[#allocation2 + $0x18] sm:$0xff] }
 0x1d5   : > { %5009 = vmatpush1.bf16.msra.mxu0 %v5008_v44  ;;  %v847_v16 = vld [vmem:[%s6786_s16 + $0x1f8] sm:$0xff]  ;;  %v846_v21 = vld [vmem:[%s6786_s16 + $0x1f0] sm:$0xff]  ;;  %v782_v35 = vld [vmem:[#allocation2 + $0x10] sm:$0xff] }
 0x1d6   : > { %5011 = vmatprep.subr.bf16.mxu0 %v5010_v47  ;;  %5041 = vmatpush1.bf16.msra.mxu1 %v5040_v63  ;;  %v5050_v19 = vpack.c.bf16 %v847_v16, %v843_v15  ;;  %v5052_v22 = vpack.c.bf16 %v846_v21, %v842_v20  ;;  %v780_v23 = vld [vmem:[#allocation2] sm:$0xff]  ;;  %v781_v24 = vld [vmem:[#allocation2 + $0x8] sm:$0xff]  ;;  %v1025_v49 = vld [vmem:[%s6779_s1 + $0x8] sm:$0xff] (!%p4839_p5) }
 0x1d7   : > { %5043 = vmatprep.subr.bf16.mxu1 %v5042_v1  ;;  %v1029_v50 = vld [vmem:[%s6779_s1 + $0x28] sm:$0xff] (!%p4839_p5)  ;;  %v1027_v51 = vld [vmem:[%s6779_s1 + $0x18] sm:$0xff] (!%p4839_p5)  ;;  %v1026_v63 = vld [vmem:[%s6779_s1 + $0x10] sm:$0xff] (!%p4839_p5) }
 0x1d8   : > { %v5054_v56 = vpack.c.bf16 (!%p4839_p5), %v1029_v50, %v1025_v49  ;;  %v1031_v52 = vld [vmem:[%s6779_s1 + $0x38] sm:$0xff] (!%p4839_p5)  ;;  %v1030_v0 = vld [vmem:[%s6779_s1 + $0x30] sm:$0xff] (!%p4839_p5)  ;;  %v1033_v1 = vld [vmem:[%s6779_s1 + $0x48] sm:$0xff] (!%p4839_p5) }
 0x1d9   : > { %5013 = vmatpush1.bf16.msra.mxu0 %v5012_v57  ;;  %v1024_v57 = vld [vmem:[%s6779_s1] sm:$0xff] (!%p4839_p5)  ;;  %v5086_v61 = vpack.c.bf16 (!%p4839_p5), %v1031_v52, %v1027_v51  ;;  %v5088_v2 = vpack.c.bf16 (!%p4839_p5), %v1030_v0, %v1026_v63  ;;  %v1037_v3 = vld [vmem:[%s6779_s1 + $0x68] sm:$0xff] (!%p4839_p5)  ;;  %v1035_v4 = vld [vmem:[%s6779_s1 + $0x58] sm:$0xff] (!%p4839_p5) }
 0x1da   : > { %5015 = vmatprep.subr.bf16.mxu0 %v5014_v58  ;;  %5045 = vmatpush1.bf16.msra.mxu1 %v5044_v11  ;;  %v1028_v58 = vld [vmem:[%s6779_s1 + $0x20] sm:$0xff] (!%p4839_p5)  ;;  %v1039_v5 = vld [vmem:[%s6779_s1 + $0x78] sm:$0xff] (!%p4839_p5)  ;;  %v1034_v11 = vld [vmem:[%s6779_s1 + $0x50] sm:$0xff] (!%p4839_p5) }
 0x1db   : > { %5047 = vmatprep.subr.bf16.mxu1 %v5046_v12  ;;  %v5056_v62 = vpack.c.bf16 (!%p4839_p5), %v1028_v58, %v1024_v57  ;;  %v1032_v9 = vld [vmem:[%s6779_s1 + $0x40] sm:$0xff] (!%p4839_p5)  ;;  %v1038_v13 = vld [vmem:[%s6779_s1 + $0x70] sm:$0xff] (!%p4839_p5)  ;;  %v1041_v14 = vld [vmem:[%s6779_s1 + $0x88] sm:$0xff] (!%p4839_p5) }
 0x1dc   : > { %v1036_v10 = vld [vmem:[%s6779_s1 + $0x60] sm:$0xff] (!%p4839_p5)  ;;  %v1045_v15 = vld [vmem:[%s6779_s1 + $0xa8] sm:$0xff] (!%p4839_p5)  ;;  %v5092_v16 = vpack.c.bf16 (!%p4839_p5), %v1038_v13, %v1034_v11  ;;  %v1071_v49 = vld [vmem:[%s6779_s1 + $0x178] sm:$0xff] (!%p4839_p5) }
 0x1dd   : > { %5017 = vmatpush1.bf16.msra.mxu0 %v5016_v6  ;;  %v5058_v6 = vpack.c.bf16 (!%p4839_p5), %v1037_v3, %v1033_v1  ;;  %v5060_v12 = vpack.c.bf16 (!%p4839_p5), %v1036_v10, %v1032_v9  ;;  %v1040_v20 = vld [vmem:[%s6779_s1 + $0x80] sm:$0xff] (!%p4839_p5)  ;;  %v1066_v58 = vld [vmem:[%s6779_s1 + $0x150] sm:$0xff] (!%p4839_p5)  ;;  %v1077_v63 = vld [vmem:[%s6779_s1 + $0x1a8] sm:$0xff] (!%p4839_p5) }
 0x1de   : > { %5019 = vmatprep.subr.bf16.mxu0 %v5018_v8  ;;  %5049 = vmatpush1.bf16.msra.mxu1 %v5048_v18  ;;  %v5090_v8 = vpack.c.bf16 (!%p4839_p5), %v1039_v5, %v1035_v4  ;;  %v1043_v18 = vld [vmem:[%s6779_s1 + $0x98] sm:$0xff] (!%p4839_p5)  ;;  %v1064_v52 = vld [vmem:[%s6779_s1 + $0x140] sm:$0xff] (!%p4839_p5)  ;;  %v1078_v10 = vld [vmem:[%s6779_s1 + $0x1b0] sm:$0xff] (!%p4839_p5) }
 0x1df   : > { %5051 = vmatprep.subr.bf16.mxu1 %v5050_v19  ;;  %v1047_v19 = vld [vmem:[%s6779_s1 + $0xb8] sm:$0xff] (!%p4839_p5)  ;;  %v1068_v57 = vld [vmem:[%s6779_s1 + $0x160] sm:$0xff] (!%p4839_p5)  ;;  %v1081_v11 = vld [vmem:[%s6779_s1 + $0x1c8] sm:$0xff] (!%p4839_p5) }
 0x1e0   : > { %v5094_v21 = vpack.c.bf16 (!%p4839_p5), %v1047_v19, %v1043_v18  ;;  %v1075_v0 = vld [vmem:[%s6779_s1 + $0x198] sm:$0xff] (!%p4839_p5)  ;;  %v1072_v5 = vld [vmem:[%s6779_s1 + $0x180] sm:$0xff] (!%p4839_p5) }
 0x1e1   : > { %5021 = vmatpush1.bf16.msra.mxu0 %v5020_v17  ;;  %v5062_v17 = vpack.c.bf16 (!%p4839_p5), %v1045_v15, %v1041_v14  ;;  %v1079_v1 = vld [vmem:[%s6779_s1 + $0x1b8] sm:$0xff] (!%p4839_p5)  ;;  %v1080_v18 = vld [vmem:[%s6779_s1 + $0x1c0] sm:$0xff] (!%p4839_p5) }
 0x1e2   : > { %5053 = vmatpush1.bf16.msra.mxu1 %v5052_v22  ;;  %5055 = vmatprep.subr.bf16.mxu0 (!%p4839_p5), %v5054_v56  ;;  %v1044_v22 = vld [vmem:[%s6779_s1 + $0xa0] sm:$0xff] (!%p4839_p5)  ;;  %v5110_v9 = vpack.c.bf16 (!%p4839_p5), %v1079_v1, %v1075_v0  ;;  %v1083_v13 = vld [vmem:[%s6779_s1 + $0x1d8] sm:$0xff] (!%p4839_p5) }
 0x1e3   : > { %5087 = vmatprep.subr.bf16.mxu1 (!%p4839_p5), %v5086_v61  ;;  %v1070_v61 = vld [vmem:[%s6779_s1 + $0x170] sm:$0xff] (!%p4839_p5)  ;;  %v1087_v14 = vld [vmem:[%s6779_s1 + $0x1f8] sm:$0xff] (!%p4839_p5)  ;;  %v1084_v19 = vld [vmem:[%s6779_s1 + $0x1e0] sm:$0xff] (!%p4839_p5) }
 0x1e4   : > { %913 = vmatmul.mubr.f32.vlgmr.msra.gmra.mrb[0].mxu0 %v6469_v59  ;;  %v5108_v3 = vpack.c.bf16 (!%p4839_p5), %v1070_v61, %v1066_v58 }
 0x1e5   : > { %984 = vmatmul.mubr.f32.vlgmr.msra.gmra.mrb[0].mxu1 %v6469_v59  ;;  %1174 = vmatprep.mubr.f32.mxu0 (!%p4839_p5), %v6470_v60 }
 0x1e6   : > { %1245 = vmatprep.mubr.f32.mxu1 (!%p4839_p5), %v6470_v60  ;;  %5057 = vmatpush1.bf16.msra.mxu0 (!%p4839_p5), %v5056_v62  ;;  %v1073_v62 = vld [vmem:[%s6779_s1 + $0x188] sm:$0xff] (!%p4839_p5) }
 0x1e7   : > { %5089 = vmatpush1.bf16.msra.mxu1 (!%p4839_p5), %v5088_v2  ;;  %5059 = vmatprep.subr.bf16.mxu0 (!%p4839_p5), %v5058_v6  ;;  %v5076_v2 = vpack.c.bf16 (!%p4839_p5), %v1068_v57, %v1064_v52  ;;  %v5078_v4 = vpack.c.bf16 (!%p4839_p5), %v1077_v63, %v1073_v62  ;;  %v1076_v6 = vld [vmem:[%s6779_s1 + $0x1a0] sm:$0xff] (!%p4839_p5) }
 0x1e8   : > { %5091 = vmatprep.subr.bf16.mxu1 (!%p4839_p5), %v5090_v8  ;;  %v1074_v8 = vld [vmem:[%s6779_s1 + $0x190] sm:$0xff] (!%p4839_p5)  ;;  %v5080_v15 = vpack.c.bf16 (!%p4839_p5), %v1076_v6, %v1072_v5 }
 0x1ea   : > { %5061 = vmatpush1.bf16.msra.mxu0 (!%p4839_p5), %v5060_v12  ;;  %v1085_v12 = vld [vmem:[%s6779_s1 + $0x1e8] sm:$0xff] (!%p4839_p5) }
 0x1eb   : > { %5093 = vmatpush1.bf16.msra.mxu1 (!%p4839_p5), %v5092_v16  ;;  %5063 = vmatprep.subr.bf16.mxu0 (!%p4839_p5), %v5062_v17  ;;  %v5112_v16 = vpack.c.bf16 (!%p4839_p5), %v1078_v10, %v1074_v8  ;;  %v5082_v17 = vpack.c.bf16 (!%p4839_p5), %v1085_v12, %v1081_v11 }
 0x1ec   : > { %5095 = vmatprep.subr.bf16.mxu1 (!%p4839_p5), %v5094_v21  ;;  %v1082_v21 = vld [vmem:[%s6779_s1 + $0x1d0] sm:$0xff] (!%p4839_p5) }
 0x2b7   : > { %v914_v25 = vpop.f32.mrb[0].mxu0 }
 0x2b8   : > { %v990_v26 = vadd.f32 %v914_v25, %v780_v23  ;;  %v916_v27 = vpop.f32.mrb[1].mxu0  ;;  %v985_v32 = vpop.f32.mrb[0].mxu1  ;;  %v1042_v23 = vld [vmem:[%s6779_s1 + $0x90] sm:$0xff] (!%p4839_p5)  ;;  %v5064_v25 = vpack.c.bf16 (!%p4839_p5), %v1044_v22, %v1040_v20  ;;  %v5114_v20 = vpack.c.bf16 (!%p4839_p5), %v1087_v14, %v1083_v13 }
 0x2b9   : > { %v991_v28 = vadd.f32 %v916_v27, %v781_v24  ;;  %v987_v33 = vpop.f32.mrb[1].mxu1  ;;  %v992_v37 = vadd.f32 %v985_v32, %v782_v35  ;;  %v1046_v24 = vld [vmem:[%s6779_s1 + $0xb0] sm:$0xff] (!%p4839_p5)  ;;  %v1053_v27 = vld [vmem:[%s6779_s1 + $0xe8] sm:$0xff] (!%p4839_p5)  ;;  %v1048_v32 = vld [vmem:[%s6779_s1 + $0xc0] sm:$0xff] (!%p4839_p5) }
 0x2ba   : > { %v4836_v29 = vmul.f32 -1.442695, %v990_v26  ;;  %v993_v34 = vadd.f32 %v987_v33, %v783_v31  ;;  %v1049_v26 = vld [vmem:[%s6779_s1 + $0xc8] sm:$0xff] (!%p4839_p5)  ;;  %v1055_v31 = vld [vmem:[%s6779_s1 + $0xf8] sm:$0xff] (!%p4839_p5)  ;;  %v1052_v33 = vld [vmem:[%s6779_s1 + $0xe0] sm:$0xff] (!%p4839_p5)  ;;  %5065 = vmatpush1.bf16.msra.mxu0 (!%p4839_p5), %v5064_v25  ;;  %v1090_v25 = vlaneseq (!%p4839_p5) }
 0x2bb   : > { %v4837_v30 = vmul.f32 -1.442695, %v991_v28  ;;  %v1051_v28 = vld [vmem:[%s6779_s1 + $0xd8] sm:$0xff] (!%p4839_p5)  ;;  %v1050_v35 = vld [vmem:[%s6779_s1 + $0xd0] sm:$0xff] (!%p4839_p5) }
 0x2bc   : > { %6144 = vpow2.f32 %v4836_v29  ;;  %v4838_v36 = vmul.f32 -1.442695, %v993_v34  ;;  %v5096_v29 = vpack.c.bf16 (!%p4839_p5), %v1046_v24, %v1042_v23  ;;  %v5098_v34 = vpack.c.bf16 (!%p4839_p5), %v1055_v31, %v1051_v28  ;;  %v1086_v22 = vld [vmem:[%s6779_s1 + $0x1f0] sm:$0xff] (!%p4839_p5) }
 0x2bd   : > { %6146 = vpow2.f32 %v4837_v30  ;;  %v5066_v30 = vpack.c.bf16 (!%p4839_p5), %v1053_v27, %v1049_v26  ;;  %v5084_v23 = vpack.c.bf16 (!%p4839_p5), %v1084_v19, %v1080_v18  ;;  %v5116_v24 = vpack.c.bf16 (!%p4839_p5), %v1086_v22, %v1082_v21  ;;  %v1088_v28 = vld [vmem:[%s6801_s11] sm:$0xf] (!%p4839_p5) }
 0x2be   : > { %6148 = vpow2.f32 %v4838_v36  ;;  %v1054_v36 = vld [vmem:[%s6779_s1 + $0xf0] sm:$0xff] (!%p4839_p5)  ;;  %5097 = vmatpush1.bf16.msra.mxu1 (!%p4839_p5), %v5096_v29  ;;  %v1091_v26 = vshrl.u32 (!%p4839_p5), %v1090_v25, 7 }
 0x2bf   : > { %6150 = vtanh.f32 %v992_v37  ;;  %v1057_v37 = vld [vmem:[%s6779_s1 + $0x108] sm:$0xff] (!%p4839_p5)  ;;  %5067 = vmatprep.subr.bf16.mxu0 (!%p4839_p5), %v5066_v30  ;;  %5099 = vmatprep.subr.bf16.mxu1 (!%p4839_p5), %v5098_v34 }
 0x2c0   : > { %v1092_v27 = vsub.s32 (!%p4839_p5), 0, %v1091_v26  ;;  %v1100_v29 = vsub.s32 (!%p4839_p5), 2, %v1091_v26  ;;  %v1096_v30 = vsub.s32 (!%p4839_p5), 1, %v1091_v26  ;;  %v1104_v31 = vsub.s32 (!%p4839_p5), 3, %v1091_v26 }
 0x2c2   : > { %v1097_v34 = vrot.slane (!%p4839_p5), %v1088_v28, %v1096_v30 }
 0x2c6   : > { %v6145_v38 = vpop.eup %6144 }
 0x2c7   : > { %v6147_v39 = vpop.eup %6146  ;;  %v997_v40 = vadd.f32 1.0, %v6145_v38  ;;  %v1061_v38 = vld [vmem:[%s6779_s1 + $0x128] sm:$0xff] (!%p4839_p5) }
 0x2c8   : > { %v1003_v41 = vadd.f32 1.0, %v6147_v39  ;;  %v6149_v42 = vpop.eup %6148  ;;  %v1059_v39 = vld [vmem:[%s6779_s1 + $0x118] sm:$0xff] (!%p4839_p5) }
 0x2c9   : > { %6152 = vrcp.f32 %v997_v40  ;;  %v6151_v43 = vpop.eup %6150  ;;  %v1010_v45 = vadd.f32 1.0, %v6149_v42  ;;  %v1063_v40 = vld [vmem:[%s6779_s1 + $0x138] sm:$0xff] (!%p4839_p5)  ;;  %v5100_v42 = vpack.c.bf16 (!%p4839_p5), %v1054_v36, %v1050_v35  ;;  %v1105_v35 = vrot.slane (!%p4839_p5), %v1088_v28, %v1104_v31 }
 0x2ca   : > { %6154 = vrcp.f32 %v1003_v41  ;;  %v5068_v41 = vpack.c.bf16 (!%p4839_p5), %v1052_v33, %v1048_v32  ;;  %v1093_v32 = vrot.slane (!%p4839_p5), %v1088_v28, %v1092_v27  ;;  %v1101_v33 = vrot.slane (!%p4839_p5), %v1088_v28, %v1100_v29 }
 0x2cb   : > { %6156 = vrcp.f32 %v1010_v45  ;;  %v1060_v45 = vld [vmem:[%s6779_s1 + $0x120] sm:$0xff] (!%p4839_p5)  ;;  %5101 = vmatpush1.bf16.msra.mxu1 (!%p4839_p5), %v5100_v42 }
 0x2cc   : > { %5069 = vmatpush1.bf16.msra.mxu0 (!%p4839_p5), %v5068_v41 }
 0x2d3   : > { %v6153_v44 = vpop.eup %6152 }
 0x2d4   : > { %v6155_v46 = vpop.eup %6154  ;;  %v1015_v47 = vmul.f32 %v6153_v44, %v6151_v43  ;;  %v5070_v43 = vpack.c.bf16 (!%p4839_p5), %v1061_v38, %v1057_v37  ;;  %v1056_v44 = vld [vmem:[%s6779_s1 + $0x100] sm:$0xff] (!%p4839_p5) }
 0x2d5   : > { %v1014_v48 = vmul.f32 0.0, %v6155_v46  ;;  %v6157_v53 = vpop.eup %6156  ;;  %v1058_v46 = vld [vmem:[%s6779_s1 + $0x110] sm:$0xff] (!%p4839_p5)  ;;  %v5072_v50 = vpack.c.bf16 (!%p4839_p5), %v1060_v45, %v1056_v44 }
 0x2d6   : > { %5071 = vmatprep.subr.bf16.mxu0 (!%p4839_p5), %v5070_v43 }
 0x2d7   : > { %v1016_v7 = vadd.f32 %v1015_v47, %v1014_v48  ;;  %v5102_v47 = vpack.c.bf16 (!%p4839_p5), %v1063_v40, %v1059_v39  ;;  %v1062_v48 = vld [vmem:[%s6779_s1 + $0x130] sm:$0xff] (!%p4839_p5)  ;;  %5073 = vmatpush1.bf16.msra.mxu0 (!%p4839_p5), %v5072_v50 }
 0x2d8   : > { %v5104_v51 = vpack.c.bf16 (!%p4839_p5), %v1062_v48, %v1058_v46 }
 0x2d9   : > { %6158 = vtanh.f32 %v1016_v7  ;;  %1019 = vst [vmem:[#allocation4] sm:$0xff] %v1016_v7  ;;  %v1065_v7 = vld [vmem:[%s6779_s1 + $0x148] sm:$0xff] (!%p4839_p5)  ;;  %5103 = vmatprep.subr.bf16.mxu1 (!%p4839_p5), %v5102_v47 }
 0x2da   : > { %5105 = vmatpush1.bf16.msra.mxu1 (!%p4839_p5), %v5104_v51 }
 0x2e0   : > { %1023 = sbr.rel (%p4839_p5) target bundleno = 971 (0x3cb), region = 76 }
 0x2e3   : > { %v6159_v54 = vpop.eup %6158 }
 0x2e4   : > { %v6956_v55 = vmul.f32 %v6159_v54, %v6157_v53  ;;  %v1069_v53 = vld [vmem:[%s6779_s1 + $0x168] sm:$0xff] (!%p4839_p5)  ;;  %v1067_v54 = vld [vmem:[%s6779_s1 + $0x158] sm:$0xff] (!%p4839_p5) }
 0x2e5   : > { %v5074_v56 = vpack.c.bf16 (!%p4839_p5), %v1069_v53, %v1065_v7  ;;  %v5106_v60 = vpack.c.bf16 (!%p4839_p5), %v1071_v49, %v1067_v54 }
 0x2e6   : > { %1020 = vst [vmem:[#allocation3] sm:$0xff] %v6956_v55 }
 0x2e7   : > { %5075 = vmatprep.subr.bf16.mxu0 %v5074_v56  ;;  %5107 = vmatprep.subr.bf16.mxu1 %v5106_v60 }
 0x2e8   : > { %5077 = vmatpush1.bf16.msra.mxu0 %v5076_v2  ;;  %5109 = vmatpush1.bf16.msra.mxu1 %v5108_v3 }
 0x2e9   : > { %5079 = vmatprep.subr.bf16.mxu0 %v5078_v4  ;;  %5111 = vmatprep.subr.bf16.mxu1 %v5110_v9 }
 0x2ec   : > { %5081 = vmatpush1.bf16.msra.mxu0 %v5080_v15  ;;  %5113 = vmatpush1.bf16.msra.mxu1 %v5112_v16 }
 0x2ed   : > { %5083 = vmatprep.subr.bf16.mxu0 %v5082_v17  ;;  %5115 = vmatprep.subr.bf16.mxu1 %v5114_v20 }
 0x2f0   : > { %5085 = vmatpush1.bf16.msra.mxu0 %v5084_v23  ;;  %5117 = vmatpush1.bf16.msra.mxu1 %v5116_v24 }
 0x2f3   : > { %1175 = vmatmul.mubr.f32.vlgmr.msra.gmra.mrb[0].mxu0 %v6956_v55  ;;  %1246 = vmatmul.mubr.f32.vlgmr.msra.gmra.mrb[0].mxu1 %v6956_v55 }
 0x3c6   : > { %v1176_v36 = vpop.f32.mrb[0].mxu0  ;;  %v1247_v38 = vpop.f32.mrb[0].mxu1 }
 0x3c7   : > { %v1177_v37 = vadd.f32 %v1176_v36, %v1093_v32  ;;  %v1178_v39 = vpop.f32.mrb[1].mxu0  ;;  %v1248_v40 = vadd.f32 %v1247_v38, %v1101_v33  ;;  %v1249_v42 = vpop.f32.mrb[1].mxu1 }
 0x3c8   : > { %v1179_v41 = vadd.f32 %v1178_v39, %v1097_v34  ;;  %v1250_v55 = vadd.f32 %v1249_v42, %v1105_v35 }
 0x3c9   : > { %1252 = vst [vmem:[#allocation2] sm:$0xff] %v1177_v37  ;;  %1254 = vst [vmem:[#allocation2 + $0x10] sm:$0xff] %v1248_v40 }
 0x3ca   : > { %1253 = vst [vmem:[#allocation2 + $0x8] sm:$0xff] %v1179_v41  ;;  %1255 = vst [vmem:[#allocation2 + $0x18] sm:$0xff] %v1250_v55 }
 0x3cb PF: > { %v1265_v43 = vld [vmem:[%s6786_s16 + $0x8] sm:$0xff]  ;;  %v1264_v45 = vld [vmem:[%s6786_s16] sm:$0xff]  ;;  %1392 = vmatprep.mubr.f32.mxu0 %v6469_v59  ;;  %1463 = vmatprep.mubr.f32.mxu1 %v6469_v59  ;;  %v1267_v62 = vld [vmem:[%s6786_s16 + $0x18] sm:$0xff] }
 0x3cc   : > { %v1269_v44 = vld [vmem:[%s6786_s16 + $0x28] sm:$0xff]  ;;  %v1268_v47 = vld [vmem:[%s6786_s16 + $0x20] sm:$0xff]  ;;  %v1271_v63 = vld [vmem:[%s6786_s16 + $0x38] sm:$0xff] }
 0x3cd   : > { %v5118_v46 = vpack.c.bf16 %v1269_v44, %v1265_v43  ;;  %v1273_v48 = vld [vmem:[%s6786_s16 + $0x48] sm:$0xff]  ;;  %v5120_v53 = vpack.c.bf16 %v1268_v47, %v1264_v45  ;;  %v1272_v49 = vld [vmem:[%s6786_s16 + $0x40] sm:$0xff]  ;;  %v5150_v1 = vpack.c.bf16 %v1271_v63, %v1267_v62  ;;  %v1266_v2 = vld [vmem:[%s6786_s16 + $0x10] sm:$0xff] }
 0x3ce   : > { %v1277_v7 = vld [vmem:[%s6786_s16 + $0x68] sm:$0xff]  ;;  %v1276_v50 = vld [vmem:[%s6786_s16 + $0x60] sm:$0xff]  ;;  %v1270_v3 = vld [vmem:[%s6786_s16 + $0x30] sm:$0xff] }
 0x3cf   : > { %v5122_v54 = vpack.c.bf16 %v1277_v7, %v1273_v48  ;;  %v1281_v51 = vld [vmem:[%s6786_s16 + $0x88] sm:$0xff]  ;;  %5119 = vmatprep.subr.bf16.mxu0 %v5118_v46  ;;  %v5124_v52 = vpack.c.bf16 %v1276_v50, %v1272_v49  ;;  %v1280_v57 = vld [vmem:[%s6786_s16 + $0x80] sm:$0xff]  ;;  %v5152_v4 = vpack.c.bf16 %v1270_v3, %v1266_v2  ;;  %5151 = vmatprep.subr.bf16.mxu1 %v5150_v1  ;;  %v1275_v6 = vld [vmem:[%s6786_s16 + $0x58] sm:$0xff] }
 0x3d0   : > { %v1285_v56 = vld [vmem:[%s6786_s16 + $0xa8] sm:$0xff]  ;;  %5121 = vmatpush1.bf16.msra.mxu0 %v5120_v53  ;;  %v1284_v58 = vld [vmem:[%s6786_s16 + $0xa0] sm:$0xff]  ;;  %v1279_v8 = vld [vmem:[%s6786_s16 + $0x78] sm:$0xff] }
 0x3d1   : > { %5123 = vmatprep.subr.bf16.mxu0 %v5122_v54  ;;  %v5126_v60 = vpack.c.bf16 %v1285_v56, %v1281_v51  ;;  %v1289_v61 = vld [vmem:[%s6786_s16 + $0xc8] sm:$0xff]  ;;  %v5128_v5 = vpack.c.bf16 %v1284_v58, %v1280_v57  ;;  %v1274_v9 = vld [vmem:[%s6786_s16 + $0x50] sm:$0xff]  ;;  %v1288_v11 = vld [vmem:[%s6786_s16 + $0xc0] sm:$0xff]  ;;  %5153 = vmatpush1.bf16.msra.mxu1 %v5152_v4  ;;  %v5154_v13 = vpack.c.bf16 %v1279_v8, %v1275_v6 }
 0x3d2   : > { %v1293_v0 = vld [vmem:[%s6786_s16 + $0xe8] sm:$0xff]  ;;  %v1292_v12 = vld [vmem:[%s6786_s16 + $0xe0] sm:$0xff]  ;;  %v1278_v14 = vld [vmem:[%s6786_s16 + $0x70] sm:$0xff] }
 0x3d3   : > { %v5130_v10 = vpack.c.bf16 %v1293_v0, %v1289_v61  ;;  %v1297_v15 = vld [vmem:[%s6786_s16 + $0x108] sm:$0xff]  ;;  %v5156_v17 = vpack.c.bf16 %v1278_v14, %v1274_v9  ;;  %v1283_v18 = vld [vmem:[%s6786_s16 + $0x98] sm:$0xff]  ;;  %5155 = vmatprep.subr.bf16.mxu1 %v5154_v13  ;;  %v1282_v20 = vld [vmem:[%s6786_s16 + $0x90] sm:$0xff]  ;;  %v5132_v22 = vpack.c.bf16 %v1292_v12, %v1288_v11 }
 0x3d4   : > { %5125 = vmatpush1.bf16.msra.mxu0 %v5124_v52  ;;  %v1301_v16 = vld [vmem:[%s6786_s16 + $0x128] sm:$0xff]  ;;  %v1287_v19 = vld [vmem:[%s6786_s16 + $0xb8] sm:$0xff]  ;;  %v1286_v21 = vld [vmem:[%s6786_s16 + $0xb0] sm:$0xff] }
 0x3d5   : > { %5127 = vmatprep.subr.bf16.mxu0 %v5126_v60  ;;  %v1296_v23 = vld [vmem:[%s6786_s16 + $0x100] sm:$0xff]  ;;  %v5158_v25 = vpack.c.bf16 %v1287_v19, %v1283_v18  ;;  %v5134_v26 = vpack.c.bf16 %v1301_v16, %v1297_v15  ;;  %5157 = vmatpush1.bf16.msra.mxu1 %v5156_v17  ;;  %v1305_v27 = vld [vmem:[%s6786_s16 + $0x148] sm:$0xff]  ;;  %v5160_v28 = vpack.c.bf16 %v1286_v21, %v1282_v20  ;;  %v1291_v29 = vld [vmem:[%s6786_s16 + $0xd8] sm:$0xff] }
 0x3d6   : > { %v1300_v24 = vld [vmem:[%s6786_s16 + $0x120] sm:$0xff]  ;;  %v1295_v30 = vld [vmem:[%s6786_s16 + $0xf8] sm:$0xff]  ;;  %v1309_v31 = vld [vmem:[%s6786_s16 + $0x168] sm:$0xff] }
 0x3d7   : > { %5159 = vmatprep.subr.bf16.mxu1 %v5158_v25  ;;  %v5162_v32 = vpack.c.bf16 %v1295_v30, %v1291_v29  ;;  %v1290_v33 = vld [vmem:[%s6786_s16 + $0xd0] sm:$0xff]  ;;  %v5136_v35 = vpack.c.bf16 %v1300_v24, %v1296_v23  ;;  %v1299_v36 = vld [vmem:[%s6786_s16 + $0x118] sm:$0xff]  ;;  %v5138_v38 = vpack.c.bf16 %v1309_v31, %v1305_v27  ;;  %v1304_v39 = vld [vmem:[%s6786_s16 + $0x140] sm:$0xff] }
 0x3d8   : > { %5129 = vmatpush1.bf16.msra.mxu0 %v5128_v5  ;;  %v1294_v34 = vld [vmem:[%s6786_s16 + $0xf0] sm:$0xff]  ;;  %v1303_v37 = vld [vmem:[%s6786_s16 + $0x138] sm:$0xff]  ;;  %v1308_v40 = vld [vmem:[%s6786_s16 + $0x160] sm:$0xff] }
 0x3d9   : > { %5131 = vmatprep.subr.bf16.mxu0 %v5130_v10  ;;  %5161 = vmatpush1.bf16.msra.mxu1 %v5160_v28  ;;  %v1313_v41 = vld [vmem:[%s6786_s16 + $0x188] sm:$0xff]  ;;  %v5164_v42 = vpack.c.bf16 %v1294_v34, %v1290_v33  ;;  %v5166_v43 = vpack.c.bf16 %v1303_v37, %v1299_v36  ;;  %v1298_v44 = vld [vmem:[%s6786_s16 + $0x110] sm:$0xff]  ;;  %v1307_v46 = vld [vmem:[%s6786_s16 + $0x158] sm:$0xff]  ;;  %v5140_v48 = vpack.c.bf16 %v1308_v40, %v1304_v39 }
 0x3da   : > { %v1317_v55 = vld [vmem:[%s6786_s16 + $0x1a8] sm:$0xff]  ;;  %5163 = vmatprep.subr.bf16.mxu1 %v5162_v32  ;;  %v1302_v45 = vld [vmem:[%s6786_s16 + $0x130] sm:$0xff]  ;;  %v1311_v47 = vld [vmem:[%s6786_s16 + $0x178] sm:$0xff] }
 0x3db   : > { %v5142_v7 = vpack.c.bf16 %v1317_v55, %v1313_v41  ;;  %v1312_v53 = vld [vmem:[%s6786_s16 + $0x180] sm:$0xff]  ;;  %v1321_v49 = vld [vmem:[%s6786_s16 + $0x1c8] sm:$0xff]  ;;  %v5168_v50 = vpack.c.bf16 %v1302_v45, %v1298_v44  ;;  %v5170_v56 = vpack.c.bf16 %v1311_v47, %v1307_v46  ;;  %v1306_v52 = vld [vmem:[%s6786_s16 + $0x150] sm:$0xff] }
 0x3dc   : > { %5133 = vmatpush1.bf16.msra.mxu0 %v5132_v22  ;;  %v1316_v54 = vld [vmem:[%s6786_s16 + $0x1a0] sm:$0xff]  ;;  %v1325_v51 = vld [vmem:[%s6786_s16 + $0x1e8] sm:$0xff]  ;;  %v1310_v57 = vld [vmem:[%s6786_s16 + $0x170] sm:$0xff] }
 0x3dd   : > { %5135 = vmatprep.subr.bf16.mxu0 %v5134_v26  ;;  %5165 = vmatpush1.bf16.msra.mxu1 %v5164_v42  ;;  %v1315_v58 = vld [vmem:[%s6786_s16 + $0x198] sm:$0xff]  ;;  %v5144_v61 = vpack.c.bf16 %v1316_v54, %v1312_v53  ;;  %v5146_v62 = vpack.c.bf16 %v1325_v51, %v1321_v49  ;;  %v1320_v63 = vld [vmem:[%s6786_s16 + $0x1c0] sm:$0xff]  ;;  %v5172_v1 = vpack.c.bf16 %v1310_v57, %v1306_v52  ;;  %v1314_v3 = vld [vmem:[%s6786_s16 + $0x190] sm:$0xff]  ;;  %v6471_v49 = vmov (!%p4839_p5), 0.0  }
 0x3de   : > { %5167 = vmatprep.subr.bf16.mxu1 %v5166_v43  ;;  %v1319_v60 = vld [vmem:[%s6786_s16 + $0x1b8] sm:$0xff]  ;;  %v1324_v0 = vld [vmem:[%s6786_s16 + $0x1e0] sm:$0xff]  ;;  %v1318_v4 = vld [vmem:[%s6786_s16 + $0x1b0] sm:$0xff] }
 0x3df   : > { %v5174_v2 = vpack.c.bf16 %v1319_v60, %v1315_v58  ;;  %v1323_v5 = vld [vmem:[%s6786_s16 + $0x1d8] sm:$0xff]  ;;  %v5148_v8 = vpack.c.bf16 %v1324_v0, %v1320_v63  ;;  %v5176_v9 = vpack.c.bf16 %v1318_v4, %v1314_v3  ;;  %v1322_v11 = vld [vmem:[%s6786_s16 + $0x1d0] sm:$0xff]  ;;  %v1263_v23 = vld [vmem:[#allocation2 + $0x38] sm:$0xff] }
 0x3e0   : > { %5137 = vmatpush1.bf16.msra.mxu0 %v5136_v35  ;;  %v1327_v6 = vld [vmem:[%s6786_s16 + $0x1f8] sm:$0xff]  ;;  %v1326_v12 = vld [vmem:[%s6786_s16 + $0x1f0] sm:$0xff]  ;;  %v1262_v27 = vld [vmem:[#allocation2 + $0x30] sm:$0xff] }
 0x3e1   : > { %5139 = vmatprep.subr.bf16.mxu0 %v5138_v38  ;;  %5169 = vmatpush1.bf16.msra.mxu1 %v5168_v50  ;;  %v5178_v10 = vpack.c.bf16 %v1327_v6, %v1323_v5  ;;  %v1256_v13 = vld [vmem:[#allocation3] sm:$0xff]  ;;  %v5180_v14 = vpack.c.bf16 %v1326_v12, %v1322_v11  ;;  %v1261_v16 = vld [vmem:[#allocation2 + $0x28] sm:$0xff]  ;;  %v1505_v45 = vld [vmem:[%s6779_s1 + $0x8] sm:$0xff] (!%p4839_p5) }
 0x3e2   : > { %5171 = vmatprep.subr.bf16.mxu1 %v5170_v56  ;;  %v1260_v15 = vld [vmem:[#allocation2 + $0x20] sm:$0xff]  ;;  %v1493_v36 = vld [vmem:[#allocation4] sm:$0xff]  ;;  %v1509_v46 = vld [vmem:[%s6779_s1 + $0x28] sm:$0xff] (!%p4839_p5) }
 0x3e3   : > { %v1507_v47 = vld [vmem:[%s6779_s1 + $0x18] sm:$0xff] (!%p4839_p5)  ;;  %v1504_v53 = vld [vmem:[%s6779_s1] sm:$0xff] (!%p4839_p5)  ;;  %v1506_v56 = vld [vmem:[%s6779_s1 + $0x10] sm:$0xff] (!%p4839_p5) }
 0x3e4   : > { %5141 = vmatpush1.bf16.msra.mxu0 %v5140_v48  ;;  %v5182_v48 = vpack.c.bf16 (!%p4839_p5), %v1509_v46, %v1505_v45  ;;  %v1508_v54 = vld [vmem:[%s6779_s1 + $0x20] sm:$0xff] (!%p4839_p5)  ;;  %v1510_v52 = vld [vmem:[%s6779_s1 + $0x30] sm:$0xff] (!%p4839_p5)  ;;  %v1513_v57 = vld [vmem:[%s6779_s1 + $0x48] sm:$0xff] (!%p4839_p5) }
 0x3e5   : > { %5143 = vmatprep.subr.bf16.mxu0 %v5142_v7  ;;  %5173 = vmatpush1.bf16.msra.mxu1 %v5172_v1  ;;  %v1511_v7 = vld [vmem:[%s6779_s1 + $0x38] sm:$0xff] (!%p4839_p5)  ;;  %v5184_v51 = vpack.c.bf16 (!%p4839_p5), %v1508_v54, %v1504_v53  ;;  %v5216_v58 = vpack.c.bf16 (!%p4839_p5), %v1510_v52, %v1506_v56  ;;  %v1517_v60 = vld [vmem:[%s6779_s1 + $0x68] sm:$0xff] (!%p4839_p5)  ;;  %v1512_v1 = vld [vmem:[%s6779_s1 + $0x40] sm:$0xff] (!%p4839_p5) }
 0x3e6   : > { %5175 = vmatprep.subr.bf16.mxu1 %v5174_v2  ;;  %v5214_v50 = vpack.c.bf16 (!%p4839_p5), %v1511_v7, %v1507_v47  ;;  %v5186_v63 = vpack.c.bf16 (!%p4839_p5), %v1517_v60, %v1513_v57  ;;  %v1516_v2 = vld [vmem:[%s6779_s1 + $0x60] sm:$0xff] (!%p4839_p5)  ;;  %v1514_v3 = vld [vmem:[%s6779_s1 + $0x50] sm:$0xff] (!%p4839_p5)  ;;  %v1521_v6 = vld [vmem:[%s6779_s1 + $0x88] sm:$0xff] (!%p4839_p5) }
 0x3e7   : > { %v5188_v4 = vpack.c.bf16 (!%p4839_p5), %v1516_v2, %v1512_v1  ;;  %v1518_v5 = vld [vmem:[%s6779_s1 + $0x70] sm:$0xff] (!%p4839_p5)  ;;  %v1523_v11 = vld [vmem:[%s6779_s1 + $0x98] sm:$0xff] (!%p4839_p5)  ;;  %v1544_v7 = vld [vmem:[%s6779_s1 + $0x140] sm:$0xff] (!%p4839_p5) }
 0x3e8   : > { %5145 = vmatpush1.bf16.msra.mxu0 %v5144_v61  ;;  %v1515_v61 = vld [vmem:[%s6779_s1 + $0x58] sm:$0xff] (!%p4839_p5)  ;;  %v1548_v53 = vld [vmem:[%s6779_s1 + $0x160] sm:$0xff] (!%p4839_p5)  ;;  %v1546_v54 = vld [vmem:[%s6779_s1 + $0x150] sm:$0xff] (!%p4839_p5) }
 0x3e9   : > { %5147 = vmatprep.subr.bf16.mxu0 %v5146_v62  ;;  %5177 = vmatpush1.bf16.msra.mxu1 %v5176_v9  ;;  %v1519_v62 = vld [vmem:[%s6779_s1 + $0x78] sm:$0xff] (!%p4839_p5)  ;;  %v5220_v9 = vpack.c.bf16 (!%p4839_p5), %v1518_v5, %v1514_v3  ;;  %v1557_v56 = vld [vmem:[%s6779_s1 + $0x1a8] sm:$0xff] (!%p4839_p5)  ;;  %v1558_v2 = vld [vmem:[%s6779_s1 + $0x1b0] sm:$0xff] (!%p4839_p5) }
 0x3ea   : > { %5179 = vmatprep.subr.bf16.mxu1 %v5178_v10  ;;  %v5218_v0 = vpack.c.bf16 (!%p4839_p5), %v1519_v62, %v1515_v61  ;;  %v1527_v12 = vld [vmem:[%s6779_s1 + $0xb8] sm:$0xff] (!%p4839_p5)  ;;  %v1552_v62 = vld [vmem:[%s6779_s1 + $0x180] sm:$0xff] (!%p4839_p5)  ;;  %v1561_v3 = vld [vmem:[%s6779_s1 + $0x1c8] sm:$0xff] (!%p4839_p5) }
 0x3eb   : > { %v1551_v45 = vld [vmem:[%s6779_s1 + $0x178] sm:$0xff] (!%p4839_p5) }
 0x3ec   : > { %5149 = vmatpush1.bf16.msra.mxu0 %v5148_v8  ;;  %v1525_v8 = vld [vmem:[%s6779_s1 + $0xa8] sm:$0xff] (!%p4839_p5)  ;;  %v1555_v52 = vld [vmem:[%s6779_s1 + $0x198] sm:$0xff] (!%p4839_p5) }
 0x3ed   : > { %5181 = vmatpush1.bf16.msra.mxu1 %v5180_v14  ;;  %5183 = vmatprep.subr.bf16.mxu0 (!%p4839_p5), %v5182_v48  ;;  %v5190_v10 = vpack.c.bf16 (!%p4839_p5), %v1525_v8, %v1521_v6  ;;  %v5222_v14 = vpack.c.bf16 (!%p4839_p5), %v1527_v12, %v1523_v11  ;;  %v1559_v57 = vld [vmem:[%s6779_s1 + $0x1b8] sm:$0xff] (!%p4839_p5)  ;;  %v1560_v11 = vld [vmem:[%s6779_s1 + $0x1c0] sm:$0xff] (!%p4839_p5) }
 0x3ee   : > { %5215 = vmatprep.subr.bf16.mxu1 (!%p4839_p5), %v5214_v50  ;;  %v1550_v50 = vld [vmem:[%s6779_s1 + $0x170] sm:$0xff] (!%p4839_p5)  ;;  %v5238_v1 = vpack.c.bf16 (!%p4839_p5), %v1559_v57, %v1555_v52  ;;  %v1563_v5 = vld [vmem:[%s6779_s1 + $0x1d8] sm:$0xff] (!%p4839_p5)  ;;  %v1564_v12 = vld [vmem:[%s6779_s1 + $0x1e0] sm:$0xff] (!%p4839_p5) }
 0x3ef   : > { %1393 = vmatmul.mubr.f32.vlgmr.msra.gmra.mrb[0].mxu0 %v1256_v13  ;;  %v5236_v60 = vpack.c.bf16 (!%p4839_p5), %v1550_v50, %v1546_v54  ;;  %v1567_v6 = vld [vmem:[%s6779_s1 + $0x1f8] sm:$0xff] (!%p4839_p5) }
 0x3f0   : > { %1464 = vmatmul.mubr.f32.vlgmr.msra.gmra.mrb[0].mxu1 %v1256_v13  ;;  %1654 = vmatprep.mubr.f32.mxu0 (!%p4839_p5), %v6471_v49  ;;  %v1520_v13 = vld [vmem:[%s6779_s1 + $0x80] sm:$0xff] (!%p4839_p5) }
 0x3f1   : > { %1725 = vmatprep.mubr.f32.mxu1 (!%p4839_p5), %v6471_v49  ;;  %5185 = vmatpush1.bf16.msra.mxu0 (!%p4839_p5), %v5184_v51  ;;  %v1553_v51 = vld [vmem:[%s6779_s1 + $0x188] sm:$0xff] (!%p4839_p5) }
 0x3f2   : > { %5217 = vmatpush1.bf16.msra.mxu1 (!%p4839_p5), %v5216_v58  ;;  %5187 = vmatprep.subr.bf16.mxu0 (!%p4839_p5), %v5186_v63  ;;  %v5204_v58 = vpack.c.bf16 (!%p4839_p5), %v1548_v53, %v1544_v7  ;;  %v5206_v61 = vpack.c.bf16 (!%p4839_p5), %v1557_v56, %v1553_v51  ;;  %v1556_v63 = vld [vmem:[%s6779_s1 + $0x1a0] sm:$0xff] (!%p4839_p5) }
 0x3f3   : > { %5219 = vmatprep.subr.bf16.mxu1 (!%p4839_p5), %v5218_v0  ;;  %v1554_v0 = vld [vmem:[%s6779_s1 + $0x190] sm:$0xff] (!%p4839_p5)  ;;  %v5208_v8 = vpack.c.bf16 (!%p4839_p5), %v1556_v63, %v1552_v62 }
 0x3f5   : > { %5189 = vmatpush1.bf16.msra.mxu0 (!%p4839_p5), %v5188_v4  ;;  %v1565_v4 = vld [vmem:[%s6779_s1 + $0x1e8] sm:$0xff] (!%p4839_p5) }
 0x3f6   : > { %5221 = vmatpush1.bf16.msra.mxu1 (!%p4839_p5), %v5220_v9  ;;  %5191 = vmatprep.subr.bf16.mxu0 (!%p4839_p5), %v5190_v10  ;;  %v5240_v9 = vpack.c.bf16 (!%p4839_p5), %v1558_v2, %v1554_v0  ;;  %v5210_v10 = vpack.c.bf16 (!%p4839_p5), %v1565_v4, %v1561_v3 }
 0x3f7   : > { %5223 = vmatprep.subr.bf16.mxu1 (!%p4839_p5), %v5222_v14  ;;  %v1562_v14 = vld [vmem:[%s6779_s1 + $0x1d0] sm:$0xff] (!%p4839_p5) }
 0x4c2   : > { %v1394_v17 = vpop.f32.mrb[0].mxu0 }
 0x4c3   : > { %v1470_v18 = vadd.f32 %v1394_v17, %v1260_v15  ;;  %v1396_v19 = vpop.f32.mrb[1].mxu0  ;;  %v1465_v24 = vpop.f32.mrb[0].mxu1  ;;  %v1524_v15 = vld [vmem:[%s6779_s1 + $0xa0] sm:$0xff] (!%p4839_p5)  ;;  %v1526_v17 = vld [vmem:[%s6779_s1 + $0xb0] sm:$0xff] (!%p4839_p5) }
 0x4c4   : > { %v1471_v20 = vadd.f32 %v1396_v19, %v1261_v16  ;;  %v1467_v25 = vpop.f32.mrb[1].mxu1  ;;  %v1472_v29 = vadd.f32 %v1465_v24, %v1262_v27  ;;  %v1522_v16 = vld [vmem:[%s6779_s1 + $0x90] sm:$0xff] (!%p4839_p5)  ;;  %v1529_v19 = vld [vmem:[%s6779_s1 + $0xc8] sm:$0xff] (!%p4839_p5)  ;;  %v1535_v24 = vld [vmem:[%s6779_s1 + $0xf8] sm:$0xff] (!%p4839_p5) }
 0x4c5   : > { %v4840_v21 = vmul.f32 -1.442695, %v1470_v18  ;;  %v1473_v26 = vadd.f32 %v1467_v25, %v1263_v23  ;;  %v5192_v18 = vpack.c.bf16 (!%p4839_p5), %v1524_v15, %v1520_v13  ;;  %v1528_v25 = vld [vmem:[%s6779_s1 + $0xc0] sm:$0xff] (!%p4839_p5)  ;;  %v5242_v13 = vpack.c.bf16 (!%p4839_p5), %v1567_v6, %v1563_v5  ;;  %v1566_v15 = vld [vmem:[%s6779_s1 + $0x1f0] sm:$0xff] (!%p4839_p5) }
 0x4c6   : > { %v4841_v22 = vmul.f32 -1.442695, %v1471_v20  ;;  %v1533_v20 = vld [vmem:[%s6779_s1 + $0xe8] sm:$0xff] (!%p4839_p5) }
 0x4c7   : > { %6160 = vpow2.f32 %v4840_v21  ;;  %v4842_v28 = vmul.f32 -1.442695, %v1473_v26  ;;  %v1531_v21 = vld [vmem:[%s6779_s1 + $0xd8] sm:$0xff] (!%p4839_p5)  ;;  %v5194_v23 = vpack.c.bf16 (!%p4839_p5), %v1533_v20, %v1529_v19  ;;  %v1532_v26 = vld [vmem:[%s6779_s1 + $0xe0] sm:$0xff] (!%p4839_p5)  ;;  %5193 = vmatpush1.bf16.msra.mxu0 (!%p4839_p5), %v5192_v18  ;;  %v1570_v18 = vlaneseq (!%p4839_p5) }
 0x4c8   : > { %6162 = vpow2.f32 %v4841_v22  ;;  %v5224_v22 = vpack.c.bf16 (!%p4839_p5), %v1526_v17, %v1522_v16  ;;  %v5226_v27 = vpack.c.bf16 (!%p4839_p5), %v1535_v24, %v1531_v21  ;;  %v5212_v16 = vpack.c.bf16 (!%p4839_p5), %v1564_v12, %v1560_v11  ;;  %v1568_v21 = vld [vmem:[%s6801_s11] sm:$0xf] (!%p4839_p5) }
 0x4c9   : > { %6164 = vpow2.f32 %v4842_v28  ;;  %v1530_v28 = vld [vmem:[%s6779_s1 + $0xd0] sm:$0xff] (!%p4839_p5)  ;;  %5195 = vmatprep.subr.bf16.mxu0 (!%p4839_p5), %v5194_v23  ;;  %v5244_v17 = vpack.c.bf16 (!%p4839_p5), %v1566_v15, %v1562_v14  ;;  %v1571_v19 = vshrl.u32 (!%p4839_p5), %v1570_v18, 7 }
 0x4ca   : > { %6166 = vtanh.f32 %v1472_v29  ;;  %v1534_v29 = vld [vmem:[%s6779_s1 + $0xf0] sm:$0xff] (!%p4839_p5)  ;;  %5225 = vmatpush1.bf16.msra.mxu1 (!%p4839_p5), %v5224_v22 }
 0x4cb   : > { %5227 = vmatprep.subr.bf16.mxu1 (!%p4839_p5), %v5226_v27  ;;  %v1572_v20 = vsub.s32 (!%p4839_p5), 0, %v1571_v19  ;;  %v1580_v22 = vsub.s32 (!%p4839_p5), 2, %v1571_v19  ;;  %v1576_v23 = vsub.s32 (!%p4839_p5), 1, %v1571_v19  ;;  %v1584_v24 = vsub.s32 (!%p4839_p5), 3, %v1571_v19 }
 0x4cd   : > { %v1577_v27 = vrot.slane (!%p4839_p5), %v1568_v21, %v1576_v23 }
 0x4d1   : > { %v6161_v30 = vpop.eup %6160 }
 0x4d2   : > { %v6163_v31 = vpop.eup %6162  ;;  %v1477_v32 = vadd.f32 1.0, %v6161_v30  ;;  %v1537_v30 = vld [vmem:[%s6779_s1 + $0x108] sm:$0xff] (!%p4839_p5) }
 0x4d3   : > { %v1483_v33 = vadd.f32 1.0, %v6163_v31  ;;  %v6165_v34 = vpop.eup %6164  ;;  %v1541_v31 = vld [vmem:[%s6779_s1 + $0x128] sm:$0xff] (!%p4839_p5) }
 0x4d4   : > { %6168 = vrcp.f32 %v1477_v32  ;;  %v6167_v35 = vpop.eup %6166  ;;  %v1490_v38 = vadd.f32 1.0, %v6165_v34  ;;  %v1539_v32 = vld [vmem:[%s6779_s1 + $0x118] sm:$0xff] (!%p4839_p5)  ;;  %v5196_v34 = vpack.c.bf16 (!%p4839_p5), %v1532_v26, %v1528_v25  ;;  %v1573_v25 = vrot.slane (!%p4839_p5), %v1568_v21, %v1572_v20 }
 0x4d5   : > { %6170 = vrcp.f32 %v1483_v33  ;;  %v1543_v33 = vld [vmem:[%s6779_s1 + $0x138] sm:$0xff] (!%p4839_p5)  ;;  %v1581_v26 = vrot.slane (!%p4839_p5), %v1568_v21, %v1580_v22 }
 0x4d6   : > { %6172 = vrcp.f32 %v1490_v38  ;;  %v1540_v38 = vld [vmem:[%s6779_s1 + $0x120] sm:$0xff] (!%p4839_p5)  ;;  %5197 = vmatpush1.bf16.msra.mxu0 (!%p4839_p5), %v5196_v34 }
 0x4de   : > { %v6169_v37 = vpop.eup %6168 }
 0x4df   : > { %v6171_v39 = vpop.eup %6170  ;;  %v1495_v40 = vmul.f32 %v6169_v37, %v6167_v35  ;;  %v5228_v35 = vpack.c.bf16 (!%p4839_p5), %v1534_v29, %v1530_v28  ;;  %v1536_v37 = vld [vmem:[%s6779_s1 + $0x100] sm:$0xff] (!%p4839_p5)  ;;  %v1585_v28 = vrot.slane (!%p4839_p5), %v1568_v21, %v1584_v24 }
 0x4e0   : > { %v1494_v41 = vmul.f32 %v6171_v39, %v1493_v36  ;;  %v6173_v55 = vpop.eup %6172  ;;  %v5198_v36 = vpack.c.bf16 (!%p4839_p5), %v1541_v31, %v1537_v30  ;;  %v1538_v39 = vld [vmem:[%s6779_s1 + $0x110] sm:$0xff] (!%p4839_p5)  ;;  %v5200_v46 = vpack.c.bf16 (!%p4839_p5), %v1540_v38, %v1536_v37 }
 0x4e1   : > { %5229 = vmatpush1.bf16.msra.mxu1 (!%p4839_p5), %v5228_v35 }
 0x4e2   : > { %v1496_v42 = vadd.f32 %v1495_v40, %v1494_v41  ;;  %v5230_v40 = vpack.c.bf16 (!%p4839_p5), %v1543_v33, %v1539_v32  ;;  %v1542_v41 = vld [vmem:[%s6779_s1 + $0x130] sm:$0xff] (!%p4839_p5)  ;;  %5199 = vmatprep.subr.bf16.mxu0 (!%p4839_p5), %v5198_v36 }
 0x4e3   : > { %v5232_v47 = vpack.c.bf16 (!%p4839_p5), %v1542_v41, %v1538_v39  ;;  %5201 = vmatpush1.bf16.msra.mxu0 (!%p4839_p5), %v5200_v46 }
 0x4e4   : > { %6174 = vtanh.f32 %v1496_v42  ;;  %1499 = vst [vmem:[#allocation4] sm:$0xff] %v1496_v42  ;;  %v1545_v42 = vld [vmem:[%s6779_s1 + $0x148] sm:$0xff] (!%p4839_p5)  ;;  %5231 = vmatprep.subr.bf16.mxu1 (!%p4839_p5), %v5230_v40 }
 0x4e5   : > { %5233 = vmatpush1.bf16.msra.mxu1 (!%p4839_p5), %v5232_v47 }
 0x4eb   : > { %1503 = sbr.rel (%p4839_p5) target bundleno = 1494 (0x5d6), region = 80 }
 0x4ee   : > { %v6175_v43 = vpop.eup %6174 }
 0x4ef   : > { %v7095_v44 = vmul.f32 %v6175_v43, %v6173_v55  ;;  %v1549_v55 = vld [vmem:[%s6779_s1 + $0x168] sm:$0xff] (!%p4839_p5)  ;;  %v1547_v43 = vld [vmem:[%s6779_s1 + $0x158] sm:$0xff] (!%p4839_p5) }
 0x4f0   : > { %v5202_v48 = vpack.c.bf16 (!%p4839_p5), %v1549_v55, %v1545_v42  ;;  %v5234_v49 = vpack.c.bf16 (!%p4839_p5), %v1551_v45, %v1547_v43 }
 0x4f1   : > { %1500 = vst [vmem:[#allocation3] sm:$0xff] %v7095_v44 }
 0x4f2   : > { %5203 = vmatprep.subr.bf16.mxu0 %v5202_v48  ;;  %5235 = vmatprep.subr.bf16.mxu1 %v5234_v49 }
 0x4f3   : > { %5205 = vmatpush1.bf16.msra.mxu0 %v5204_v58  ;;  %5237 = vmatpush1.bf16.msra.mxu1 %v5236_v60 }
 0x4f4   : > { %5207 = vmatprep.subr.bf16.mxu0 %v5206_v61  ;;  %5239 = vmatprep.subr.bf16.mxu1 %v5238_v1 }
 0x4f7   : > { %5209 = vmatpush1.bf16.msra.mxu0 %v5208_v8  ;;  %5241 = vmatpush1.bf16.msra.mxu1 %v5240_v9 }
 0x4f8   : > { %5211 = vmatprep.subr.bf16.mxu0 %v5210_v10  ;;  %5243 = vmatprep.subr.bf16.mxu1 %v5242_v13 }
 0x4fb   : > { %5213 = vmatpush1.bf16.msra.mxu0 %v5212_v16  ;;  %5245 = vmatpush1.bf16.msra.mxu1 %v5244_v17 }
 0x4fe   : > { %1655 = vmatmul.mubr.f32.vlgmr.msra.gmra.mrb[0].mxu0 %v7095_v44  ;;  %1726 = vmatmul.mubr.f32.vlgmr.msra.gmra.mrb[0].mxu1 %v7095_v44 }
 0x5d1   : > { %v1656_v29 = vpop.f32.mrb[0].mxu0  ;;  %v1727_v31 = vpop.f32.mrb[0].mxu1 }
 0x5d2   : > { %v1657_v30 = vadd.f32 %v1656_v29, %v1573_v25  ;;  %v1658_v32 = vpop.f32.mrb[1].mxu0  ;;  %v1728_v33 = vadd.f32 %v1727_v31, %v1581_v26  ;;  %v1729_v35 = vpop.f32.mrb[1].mxu1 }
 0x5d3   : > { %v1659_v34 = vadd.f32 %v1658_v32, %v1577_v27  ;;  %v1730_v44 = vadd.f32 %v1729_v35, %v1585_v28 }
 0x5d4   : > { %1732 = vst [vmem:[#allocation2 + $0x20] sm:$0xff] %v1657_v30  ;;  %1734 = vst [vmem:[#allocation2 + $0x30] sm:$0xff] %v1728_v33 }
 0x5d5   : > { %1733 = vst [vmem:[#allocation2 + $0x28] sm:$0xff] %v1659_v34  ;;  %1735 = vst [vmem:[#allocation2 + $0x38] sm:$0xff] %v1730_v44 }
 0x5d6 PF: > { %v1745_v36 = vld [vmem:[%s6786_s16 + $0x8] sm:$0xff]  ;;  %v1744_v38 = vld [vmem:[%s6786_s16] sm:$0xff]  ;;  %1872 = vmatprep.mubr.f32.mxu0 %v6469_v59  ;;  %1943 = vmatprep.mubr.f32.mxu1 %v6469_v59  ;;  %v1747_v51 = vld [vmem:[%s6786_s16 + $0x18] sm:$0xff] }
 0x5d7   : > { %v1749_v37 = vld [vmem:[%s6786_s16 + $0x28] sm:$0xff]  ;;  %v1748_v40 = vld [vmem:[%s6786_s16 + $0x20] sm:$0xff]  ;;  %v1751_v56 = vld [vmem:[%s6786_s16 + $0x38] sm:$0xff] }
 0x5d8   : > { %v5246_v39 = vpack.c.bf16 %v1749_v37, %v1745_v36  ;;  %v1753_v41 = vld [vmem:[%s6786_s16 + $0x48] sm:$0xff]  ;;  %v5248_v55 = vpack.c.bf16 %v1748_v40, %v1744_v38  ;;  %v1752_v45 = vld [vmem:[%s6786_s16 + $0x40] sm:$0xff]  ;;  %v5278_v57 = vpack.c.bf16 %v1751_v56, %v1747_v51  ;;  %v1746_v58 = vld [vmem:[%s6786_s16 + $0x10] sm:$0xff] }
 0x5d9   : > { %v1757_v42 = vld [vmem:[%s6786_s16 + $0x68] sm:$0xff]  ;;  %v1756_v46 = vld [vmem:[%s6786_s16 + $0x60] sm:$0xff]  ;;  %v1750_v60 = vld [vmem:[%s6786_s16 + $0x30] sm:$0xff] }
 0x5da   : > { %v5250_v43 = vpack.c.bf16 %v1757_v42, %v1753_v41  ;;  %v1761_v47 = vld [vmem:[%s6786_s16 + $0x88] sm:$0xff]  ;;  %5247 = vmatprep.subr.bf16.mxu0 %v5246_v39  ;;  %v5252_v7 = vpack.c.bf16 %v1756_v46, %v1752_v45  ;;  %v1760_v53 = vld [vmem:[%s6786_s16 + $0x80] sm:$0xff]  ;;  %v5280_v61 = vpack.c.bf16 %v1750_v60, %v1746_v58  ;;  %5279 = vmatprep.subr.bf16.mxu1 %v5278_v57  ;;  %v1755_v63 = vld [vmem:[%s6786_s16 + $0x58] sm:$0xff] }
 0x5db   : > { %v1765_v48 = vld [vmem:[%s6786_s16 + $0xa8] sm:$0xff]  ;;  %5249 = vmatpush1.bf16.msra.mxu0 %v5248_v55  ;;  %v1764_v54 = vld [vmem:[%s6786_s16 + $0xa0] sm:$0xff]  ;;  %v1759_v0 = vld [vmem:[%s6786_s16 + $0x78] sm:$0xff] }
 0x5dc   : > { %5251 = vmatprep.subr.bf16.mxu0 %v5250_v43  ;;  %v5254_v49 = vpack.c.bf16 %v1765_v48, %v1761_v47  ;;  %v1769_v50 = vld [vmem:[%s6786_s16 + $0xc8] sm:$0xff]  ;;  %v5256_v62 = vpack.c.bf16 %v1764_v54, %v1760_v53  ;;  %v1754_v1 = vld [vmem:[%s6786_s16 + $0x50] sm:$0xff]  ;;  %v1768_v3 = vld [vmem:[%s6786_s16 + $0xc0] sm:$0xff]  ;;  %5281 = vmatpush1.bf16.msra.mxu1 %v5280_v61  ;;  %v5282_v5 = vpack.c.bf16 %v1759_v0, %v1755_v63 }
 0x5dd   : > { %v1773_v52 = vld [vmem:[%s6786_s16 + $0xe8] sm:$0xff]  ;;  %v1772_v4 = vld [vmem:[%s6786_s16 + $0xe0] sm:$0xff]  ;;  %v1758_v6 = vld [vmem:[%s6786_s16 + $0x70] sm:$0xff] }
 0x5de   : > { %v5258_v2 = vpack.c.bf16 %v1773_v52, %v1769_v50  ;;  %v1777_v8 = vld [vmem:[%s6786_s16 + $0x108] sm:$0xff]  ;;  %v5284_v10 = vpack.c.bf16 %v1758_v6, %v1754_v1  ;;  %v1763_v11 = vld [vmem:[%s6786_s16 + $0x98] sm:$0xff]  ;;  %5283 = vmatprep.subr.bf16.mxu1 %v5282_v5  ;;  %v1762_v13 = vld [vmem:[%s6786_s16 + $0x90] sm:$0xff]  ;;  %v5260_v15 = vpack.c.bf16 %v1772_v4, %v1768_v3 }
 0x5df   : > { %5253 = vmatpush1.bf16.msra.mxu0 %v5252_v7  ;;  %v1781_v9 = vld [vmem:[%s6786_s16 + $0x128] sm:$0xff]  ;;  %v1767_v12 = vld [vmem:[%s6786_s16 + $0xb8] sm:$0xff]  ;;  %v1766_v14 = vld [vmem:[%s6786_s16 + $0xb0] sm:$0xff] }
 0x5e0   : > { %5255 = vmatprep.subr.bf16.mxu0 %v5254_v49  ;;  %v1776_v16 = vld [vmem:[%s6786_s16 + $0x100] sm:$0xff]  ;;  %v5286_v18 = vpack.c.bf16 %v1767_v12, %v1763_v11  ;;  %v5262_v19 = vpack.c.bf16 %v1781_v9, %v1777_v8  ;;  %5285 = vmatpush1.bf16.msra.mxu1 %v5284_v10  ;;  %v1785_v20 = vld [vmem:[%s6786_s16 + $0x148] sm:$0xff]  ;;  %v5288_v21 = vpack.c.bf16 %v1766_v14, %v1762_v13  ;;  %v1771_v22 = vld [vmem:[%s6786_s16 + $0xd8] sm:$0xff] }
 0x5e1   : > { %v1780_v17 = vld [vmem:[%s6786_s16 + $0x120] sm:$0xff]  ;;  %v1775_v23 = vld [vmem:[%s6786_s16 + $0xf8] sm:$0xff]  ;;  %v1789_v24 = vld [vmem:[%s6786_s16 + $0x168] sm:$0xff] }
 0x5e2   : > { %5287 = vmatprep.subr.bf16.mxu1 %v5286_v18  ;;  %v5290_v25 = vpack.c.bf16 %v1775_v23, %v1771_v22  ;;  %v1770_v26 = vld [vmem:[%s6786_s16 + $0xd0] sm:$0xff]  ;;  %v5264_v28 = vpack.c.bf16 %v1780_v17, %v1776_v16  ;;  %v1779_v29 = vld [vmem:[%s6786_s16 + $0x118] sm:$0xff]  ;;  %v5266_v31 = vpack.c.bf16 %v1789_v24, %v1785_v20  ;;  %v1784_v32 = vld [vmem:[%s6786_s16 + $0x140] sm:$0xff] }
 0x5e3   : > { %5257 = vmatpush1.bf16.msra.mxu0 %v5256_v62  ;;  %v1774_v27 = vld [vmem:[%s6786_s16 + $0xf0] sm:$0xff]  ;;  %v1783_v30 = vld [vmem:[%s6786_s16 + $0x138] sm:$0xff]  ;;  %v1788_v33 = vld [vmem:[%s6786_s16 + $0x160] sm:$0xff] }
 0x5e4   : > { %5259 = vmatprep.subr.bf16.mxu0 %v5258_v2  ;;  %5289 = vmatpush1.bf16.msra.mxu1 %v5288_v21  ;;  %v1793_v34 = vld [vmem:[%s6786_s16 + $0x188] sm:$0xff]  ;;  %v5292_v35 = vpack.c.bf16 %v1774_v27, %v1770_v26  ;;  %v5294_v36 = vpack.c.bf16 %v1783_v30, %v1779_v29  ;;  %v1778_v37 = vld [vmem:[%s6786_s16 + $0x110] sm:$0xff]  ;;  %v1787_v39 = vld [vmem:[%s6786_s16 + $0x158] sm:$0xff]  ;;  %v5268_v41 = vpack.c.bf16 %v1788_v33, %v1784_v32 }
 0x5e5   : > { %v1797_v44 = vld [vmem:[%s6786_s16 + $0x1a8] sm:$0xff]  ;;  %5291 = vmatprep.subr.bf16.mxu1 %v5290_v25  ;;  %v1782_v38 = vld [vmem:[%s6786_s16 + $0x130] sm:$0xff]  ;;  %v1791_v40 = vld [vmem:[%s6786_s16 + $0x178] sm:$0xff] }
 0x5e6   : > { %v5270_v42 = vpack.c.bf16 %v1797_v44, %v1793_v34  ;;  %v1792_v55 = vld [vmem:[%s6786_s16 + $0x180] sm:$0xff]  ;;  %v1801_v45 = vld [vmem:[%s6786_s16 + $0x1c8] sm:$0xff]  ;;  %v5296_v46 = vpack.c.bf16 %v1782_v38, %v1778_v37  ;;  %v5298_v48 = vpack.c.bf16 %v1791_v40, %v1787_v39  ;;  %v1786_v7 = vld [vmem:[%s6786_s16 + $0x150] sm:$0xff] }
 0x5e7   : > { %5261 = vmatpush1.bf16.msra.mxu0 %v5260_v15  ;;  %v1796_v43 = vld [vmem:[%s6786_s16 + $0x1a0] sm:$0xff]  ;;  %v1805_v47 = vld [vmem:[%s6786_s16 + $0x1e8] sm:$0xff]  ;;  %v1790_v53 = vld [vmem:[%s6786_s16 + $0x170] sm:$0xff] }
 0x5e8   : > { %5263 = vmatprep.subr.bf16.mxu0 %v5262_v19  ;;  %5293 = vmatpush1.bf16.msra.mxu1 %v5292_v35  ;;  %v1795_v54 = vld [vmem:[%s6786_s16 + $0x198] sm:$0xff]  ;;  %v5272_v50 = vpack.c.bf16 %v1796_v43, %v1792_v55  ;;  %v5274_v51 = vpack.c.bf16 %v1805_v47, %v1801_v45  ;;  %v1800_v56 = vld [vmem:[%s6786_s16 + $0x1c0] sm:$0xff]  ;;  %v5300_v57 = vpack.c.bf16 %v1790_v53, %v1786_v7  ;;  %v1794_v60 = vld [vmem:[%s6786_s16 + $0x190] sm:$0xff]  ;;  %v6472_v45 = vmov (!%p4839_p5), 0.0  }
 0x5e9   : > { %5295 = vmatprep.subr.bf16.mxu1 %v5294_v36  ;;  %v1799_v49 = vld [vmem:[%s6786_s16 + $0x1b8] sm:$0xff]  ;;  %v1804_v52 = vld [vmem:[%s6786_s16 + $0x1e0] sm:$0xff]  ;;  %v1798_v61 = vld [vmem:[%s6786_s16 + $0x1b0] sm:$0xff] }
 0x5ea   : > { %v5302_v58 = vpack.c.bf16 %v1799_v49, %v1795_v54  ;;  %v1803_v62 = vld [vmem:[%s6786_s16 + $0x1d8] sm:$0xff]  ;;  %v5276_v0 = vpack.c.bf16 %v1804_v52, %v1800_v56  ;;  %v5304_v1 = vpack.c.bf16 %v1798_v61, %v1794_v60  ;;  %v1802_v3 = vld [vmem:[%s6786_s16 + $0x1d0] sm:$0xff]  ;;  %v1743_v16 = vld [vmem:[#allocation2 + $0x58] sm:$0xff] }
 0x5eb   : > { %5265 = vmatpush1.bf16.msra.mxu0 %v5264_v28  ;;  %v1807_v63 = vld [vmem:[%s6786_s16 + $0x1f8] sm:$0xff]  ;;  %v1806_v4 = vld [vmem:[%s6786_s16 + $0x1f0] sm:$0xff]  ;;  %v1742_v20 = vld [vmem:[#allocation2 + $0x50] sm:$0xff] }
 0x5ec   : > { %5267 = vmatprep.subr.bf16.mxu0 %v5266_v31  ;;  %5297 = vmatpush1.bf16.msra.mxu1 %v5296_v46  ;;  %v5306_v2 = vpack.c.bf16 %v1807_v63, %v1803_v62  ;;  %v1736_v5 = vld [vmem:[#allocation3] sm:$0xff]  ;;  %v5308_v6 = vpack.c.bf16 %v1806_v4, %v1802_v3  ;;  %v1741_v9 = vld [vmem:[#allocation2 + $0x48] sm:$0xff]  ;;  %v1985_v38 = vld [vmem:[%s6779_s1 + $0x8] sm:$0xff] (!%p4839_p5) }
 0x5ed   : > { %5299 = vmatprep.subr.bf16.mxu1 %v5298_v48  ;;  %v1740_v8 = vld [vmem:[#allocation2 + $0x40] sm:$0xff]  ;;  %v1973_v29 = vld [vmem:[#allocation4] sm:$0xff]  ;;  %v1989_v39 = vld [vmem:[%s6779_s1 + $0x28] sm:$0xff] (!%p4839_p5) }
 0x5ee   : > { %v1987_v40 = vld [vmem:[%s6779_s1 + $0x18] sm:$0xff] (!%p4839_p5)  ;;  %v1984_v55 = vld [vmem:[%s6779_s1] sm:$0xff] (!%p4839_p5)  ;;  %v1986_v48 = vld [vmem:[%s6779_s1 + $0x10] sm:$0xff] (!%p4839_p5) }
 0x5ef   : > { %5269 = vmatpush1.bf16.msra.mxu0 %v5268_v41  ;;  %v5310_v41 = vpack.c.bf16 (!%p4839_p5), %v1989_v39, %v1985_v38  ;;  %v1988_v43 = vld [vmem:[%s6779_s1 + $0x20] sm:$0xff] (!%p4839_p5)  ;;  %v1990_v7 = vld [vmem:[%s6779_s1 + $0x30] sm:$0xff] (!%p4839_p5)  ;;  %v1993_v53 = vld [vmem:[%s6779_s1 + $0x48] sm:$0xff] (!%p4839_p5) }
 0x5f0   : > { %5271 = vmatprep.subr.bf16.mxu0 %v5270_v42  ;;  %5301 = vmatpush1.bf16.msra.mxu1 %v5300_v57  ;;  %v1991_v42 = vld [vmem:[%s6779_s1 + $0x38] sm:$0xff] (!%p4839_p5)  ;;  %v5312_v47 = vpack.c.bf16 (!%p4839_p5), %v1988_v43, %v1984_v55  ;;  %v5344_v54 = vpack.c.bf16 (!%p4839_p5), %v1990_v7, %v1986_v48  ;;  %v1997_v49 = vld [vmem:[%s6779_s1 + $0x68] sm:$0xff] (!%p4839_p5)  ;;  %v1992_v57 = vld [vmem:[%s6779_s1 + $0x40] sm:$0xff] (!%p4839_p5) }
 0x5f1   : > { %5303 = vmatprep.subr.bf16.mxu1 %v5302_v58  ;;  %v5342_v46 = vpack.c.bf16 (!%p4839_p5), %v1991_v42, %v1987_v40  ;;  %v5314_v56 = vpack.c.bf16 (!%p4839_p5), %v1997_v49, %v1993_v53  ;;  %v1996_v58 = vld [vmem:[%s6779_s1 + $0x60] sm:$0xff] (!%p4839_p5)  ;;  %v1994_v60 = vld [vmem:[%s6779_s1 + $0x50] sm:$0xff] (!%p4839_p5)  ;;  %v2001_v63 = vld [vmem:[%s6779_s1 + $0x88] sm:$0xff] (!%p4839_p5) }
 0x5f2   : > { %v5316_v61 = vpack.c.bf16 (!%p4839_p5), %v1996_v58, %v1992_v57  ;;  %v1998_v62 = vld [vmem:[%s6779_s1 + $0x70] sm:$0xff] (!%p4839_p5)  ;;  %v2003_v3 = vld [vmem:[%s6779_s1 + $0x98] sm:$0xff] (!%p4839_p5)  ;;  %v2024_v42 = vld [vmem:[%s6779_s1 + $0x140] sm:$0xff] (!%p4839_p5) }
 0x5f3   : > { %5273 = vmatpush1.bf16.msra.mxu0 %v5272_v50  ;;  %v1995_v50 = vld [vmem:[%s6779_s1 + $0x58] sm:$0xff] (!%p4839_p5)  ;;  %v2028_v55 = vld [vmem:[%s6779_s1 + $0x160] sm:$0xff] (!%p4839_p5)  ;;  %v2026_v43 = vld [vmem:[%s6779_s1 + $0x150] sm:$0xff] (!%p4839_p5) }
 0x5f4   : > { %5275 = vmatprep.subr.bf16.mxu0 %v5274_v51  ;;  %5305 = vmatpush1.bf16.msra.mxu1 %v5304_v1  ;;  %v1999_v51 = vld [vmem:[%s6779_s1 + $0x78] sm:$0xff] (!%p4839_p5)  ;;  %v5348_v1 = vpack.c.bf16 (!%p4839_p5), %v1998_v62, %v1994_v60  ;;  %v2037_v48 = vld [vmem:[%s6779_s1 + $0x1a8] sm:$0xff] (!%p4839_p5)  ;;  %v2038_v58 = vld [vmem:[%s6779_s1 + $0x1b0] sm:$0xff] (!%p4839_p5) }
 0x5f5   : > { %5307 = vmatprep.subr.bf16.mxu1 %v5306_v2  ;;  %v5346_v52 = vpack.c.bf16 (!%p4839_p5), %v1999_v51, %v1995_v50  ;;  %v2007_v4 = vld [vmem:[%s6779_s1 + $0xb8] sm:$0xff] (!%p4839_p5)  ;;  %v2032_v51 = vld [vmem:[%s6779_s1 + $0x180] sm:$0xff] (!%p4839_p5)  ;;  %v2041_v60 = vld [vmem:[%s6779_s1 + $0x1c8] sm:$0xff] (!%p4839_p5) }
 0x5f6   : > { %v2031_v38 = vld [vmem:[%s6779_s1 + $0x178] sm:$0xff] (!%p4839_p5) }
 0x5f7   : > { %5277 = vmatpush1.bf16.msra.mxu0 %v5276_v0  ;;  %v2005_v0 = vld [vmem:[%s6779_s1 + $0xa8] sm:$0xff] (!%p4839_p5)  ;;  %v2035_v7 = vld [vmem:[%s6779_s1 + $0x198] sm:$0xff] (!%p4839_p5) }
 0x5f8   : > { %5309 = vmatpush1.bf16.msra.mxu1 %v5308_v6  ;;  %5311 = vmatprep.subr.bf16.mxu0 (!%p4839_p5), %v5310_v41  ;;  %v5318_v2 = vpack.c.bf16 (!%p4839_p5), %v2005_v0, %v2001_v63  ;;  %v5350_v6 = vpack.c.bf16 (!%p4839_p5), %v2007_v4, %v2003_v3  ;;  %v2039_v53 = vld [vmem:[%s6779_s1 + $0x1b8] sm:$0xff] (!%p4839_p5)  ;;  %v2040_v3 = vld [vmem:[%s6779_s1 + $0x1c0] sm:$0xff] (!%p4839_p5) }
 0x5f9   : > { %5343 = vmatprep.subr.bf16.mxu1 (!%p4839_p5), %v5342_v46  ;;  %v2030_v46 = vld [vmem:[%s6779_s1 + $0x170] sm:$0xff] (!%p4839_p5)  ;;  %v5366_v57 = vpack.c.bf16 (!%p4839_p5), %v2039_v53, %v2035_v7  ;;  %v2043_v62 = vld [vmem:[%s6779_s1 + $0x1d8] sm:$0xff] (!%p4839_p5)  ;;  %v2044_v4 = vld [vmem:[%s6779_s1 + $0x1e0] sm:$0xff] (!%p4839_p5) }
 0x5fa   : > { %1873 = vmatmul.mubr.f32.vlgmr.msra.gmra.mrb[0].mxu0 %v1736_v5  ;;  %v5364_v49 = vpack.c.bf16 (!%p4839_p5), %v2030_v46, %v2026_v43  ;;  %v2047_v63 = vld [vmem:[%s6779_s1 + $0x1f8] sm:$0xff] (!%p4839_p5) }
 0x5fb   : > { %1944 = vmatmul.mubr.f32.vlgmr.msra.gmra.mrb[0].mxu1 %v1736_v5  ;;  %2134 = vmatprep.mubr.f32.mxu0 (!%p4839_p5), %v6472_v45  ;;  %v2000_v5 = vld [vmem:[%s6779_s1 + $0x80] sm:$0xff] (!%p4839_p5) }
 0x5fc   : > { %2205 = vmatprep.mubr.f32.mxu1 (!%p4839_p5), %v6472_v45  ;;  %5313 = vmatpush1.bf16.msra.mxu0 (!%p4839_p5), %v5312_v47  ;;  %v2033_v47 = vld [vmem:[%s6779_s1 + $0x188] sm:$0xff] (!%p4839_p5) }
 0x5fd   : > { %5345 = vmatpush1.bf16.msra.mxu1 (!%p4839_p5), %v5344_v54  ;;  %5315 = vmatprep.subr.bf16.mxu0 (!%p4839_p5), %v5314_v56  ;;  %v5332_v54 = vpack.c.bf16 (!%p4839_p5), %v2028_v55, %v2024_v42  ;;  %v5334_v50 = vpack.c.bf16 (!%p4839_p5), %v2037_v48, %v2033_v47  ;;  %v2036_v56 = vld [vmem:[%s6779_s1 + $0x1a0] sm:$0xff] (!%p4839_p5) }
 0x5fe   : > { %5347 = vmatprep.subr.bf16.mxu1 (!%p4839_p5), %v5346_v52  ;;  %v2034_v52 = vld [vmem:[%s6779_s1 + $0x190] sm:$0xff] (!%p4839_p5)  ;;  %v5336_v0 = vpack.c.bf16 (!%p4839_p5), %v2036_v56, %v2032_v51 }
 0x600   : > { %5317 = vmatpush1.bf16.msra.mxu0 (!%p4839_p5), %v5316_v61  ;;  %v2045_v61 = vld [vmem:[%s6779_s1 + $0x1e8] sm:$0xff] (!%p4839_p5) }
 0x601   : > { %5349 = vmatpush1.bf16.msra.mxu1 (!%p4839_p5), %v5348_v1  ;;  %5319 = vmatprep.subr.bf16.mxu0 (!%p4839_p5), %v5318_v2  ;;  %v5368_v1 = vpack.c.bf16 (!%p4839_p5), %v2038_v58, %v2034_v52  ;;  %v5338_v2 = vpack.c.bf16 (!%p4839_p5), %v2045_v61, %v2041_v60 }
 0x602   : > { %5351 = vmatprep.subr.bf16.mxu1 (!%p4839_p5), %v5350_v6  ;;  %v2042_v6 = vld [vmem:[%s6779_s1 + $0x1d0] sm:$0xff] (!%p4839_p5) }
 0x6cd   : > { %v1874_v10 = vpop.f32.mrb[0].mxu0 }
 0x6ce   : > { %v1950_v11 = vadd.f32 %v1874_v10, %v1740_v8  ;;  %v1876_v12 = vpop.f32.mrb[1].mxu0  ;;  %v1945_v17 = vpop.f32.mrb[0].mxu1  ;;  %v2004_v8 = vld [vmem:[%s6779_s1 + $0xa0] sm:$0xff] (!%p4839_p5)  ;;  %v2006_v10 = vld [vmem:[%s6779_s1 + $0xb0] sm:$0xff] (!%p4839_p5) }
 0x6cf   : > { %v1951_v13 = vadd.f32 %v1876_v12, %v1741_v9  ;;  %v1947_v18 = vpop.f32.mrb[1].mxu1  ;;  %v1952_v22 = vadd.f32 %v1945_v17, %v1742_v20  ;;  %v2002_v9 = vld [vmem:[%s6779_s1 + $0x90] sm:$0xff] (!%p4839_p5)  ;;  %v2009_v12 = vld [vmem:[%s6779_s1 + $0xc8] sm:$0xff] (!%p4839_p5)  ;;  %v2015_v17 = vld [vmem:[%s6779_s1 + $0xf8] sm:$0xff] (!%p4839_p5) }
 0x6d0   : > { %v4844_v14 = vmul.f32 -1.442695, %v1950_v11  ;;  %v1953_v19 = vadd.f32 %v1947_v18, %v1743_v16  ;;  %v5320_v11 = vpack.c.bf16 (!%p4839_p5), %v2004_v8, %v2000_v5  ;;  %v2008_v18 = vld [vmem:[%s6779_s1 + $0xc0] sm:$0xff] (!%p4839_p5)  ;;  %v5370_v5 = vpack.c.bf16 (!%p4839_p5), %v2047_v63, %v2043_v62  ;;  %v2046_v8 = vld [vmem:[%s6779_s1 + $0x1f0] sm:$0xff] (!%p4839_p5) }
 0x6d1   : > { %v4845_v15 = vmul.f32 -1.442695, %v1951_v13  ;;  %v2013_v13 = vld [vmem:[%s6779_s1 + $0xe8] sm:$0xff] (!%p4839_p5) }
 0x6d2   : > { %6176 = vpow2.f32 %v4844_v14  ;;  %v4846_v21 = vmul.f32 -1.442695, %v1953_v19  ;;  %v2011_v14 = vld [vmem:[%s6779_s1 + $0xd8] sm:$0xff] (!%p4839_p5)  ;;  %v5322_v16 = vpack.c.bf16 (!%p4839_p5), %v2013_v13, %v2009_v12  ;;  %v2012_v19 = vld [vmem:[%s6779_s1 + $0xe0] sm:$0xff] (!%p4839_p5)  ;;  %5321 = vmatpush1.bf16.msra.mxu0 (!%p4839_p5), %v5320_v11  ;;  %v2050_v11 = vlaneseq (!%p4839_p5) }
 0x6d3   : > { %6178 = vpow2.f32 %v4845_v15  ;;  %v5352_v15 = vpack.c.bf16 (!%p4839_p5), %v2006_v10, %v2002_v9  ;;  %v5354_v20 = vpack.c.bf16 (!%p4839_p5), %v2015_v17, %v2011_v14  ;;  %v5340_v9 = vpack.c.bf16 (!%p4839_p5), %v2044_v4, %v2040_v3  ;;  %v2048_v14 = vld [vmem:[%s6801_s11] sm:$0xf] (!%p4839_p5) }
 0x6d4   : > { %6180 = vpow2.f32 %v4846_v21  ;;  %v2010_v21 = vld [vmem:[%s6779_s1 + $0xd0] sm:$0xff] (!%p4839_p5)  ;;  %5323 = vmatprep.subr.bf16.mxu0 (!%p4839_p5), %v5322_v16  ;;  %v5372_v10 = vpack.c.bf16 (!%p4839_p5), %v2046_v8, %v2042_v6  ;;  %v2051_v12 = vshrl.u32 (!%p4839_p5), %v2050_v11, 7 }
 0x6d5   : > { %6182 = vtanh.f32 %v1952_v22  ;;  %v2014_v22 = vld [vmem:[%s6779_s1 + $0xf0] sm:$0xff] (!%p4839_p5)  ;;  %5353 = vmatpush1.bf16.msra.mxu1 (!%p4839_p5), %v5352_v15 }
 0x6d6   : > { %5355 = vmatprep.subr.bf16.mxu1 (!%p4839_p5), %v5354_v20  ;;  %v2052_v13 = vsub.s32 (!%p4839_p5), 0, %v2051_v12  ;;  %v2060_v15 = vsub.s32 (!%p4839_p5), 2, %v2051_v12  ;;  %v2056_v16 = vsub.s32 (!%p4839_p5), 1, %v2051_v12  ;;  %v2064_v17 = vsub.s32 (!%p4839_p5), 3, %v2051_v12 }
 0x6d8   : > { %v2057_v20 = vrot.slane (!%p4839_p5), %v2048_v14, %v2056_v16 }
 0x6dc   : > { %v6177_v23 = vpop.eup %6176 }
 0x6dd   : > { %v6179_v24 = vpop.eup %6178  ;;  %v1957_v25 = vadd.f32 1.0, %v6177_v23  ;;  %v2017_v23 = vld [vmem:[%s6779_s1 + $0x108] sm:$0xff] (!%p4839_p5) }
 0x6de   : > { %v1963_v26 = vadd.f32 1.0, %v6179_v24  ;;  %v6181_v27 = vpop.eup %6180  ;;  %v2021_v24 = vld [vmem:[%s6779_s1 + $0x128] sm:$0xff] (!%p4839_p5) }
 0x6df   : > { %6184 = vrcp.f32 %v1957_v25  ;;  %v6183_v28 = vpop.eup %6182  ;;  %v1970_v31 = vadd.f32 1.0, %v6181_v27  ;;  %v2019_v25 = vld [vmem:[%s6779_s1 + $0x118] sm:$0xff] (!%p4839_p5)  ;;  %v5324_v27 = vpack.c.bf16 (!%p4839_p5), %v2012_v19, %v2008_v18  ;;  %v2053_v18 = vrot.slane (!%p4839_p5), %v2048_v14, %v2052_v13 }
 0x6e0   : > { %6186 = vrcp.f32 %v1963_v26  ;;  %v2023_v26 = vld [vmem:[%s6779_s1 + $0x138] sm:$0xff] (!%p4839_p5)  ;;  %v2061_v19 = vrot.slane (!%p4839_p5), %v2048_v14, %v2060_v15 }
 0x6e1   : > { %6188 = vrcp.f32 %v1970_v31  ;;  %v2020_v31 = vld [vmem:[%s6779_s1 + $0x120] sm:$0xff] (!%p4839_p5)  ;;  %5325 = vmatpush1.bf16.msra.mxu0 (!%p4839_p5), %v5324_v27 }
 0x6e9   : > { %v6185_v30 = vpop.eup %6184 }
 0x6ea   : > { %v6187_v32 = vpop.eup %6186  ;;  %v1975_v33 = vmul.f32 %v6185_v30, %v6183_v28  ;;  %v5356_v28 = vpack.c.bf16 (!%p4839_p5), %v2014_v22, %v2010_v21  ;;  %v2016_v30 = vld [vmem:[%s6779_s1 + $0x100] sm:$0xff] (!%p4839_p5)  ;;  %v2065_v21 = vrot.slane (!%p4839_p5), %v2048_v14, %v2064_v17 }
 0x6eb   : > { %v1974_v34 = vmul.f32 %v6187_v32, %v1973_v29  ;;  %v6189_v44 = vpop.eup %6188  ;;  %v5326_v29 = vpack.c.bf16 (!%p4839_p5), %v2021_v24, %v2017_v23  ;;  %v2018_v32 = vld [vmem:[%s6779_s1 + $0x110] sm:$0xff] (!%p4839_p5)  ;;  %v5328_v39 = vpack.c.bf16 (!%p4839_p5), %v2020_v31, %v2016_v30 }
 0x6ec   : > { %5357 = vmatpush1.bf16.msra.mxu1 (!%p4839_p5), %v5356_v28 }
 0x6ed   : > { %v1976_v35 = vadd.f32 %v1975_v33, %v1974_v34  ;;  %v5358_v33 = vpack.c.bf16 (!%p4839_p5), %v2023_v26, %v2019_v25  ;;  %v2022_v34 = vld [vmem:[%s6779_s1 + $0x130] sm:$0xff] (!%p4839_p5)  ;;  %5327 = vmatprep.subr.bf16.mxu0 (!%p4839_p5), %v5326_v29 }
 0x6ee   : > { %v5360_v40 = vpack.c.bf16 (!%p4839_p5), %v2022_v34, %v2018_v32  ;;  %5329 = vmatpush1.bf16.msra.mxu0 (!%p4839_p5), %v5328_v39 }
 0x6ef   : > { %6190 = vtanh.f32 %v1976_v35  ;;  %1979 = vst [vmem:[#allocation4] sm:$0xff] %v1976_v35  ;;  %v2025_v35 = vld [vmem:[%s6779_s1 + $0x148] sm:$0xff] (!%p4839_p5)  ;;  %5359 = vmatprep.subr.bf16.mxu1 (!%p4839_p5), %v5358_v33 }
 0x6f0   : > { %5361 = vmatpush1.bf16.msra.mxu1 (!%p4839_p5), %v5360_v40 }
 0x6f6   : > { %1983 = sbr.rel (%p4839_p5) target bundleno = 2017 (0x7e1), region = 84 }
 0x6f9   : > { %v6191_v36 = vpop.eup %6190 }
 0x6fa   : > { %v7233_v37 = vmul.f32 %v6191_v36, %v6189_v44  ;;  %v2029_v44 = vld [vmem:[%s6779_s1 + $0x168] sm:$0xff] (!%p4839_p5)  ;;  %v2027_v36 = vld [vmem:[%s6779_s1 + $0x158] sm:$0xff] (!%p4839_p5) }
 0x6fb   : > { %v5330_v41 = vpack.c.bf16 (!%p4839_p5), %v2029_v44, %v2025_v35  ;;  %v5362_v45 = vpack.c.bf16 (!%p4839_p5), %v2031_v38, %v2027_v36 }
 0x6fc   : > { %1980 = vst [vmem:[#allocation3] sm:$0xff] %v7233_v37 }
 0x6fd   : > { %5331 = vmatprep.subr.bf16.mxu0 %v5330_v41  ;;  %5363 = vmatprep.subr.bf16.mxu1 %v5362_v45 }
 0x6fe   : > { %5333 = vmatpush1.bf16.msra.mxu0 %v5332_v54  ;;  %5365 = vmatpush1.bf16.msra.mxu1 %v5364_v49 }
 0x6ff   : > { %5335 = vmatprep.subr.bf16.mxu0 %v5334_v50  ;;  %5367 = vmatprep.subr.bf16.mxu1 %v5366_v57 }
 0x702   : > { %5337 = vmatpush1.bf16.msra.mxu0 %v5336_v0  ;;  %5369 = vmatpush1.bf16.msra.mxu1 %v5368_v1 }
 0x703   : > { %5339 = vmatprep.subr.bf16.mxu0 %v5338_v2  ;;  %5371 = vmatprep.subr.bf16.mxu1 %v5370_v5 }
 0x706   : > { %5341 = vmatpush1.bf16.msra.mxu0 %v5340_v9  ;;  %5373 = vmatpush1.bf16.msra.mxu1 %v5372_v10 }
 0x709   : > { %2135 = vmatmul.mubr.f32.vlgmr.msra.gmra.mrb[0].mxu0 %v7233_v37  ;;  %2206 = vmatmul.mubr.f32.vlgmr.msra.gmra.mrb[0].mxu1 %v7233_v37 }
 0x7dc   : > { %v2136_v22 = vpop.f32.mrb[0].mxu0  ;;  %v2207_v24 = vpop.f32.mrb[0].mxu1 }
 0x7dd   : > { %v2137_v23 = vadd.f32 %v2136_v22, %v2053_v18  ;;  %v2138_v25 = vpop.f32.mrb[1].mxu0  ;;  %v2208_v26 = vadd.f32 %v2207_v24, %v2061_v19  ;;  %v2209_v28 = vpop.f32.mrb[1].mxu1 }
 0x7de   : > { %v2139_v27 = vadd.f32 %v2138_v25, %v2057_v20  ;;  %v2210_v37 = vadd.f32 %v2209_v28, %v2065_v21 }
 0x7df   : > { %2212 = vst [vmem:[#allocation2 + $0x40] sm:$0xff] %v2137_v23  ;;  %2214 = vst [vmem:[#allocation2 + $0x50] sm:$0xff] %v2208_v26 }
 0x7e0   : > { %2213 = vst [vmem:[#allocation2 + $0x48] sm:$0xff] %v2139_v27  ;;  %2215 = vst [vmem:[#allocation2 + $0x58] sm:$0xff] %v2210_v37 }
 0x7e1 PF: > { %v2225_v29 = vld [vmem:[%s6786_s16 + $0x8] sm:$0xff]  ;;  %v2224_v31 = vld [vmem:[%s6786_s16] sm:$0xff]  ;;  %2352 = vmatprep.mubr.f32.mxu0 %v6469_v59  ;;  %2423 = vmatprep.mubr.f32.mxu1 %v6469_v59  ;;  %v2227_v47 = vld [vmem:[%s6786_s16 + $0x18] sm:$0xff] }
 0x7e2   : > { %v2229_v30 = vld [vmem:[%s6786_s16 + $0x28] sm:$0xff]  ;;  %v2228_v33 = vld [vmem:[%s6786_s16 + $0x20] sm:$0xff]  ;;  %v2231_v48 = vld [vmem:[%s6786_s16 + $0x38] sm:$0xff] }
 0x7e3   : > { %v5374_v32 = vpack.c.bf16 %v2229_v30, %v2225_v29  ;;  %v2233_v34 = vld [vmem:[%s6786_s16 + $0x48] sm:$0xff]  ;;  %v5376_v44 = vpack.c.bf16 %v2228_v33, %v2224_v31  ;;  %v2232_v38 = vld [vmem:[%s6786_s16 + $0x40] sm:$0xff]  ;;  %v5406_v53 = vpack.c.bf16 %v2231_v48, %v2227_v47  ;;  %v2226_v54 = vld [vmem:[%s6786_s16 + $0x10] sm:$0xff] }
 0x7e4   : > { %v2237_v35 = vld [vmem:[%s6786_s16 + $0x68] sm:$0xff]  ;;  %v2236_v39 = vld [vmem:[%s6786_s16 + $0x60] sm:$0xff]  ;;  %v2230_v49 = vld [vmem:[%s6786_s16 + $0x30] sm:$0xff] }
 0x7e5   : > { %v5378_v36 = vpack.c.bf16 %v2237_v35, %v2233_v34  ;;  %v2241_v40 = vld [vmem:[%s6786_s16 + $0x88] sm:$0xff]  ;;  %5375 = vmatprep.subr.bf16.mxu0 %v5374_v32  ;;  %v5380_v42 = vpack.c.bf16 %v2236_v39, %v2232_v38  ;;  %v2240_v55 = vld [vmem:[%s6786_s16 + $0x80] sm:$0xff]  ;;  %v5408_v50 = vpack.c.bf16 %v2230_v49, %v2226_v54  ;;  %5407 = vmatprep.subr.bf16.mxu1 %v5406_v53  ;;  %v2235_v56 = vld [vmem:[%s6786_s16 + $0x58] sm:$0xff] }
 0x7e6   : > { %v2245_v41 = vld [vmem:[%s6786_s16 + $0xa8] sm:$0xff]  ;;  %5377 = vmatpush1.bf16.msra.mxu0 %v5376_v44  ;;  %v2244_v43 = vld [vmem:[%s6786_s16 + $0xa0] sm:$0xff]  ;;  %v2239_v52 = vld [vmem:[%s6786_s16 + $0x78] sm:$0xff] }
 0x7e7   : > { %5379 = vmatprep.subr.bf16.mxu0 %v5378_v36  ;;  %v5382_v45 = vpack.c.bf16 %v2245_v41, %v2241_v40  ;;  %v2249_v46 = vld [vmem:[%s6786_s16 + $0xc8] sm:$0xff]  ;;  %v5384_v51 = vpack.c.bf16 %v2244_v43, %v2240_v55  ;;  %v2234_v57 = vld [vmem:[%s6786_s16 + $0x50] sm:$0xff]  ;;  %v2248_v60 = vld [vmem:[%s6786_s16 + $0xc0] sm:$0xff]  ;;  %5409 = vmatpush1.bf16.msra.mxu1 %v5408_v50  ;;  %v5410_v62 = vpack.c.bf16 %v2239_v52, %v2235_v56 }
 0x7e8   : > { %v2253_v7 = vld [vmem:[%s6786_s16 + $0xe8] sm:$0xff]  ;;  %v2252_v61 = vld [vmem:[%s6786_s16 + $0xe0] sm:$0xff]  ;;  %v2238_v63 = vld [vmem:[%s6786_s16 + $0x70] sm:$0xff] }
 0x7e9   : > { %v5386_v58 = vpack.c.bf16 %v2253_v7, %v2249_v46  ;;  %v2257_v0 = vld [vmem:[%s6786_s16 + $0x108] sm:$0xff]  ;;  %v5412_v2 = vpack.c.bf16 %v2238_v63, %v2234_v57  ;;  %v2243_v3 = vld [vmem:[%s6786_s16 + $0x98] sm:$0xff]  ;;  %5411 = vmatprep.subr.bf16.mxu1 %v5410_v62  ;;  %v2242_v5 = vld [vmem:[%s6786_s16 + $0x90] sm:$0xff]  ;;  %v5388_v8 = vpack.c.bf16 %v2252_v61, %v2248_v60 }
 0x7ea   : > { %5381 = vmatpush1.bf16.msra.mxu0 %v5380_v42  ;;  %v2261_v1 = vld [vmem:[%s6786_s16 + $0x128] sm:$0xff]  ;;  %v2247_v4 = vld [vmem:[%s6786_s16 + $0xb8] sm:$0xff]  ;;  %v2246_v6 = vld [vmem:[%s6786_s16 + $0xb0] sm:$0xff] }
 0x7eb   : > { %5383 = vmatprep.subr.bf16.mxu0 %v5382_v45  ;;  %v2256_v9 = vld [vmem:[%s6786_s16 + $0x100] sm:$0xff]  ;;  %v5414_v11 = vpack.c.bf16 %v2247_v4, %v2243_v3  ;;  %v5390_v12 = vpack.c.bf16 %v2261_v1, %v2257_v0  ;;  %5413 = vmatpush1.bf16.msra.mxu1 %v5412_v2  ;;  %v2265_v13 = vld [vmem:[%s6786_s16 + $0x148] sm:$0xff]  ;;  %v5416_v14 = vpack.c.bf16 %v2246_v6, %v2242_v5  ;;  %v2251_v15 = vld [vmem:[%s6786_s16 + $0xd8] sm:$0xff] }
 0x7ec   : > { %v2260_v10 = vld [vmem:[%s6786_s16 + $0x120] sm:$0xff]  ;;  %v2255_v16 = vld [vmem:[%s6786_s16 + $0xf8] sm:$0xff]  ;;  %v2269_v17 = vld [vmem:[%s6786_s16 + $0x168] sm:$0xff] }
 0x7ed   : > { %5415 = vmatprep.subr.bf16.mxu1 %v5414_v11  ;;  %v5418_v18 = vpack.c.bf16 %v2255_v16, %v2251_v15  ;;  %v2250_v19 = vld [vmem:[%s6786_s16 + $0xd0] sm:$0xff]  ;;  %v5392_v21 = vpack.c.bf16 %v2260_v10, %v2256_v9  ;;  %v2259_v22 = vld [vmem:[%s6786_s16 + $0x118] sm:$0xff]  ;;  %v5394_v24 = vpack.c.bf16 %v2269_v17, %v2265_v13  ;;  %v2264_v25 = vld [vmem:[%s6786_s16 + $0x140] sm:$0xff] }
 0x7ee   : > { %5385 = vmatpush1.bf16.msra.mxu0 %v5384_v51  ;;  %v2254_v20 = vld [vmem:[%s6786_s16 + $0xf0] sm:$0xff]  ;;  %v2263_v23 = vld [vmem:[%s6786_s16 + $0x138] sm:$0xff]  ;;  %v2268_v26 = vld [vmem:[%s6786_s16 + $0x160] sm:$0xff] }
 0x7ef   : > { %5387 = vmatprep.subr.bf16.mxu0 %v5386_v58  ;;  %5417 = vmatpush1.bf16.msra.mxu1 %v5416_v14  ;;  %v2273_v27 = vld [vmem:[%s6786_s16 + $0x188] sm:$0xff]  ;;  %v5420_v28 = vpack.c.bf16 %v2254_v20, %v2250_v19  ;;  %v5422_v29 = vpack.c.bf16 %v2263_v23, %v2259_v22  ;;  %v2258_v30 = vld [vmem:[%s6786_s16 + $0x110] sm:$0xff]  ;;  %v2267_v32 = vld [vmem:[%s6786_s16 + $0x158] sm:$0xff]  ;;  %v5396_v34 = vpack.c.bf16 %v2268_v26, %v2264_v25 }
 0x7f0   : > { %v2277_v37 = vld [vmem:[%s6786_s16 + $0x1a8] sm:$0xff]  ;;  %5419 = vmatprep.subr.bf16.mxu1 %v5418_v18  ;;  %v2262_v31 = vld [vmem:[%s6786_s16 + $0x130] sm:$0xff]  ;;  %v2271_v33 = vld [vmem:[%s6786_s16 + $0x178] sm:$0xff] }
 0x7f1   : > { %v5398_v35 = vpack.c.bf16 %v2277_v37, %v2273_v27  ;;  %v2272_v44 = vld [vmem:[%s6786_s16 + $0x180] sm:$0xff]  ;;  %v2281_v38 = vld [vmem:[%s6786_s16 + $0x1c8] sm:$0xff]  ;;  %v5424_v39 = vpack.c.bf16 %v2262_v31, %v2258_v30  ;;  %v5426_v41 = vpack.c.bf16 %v2271_v33, %v2267_v32  ;;  %v2266_v42 = vld [vmem:[%s6786_s16 + $0x150] sm:$0xff] }
 0x7f2   : > { %5389 = vmatpush1.bf16.msra.mxu0 %v5388_v8  ;;  %v2276_v36 = vld [vmem:[%s6786_s16 + $0x1a0] sm:$0xff]  ;;  %v2285_v40 = vld [vmem:[%s6786_s16 + $0x1e8] sm:$0xff]  ;;  %v2270_v55 = vld [vmem:[%s6786_s16 + $0x170] sm:$0xff] }
 0x7f3   : > { %5391 = vmatprep.subr.bf16.mxu0 %v5390_v12  ;;  %5421 = vmatpush1.bf16.msra.mxu1 %v5420_v28  ;;  %v2275_v43 = vld [vmem:[%s6786_s16 + $0x198] sm:$0xff]  ;;  %v5400_v46 = vpack.c.bf16 %v2276_v36, %v2272_v44  ;;  %v5402_v47 = vpack.c.bf16 %v2285_v40, %v2281_v38  ;;  %v2280_v48 = vld [vmem:[%s6786_s16 + $0x1c0] sm:$0xff]  ;;  %v5428_v53 = vpack.c.bf16 %v2270_v55, %v2266_v42  ;;  %v2274_v49 = vld [vmem:[%s6786_s16 + $0x190] sm:$0xff]  ;;  %v6473_v38 = vmov (!%p4839_p5), 0.0  }
 0x7f4   : > { %5423 = vmatprep.subr.bf16.mxu1 %v5422_v29  ;;  %v2279_v45 = vld [vmem:[%s6786_s16 + $0x1b8] sm:$0xff]  ;;  %v2284_v7 = vld [vmem:[%s6786_s16 + $0x1e0] sm:$0xff]  ;;  %v2278_v50 = vld [vmem:[%s6786_s16 + $0x1b0] sm:$0xff] }
 0x7f5   : > { %v5430_v54 = vpack.c.bf16 %v2279_v45, %v2275_v43  ;;  %v2283_v51 = vld [vmem:[%s6786_s16 + $0x1d8] sm:$0xff]  ;;  %v5404_v52 = vpack.c.bf16 %v2284_v7, %v2280_v48  ;;  %v5432_v57 = vpack.c.bf16 %v2278_v50, %v2274_v49  ;;  %v2282_v60 = vld [vmem:[%s6786_s16 + $0x1d0] sm:$0xff]  ;;  %v2223_v9 = vld [vmem:[#allocation2 + $0x78] sm:$0xff] }
 0x7f6   : > { %5393 = vmatpush1.bf16.msra.mxu0 %v5392_v21  ;;  %v2287_v56 = vld [vmem:[%s6786_s16 + $0x1f8] sm:$0xff]  ;;  %v2286_v61 = vld [vmem:[%s6786_s16 + $0x1f0] sm:$0xff]  ;;  %v2222_v13 = vld [vmem:[#allocation2 + $0x70] sm:$0xff] }
 0x7f7   : > { %5395 = vmatprep.subr.bf16.mxu0 %v5394_v24  ;;  %5425 = vmatpush1.bf16.msra.mxu1 %v5424_v39  ;;  %v5434_v58 = vpack.c.bf16 %v2287_v56, %v2283_v51  ;;  %v2216_v62 = vld [vmem:[#allocation3] sm:$0xff]  ;;  %v5436_v63 = vpack.c.bf16 %v2286_v61, %v2282_v60  ;;  %v2221_v1 = vld [vmem:[#allocation2 + $0x68] sm:$0xff]  ;;  %v2465_v31 = vld [vmem:[%s6779_s1 + $0x8] sm:$0xff] (!%p4839_p5) }
 0x7f8   : > { %5427 = vmatprep.subr.bf16.mxu1 %v5426_v41  ;;  %v2220_v0 = vld [vmem:[#allocation2 + $0x60] sm:$0xff]  ;;  %v2453_v22 = vld [vmem:[#allocation4] sm:$0xff]  ;;  %v2469_v32 = vld [vmem:[%s6779_s1 + $0x28] sm:$0xff] (!%p4839_p5) }
 0x7f9   : > { %v2467_v33 = vld [vmem:[%s6779_s1 + $0x18] sm:$0xff] (!%p4839_p5)  ;;  %v2464_v44 = vld [vmem:[%s6779_s1] sm:$0xff] (!%p4839_p5)  ;;  %v2466_v41 = vld [vmem:[%s6779_s1 + $0x10] sm:$0xff] (!%p4839_p5) }
 0x7fa   : > { %5397 = vmatpush1.bf16.msra.mxu0 %v5396_v34  ;;  %v5438_v34 = vpack.c.bf16 (!%p4839_p5), %v2469_v32, %v2465_v31  ;;  %v2468_v36 = vld [vmem:[%s6779_s1 + $0x20] sm:$0xff] (!%p4839_p5)  ;;  %v2470_v42 = vld [vmem:[%s6779_s1 + $0x30] sm:$0xff] (!%p4839_p5)  ;;  %v2473_v55 = vld [vmem:[%s6779_s1 + $0x48] sm:$0xff] (!%p4839_p5) }
 0x7fb   : > { %5399 = vmatprep.subr.bf16.mxu0 %v5398_v35  ;;  %5429 = vmatpush1.bf16.msra.mxu1 %v5428_v53  ;;  %v2471_v35 = vld [vmem:[%s6779_s1 + $0x38] sm:$0xff] (!%p4839_p5)  ;;  %v5440_v40 = vpack.c.bf16 (!%p4839_p5), %v2468_v36, %v2464_v44  ;;  %v5472_v43 = vpack.c.bf16 (!%p4839_p5), %v2470_v42, %v2466_v41  ;;  %v2477_v45 = vld [vmem:[%s6779_s1 + $0x68] sm:$0xff] (!%p4839_p5)  ;;  %v2472_v53 = vld [vmem:[%s6779_s1 + $0x40] sm:$0xff] (!%p4839_p5) }
 0x7fc   : > { %5431 = vmatprep.subr.bf16.mxu1 %v5430_v54  ;;  %v5470_v39 = vpack.c.bf16 (!%p4839_p5), %v2471_v35, %v2467_v33  ;;  %v5442_v48 = vpack.c.bf16 (!%p4839_p5), %v2477_v45, %v2473_v55  ;;  %v2476_v54 = vld [vmem:[%s6779_s1 + $0x60] sm:$0xff] (!%p4839_p5)  ;;  %v2474_v49 = vld [vmem:[%s6779_s1 + $0x50] sm:$0xff] (!%p4839_p5)  ;;  %v2481_v56 = vld [vmem:[%s6779_s1 + $0x88] sm:$0xff] (!%p4839_p5) }
 0x7fd   : > { %v5444_v50 = vpack.c.bf16 (!%p4839_p5), %v2476_v54, %v2472_v53  ;;  %v2478_v51 = vld [vmem:[%s6779_s1 + $0x70] sm:$0xff] (!%p4839_p5)  ;;  %v2483_v60 = vld [vmem:[%s6779_s1 + $0x98] sm:$0xff] (!%p4839_p5)  ;;  %v2504_v35 = vld [vmem:[%s6779_s1 + $0x140] sm:$0xff] (!%p4839_p5) }
 0x7fe   : > { %5401 = vmatpush1.bf16.msra.mxu0 %v5400_v46  ;;  %v2475_v46 = vld [vmem:[%s6779_s1 + $0x58] sm:$0xff] (!%p4839_p5)  ;;  %v2508_v44 = vld [vmem:[%s6779_s1 + $0x160] sm:$0xff] (!%p4839_p5)  ;;  %v2506_v36 = vld [vmem:[%s6779_s1 + $0x150] sm:$0xff] (!%p4839_p5) }
 0x7ff   : > { %5403 = vmatprep.subr.bf16.mxu0 %v5402_v47  ;;  %5433 = vmatpush1.bf16.msra.mxu1 %v5432_v57  ;;  %v2479_v47 = vld [vmem:[%s6779_s1 + $0x78] sm:$0xff] (!%p4839_p5)  ;;  %v5476_v57 = vpack.c.bf16 (!%p4839_p5), %v2478_v51, %v2474_v49  ;;  %v2517_v41 = vld [vmem:[%s6779_s1 + $0x1a8] sm:$0xff] (!%p4839_p5)  ;;  %v2518_v54 = vld [vmem:[%s6779_s1 + $0x1b0] sm:$0xff] (!%p4839_p5) }
 0x800   : > { %5435 = vmatprep.subr.bf16.mxu1 %v5434_v58  ;;  %v5474_v7 = vpack.c.bf16 (!%p4839_p5), %v2479_v47, %v2475_v46  ;;  %v2487_v61 = vld [vmem:[%s6779_s1 + $0xb8] sm:$0xff] (!%p4839_p5)  ;;  %v2512_v47 = vld [vmem:[%s6779_s1 + $0x180] sm:$0xff] (!%p4839_p5)  ;;  %v2521_v49 = vld [vmem:[%s6779_s1 + $0x1c8] sm:$0xff] (!%p4839_p5) }
 0x801   : > { %v2511_v31 = vld [vmem:[%s6779_s1 + $0x178] sm:$0xff] (!%p4839_p5) }
 0x802   : > { %5405 = vmatpush1.bf16.msra.mxu0 %v5404_v52  ;;  %v2485_v52 = vld [vmem:[%s6779_s1 + $0xa8] sm:$0xff] (!%p4839_p5)  ;;  %v2515_v42 = vld [vmem:[%s6779_s1 + $0x198] sm:$0xff] (!%p4839_p5) }
 0x803   : > { %5437 = vmatpush1.bf16.msra.mxu1 %v5436_v63  ;;  %5439 = vmatprep.subr.bf16.mxu0 (!%p4839_p5), %v5438_v34  ;;  %v5446_v58 = vpack.c.bf16 (!%p4839_p5), %v2485_v52, %v2481_v56  ;;  %v5478_v63 = vpack.c.bf16 (!%p4839_p5), %v2487_v61, %v2483_v60  ;;  %v2519_v55 = vld [vmem:[%s6779_s1 + $0x1b8] sm:$0xff] (!%p4839_p5)  ;;  %v2520_v60 = vld [vmem:[%s6779_s1 + $0x1c0] sm:$0xff] (!%p4839_p5) }
 0x804   : > { %5471 = vmatprep.subr.bf16.mxu1 (!%p4839_p5), %v5470_v39  ;;  %v2510_v39 = vld [vmem:[%s6779_s1 + $0x170] sm:$0xff] (!%p4839_p5)  ;;  %v5494_v53 = vpack.c.bf16 (!%p4839_p5), %v2519_v55, %v2515_v42  ;;  %v2523_v51 = vld [vmem:[%s6779_s1 + $0x1d8] sm:$0xff] (!%p4839_p5)  ;;  %v2524_v61 = vld [vmem:[%s6779_s1 + $0x1e0] sm:$0xff] (!%p4839_p5) }
 0x805   : > { %2353 = vmatmul.mubr.f32.vlgmr.msra.gmra.mrb[0].mxu0 %v2216_v62  ;;  %v5492_v45 = vpack.c.bf16 (!%p4839_p5), %v2510_v39, %v2506_v36  ;;  %v2527_v56 = vld [vmem:[%s6779_s1 + $0x1f8] sm:$0xff] (!%p4839_p5) }
 0x806   : > { %2424 = vmatmul.mubr.f32.vlgmr.msra.gmra.mrb[0].mxu1 %v2216_v62  ;;  %2614 = vmatprep.mubr.f32.mxu0 (!%p4839_p5), %v6473_v38  ;;  %v2480_v62 = vld [vmem:[%s6779_s1 + $0x80] sm:$0xff] (!%p4839_p5) }
 0x807   : > { %2685 = vmatprep.mubr.f32.mxu1 (!%p4839_p5), %v6473_v38  ;;  %5441 = vmatpush1.bf16.msra.mxu0 (!%p4839_p5), %v5440_v40  ;;  %v2513_v40 = vld [vmem:[%s6779_s1 + $0x188] sm:$0xff] (!%p4839_p5) }
 0x808   : > { %5473 = vmatpush1.bf16.msra.mxu1 (!%p4839_p5), %v5472_v43  ;;  %5443 = vmatprep.subr.bf16.mxu0 (!%p4839_p5), %v5442_v48  ;;  %v5460_v43 = vpack.c.bf16 (!%p4839_p5), %v2508_v44, %v2504_v35  ;;  %v5462_v46 = vpack.c.bf16 (!%p4839_p5), %v2517_v41, %v2513_v40  ;;  %v2516_v48 = vld [vmem:[%s6779_s1 + $0x1a0] sm:$0xff] (!%p4839_p5) }
 0x809   : > { %5475 = vmatprep.subr.bf16.mxu1 (!%p4839_p5), %v5474_v7  ;;  %v2514_v7 = vld [vmem:[%s6779_s1 + $0x190] sm:$0xff] (!%p4839_p5)  ;;  %v5464_v52 = vpack.c.bf16 (!%p4839_p5), %v2516_v48, %v2512_v47 }
 0x80b   : > { %5445 = vmatpush1.bf16.msra.mxu0 (!%p4839_p5), %v5444_v50  ;;  %v2525_v50 = vld [vmem:[%s6779_s1 + $0x1e8] sm:$0xff] (!%p4839_p5) }
 0x80c   : > { %5477 = vmatpush1.bf16.msra.mxu1 (!%p4839_p5), %v5476_v57  ;;  %5447 = vmatprep.subr.bf16.mxu0 (!%p4839_p5), %v5446_v58  ;;  %v5496_v57 = vpack.c.bf16 (!%p4839_p5), %v2518_v54, %v2514_v7  ;;  %v5466_v58 = vpack.c.bf16 (!%p4839_p5), %v2525_v50, %v2521_v49 }
 0x80d   : > { %5479 = vmatprep.subr.bf16.mxu1 (!%p4839_p5), %v5478_v63  ;;  %v2522_v63 = vld [vmem:[%s6779_s1 + $0x1d0] sm:$0xff] (!%p4839_p5) }
 0x8d8   : > { %v2354_v2 = vpop.f32.mrb[0].mxu0 }
 0x8d9   : > { %v2430_v3 = vadd.f32 %v2354_v2, %v2220_v0  ;;  %v2356_v4 = vpop.f32.mrb[1].mxu0  ;;  %v2425_v10 = vpop.f32.mrb[0].mxu1  ;;  %v2484_v0 = vld [vmem:[%s6779_s1 + $0xa0] sm:$0xff] (!%p4839_p5)  ;;  %v2486_v2 = vld [vmem:[%s6779_s1 + $0xb0] sm:$0xff] (!%p4839_p5) }
 0x8da   : > { %v2431_v5 = vadd.f32 %v2356_v4, %v2221_v1  ;;  %v2427_v11 = vpop.f32.mrb[1].mxu1  ;;  %v2432_v15 = vadd.f32 %v2425_v10, %v2222_v13  ;;  %v2482_v1 = vld [vmem:[%s6779_s1 + $0x90] sm:$0xff] (!%p4839_p5)  ;;  %v2489_v4 = vld [vmem:[%s6779_s1 + $0xc8] sm:$0xff] (!%p4839_p5)  ;;  %v2495_v10 = vld [vmem:[%s6779_s1 + $0xf8] sm:$0xff] (!%p4839_p5) }
 0x8db   : > { %v4848_v6 = vmul.f32 -1.442695, %v2430_v3  ;;  %v2433_v12 = vadd.f32 %v2427_v11, %v2223_v9  ;;  %v5448_v3 = vpack.c.bf16 (!%p4839_p5), %v2484_v0, %v2480_v62  ;;  %v2488_v11 = vld [vmem:[%s6779_s1 + $0xc0] sm:$0xff] (!%p4839_p5)  ;;  %v5498_v62 = vpack.c.bf16 (!%p4839_p5), %v2527_v56, %v2523_v51  ;;  %v2526_v0 = vld [vmem:[%s6779_s1 + $0x1f0] sm:$0xff] (!%p4839_p5) }
 0x8dc   : > { %v4849_v8 = vmul.f32 -1.442695, %v2431_v5  ;;  %v2493_v5 = vld [vmem:[%s6779_s1 + $0xe8] sm:$0xff] (!%p4839_p5) }
 0x8dd   : > { %6192 = vpow2.f32 %v4848_v6  ;;  %v4850_v14 = vmul.f32 -1.442695, %v2433_v12  ;;  %v2491_v6 = vld [vmem:[%s6779_s1 + $0xd8] sm:$0xff] (!%p4839_p5)  ;;  %v5450_v9 = vpack.c.bf16 (!%p4839_p5), %v2493_v5, %v2489_v4  ;;  %v2492_v12 = vld [vmem:[%s6779_s1 + $0xe0] sm:$0xff] (!%p4839_p5)  ;;  %5449 = vmatpush1.bf16.msra.mxu0 (!%p4839_p5), %v5448_v3  ;;  %v2530_v3 = vlaneseq (!%p4839_p5) }
 0x8de   : > { %6194 = vpow2.f32 %v4849_v8  ;;  %v5480_v8 = vpack.c.bf16 (!%p4839_p5), %v2486_v2, %v2482_v1  ;;  %v5482_v13 = vpack.c.bf16 (!%p4839_p5), %v2495_v10, %v2491_v6  ;;  %v5468_v1 = vpack.c.bf16 (!%p4839_p5), %v2524_v61, %v2520_v60  ;;  %v2528_v6 = vld [vmem:[%s6801_s11] sm:$0xf] (!%p4839_p5) }
 0x8df   : > { %6196 = vpow2.f32 %v4850_v14  ;;  %v2490_v14 = vld [vmem:[%s6779_s1 + $0xd0] sm:$0xff] (!%p4839_p5)  ;;  %5451 = vmatprep.subr.bf16.mxu0 (!%p4839_p5), %v5450_v9  ;;  %v5500_v2 = vpack.c.bf16 (!%p4839_p5), %v2526_v0, %v2522_v63  ;;  %v2531_v4 = vshrl.u32 (!%p4839_p5), %v2530_v3, 7 }
 0x8e0   : > { %6198 = vtanh.f32 %v2432_v15  ;;  %v2494_v15 = vld [vmem:[%s6779_s1 + $0xf0] sm:$0xff] (!%p4839_p5)  ;;  %5481 = vmatpush1.bf16.msra.mxu1 (!%p4839_p5), %v5480_v8 }
 0x8e1   : > { %5483 = vmatprep.subr.bf16.mxu1 (!%p4839_p5), %v5482_v13  ;;  %v2532_v5 = vsub.s32 (!%p4839_p5), 0, %v2531_v4  ;;  %v2540_v8 = vsub.s32 (!%p4839_p5), 2, %v2531_v4  ;;  %v2536_v9 = vsub.s32 (!%p4839_p5), 1, %v2531_v4  ;;  %v2544_v10 = vsub.s32 (!%p4839_p5), 3, %v2531_v4 }
 0x8e3   : > { %v2537_v13 = vrot.slane (!%p4839_p5), %v2528_v6, %v2536_v9 }
 0x8e7   : > { %v6193_v16 = vpop.eup %6192 }
 0x8e8   : > { %v6195_v17 = vpop.eup %6194  ;;  %v2437_v18 = vadd.f32 1.0, %v6193_v16  ;;  %v2497_v16 = vld [vmem:[%s6779_s1 + $0x108] sm:$0xff] (!%p4839_p5) }
 0x8e9   : > { %v2443_v19 = vadd.f32 1.0, %v6195_v17  ;;  %v6197_v20 = vpop.eup %6196  ;;  %v2501_v17 = vld [vmem:[%s6779_s1 + $0x128] sm:$0xff] (!%p4839_p5) }
 0x8ea   : > { %6200 = vrcp.f32 %v2437_v18  ;;  %v6199_v21 = vpop.eup %6198  ;;  %v2450_v24 = vadd.f32 1.0, %v6197_v20  ;;  %v2499_v18 = vld [vmem:[%s6779_s1 + $0x118] sm:$0xff] (!%p4839_p5)  ;;  %v5452_v20 = vpack.c.bf16 (!%p4839_p5), %v2492_v12, %v2488_v11  ;;  %v2533_v11 = vrot.slane (!%p4839_p5), %v2528_v6, %v2532_v5 }
 0x8eb   : > { %6202 = vrcp.f32 %v2443_v19  ;;  %v2503_v19 = vld [vmem:[%s6779_s1 + $0x138] sm:$0xff] (!%p4839_p5)  ;;  %v2541_v12 = vrot.slane (!%p4839_p5), %v2528_v6, %v2540_v8 }
 0x8ec   : > { %6204 = vrcp.f32 %v2450_v24  ;;  %v2500_v24 = vld [vmem:[%s6779_s1 + $0x120] sm:$0xff] (!%p4839_p5)  ;;  %5453 = vmatpush1.bf16.msra.mxu0 (!%p4839_p5), %v5452_v20 }
 0x8f4   : > { %v6201_v23 = vpop.eup %6200 }
 0x8f5   : > { %v6203_v25 = vpop.eup %6202  ;;  %v2455_v26 = vmul.f32 %v6201_v23, %v6199_v21  ;;  %v5484_v21 = vpack.c.bf16 (!%p4839_p5), %v2494_v15, %v2490_v14  ;;  %v2496_v23 = vld [vmem:[%s6779_s1 + $0x100] sm:$0xff] (!%p4839_p5)  ;;  %v2545_v14 = vrot.slane (!%p4839_p5), %v2528_v6, %v2544_v10 }
 0x8f6   : > { %v2454_v27 = vmul.f32 %v6203_v25, %v2453_v22  ;;  %v6205_v37 = vpop.eup %6204  ;;  %v5454_v22 = vpack.c.bf16 (!%p4839_p5), %v2501_v17, %v2497_v16  ;;  %v2498_v25 = vld [vmem:[%s6779_s1 + $0x110] sm:$0xff] (!%p4839_p5)  ;;  %v5456_v32 = vpack.c.bf16 (!%p4839_p5), %v2500_v24, %v2496_v23 }
 0x8f7   : > { %5485 = vmatpush1.bf16.msra.mxu1 (!%p4839_p5), %v5484_v21 }
 0x8f8   : > { %v2456_v28 = vadd.f32 %v2455_v26, %v2454_v27  ;;  %v5486_v26 = vpack.c.bf16 (!%p4839_p5), %v2503_v19, %v2499_v18  ;;  %v2502_v27 = vld [vmem:[%s6779_s1 + $0x130] sm:$0xff] (!%p4839_p5)  ;;  %5455 = vmatprep.subr.bf16.mxu0 (!%p4839_p5), %v5454_v22 }
 0x8f9   : > { %v5488_v33 = vpack.c.bf16 (!%p4839_p5), %v2502_v27, %v2498_v25  ;;  %5457 = vmatpush1.bf16.msra.mxu0 (!%p4839_p5), %v5456_v32 }
 0x8fa   : > { %6206 = vtanh.f32 %v2456_v28  ;;  %2459 = vst [vmem:[#allocation4] sm:$0xff] %v2456_v28  ;;  %v2505_v28 = vld [vmem:[%s6779_s1 + $0x148] sm:$0xff] (!%p4839_p5)  ;;  %5487 = vmatprep.subr.bf16.mxu1 (!%p4839_p5), %v5486_v26 }
 0x8fb   : > { %5489 = vmatpush1.bf16.msra.mxu1 (!%p4839_p5), %v5488_v33 }
 0x901   : > { %2463 = sbr.rel (%p4839_p5) target bundleno = 2540 (0x9ec), region = 88 }
 0x904   : > { %v6207_v29 = vpop.eup %6206 }
 0x905   : > { %v7371_v30 = vmul.f32 %v6207_v29, %v6205_v37  ;;  %v2509_v37 = vld [vmem:[%s6779_s1 + $0x168] sm:$0xff] (!%p4839_p5)  ;;  %v2507_v29 = vld [vmem:[%s6779_s1 + $0x158] sm:$0xff] (!%p4839_p5) }
 0x906   : > { %v5458_v34 = vpack.c.bf16 (!%p4839_p5), %v2509_v37, %v2505_v28  ;;  %v5490_v38 = vpack.c.bf16 (!%p4839_p5), %v2511_v31, %v2507_v29 }
 0x907   : > { %2460 = vst [vmem:[#allocation3] sm:$0xff] %v7371_v30 }
 0x908   : > { %5459 = vmatprep.subr.bf16.mxu0 %v5458_v34  ;;  %5491 = vmatprep.subr.bf16.mxu1 %v5490_v38 }
 0x909   : > { %5461 = vmatpush1.bf16.msra.mxu0 %v5460_v43  ;;  %5493 = vmatpush1.bf16.msra.mxu1 %v5492_v45 }
 0x90a   : > { %5463 = vmatprep.subr.bf16.mxu0 %v5462_v46  ;;  %5495 = vmatprep.subr.bf16.mxu1 %v5494_v53 }
 0x90d   : > { %5465 = vmatpush1.bf16.msra.mxu0 %v5464_v52  ;;  %5497 = vmatpush1.bf16.msra.mxu1 %v5496_v57 }
 0x90e   : > { %5467 = vmatprep.subr.bf16.mxu0 %v5466_v58  ;;  %5499 = vmatprep.subr.bf16.mxu1 %v5498_v62 }
 0x911   : > { %5469 = vmatpush1.bf16.msra.mxu0 %v5468_v1  ;;  %5501 = vmatpush1.bf16.msra.mxu1 %v5500_v2 }
 0x914   : > { %2615 = vmatmul.mubr.f32.vlgmr.msra.gmra.mrb[0].mxu0 %v7371_v30  ;;  %2686 = vmatmul.mubr.f32.vlgmr.msra.gmra.mrb[0].mxu1 %v7371_v30 }
 0x9e7   : > { %v2616_v15 = vpop.f32.mrb[0].mxu0  ;;  %v2687_v17 = vpop.f32.mrb[0].mxu1 }
 0x9e8   : > { %v2617_v16 = vadd.f32 %v2616_v15, %v2533_v11  ;;  %v2618_v18 = vpop.f32.mrb[1].mxu0  ;;  %v2688_v19 = vadd.f32 %v2687_v17, %v2541_v12  ;;  %v2689_v21 = vpop.f32.mrb[1].mxu1 }
 0x9e9   : > { %v2619_v20 = vadd.f32 %v2618_v18, %v2537_v13  ;;  %v2690_v30 = vadd.f32 %v2689_v21, %v2545_v14 }
 0x9ea   : > { %2692 = vst [vmem:[#allocation2 + $0x60] sm:$0xff] %v2617_v16  ;;  %2694 = vst [vmem:[#allocation2 + $0x70] sm:$0xff] %v2688_v19 }
 0x9eb   : > { %2693 = vst [vmem:[#allocation2 + $0x68] sm:$0xff] %v2619_v20  ;;  %2695 = vst [vmem:[#allocation2 + $0x78] sm:$0xff] %v2690_v30 }
 0x9ec PF: > { %v2705_v22 = vld [vmem:[%s6786_s16 + $0x8] sm:$0xff]  ;;  %v2704_v24 = vld [vmem:[%s6786_s16] sm:$0xff]  ;;  %2832 = vmatprep.mubr.f32.mxu0 %v6469_v59  ;;  %2903 = vmatprep.mubr.f32.mxu1 %v6469_v59  ;;  %v2707_v40 = vld [vmem:[%s6786_s16 + $0x18] sm:$0xff] }
 0x9ed   : > { %v2709_v23 = vld [vmem:[%s6786_s16 + $0x28] sm:$0xff]  ;;  %v2708_v26 = vld [vmem:[%s6786_s16 + $0x20] sm:$0xff]  ;;  %v2711_v41 = vld [vmem:[%s6786_s16 + $0x38] sm:$0xff] }
 0x9ee   : > { %v5502_v25 = vpack.c.bf16 %v2709_v23, %v2705_v22  ;;  %v2713_v27 = vld [vmem:[%s6786_s16 + $0x48] sm:$0xff]  ;;  %v5504_v37 = vpack.c.bf16 %v2708_v26, %v2704_v24  ;;  %v2712_v31 = vld [vmem:[%s6786_s16 + $0x40] sm:$0xff]  ;;  %v5534_v55 = vpack.c.bf16 %v2711_v41, %v2707_v40  ;;  %v2706_v43 = vld [vmem:[%s6786_s16 + $0x10] sm:$0xff] }
 0x9ef   : > { %v2717_v28 = vld [vmem:[%s6786_s16 + $0x68] sm:$0xff]  ;;  %v2716_v32 = vld [vmem:[%s6786_s16 + $0x60] sm:$0xff]  ;;  %v2710_v45 = vld [vmem:[%s6786_s16 + $0x30] sm:$0xff] }
 0x9f0   : > { %v5506_v29 = vpack.c.bf16 %v2717_v28, %v2713_v27  ;;  %v2721_v33 = vld [vmem:[%s6786_s16 + $0x88] sm:$0xff]  ;;  %5503 = vmatprep.subr.bf16.mxu0 %v5502_v25  ;;  %v5508_v35 = vpack.c.bf16 %v2716_v32, %v2712_v31  ;;  %v2720_v44 = vld [vmem:[%s6786_s16 + $0x80] sm:$0xff]  ;;  %v5536_v46 = vpack.c.bf16 %v2710_v45, %v2706_v43  ;;  %5535 = vmatprep.subr.bf16.mxu1 %v5534_v55  ;;  %v2715_v48 = vld [vmem:[%s6786_s16 + $0x58] sm:$0xff] }
 0x9f1   : > { %v2725_v34 = vld [vmem:[%s6786_s16 + $0xa8] sm:$0xff]  ;;  %5505 = vmatpush1.bf16.msra.mxu0 %v5504_v37  ;;  %v2724_v36 = vld [vmem:[%s6786_s16 + $0xa0] sm:$0xff]  ;;  %v2719_v7 = vld [vmem:[%s6786_s16 + $0x78] sm:$0xff] }
 0x9f2   : > { %5507 = vmatprep.subr.bf16.mxu0 %v5506_v29  ;;  %v5510_v38 = vpack.c.bf16 %v2725_v34, %v2721_v33  ;;  %v2729_v39 = vld [vmem:[%s6786_s16 + $0xc8] sm:$0xff]  ;;  %v5512_v47 = vpack.c.bf16 %v2724_v36, %v2720_v44  ;;  %v2714_v53 = vld [vmem:[%s6786_s16 + $0x50] sm:$0xff]  ;;  %v2728_v49 = vld [vmem:[%s6786_s16 + $0xc0] sm:$0xff]  ;;  %5537 = vmatpush1.bf16.msra.mxu1 %v5536_v46  ;;  %v5538_v51 = vpack.c.bf16 %v2719_v7, %v2715_v48 }
 0x9f3   : > { %v2733_v42 = vld [vmem:[%s6786_s16 + $0xe8] sm:$0xff]  ;;  %v2732_v50 = vld [vmem:[%s6786_s16 + $0xe0] sm:$0xff]  ;;  %v2718_v56 = vld [vmem:[%s6786_s16 + $0x70] sm:$0xff] }
 0x9f4   : > { %v5514_v54 = vpack.c.bf16 %v2733_v42, %v2729_v39  ;;  %v2737_v52 = vld [vmem:[%s6786_s16 + $0x108] sm:$0xff]  ;;  %v5540_v58 = vpack.c.bf16 %v2718_v56, %v2714_v53  ;;  %v2723_v60 = vld [vmem:[%s6786_s16 + $0x98] sm:$0xff]  ;;  %5539 = vmatprep.subr.bf16.mxu1 %v5538_v51  ;;  %v2722_v62 = vld [vmem:[%s6786_s16 + $0x90] sm:$0xff]  ;;  %v5516_v0 = vpack.c.bf16 %v2732_v50, %v2728_v49 }
 0x9f5   : > { %5509 = vmatpush1.bf16.msra.mxu0 %v5508_v35  ;;  %v2741_v57 = vld [vmem:[%s6786_s16 + $0x128] sm:$0xff]  ;;  %v2727_v61 = vld [vmem:[%s6786_s16 + $0xb8] sm:$0xff]  ;;  %v2726_v63 = vld [vmem:[%s6786_s16 + $0xb0] sm:$0xff] }
 0x9f6   : > { %5511 = vmatprep.subr.bf16.mxu0 %v5510_v38  ;;  %v2736_v1 = vld [vmem:[%s6786_s16 + $0x100] sm:$0xff]  ;;  %v5542_v3 = vpack.c.bf16 %v2727_v61, %v2723_v60  ;;  %v5518_v4 = vpack.c.bf16 %v2741_v57, %v2737_v52  ;;  %5541 = vmatpush1.bf16.msra.mxu1 %v5540_v58  ;;  %v2745_v5 = vld [vmem:[%s6786_s16 + $0x148] sm:$0xff]  ;;  %v5544_v6 = vpack.c.bf16 %v2726_v63, %v2722_v62  ;;  %v2731_v8 = vld [vmem:[%s6786_s16 + $0xd8] sm:$0xff] }
 0x9f7   : > { %v2740_v2 = vld [vmem:[%s6786_s16 + $0x120] sm:$0xff]  ;;  %v2735_v9 = vld [vmem:[%s6786_s16 + $0xf8] sm:$0xff]  ;;  %v2749_v10 = vld [vmem:[%s6786_s16 + $0x168] sm:$0xff] }
 0x9f8   : > { %5543 = vmatprep.subr.bf16.mxu1 %v5542_v3  ;;  %v5546_v11 = vpack.c.bf16 %v2735_v9, %v2731_v8  ;;  %v2730_v12 = vld [vmem:[%s6786_s16 + $0xd0] sm:$0xff]  ;;  %v5520_v14 = vpack.c.bf16 %v2740_v2, %v2736_v1  ;;  %v2739_v15 = vld [vmem:[%s6786_s16 + $0x118] sm:$0xff]  ;;  %v5522_v17 = vpack.c.bf16 %v2749_v10, %v2745_v5  ;;  %v2744_v18 = vld [vmem:[%s6786_s16 + $0x140] sm:$0xff] }
 0x9f9   : > { %5513 = vmatpush1.bf16.msra.mxu0 %v5512_v47  ;;  %v2734_v13 = vld [vmem:[%s6786_s16 + $0xf0] sm:$0xff]  ;;  %v2743_v16 = vld [vmem:[%s6786_s16 + $0x138] sm:$0xff]  ;;  %v2748_v19 = vld [vmem:[%s6786_s16 + $0x160] sm:$0xff] }
 0x9fa   : > { %5515 = vmatprep.subr.bf16.mxu0 %v5514_v54  ;;  %5545 = vmatpush1.bf16.msra.mxu1 %v5544_v6  ;;  %v2753_v20 = vld [vmem:[%s6786_s16 + $0x188] sm:$0xff]  ;;  %v5548_v21 = vpack.c.bf16 %v2734_v13, %v2730_v12  ;;  %v5550_v22 = vpack.c.bf16 %v2743_v16, %v2739_v15  ;;  %v2738_v23 = vld [vmem:[%s6786_s16 + $0x110] sm:$0xff]  ;;  %v2747_v25 = vld [vmem:[%s6786_s16 + $0x158] sm:$0xff]  ;;  %v5524_v27 = vpack.c.bf16 %v2748_v19, %v2744_v18 }
 0x9fb   : > { %v2757_v30 = vld [vmem:[%s6786_s16 + $0x1a8] sm:$0xff]  ;;  %5547 = vmatprep.subr.bf16.mxu1 %v5546_v11  ;;  %v2742_v24 = vld [vmem:[%s6786_s16 + $0x130] sm:$0xff]  ;;  %v2751_v26 = vld [vmem:[%s6786_s16 + $0x178] sm:$0xff] }
 0x9fc   : > { %v5526_v28 = vpack.c.bf16 %v2757_v30, %v2753_v20  ;;  %v2752_v37 = vld [vmem:[%s6786_s16 + $0x180] sm:$0xff]  ;;  %v2761_v31 = vld [vmem:[%s6786_s16 + $0x1c8] sm:$0xff]  ;;  %v5552_v32 = vpack.c.bf16 %v2742_v24, %v2738_v23  ;;  %v5554_v34 = vpack.c.bf16 %v2751_v26, %v2747_v25  ;;  %v2746_v35 = vld [vmem:[%s6786_s16 + $0x150] sm:$0xff] }
 0x9fd   : > { %5517 = vmatpush1.bf16.msra.mxu0 %v5516_v0  ;;  %v2756_v29 = vld [vmem:[%s6786_s16 + $0x1a0] sm:$0xff]  ;;  %v2765_v33 = vld [vmem:[%s6786_s16 + $0x1e8] sm:$0xff]  ;;  %v2750_v44 = vld [vmem:[%s6786_s16 + $0x170] sm:$0xff] }
 0x9fe   : > { %5519 = vmatprep.subr.bf16.mxu0 %v5518_v4  ;;  %5549 = vmatpush1.bf16.msra.mxu1 %v5548_v21  ;;  %v2755_v36 = vld [vmem:[%s6786_s16 + $0x198] sm:$0xff]  ;;  %v5528_v39 = vpack.c.bf16 %v2756_v29, %v2752_v37  ;;  %v5530_v40 = vpack.c.bf16 %v2765_v33, %v2761_v31  ;;  %v2760_v41 = vld [vmem:[%s6786_s16 + $0x1c0] sm:$0xff]  ;;  %v5556_v55 = vpack.c.bf16 %v2750_v44, %v2746_v35  ;;  %v2754_v45 = vld [vmem:[%s6786_s16 + $0x190] sm:$0xff]  ;;  %v6474_v31 = vmov (!%p4839_p5), 0.0  }
 0x9ff   : > { %5551 = vmatprep.subr.bf16.mxu1 %v5550_v22  ;;  %v2759_v38 = vld [vmem:[%s6786_s16 + $0x1b8] sm:$0xff]  ;;  %v2764_v42 = vld [vmem:[%s6786_s16 + $0x1e0] sm:$0xff]  ;;  %v2758_v46 = vld [vmem:[%s6786_s16 + $0x1b0] sm:$0xff] }
 0xa00   : > { %v5558_v43 = vpack.c.bf16 %v2759_v38, %v2755_v36  ;;  %v2763_v47 = vld [vmem:[%s6786_s16 + $0x1d8] sm:$0xff]  ;;  %v5532_v7 = vpack.c.bf16 %v2764_v42, %v2760_v41  ;;  %v5560_v53 = vpack.c.bf16 %v2758_v46, %v2754_v45  ;;  %v2762_v49 = vld [vmem:[%s6786_s16 + $0x1d0] sm:$0xff]  ;;  %v2703_v1 = vld [vmem:[#allocation2 + $0x98] sm:$0xff] }
 0xa01   : > { %5521 = vmatpush1.bf16.msra.mxu0 %v5520_v14  ;;  %v2767_v48 = vld [vmem:[%s6786_s16 + $0x1f8] sm:$0xff]  ;;  %v2766_v50 = vld [vmem:[%s6786_s16 + $0x1f0] sm:$0xff]  ;;  %v2702_v5 = vld [vmem:[#allocation2 + $0x90] sm:$0xff] }
 0xa02   : > { %5523 = vmatprep.subr.bf16.mxu0 %v5522_v17  ;;  %5553 = vmatpush1.bf16.msra.mxu1 %v5552_v32  ;;  %v5562_v54 = vpack.c.bf16 %v2767_v48, %v2763_v47  ;;  %v2696_v51 = vld [vmem:[#allocation3] sm:$0xff]  ;;  %v5564_v56 = vpack.c.bf16 %v2766_v50, %v2762_v49  ;;  %v2701_v57 = vld [vmem:[#allocation2 + $0x88] sm:$0xff]  ;;  %v2945_v24 = vld [vmem:[%s6779_s1 + $0x8] sm:$0xff] (!%p4839_p5) }
 0xa03   : > { %5555 = vmatprep.subr.bf16.mxu1 %v5554_v34  ;;  %v2700_v52 = vld [vmem:[#allocation2 + $0x80] sm:$0xff]  ;;  %v2933_v15 = vld [vmem:[#allocation4] sm:$0xff]  ;;  %v2949_v25 = vld [vmem:[%s6779_s1 + $0x28] sm:$0xff] (!%p4839_p5) }
 0xa04   : > { %v2947_v26 = vld [vmem:[%s6779_s1 + $0x18] sm:$0xff] (!%p4839_p5)  ;;  %v2944_v37 = vld [vmem:[%s6779_s1] sm:$0xff] (!%p4839_p5)  ;;  %v2946_v34 = vld [vmem:[%s6779_s1 + $0x10] sm:$0xff] (!%p4839_p5) }
 0xa05   : > { %5525 = vmatpush1.bf16.msra.mxu0 %v5524_v27  ;;  %v5566_v27 = vpack.c.bf16 (!%p4839_p5), %v2949_v25, %v2945_v24  ;;  %v2948_v29 = vld [vmem:[%s6779_s1 + $0x20] sm:$0xff] (!%p4839_p5)  ;;  %v2950_v35 = vld [vmem:[%s6779_s1 + $0x30] sm:$0xff] (!%p4839_p5)  ;;  %v2953_v44 = vld [vmem:[%s6779_s1 + $0x48] sm:$0xff] (!%p4839_p5) }
 0xa06   : > { %5527 = vmatprep.subr.bf16.mxu0 %v5526_v28  ;;  %5557 = vmatpush1.bf16.msra.mxu1 %v5556_v55  ;;  %v2951_v28 = vld [vmem:[%s6779_s1 + $0x38] sm:$0xff] (!%p4839_p5)  ;;  %v5568_v33 = vpack.c.bf16 (!%p4839_p5), %v2948_v29, %v2944_v37  ;;  %v5600_v36 = vpack.c.bf16 (!%p4839_p5), %v2950_v35, %v2946_v34  ;;  %v2957_v38 = vld [vmem:[%s6779_s1 + $0x68] sm:$0xff] (!%p4839_p5)  ;;  %v2952_v55 = vld [vmem:[%s6779_s1 + $0x40] sm:$0xff] (!%p4839_p5) }
 0xa07   : > { %5559 = vmatprep.subr.bf16.mxu1 %v5558_v43  ;;  %v5598_v32 = vpack.c.bf16 (!%p4839_p5), %v2951_v28, %v2947_v26  ;;  %v5570_v41 = vpack.c.bf16 (!%p4839_p5), %v2957_v38, %v2953_v44  ;;  %v2956_v43 = vld [vmem:[%s6779_s1 + $0x60] sm:$0xff] (!%p4839_p5)  ;;  %v2954_v45 = vld [vmem:[%s6779_s1 + $0x50] sm:$0xff] (!%p4839_p5)  ;;  %v2961_v48 = vld [vmem:[%s6779_s1 + $0x88] sm:$0xff] (!%p4839_p5) }
 0xa08   : > { %v5572_v46 = vpack.c.bf16 (!%p4839_p5), %v2956_v43, %v2952_v55  ;;  %v2958_v47 = vld [vmem:[%s6779_s1 + $0x70] sm:$0xff] (!%p4839_p5)  ;;  %v2963_v49 = vld [vmem:[%s6779_s1 + $0x98] sm:$0xff] (!%p4839_p5)  ;;  %v2984_v28 = vld [vmem:[%s6779_s1 + $0x140] sm:$0xff] (!%p4839_p5) }
 0xa09   : > { %5529 = vmatpush1.bf16.msra.mxu0 %v5528_v39  ;;  %v2955_v39 = vld [vmem:[%s6779_s1 + $0x58] sm:$0xff] (!%p4839_p5)  ;;  %v2988_v37 = vld [vmem:[%s6779_s1 + $0x160] sm:$0xff] (!%p4839_p5)  ;;  %v2986_v29 = vld [vmem:[%s6779_s1 + $0x150] sm:$0xff] (!%p4839_p5) }
 0xa0a   : > { %5531 = vmatprep.subr.bf16.mxu0 %v5530_v40  ;;  %5561 = vmatpush1.bf16.msra.mxu1 %v5560_v53  ;;  %v2959_v40 = vld [vmem:[%s6779_s1 + $0x78] sm:$0xff] (!%p4839_p5)  ;;  %v5604_v53 = vpack.c.bf16 (!%p4839_p5), %v2958_v47, %v2954_v45  ;;  %v2997_v34 = vld [vmem:[%s6779_s1 + $0x1a8] sm:$0xff] (!%p4839_p5)  ;;  %v2998_v43 = vld [vmem:[%s6779_s1 + $0x1b0] sm:$0xff] (!%p4839_p5) }
 0xa0b   : > { %5563 = vmatprep.subr.bf16.mxu1 %v5562_v54  ;;  %v5602_v42 = vpack.c.bf16 (!%p4839_p5), %v2959_v40, %v2955_v39  ;;  %v2967_v50 = vld [vmem:[%s6779_s1 + $0xb8] sm:$0xff] (!%p4839_p5)  ;;  %v2992_v40 = vld [vmem:[%s6779_s1 + $0x180] sm:$0xff] (!%p4839_p5)  ;;  %v3001_v45 = vld [vmem:[%s6779_s1 + $0x1c8] sm:$0xff] (!%p4839_p5) }
 0xa0c   : > { %v2991_v24 = vld [vmem:[%s6779_s1 + $0x178] sm:$0xff] (!%p4839_p5) }
 0xa0d   : > { %5533 = vmatpush1.bf16.msra.mxu0 %v5532_v7  ;;  %v2965_v7 = vld [vmem:[%s6779_s1 + $0xa8] sm:$0xff] (!%p4839_p5)  ;;  %v2995_v35 = vld [vmem:[%s6779_s1 + $0x198] sm:$0xff] (!%p4839_p5) }
 0xa0e   : > { %5565 = vmatpush1.bf16.msra.mxu1 %v5564_v56  ;;  %5567 = vmatprep.subr.bf16.mxu0 (!%p4839_p5), %v5566_v27  ;;  %v5574_v54 = vpack.c.bf16 (!%p4839_p5), %v2965_v7, %v2961_v48  ;;  %v5606_v56 = vpack.c.bf16 (!%p4839_p5), %v2967_v50, %v2963_v49  ;;  %v2999_v44 = vld [vmem:[%s6779_s1 + $0x1b8] sm:$0xff] (!%p4839_p5)  ;;  %v3000_v49 = vld [vmem:[%s6779_s1 + $0x1c0] sm:$0xff] (!%p4839_p5) }
 0xa0f   : > { %5599 = vmatprep.subr.bf16.mxu1 (!%p4839_p5), %v5598_v32  ;;  %v2990_v32 = vld [vmem:[%s6779_s1 + $0x170] sm:$0xff] (!%p4839_p5)  ;;  %v5622_v55 = vpack.c.bf16 (!%p4839_p5), %v2999_v44, %v2995_v35  ;;  %v3003_v47 = vld [vmem:[%s6779_s1 + $0x1d8] sm:$0xff] (!%p4839_p5)  ;;  %v3004_v50 = vld [vmem:[%s6779_s1 + $0x1e0] sm:$0xff] (!%p4839_p5) }
 0xa10   : > { %2833 = vmatmul.mubr.f32.vlgmr.msra.gmra.mrb[0].mxu0 %v2696_v51  ;;  %v5620_v38 = vpack.c.bf16 (!%p4839_p5), %v2990_v32, %v2986_v29  ;;  %v3007_v48 = vld [vmem:[%s6779_s1 + $0x1f8] sm:$0xff] (!%p4839_p5) }
 0xa11   : > { %2904 = vmatmul.mubr.f32.vlgmr.msra.gmra.mrb[0].mxu1 %v2696_v51  ;;  %3094 = vmatprep.mubr.f32.mxu0 (!%p4839_p5), %v6474_v31  ;;  %v2960_v51 = vld [vmem:[%s6779_s1 + $0x80] sm:$0xff] (!%p4839_p5) }
 0xa12   : > { %3165 = vmatprep.mubr.f32.mxu1 (!%p4839_p5), %v6474_v31  ;;  %5569 = vmatpush1.bf16.msra.mxu0 (!%p4839_p5), %v5568_v33  ;;  %v2993_v33 = vld [vmem:[%s6779_s1 + $0x188] sm:$0xff] (!%p4839_p5) }
 0xa13   : > { %5601 = vmatpush1.bf16.msra.mxu1 (!%p4839_p5), %v5600_v36  ;;  %5571 = vmatprep.subr.bf16.mxu0 (!%p4839_p5), %v5570_v41  ;;  %v5588_v36 = vpack.c.bf16 (!%p4839_p5), %v2988_v37, %v2984_v28  ;;  %v5590_v39 = vpack.c.bf16 (!%p4839_p5), %v2997_v34, %v2993_v33  ;;  %v2996_v41 = vld [vmem:[%s6779_s1 + $0x1a0] sm:$0xff] (!%p4839_p5) }
 0xa14   : > { %5603 = vmatprep.subr.bf16.mxu1 (!%p4839_p5), %v5602_v42  ;;  %v2994_v42 = vld [vmem:[%s6779_s1 + $0x190] sm:$0xff] (!%p4839_p5)  ;;  %v5592_v7 = vpack.c.bf16 (!%p4839_p5), %v2996_v41, %v2992_v40 }
 0xa16   : > { %5573 = vmatpush1.bf16.msra.mxu0 (!%p4839_p5), %v5572_v46  ;;  %v3005_v46 = vld [vmem:[%s6779_s1 + $0x1e8] sm:$0xff] (!%p4839_p5) }
 0xa17   : > { %5605 = vmatpush1.bf16.msra.mxu1 (!%p4839_p5), %v5604_v53  ;;  %5575 = vmatprep.subr.bf16.mxu0 (!%p4839_p5), %v5574_v54  ;;  %v5624_v53 = vpack.c.bf16 (!%p4839_p5), %v2998_v43, %v2994_v42  ;;  %v5594_v54 = vpack.c.bf16 (!%p4839_p5), %v3005_v46, %v3001_v45 }
 0xa18   : > { %5607 = vmatprep.subr.bf16.mxu1 (!%p4839_p5), %v5606_v56  ;;  %v3002_v56 = vld [vmem:[%s6779_s1 + $0x1d0] sm:$0xff] (!%p4839_p5) }
 0xae3   : > { %v2834_v58 = vpop.f32.mrb[0].mxu0 }
 0xae4   : > { %v2910_v60 = vadd.f32 %v2834_v58, %v2700_v52  ;;  %v2836_v61 = vpop.f32.mrb[1].mxu0  ;;  %v2905_v2 = vpop.f32.mrb[0].mxu1  ;;  %v2964_v52 = vld [vmem:[%s6779_s1 + $0xa0] sm:$0xff] (!%p4839_p5)  ;;  %v2966_v58 = vld [vmem:[%s6779_s1 + $0xb0] sm:$0xff] (!%p4839_p5) }
 0xae5   : > { %v2911_v62 = vadd.f32 %v2836_v61, %v2701_v57  ;;  %v2907_v3 = vpop.f32.mrb[1].mxu1  ;;  %v2912_v8 = vadd.f32 %v2905_v2, %v2702_v5  ;;  %v2962_v57 = vld [vmem:[%s6779_s1 + $0x90] sm:$0xff] (!%p4839_p5)  ;;  %v2969_v61 = vld [vmem:[%s6779_s1 + $0xc8] sm:$0xff] (!%p4839_p5)  ;;  %v2975_v2 = vld [vmem:[%s6779_s1 + $0xf8] sm:$0xff] (!%p4839_p5) }
 0xae6   : > { %v4852_v63 = vmul.f32 -1.442695, %v2910_v60  ;;  %v2913_v4 = vadd.f32 %v2907_v3, %v2703_v1  ;;  %v5576_v60 = vpack.c.bf16 (!%p4839_p5), %v2964_v52, %v2960_v51  ;;  %v2968_v3 = vld [vmem:[%s6779_s1 + $0xc0] sm:$0xff] (!%p4839_p5)  ;;  %v5626_v51 = vpack.c.bf16 (!%p4839_p5), %v3007_v48, %v3003_v47  ;;  %v3006_v52 = vld [vmem:[%s6779_s1 + $0x1f0] sm:$0xff] (!%p4839_p5) }
 0xae7   : > { %v4853_v0 = vmul.f32 -1.442695, %v2911_v62  ;;  %v2973_v62 = vld [vmem:[%s6779_s1 + $0xe8] sm:$0xff] (!%p4839_p5) }
 0xae8   : > { %6208 = vpow2.f32 %v4852_v63  ;;  %v4854_v6 = vmul.f32 -1.442695, %v2913_v4  ;;  %v2971_v63 = vld [vmem:[%s6779_s1 + $0xd8] sm:$0xff] (!%p4839_p5)  ;;  %v5578_v1 = vpack.c.bf16 (!%p4839_p5), %v2973_v62, %v2969_v61  ;;  %v2972_v4 = vld [vmem:[%s6779_s1 + $0xe0] sm:$0xff] (!%p4839_p5)  ;;  %5577 = vmatpush1.bf16.msra.mxu0 (!%p4839_p5), %v5576_v60  ;;  %v3010_v60 = vlaneseq (!%p4839_p5) }
 0xae9   : > { %6210 = vpow2.f32 %v4853_v0  ;;  %v5608_v0 = vpack.c.bf16 (!%p4839_p5), %v2966_v58, %v2962_v57  ;;  %v5610_v5 = vpack.c.bf16 (!%p4839_p5), %v2975_v2, %v2971_v63  ;;  %v5596_v57 = vpack.c.bf16 (!%p4839_p5), %v3004_v50, %v3000_v49  ;;  %v3008_v63 = vld [vmem:[%s6801_s11] sm:$0xf] (!%p4839_p5) }
 0xaea   : > { %6212 = vpow2.f32 %v4854_v6  ;;  %v2970_v6 = vld [vmem:[%s6779_s1 + $0xd0] sm:$0xff] (!%p4839_p5)  ;;  %5579 = vmatprep.subr.bf16.mxu0 (!%p4839_p5), %v5578_v1  ;;  %v5628_v58 = vpack.c.bf16 (!%p4839_p5), %v3006_v52, %v3002_v56  ;;  %v3011_v61 = vshrl.u32 (!%p4839_p5), %v3010_v60, 7 }
 0xaeb   : > { %6214 = vtanh.f32 %v2912_v8  ;;  %v2974_v8 = vld [vmem:[%s6779_s1 + $0xf0] sm:$0xff] (!%p4839_p5)  ;;  %5609 = vmatpush1.bf16.msra.mxu1 (!%p4839_p5), %v5608_v0 }
 0xaec   : > { %5611 = vmatprep.subr.bf16.mxu1 (!%p4839_p5), %v5610_v5  ;;  %v3012_v62 = vsub.s32 (!%p4839_p5), 0, %v3011_v61  ;;  %v3020_v0 = vsub.s32 (!%p4839_p5), 2, %v3011_v61  ;;  %v3016_v1 = vsub.s32 (!%p4839_p5), 1, %v3011_v61  ;;  %v3024_v2 = vsub.s32 (!%p4839_p5), 3, %v3011_v61 }
 0xaee   : > { %v3017_v5 = vrot.slane (!%p4839_p5), %v3008_v63, %v3016_v1 }
 0xaf2   : > { %v6209_v9 = vpop.eup %6208 }
 0xaf3   : > { %v6211_v10 = vpop.eup %6210  ;;  %v2917_v11 = vadd.f32 1.0, %v6209_v9  ;;  %v2977_v9 = vld [vmem:[%s6779_s1 + $0x108] sm:$0xff] (!%p4839_p5) }
 0xaf4   : > { %v2923_v12 = vadd.f32 1.0, %v6211_v10  ;;  %v6213_v13 = vpop.eup %6212  ;;  %v2981_v10 = vld [vmem:[%s6779_s1 + $0x128] sm:$0xff] (!%p4839_p5) }
 0xaf5   : > { %6216 = vrcp.f32 %v2917_v11  ;;  %v6215_v14 = vpop.eup %6214  ;;  %v2930_v17 = vadd.f32 1.0, %v6213_v13  ;;  %v2979_v11 = vld [vmem:[%s6779_s1 + $0x118] sm:$0xff] (!%p4839_p5)  ;;  %v5580_v13 = vpack.c.bf16 (!%p4839_p5), %v2972_v4, %v2968_v3  ;;  %v3013_v3 = vrot.slane (!%p4839_p5), %v3008_v63, %v3012_v62 }
 0xaf6   : > { %6218 = vrcp.f32 %v2923_v12  ;;  %v2983_v12 = vld [vmem:[%s6779_s1 + $0x138] sm:$0xff] (!%p4839_p5)  ;;  %v3021_v4 = vrot.slane (!%p4839_p5), %v3008_v63, %v3020_v0 }
 0xaf7   : > { %6220 = vrcp.f32 %v2930_v17  ;;  %v2980_v17 = vld [vmem:[%s6779_s1 + $0x120] sm:$0xff] (!%p4839_p5)  ;;  %5581 = vmatpush1.bf16.msra.mxu0 (!%p4839_p5), %v5580_v13 }
 0xaff   : > { %v6217_v16 = vpop.eup %6216 }
 0xb00   : > { %v6219_v18 = vpop.eup %6218  ;;  %v2935_v19 = vmul.f32 %v6217_v16, %v6215_v14  ;;  %v5612_v14 = vpack.c.bf16 (!%p4839_p5), %v2974_v8, %v2970_v6  ;;  %v2976_v16 = vld [vmem:[%s6779_s1 + $0x100] sm:$0xff] (!%p4839_p5)  ;;  %v3025_v6 = vrot.slane (!%p4839_p5), %v3008_v63, %v3024_v2 }
 0xb01   : > { %v2934_v20 = vmul.f32 %v6219_v18, %v2933_v15  ;;  %v6221_v30 = vpop.eup %6220  ;;  %v5582_v15 = vpack.c.bf16 (!%p4839_p5), %v2981_v10, %v2977_v9  ;;  %v2978_v18 = vld [vmem:[%s6779_s1 + $0x110] sm:$0xff] (!%p4839_p5)  ;;  %v5584_v25 = vpack.c.bf16 (!%p4839_p5), %v2980_v17, %v2976_v16 }
 0xb02   : > { %5613 = vmatpush1.bf16.msra.mxu1 (!%p4839_p5), %v5612_v14 }
 0xb03   : > { %v2936_v21 = vadd.f32 %v2935_v19, %v2934_v20  ;;  %v5614_v19 = vpack.c.bf16 (!%p4839_p5), %v2983_v12, %v2979_v11  ;;  %v2982_v20 = vld [vmem:[%s6779_s1 + $0x130] sm:$0xff] (!%p4839_p5)  ;;  %5583 = vmatprep.subr.bf16.mxu0 (!%p4839_p5), %v5582_v15 }
 0xb04   : > { %v5616_v26 = vpack.c.bf16 (!%p4839_p5), %v2982_v20, %v2978_v18  ;;  %5585 = vmatpush1.bf16.msra.mxu0 (!%p4839_p5), %v5584_v25 }
 0xb05   : > { %6222 = vtanh.f32 %v2936_v21  ;;  %2939 = vst [vmem:[#allocation4] sm:$0xff] %v2936_v21  ;;  %v2985_v21 = vld [vmem:[%s6779_s1 + $0x148] sm:$0xff] (!%p4839_p5)  ;;  %5615 = vmatprep.subr.bf16.mxu1 (!%p4839_p5), %v5614_v19 }
 0xb06   : > { %5617 = vmatpush1.bf16.msra.mxu1 (!%p4839_p5), %v5616_v26 }
 0xb0c   : > { %2943 = sbr.rel (%p4839_p5) target bundleno = 3063 (0xbf7), region = 92 }
 0xb0f   : > { %v6223_v22 = vpop.eup %6222 }
 0xb10   : > { %v7509_v23 = vmul.f32 %v6223_v22, %v6221_v30  ;;  %v2989_v30 = vld [vmem:[%s6779_s1 + $0x168] sm:$0xff] (!%p4839_p5)  ;;  %v2987_v22 = vld [vmem:[%s6779_s1 + $0x158] sm:$0xff] (!%p4839_p5) }
 0xb11   : > { %v5586_v27 = vpack.c.bf16 (!%p4839_p5), %v2989_v30, %v2985_v21  ;;  %v5618_v31 = vpack.c.bf16 (!%p4839_p5), %v2991_v24, %v2987_v22 }
 0xb12   : > { %2940 = vst [vmem:[#allocation3] sm:$0xff] %v7509_v23 }
 0xb13   : > { %5587 = vmatprep.subr.bf16.mxu0 %v5586_v27  ;;  %5619 = vmatprep.subr.bf16.mxu1 %v5618_v31 }
 0xb14   : > { %5589 = vmatpush1.bf16.msra.mxu0 %v5588_v36  ;;  %5621 = vmatpush1.bf16.msra.mxu1 %v5620_v38 }
 0xb15   : > { %5591 = vmatprep.subr.bf16.mxu0 %v5590_v39  ;;  %5623 = vmatprep.subr.bf16.mxu1 %v5622_v55 }
 0xb18   : > { %5593 = vmatpush1.bf16.msra.mxu0 %v5592_v7  ;;  %5625 = vmatpush1.bf16.msra.mxu1 %v5624_v53 }
 0xb19   : > { %5595 = vmatprep.subr.bf16.mxu0 %v5594_v54  ;;  %5627 = vmatprep.subr.bf16.mxu1 %v5626_v51 }
 0xb1c   : > { %5597 = vmatpush1.bf16.msra.mxu0 %v5596_v57  ;;  %5629 = vmatpush1.bf16.msra.mxu1 %v5628_v58 }
 0xb1f   : > { %3095 = vmatmul.mubr.f32.vlgmr.msra.gmra.mrb[0].mxu0 %v7509_v23  ;;  %3166 = vmatmul.mubr.f32.vlgmr.msra.gmra.mrb[0].mxu1 %v7509_v23 }
 0xbf2   : > { %v3096_v8 = vpop.f32.mrb[0].mxu0  ;;  %v3167_v10 = vpop.f32.mrb[0].mxu1 }
 0xbf3   : > { %v3097_v9 = vadd.f32 %v3096_v8, %v3013_v3  ;;  %v3098_v11 = vpop.f32.mrb[1].mxu0  ;;  %v3168_v12 = vadd.f32 %v3167_v10, %v3021_v4  ;;  %v3169_v14 = vpop.f32.mrb[1].mxu1 }
 0xbf4   : > { %v3099_v13 = vadd.f32 %v3098_v11, %v3017_v5  ;;  %v3170_v23 = vadd.f32 %v3169_v14, %v3025_v6 }
 0xbf5   : > { %3172 = vst [vmem:[#allocation2 + $0x80] sm:$0xff] %v3097_v9  ;;  %3174 = vst [vmem:[#allocation2 + $0x90] sm:$0xff] %v3168_v12 }
 0xbf6   : > { %3173 = vst [vmem:[#allocation2 + $0x88] sm:$0xff] %v3099_v13  ;;  %3175 = vst [vmem:[#allocation2 + $0x98] sm:$0xff] %v3170_v23 }
 0xbf7 PF: > { %v3185_v15 = vld [vmem:[%s6786_s16 + $0x8] sm:$0xff]  ;;  %v3184_v17 = vld [vmem:[%s6786_s16] sm:$0xff]  ;;  %3312 = vmatprep.mubr.f32.mxu0 %v6469_v59  ;;  %3383 = vmatprep.mubr.f32.mxu1 %v6469_v59  ;;  %v3187_v33 = vld [vmem:[%s6786_s16 + $0x18] sm:$0xff] }
 0xbf8   : > { %v3189_v16 = vld [vmem:[%s6786_s16 + $0x28] sm:$0xff]  ;;  %v3188_v19 = vld [vmem:[%s6786_s16 + $0x20] sm:$0xff]  ;;  %v3191_v34 = vld [vmem:[%s6786_s16 + $0x38] sm:$0xff] }
 0xbf9   : > { %v5630_v18 = vpack.c.bf16 %v3189_v16, %v3185_v15  ;;  %v3193_v20 = vld [vmem:[%s6786_s16 + $0x48] sm:$0xff]  ;;  %v5632_v30 = vpack.c.bf16 %v3188_v19, %v3184_v17  ;;  %v3192_v24 = vld [vmem:[%s6786_s16 + $0x40] sm:$0xff]  ;;  %v5662_v44 = vpack.c.bf16 %v3191_v34, %v3187_v33  ;;  %v3186_v36 = vld [vmem:[%s6786_s16 + $0x10] sm:$0xff] }
 0xbfa   : > { %v3197_v21 = vld [vmem:[%s6786_s16 + $0x68] sm:$0xff]  ;;  %v3196_v25 = vld [vmem:[%s6786_s16 + $0x60] sm:$0xff]  ;;  %v3190_v38 = vld [vmem:[%s6786_s16 + $0x30] sm:$0xff] }
 0xbfb   : > { %v5634_v22 = vpack.c.bf16 %v3197_v21, %v3193_v20  ;;  %v3201_v26 = vld [vmem:[%s6786_s16 + $0x88] sm:$0xff]  ;;  %5631 = vmatprep.subr.bf16.mxu0 %v5630_v18  ;;  %v5636_v28 = vpack.c.bf16 %v3196_v25, %v3192_v24  ;;  %v3200_v37 = vld [vmem:[%s6786_s16 + $0x80] sm:$0xff]  ;;  %v5664_v39 = vpack.c.bf16 %v3190_v38, %v3186_v36  ;;  %5663 = vmatprep.subr.bf16.mxu1 %v5662_v44  ;;  %v3195_v41 = vld [vmem:[%s6786_s16 + $0x58] sm:$0xff] }
 0xbfc   : > { %v3205_v27 = vld [vmem:[%s6786_s16 + $0xa8] sm:$0xff]  ;;  %5633 = vmatpush1.bf16.msra.mxu0 %v5632_v30  ;;  %v3204_v29 = vld [vmem:[%s6786_s16 + $0xa0] sm:$0xff]  ;;  %v3199_v42 = vld [vmem:[%s6786_s16 + $0x78] sm:$0xff] }
 0xbfd   : > { %5635 = vmatprep.subr.bf16.mxu0 %v5634_v22  ;;  %v5638_v31 = vpack.c.bf16 %v3205_v27, %v3201_v26  ;;  %v3209_v32 = vld [vmem:[%s6786_s16 + $0xc8] sm:$0xff]  ;;  %v5640_v40 = vpack.c.bf16 %v3204_v29, %v3200_v37  ;;  %v3194_v55 = vld [vmem:[%s6786_s16 + $0x50] sm:$0xff]  ;;  %v3208_v45 = vld [vmem:[%s6786_s16 + $0xc0] sm:$0xff]  ;;  %5665 = vmatpush1.bf16.msra.mxu1 %v5664_v39  ;;  %v5666_v47 = vpack.c.bf16 %v3199_v42, %v3195_v41 }
 0xbfe   : > { %v3213_v35 = vld [vmem:[%s6786_s16 + $0xe8] sm:$0xff]  ;;  %v3212_v46 = vld [vmem:[%s6786_s16 + $0xe0] sm:$0xff]  ;;  %v3198_v48 = vld [vmem:[%s6786_s16 + $0x70] sm:$0xff] }
 0xbff   : > { %v5642_v43 = vpack.c.bf16 %v3213_v35, %v3209_v32  ;;  %v3217_v7 = vld [vmem:[%s6786_s16 + $0x108] sm:$0xff]  ;;  %v5668_v54 = vpack.c.bf16 %v3198_v48, %v3194_v55  ;;  %v3203_v49 = vld [vmem:[%s6786_s16 + $0x98] sm:$0xff]  ;;  %5667 = vmatprep.subr.bf16.mxu1 %v5666_v47  ;;  %v3202_v51 = vld [vmem:[%s6786_s16 + $0x90] sm:$0xff]  ;;  %v5644_v52 = vpack.c.bf16 %v3212_v46, %v3208_v45 }
 0xc00   : > { %5637 = vmatpush1.bf16.msra.mxu0 %v5636_v28  ;;  %v3221_v53 = vld [vmem:[%s6786_s16 + $0x128] sm:$0xff]  ;;  %v3207_v50 = vld [vmem:[%s6786_s16 + $0xb8] sm:$0xff]  ;;  %v3206_v56 = vld [vmem:[%s6786_s16 + $0xb0] sm:$0xff] }
 0xc01   : > { %5639 = vmatprep.subr.bf16.mxu0 %v5638_v31  ;;  %v3216_v57 = vld [vmem:[%s6786_s16 + $0x100] sm:$0xff]  ;;  %v5670_v60 = vpack.c.bf16 %v3207_v50, %v3203_v49  ;;  %v5646_v61 = vpack.c.bf16 %v3221_v53, %v3217_v7  ;;  %5669 = vmatpush1.bf16.msra.mxu1 %v5668_v54  ;;  %v3225_v62 = vld [vmem:[%s6786_s16 + $0x148] sm:$0xff]  ;;  %v5672_v63 = vpack.c.bf16 %v3206_v56, %v3202_v51  ;;  %v3211_v0 = vld [vmem:[%s6786_s16 + $0xd8] sm:$0xff] }
 0xc02   : > { %v3220_v58 = vld [vmem:[%s6786_s16 + $0x120] sm:$0xff]  ;;  %v3215_v1 = vld [vmem:[%s6786_s16 + $0xf8] sm:$0xff]  ;;  %v3229_v2 = vld [vmem:[%s6786_s16 + $0x168] sm:$0xff] }
 0xc03   : > { %5671 = vmatprep.subr.bf16.mxu1 %v5670_v60  ;;  %v5674_v3 = vpack.c.bf16 %v3215_v1, %v3211_v0  ;;  %v3210_v4 = vld [vmem:[%s6786_s16 + $0xd0] sm:$0xff]  ;;  %v5648_v6 = vpack.c.bf16 %v3220_v58, %v3216_v57  ;;  %v3219_v8 = vld [vmem:[%s6786_s16 + $0x118] sm:$0xff]  ;;  %v5650_v10 = vpack.c.bf16 %v3229_v2, %v3225_v62  ;;  %v3224_v11 = vld [vmem:[%s6786_s16 + $0x140] sm:$0xff] }
 0xc04   : > { %5641 = vmatpush1.bf16.msra.mxu0 %v5640_v40  ;;  %v3214_v5 = vld [vmem:[%s6786_s16 + $0xf0] sm:$0xff]  ;;  %v3223_v9 = vld [vmem:[%s6786_s16 + $0x138] sm:$0xff]  ;;  %v3228_v12 = vld [vmem:[%s6786_s16 + $0x160] sm:$0xff] }
 0xc05   : > { %5643 = vmatprep.subr.bf16.mxu0 %v5642_v43  ;;  %5673 = vmatpush1.bf16.msra.mxu1 %v5672_v63  ;;  %v3233_v13 = vld [vmem:[%s6786_s16 + $0x188] sm:$0xff]  ;;  %v5676_v14 = vpack.c.bf16 %v3214_v5, %v3210_v4  ;;  %v5678_v15 = vpack.c.bf16 %v3223_v9, %v3219_v8  ;;  %v3218_v16 = vld [vmem:[%s6786_s16 + $0x110] sm:$0xff]  ;;  %v3227_v18 = vld [vmem:[%s6786_s16 + $0x158] sm:$0xff]  ;;  %v5652_v20 = vpack.c.bf16 %v3228_v12, %v3224_v11 }
 0xc06   : > { %v3237_v23 = vld [vmem:[%s6786_s16 + $0x1a8] sm:$0xff]  ;;  %5675 = vmatprep.subr.bf16.mxu1 %v5674_v3  ;;  %v3222_v17 = vld [vmem:[%s6786_s16 + $0x130] sm:$0xff]  ;;  %v3231_v19 = vld [vmem:[%s6786_s16 + $0x178] sm:$0xff] }
 0xc07   : > { %v5654_v21 = vpack.c.bf16 %v3237_v23, %v3233_v13  ;;  %v3232_v30 = vld [vmem:[%s6786_s16 + $0x180] sm:$0xff]  ;;  %v3241_v24 = vld [vmem:[%s6786_s16 + $0x1c8] sm:$0xff]  ;;  %v5680_v25 = vpack.c.bf16 %v3222_v17, %v3218_v16  ;;  %v5682_v27 = vpack.c.bf16 %v3231_v19, %v3227_v18  ;;  %v3226_v28 = vld [vmem:[%s6786_s16 + $0x150] sm:$0xff] }
 0xc08   : > { %5645 = vmatpush1.bf16.msra.mxu0 %v5644_v52  ;;  %v3236_v22 = vld [vmem:[%s6786_s16 + $0x1a0] sm:$0xff]  ;;  %v3245_v26 = vld [vmem:[%s6786_s16 + $0x1e8] sm:$0xff]  ;;  %v3230_v37 = vld [vmem:[%s6786_s16 + $0x170] sm:$0xff] }
 0xc09   : > { %5647 = vmatprep.subr.bf16.mxu0 %v5646_v61  ;;  %5677 = vmatpush1.bf16.msra.mxu1 %v5676_v14  ;;  %v3235_v29 = vld [vmem:[%s6786_s16 + $0x198] sm:$0xff]  ;;  %v5656_v32 = vpack.c.bf16 %v3236_v22, %v3232_v30  ;;  %v5658_v33 = vpack.c.bf16 %v3245_v26, %v3241_v24  ;;  %v3240_v34 = vld [vmem:[%s6786_s16 + $0x1c0] sm:$0xff]  ;;  %v5684_v44 = vpack.c.bf16 %v3230_v37, %v3226_v28  ;;  %v3234_v38 = vld [vmem:[%s6786_s16 + $0x190] sm:$0xff]  ;;  %v6475_v24 = vmov (!%p4839_p5), 0.0  }
 0xc0a   : > { %5679 = vmatprep.subr.bf16.mxu1 %v5678_v15  ;;  %v3239_v31 = vld [vmem:[%s6786_s16 + $0x1b8] sm:$0xff]  ;;  %v3244_v35 = vld [vmem:[%s6786_s16 + $0x1e0] sm:$0xff]  ;;  %v3238_v39 = vld [vmem:[%s6786_s16 + $0x1b0] sm:$0xff] }
 0xc0b   : > { %v5686_v36 = vpack.c.bf16 %v3239_v31, %v3235_v29  ;;  %v3243_v40 = vld [vmem:[%s6786_s16 + $0x1d8] sm:$0xff]  ;;  %v5660_v42 = vpack.c.bf16 %v3244_v35, %v3240_v34  ;;  %v5688_v55 = vpack.c.bf16 %v3238_v39, %v3234_v38  ;;  %v3242_v45 = vld [vmem:[%s6786_s16 + $0x1d0] sm:$0xff]  ;;  %v3183_v57 = vld [vmem:[#allocation2 + $0xb8] sm:$0xff] }
 0xc0c   : > { %5649 = vmatpush1.bf16.msra.mxu0 %v5648_v6  ;;  %v3247_v41 = vld [vmem:[%s6786_s16 + $0x1f8] sm:$0xff]  ;;  %v3246_v46 = vld [vmem:[%s6786_s16 + $0x1f0] sm:$0xff]  ;;  %v3182_v62 = vld [vmem:[#allocation2 + $0xb0] sm:$0xff] }
 0xc0d   : > { %5651 = vmatprep.subr.bf16.mxu0 %v5650_v10  ;;  %5681 = vmatpush1.bf16.msra.mxu1 %v5680_v25  ;;  %v5690_v43 = vpack.c.bf16 %v3247_v41, %v3243_v40  ;;  %v3176_v47 = vld [vmem:[#allocation3] sm:$0xff]  ;;  %v5692_v48 = vpack.c.bf16 %v3246_v46, %v3242_v45  ;;  %v3181_v53 = vld [vmem:[#allocation2 + $0xa8] sm:$0xff]  ;;  %v3425_v17 = vld [vmem:[%s6779_s1 + $0x8] sm:$0xff] (!%p4839_p5) }
 0xc0e   : > { %5683 = vmatprep.subr.bf16.mxu1 %v5682_v27  ;;  %v3180_v7 = vld [vmem:[#allocation2 + $0xa0] sm:$0xff]  ;;  %v3413_v8 = vld [vmem:[#allocation4] sm:$0xff]  ;;  %v3429_v18 = vld [vmem:[%s6779_s1 + $0x28] sm:$0xff] (!%p4839_p5) }
 0xc0f   : > { %v3427_v19 = vld [vmem:[%s6779_s1 + $0x18] sm:$0xff] (!%p4839_p5)  ;;  %v3424_v30 = vld [vmem:[%s6779_s1] sm:$0xff] (!%p4839_p5)  ;;  %v3426_v27 = vld [vmem:[%s6779_s1 + $0x10] sm:$0xff] (!%p4839_p5) }
 0xc10   : > { %5653 = vmatpush1.bf16.msra.mxu0 %v5652_v20  ;;  %v5694_v20 = vpack.c.bf16 (!%p4839_p5), %v3429_v18, %v3425_v17  ;;  %v3428_v22 = vld [vmem:[%s6779_s1 + $0x20] sm:$0xff] (!%p4839_p5)  ;;  %v3430_v28 = vld [vmem:[%s6779_s1 + $0x30] sm:$0xff] (!%p4839_p5)  ;;  %v3433_v37 = vld [vmem:[%s6779_s1 + $0x48] sm:$0xff] (!%p4839_p5) }
 0xc11   : > { %5655 = vmatprep.subr.bf16.mxu0 %v5654_v21  ;;  %5685 = vmatpush1.bf16.msra.mxu1 %v5684_v44  ;;  %v3431_v21 = vld [vmem:[%s6779_s1 + $0x38] sm:$0xff] (!%p4839_p5)  ;;  %v5696_v26 = vpack.c.bf16 (!%p4839_p5), %v3428_v22, %v3424_v30  ;;  %v5728_v29 = vpack.c.bf16 (!%p4839_p5), %v3430_v28, %v3426_v27  ;;  %v3437_v31 = vld [vmem:[%s6779_s1 + $0x68] sm:$0xff] (!%p4839_p5)  ;;  %v3432_v44 = vld [vmem:[%s6779_s1 + $0x40] sm:$0xff] (!%p4839_p5) }
 0xc12   : > { %5687 = vmatprep.subr.bf16.mxu1 %v5686_v36  ;;  %v5726_v25 = vpack.c.bf16 (!%p4839_p5), %v3431_v21, %v3427_v19  ;;  %v5698_v34 = vpack.c.bf16 (!%p4839_p5), %v3437_v31, %v3433_v37  ;;  %v3436_v36 = vld [vmem:[%s6779_s1 + $0x60] sm:$0xff] (!%p4839_p5)  ;;  %v3434_v38 = vld [vmem:[%s6779_s1 + $0x50] sm:$0xff] (!%p4839_p5)  ;;  %v3441_v41 = vld [vmem:[%s6779_s1 + $0x88] sm:$0xff] (!%p4839_p5) }
 0xc13   : > { %v5700_v39 = vpack.c.bf16 (!%p4839_p5), %v3436_v36, %v3432_v44  ;;  %v3438_v40 = vld [vmem:[%s6779_s1 + $0x70] sm:$0xff] (!%p4839_p5)  ;;  %v3443_v45 = vld [vmem:[%s6779_s1 + $0x98] sm:$0xff] (!%p4839_p5)  ;;  %v3464_v21 = vld [vmem:[%s6779_s1 + $0x140] sm:$0xff] (!%p4839_p5) }
 0xc14   : > { %5657 = vmatpush1.bf16.msra.mxu0 %v5656_v32  ;;  %v3435_v32 = vld [vmem:[%s6779_s1 + $0x58] sm:$0xff] (!%p4839_p5)  ;;  %v3468_v30 = vld [vmem:[%s6779_s1 + $0x160] sm:$0xff] (!%p4839_p5)  ;;  %v3466_v22 = vld [vmem:[%s6779_s1 + $0x150] sm:$0xff] (!%p4839_p5) }
 0xc15   : > { %5659 = vmatprep.subr.bf16.mxu0 %v5658_v33  ;;  %5689 = vmatpush1.bf16.msra.mxu1 %v5688_v55  ;;  %v3439_v33 = vld [vmem:[%s6779_s1 + $0x78] sm:$0xff] (!%p4839_p5)  ;;  %v5732_v55 = vpack.c.bf16 (!%p4839_p5), %v3438_v40, %v3434_v38  ;;  %v3477_v27 = vld [vmem:[%s6779_s1 + $0x1a8] sm:$0xff] (!%p4839_p5)  ;;  %v3478_v36 = vld [vmem:[%s6779_s1 + $0x1b0] sm:$0xff] (!%p4839_p5) }
 0xc16   : > { %5691 = vmatprep.subr.bf16.mxu1 %v5690_v43  ;;  %v5730_v35 = vpack.c.bf16 (!%p4839_p5), %v3439_v33, %v3435_v32  ;;  %v3447_v46 = vld [vmem:[%s6779_s1 + $0xb8] sm:$0xff] (!%p4839_p5)  ;;  %v3472_v33 = vld [vmem:[%s6779_s1 + $0x180] sm:$0xff] (!%p4839_p5)  ;;  %v3481_v38 = vld [vmem:[%s6779_s1 + $0x1c8] sm:$0xff] (!%p4839_p5) }
 0xc17   : > { %v3471_v17 = vld [vmem:[%s6779_s1 + $0x178] sm:$0xff] (!%p4839_p5) }
 0xc18   : > { %5661 = vmatpush1.bf16.msra.mxu0 %v5660_v42  ;;  %v3445_v42 = vld [vmem:[%s6779_s1 + $0xa8] sm:$0xff] (!%p4839_p5)  ;;  %v3475_v28 = vld [vmem:[%s6779_s1 + $0x198] sm:$0xff] (!%p4839_p5) }
 0xc19   : > { %5693 = vmatpush1.bf16.msra.mxu1 %v5692_v48  ;;  %5695 = vmatprep.subr.bf16.mxu0 (!%p4839_p5), %v5694_v20  ;;  %v5702_v43 = vpack.c.bf16 (!%p4839_p5), %v3445_v42, %v3441_v41  ;;  %v5734_v48 = vpack.c.bf16 (!%p4839_p5), %v3447_v46, %v3443_v45  ;;  %v3479_v37 = vld [vmem:[%s6779_s1 + $0x1b8] sm:$0xff] (!%p4839_p5)  ;;  %v3480_v45 = vld [vmem:[%s6779_s1 + $0x1c0] sm:$0xff] (!%p4839_p5) }
 0xc1a   : > { %5727 = vmatprep.subr.bf16.mxu1 (!%p4839_p5), %v5726_v25  ;;  %v3470_v25 = vld [vmem:[%s6779_s1 + $0x170] sm:$0xff] (!%p4839_p5)  ;;  %v5750_v44 = vpack.c.bf16 (!%p4839_p5), %v3479_v37, %v3475_v28  ;;  %v3483_v40 = vld [vmem:[%s6779_s1 + $0x1d8] sm:$0xff] (!%p4839_p5)  ;;  %v3484_v46 = vld [vmem:[%s6779_s1 + $0x1e0] sm:$0xff] (!%p4839_p5) }
 0xc1b   : > { %3313 = vmatmul.mubr.f32.vlgmr.msra.gmra.mrb[0].mxu0 %v3176_v47  ;;  %v5748_v31 = vpack.c.bf16 (!%p4839_p5), %v3470_v25, %v3466_v22  ;;  %v3487_v41 = vld [vmem:[%s6779_s1 + $0x1f8] sm:$0xff] (!%p4839_p5) }
 0xc1c   : > { %3384 = vmatmul.mubr.f32.vlgmr.msra.gmra.mrb[0].mxu1 %v3176_v47  ;;  %3574 = vmatprep.mubr.f32.mxu0 (!%p4839_p5), %v6475_v24  ;;  %v3440_v47 = vld [vmem:[%s6779_s1 + $0x80] sm:$0xff] (!%p4839_p5) }
 0xc1d   : > { %3645 = vmatprep.mubr.f32.mxu1 (!%p4839_p5), %v6475_v24  ;;  %5697 = vmatpush1.bf16.msra.mxu0 (!%p4839_p5), %v5696_v26  ;;  %v3473_v26 = vld [vmem:[%s6779_s1 + $0x188] sm:$0xff] (!%p4839_p5) }
 0xc1e   : > { %5729 = vmatpush1.bf16.msra.mxu1 (!%p4839_p5), %v5728_v29  ;;  %5699 = vmatprep.subr.bf16.mxu0 (!%p4839_p5), %v5698_v34  ;;  %v5716_v29 = vpack.c.bf16 (!%p4839_p5), %v3468_v30, %v3464_v21  ;;  %v5718_v32 = vpack.c.bf16 (!%p4839_p5), %v3477_v27, %v3473_v26  ;;  %v3476_v34 = vld [vmem:[%s6779_s1 + $0x1a0] sm:$0xff] (!%p4839_p5) }
 0xc1f   : > { %5731 = vmatprep.subr.bf16.mxu1 (!%p4839_p5), %v5730_v35  ;;  %v3474_v35 = vld [vmem:[%s6779_s1 + $0x190] sm:$0xff] (!%p4839_p5)  ;;  %v5720_v42 = vpack.c.bf16 (!%p4839_p5), %v3476_v34, %v3472_v33 }
 0xc21   : > { %5701 = vmatpush1.bf16.msra.mxu0 (!%p4839_p5), %v5700_v39  ;;  %v3485_v39 = vld [vmem:[%s6779_s1 + $0x1e8] sm:$0xff] (!%p4839_p5) }
 0xc22   : > { %5733 = vmatpush1.bf16.msra.mxu1 (!%p4839_p5), %v5732_v55  ;;  %5703 = vmatprep.subr.bf16.mxu0 (!%p4839_p5), %v5702_v43  ;;  %v5752_v55 = vpack.c.bf16 (!%p4839_p5), %v3478_v36, %v3474_v35  ;;  %v5722_v43 = vpack.c.bf16 (!%p4839_p5), %v3485_v39, %v3481_v38 }
 0xc23   : > { %5735 = vmatprep.subr.bf16.mxu1 (!%p4839_p5), %v5734_v48  ;;  %v3482_v48 = vld [vmem:[%s6779_s1 + $0x1d0] sm:$0xff] (!%p4839_p5) }
 0xcee   : > { %v3314_v54 = vpop.f32.mrb[0].mxu0 }
 0xcef   : > { %v3390_v49 = vadd.f32 %v3314_v54, %v3180_v7  ;;  %v3316_v50 = vpop.f32.mrb[1].mxu0  ;;  %v3385_v58 = vpop.f32.mrb[0].mxu1  ;;  %v3444_v7 = vld [vmem:[%s6779_s1 + $0xa0] sm:$0xff] (!%p4839_p5)  ;;  %v3446_v54 = vld [vmem:[%s6779_s1 + $0xb0] sm:$0xff] (!%p4839_p5) }
 0xcf0   : > { %v3391_v51 = vadd.f32 %v3316_v50, %v3181_v53  ;;  %v3387_v60 = vpop.f32.mrb[1].mxu1  ;;  %v3392_v0 = vadd.f32 %v3385_v58, %v3182_v62  ;;  %v3442_v53 = vld [vmem:[%s6779_s1 + $0x90] sm:$0xff] (!%p4839_p5)  ;;  %v3449_v50 = vld [vmem:[%s6779_s1 + $0xc8] sm:$0xff] (!%p4839_p5)  ;;  %v3455_v58 = vld [vmem:[%s6779_s1 + $0xf8] sm:$0xff] (!%p4839_p5) }
 0xcf1   : > { %v4856_v56 = vmul.f32 -1.442695, %v3390_v49  ;;  %v3393_v61 = vadd.f32 %v3387_v60, %v3183_v57  ;;  %v5704_v49 = vpack.c.bf16 (!%p4839_p5), %v3444_v7, %v3440_v47  ;;  %v3448_v60 = vld [vmem:[%s6779_s1 + $0xc0] sm:$0xff] (!%p4839_p5)  ;;  %v5754_v47 = vpack.c.bf16 (!%p4839_p5), %v3487_v41, %v3483_v40  ;;  %v3486_v7 = vld [vmem:[%s6779_s1 + $0x1f0] sm:$0xff] (!%p4839_p5) }
 0xcf2   : > { %v4857_v52 = vmul.f32 -1.442695, %v3391_v51  ;;  %v3453_v51 = vld [vmem:[%s6779_s1 + $0xe8] sm:$0xff] (!%p4839_p5) }
 0xcf3   : > { %6224 = vpow2.f32 %v4856_v56  ;;  %v4858_v63 = vmul.f32 -1.442695, %v3393_v61  ;;  %v3451_v56 = vld [vmem:[%s6779_s1 + $0xd8] sm:$0xff] (!%p4839_p5)  ;;  %v5706_v57 = vpack.c.bf16 (!%p4839_p5), %v3453_v51, %v3449_v50  ;;  %v3452_v61 = vld [vmem:[%s6779_s1 + $0xe0] sm:$0xff] (!%p4839_p5)  ;;  %5705 = vmatpush1.bf16.msra.mxu0 (!%p4839_p5), %v5704_v49  ;;  %v3490_v49 = vlaneseq (!%p4839_p5) }
 0xcf4   : > { %6226 = vpow2.f32 %v4857_v52  ;;  %v5736_v52 = vpack.c.bf16 (!%p4839_p5), %v3446_v54, %v3442_v53  ;;  %v5738_v62 = vpack.c.bf16 (!%p4839_p5), %v3455_v58, %v3451_v56  ;;  %v5724_v53 = vpack.c.bf16 (!%p4839_p5), %v3484_v46, %v3480_v45  ;;  %v3488_v56 = vld [vmem:[%s6801_s11] sm:$0xf] (!%p4839_p5) }
 0xcf5   : > { %6228 = vpow2.f32 %v4858_v63  ;;  %v3450_v63 = vld [vmem:[%s6779_s1 + $0xd0] sm:$0xff] (!%p4839_p5)  ;;  %5707 = vmatprep.subr.bf16.mxu0 (!%p4839_p5), %v5706_v57  ;;  %v5756_v54 = vpack.c.bf16 (!%p4839_p5), %v3486_v7, %v3482_v48  ;;  %v3491_v50 = vshrl.u32 (!%p4839_p5), %v3490_v49, 7 }
 0xcf6   : > { %6230 = vtanh.f32 %v3392_v0  ;;  %v3454_v0 = vld [vmem:[%s6779_s1 + $0xf0] sm:$0xff] (!%p4839_p5)  ;;  %5737 = vmatpush1.bf16.msra.mxu1 (!%p4839_p5), %v5736_v52 }
 0xcf7   : > { %5739 = vmatprep.subr.bf16.mxu1 (!%p4839_p5), %v5738_v62  ;;  %v3492_v51 = vsub.s32 (!%p4839_p5), 0, %v3491_v50  ;;  %v3500_v52 = vsub.s32 (!%p4839_p5), 2, %v3491_v50  ;;  %v3496_v57 = vsub.s32 (!%p4839_p5), 1, %v3491_v50  ;;  %v3504_v58 = vsub.s32 (!%p4839_p5), 3, %v3491_v50 }
 0xcf9   : > { %v3497_v62 = vrot.slane (!%p4839_p5), %v3488_v56, %v3496_v57 }
 0xcfd   : > { %v6225_v1 = vpop.eup %6224 }
 0xcfe   : > { %v6227_v2 = vpop.eup %6226  ;;  %v3397_v3 = vadd.f32 1.0, %v6225_v1  ;;  %v3457_v1 = vld [vmem:[%s6779_s1 + $0x108] sm:$0xff] (!%p4839_p5) }
 0xcff   : > { %v3403_v4 = vadd.f32 1.0, %v6227_v2  ;;  %v6229_v5 = vpop.eup %6228  ;;  %v3461_v2 = vld [vmem:[%s6779_s1 + $0x128] sm:$0xff] (!%p4839_p5) }
 0xd00   : > { %6232 = vrcp.f32 %v3397_v3  ;;  %v6231_v6 = vpop.eup %6230  ;;  %v3410_v10 = vadd.f32 1.0, %v6229_v5  ;;  %v3459_v3 = vld [vmem:[%s6779_s1 + $0x118] sm:$0xff] (!%p4839_p5)  ;;  %v5708_v5 = vpack.c.bf16 (!%p4839_p5), %v3452_v61, %v3448_v60  ;;  %v3493_v60 = vrot.slane (!%p4839_p5), %v3488_v56, %v3492_v51 }
 0xd01   : > { %6234 = vrcp.f32 %v3403_v4  ;;  %v3463_v4 = vld [vmem:[%s6779_s1 + $0x138] sm:$0xff] (!%p4839_p5)  ;;  %v3501_v61 = vrot.slane (!%p4839_p5), %v3488_v56, %v3500_v52 }
 0xd02   : > { %6236 = vrcp.f32 %v3410_v10  ;;  %v3460_v10 = vld [vmem:[%s6779_s1 + $0x120] sm:$0xff] (!%p4839_p5)  ;;  %5709 = vmatpush1.bf16.msra.mxu0 (!%p4839_p5), %v5708_v5 }
 0xd0a   : > { %v6233_v9 = vpop.eup %6232 }
 0xd0b   : > { %v6235_v11 = vpop.eup %6234  ;;  %v3415_v12 = vmul.f32 %v6233_v9, %v6231_v6  ;;  %v5740_v6 = vpack.c.bf16 (!%p4839_p5), %v3454_v0, %v3450_v63  ;;  %v3456_v9 = vld [vmem:[%s6779_s1 + $0x100] sm:$0xff] (!%p4839_p5)  ;;  %v3505_v63 = vrot.slane (!%p4839_p5), %v3488_v56, %v3504_v58 }
 0xd0c   : > { %v3414_v13 = vmul.f32 %v6235_v11, %v3413_v8  ;;  %v6237_v23 = vpop.eup %6236  ;;  %v5710_v8 = vpack.c.bf16 (!%p4839_p5), %v3461_v2, %v3457_v1  ;;  %v3458_v11 = vld [vmem:[%s6779_s1 + $0x110] sm:$0xff] (!%p4839_p5)  ;;  %v5712_v18 = vpack.c.bf16 (!%p4839_p5), %v3460_v10, %v3456_v9 }
 0xd0d   : > { %5741 = vmatpush1.bf16.msra.mxu1 (!%p4839_p5), %v5740_v6 }
 0xd0e   : > { %v3416_v14 = vadd.f32 %v3415_v12, %v3414_v13  ;;  %v5742_v12 = vpack.c.bf16 (!%p4839_p5), %v3463_v4, %v3459_v3  ;;  %v3462_v13 = vld [vmem:[%s6779_s1 + $0x130] sm:$0xff] (!%p4839_p5)  ;;  %5711 = vmatprep.subr.bf16.mxu0 (!%p4839_p5), %v5710_v8 }
 0xd0f   : > { %v5744_v19 = vpack.c.bf16 (!%p4839_p5), %v3462_v13, %v3458_v11  ;;  %5713 = vmatpush1.bf16.msra.mxu0 (!%p4839_p5), %v5712_v18 }
 0xd10   : > { %6238 = vtanh.f32 %v3416_v14  ;;  %3419 = vst [vmem:[#allocation4] sm:$0xff] %v3416_v14  ;;  %v3465_v14 = vld [vmem:[%s6779_s1 + $0x148] sm:$0xff] (!%p4839_p5)  ;;  %5743 = vmatprep.subr.bf16.mxu1 (!%p4839_p5), %v5742_v12 }
 0xd11   : > { %5745 = vmatpush1.bf16.msra.mxu1 (!%p4839_p5), %v5744_v19 }
 0xd17   : > { %3423 = sbr.rel (%p4839_p5) target bundleno = 3586 (0xe02), region = 96 }
 0xd1a   : > { %v6239_v15 = vpop.eup %6238 }
 0xd1b   : > { %v7647_v16 = vmul.f32 %v6239_v15, %v6237_v23  ;;  %v3469_v23 = vld [vmem:[%s6779_s1 + $0x168] sm:$0xff] (!%p4839_p5)  ;;  %v3467_v15 = vld [vmem:[%s6779_s1 + $0x158] sm:$0xff] (!%p4839_p5) }
 0xd1c   : > { %v5714_v20 = vpack.c.bf16 (!%p4839_p5), %v3469_v23, %v3465_v14  ;;  %v5746_v24 = vpack.c.bf16 (!%p4839_p5), %v3471_v17, %v3467_v15 }
 0xd1d   : > { %3420 = vst [vmem:[#allocation3] sm:$0xff] %v7647_v16 }
 0xd1e   : > { %5715 = vmatprep.subr.bf16.mxu0 %v5714_v20  ;;  %5747 = vmatprep.subr.bf16.mxu1 %v5746_v24 }
 0xd1f   : > { %5717 = vmatpush1.bf16.msra.mxu0 %v5716_v29  ;;  %5749 = vmatpush1.bf16.msra.mxu1 %v5748_v31 }
 0xd20   : > { %5719 = vmatprep.subr.bf16.mxu0 %v5718_v32  ;;  %5751 = vmatprep.subr.bf16.mxu1 %v5750_v44 }
 0xd23   : > { %5721 = vmatpush1.bf16.msra.mxu0 %v5720_v42  ;;  %5753 = vmatpush1.bf16.msra.mxu1 %v5752_v55 }
 0xd24   : > { %5723 = vmatprep.subr.bf16.mxu0 %v5722_v43  ;;  %5755 = vmatprep.subr.bf16.mxu1 %v5754_v47 }
 0xd27   : > { %5725 = vmatpush1.bf16.msra.mxu0 %v5724_v53  ;;  %5757 = vmatpush1.bf16.msra.mxu1 %v5756_v54 }
 0xd2a   : > { %3575 = vmatmul.mubr.f32.vlgmr.msra.gmra.mrb[0].mxu0 %v7647_v16  ;;  %3646 = vmatmul.mubr.f32.vlgmr.msra.gmra.mrb[0].mxu1 %v7647_v16 }
 0xdfd   : > { %v3576_v0 = vpop.f32.mrb[0].mxu0  ;;  %v3647_v2 = vpop.f32.mrb[0].mxu1 }
 0xdfe   : > { %v3577_v1 = vadd.f32 %v3576_v0, %v3493_v60  ;;  %v3578_v3 = vpop.f32.mrb[1].mxu0  ;;  %v3648_v4 = vadd.f32 %v3647_v2, %v3501_v61  ;;  %v3649_v6 = vpop.f32.mrb[1].mxu1 }
 0xdff   : > { %v3579_v5 = vadd.f32 %v3578_v3, %v3497_v62  ;;  %v3650_v16 = vadd.f32 %v3649_v6, %v3505_v63 }
 0xe00   : > { %3652 = vst [vmem:[#allocation2 + $0xa0] sm:$0xff] %v3577_v1  ;;  %3654 = vst [vmem:[#allocation2 + $0xb0] sm:$0xff] %v3648_v4 }
 0xe01   : > { %3653 = vst [vmem:[#allocation2 + $0xa8] sm:$0xff] %v3579_v5  ;;  %3655 = vst [vmem:[#allocation2 + $0xb8] sm:$0xff] %v3650_v16 }
 0xe02 PF: > { %v3665_v8 = vld [vmem:[%s6786_s16 + $0x8] sm:$0xff]  ;;  %v3664_v10 = vld [vmem:[%s6786_s16] sm:$0xff]  ;;  %3792 = vmatprep.mubr.f32.mxu0 %v6469_v59  ;;  %3863 = vmatprep.mubr.f32.mxu1 %v6469_v59  ;;  %v3667_v26 = vld [vmem:[%s6786_s16 + $0x18] sm:$0xff] }
 0xe03   : > { %v3669_v9 = vld [vmem:[%s6786_s16 + $0x28] sm:$0xff]  ;;  %v3668_v12 = vld [vmem:[%s6786_s16 + $0x20] sm:$0xff]  ;;  %v3671_v27 = vld [vmem:[%s6786_s16 + $0x38] sm:$0xff] }
 0xe04   : > { %v5758_v11 = vpack.c.bf16 %v3669_v9, %v3665_v8  ;;  %v3673_v13 = vld [vmem:[%s6786_s16 + $0x48] sm:$0xff]  ;;  %v5760_v23 = vpack.c.bf16 %v3668_v12, %v3664_v10  ;;  %v3672_v17 = vld [vmem:[%s6786_s16 + $0x40] sm:$0xff]  ;;  %v5790_v37 = vpack.c.bf16 %v3671_v27, %v3667_v26  ;;  %v3666_v29 = vld [vmem:[%s6786_s16 + $0x10] sm:$0xff] }
 0xe05   : > { %v3677_v14 = vld [vmem:[%s6786_s16 + $0x68] sm:$0xff]  ;;  %v3676_v18 = vld [vmem:[%s6786_s16 + $0x60] sm:$0xff]  ;;  %v3670_v31 = vld [vmem:[%s6786_s16 + $0x30] sm:$0xff] }
 0xe06   : > { %v5762_v15 = vpack.c.bf16 %v3677_v14, %v3673_v13  ;;  %v3681_v19 = vld [vmem:[%s6786_s16 + $0x88] sm:$0xff]  ;;  %5759 = vmatprep.subr.bf16.mxu0 %v5758_v11  ;;  %v5764_v21 = vpack.c.bf16 %v3676_v18, %v3672_v17  ;;  %v3680_v30 = vld [vmem:[%s6786_s16 + $0x80] sm:$0xff]  ;;  %v5792_v32 = vpack.c.bf16 %v3670_v31, %v3666_v29  ;;  %5791 = vmatprep.subr.bf16.mxu1 %v5790_v37  ;;  %v3675_v34 = vld [vmem:[%s6786_s16 + $0x58] sm:$0xff] }
 0xe07   : > { %v3685_v20 = vld [vmem:[%s6786_s16 + $0xa8] sm:$0xff]  ;;  %5761 = vmatpush1.bf16.msra.mxu0 %v5760_v23  ;;  %v3684_v22 = vld [vmem:[%s6786_s16 + $0xa0] sm:$0xff]  ;;  %v3679_v35 = vld [vmem:[%s6786_s16 + $0x78] sm:$0xff] }
 0xe08   : > { %5763 = vmatprep.subr.bf16.mxu0 %v5762_v15  ;;  %v5766_v24 = vpack.c.bf16 %v3685_v20, %v3681_v19  ;;  %v3689_v25 = vld [vmem:[%s6786_s16 + $0xc8] sm:$0xff]  ;;  %v5768_v33 = vpack.c.bf16 %v3684_v22, %v3680_v30  ;;  %v3674_v44 = vld [vmem:[%s6786_s16 + $0x50] sm:$0xff]  ;;  %v3688_v38 = vld [vmem:[%s6786_s16 + $0xc0] sm:$0xff]  ;;  %5793 = vmatpush1.bf16.msra.mxu1 %v5792_v32  ;;  %v5794_v40 = vpack.c.bf16 %v3679_v35, %v3675_v34 }
 0xe09   : > { %v3693_v28 = vld [vmem:[%s6786_s16 + $0xe8] sm:$0xff]  ;;  %v3692_v39 = vld [vmem:[%s6786_s16 + $0xe0] sm:$0xff]  ;;  %v3678_v41 = vld [vmem:[%s6786_s16 + $0x70] sm:$0xff] }
 0xe0a   : > { %v5770_v36 = vpack.c.bf16 %v3693_v28, %v3689_v25  ;;  %v3697_v42 = vld [vmem:[%s6786_s16 + $0x108] sm:$0xff]  ;;  %v5796_v43 = vpack.c.bf16 %v3678_v41, %v3674_v44  ;;  %v3683_v45 = vld [vmem:[%s6786_s16 + $0x98] sm:$0xff]  ;;  %5795 = vmatprep.subr.bf16.mxu1 %v5794_v40  ;;  %v3682_v47 = vld [vmem:[%s6786_s16 + $0x90] sm:$0xff]  ;;  %v5772_v7 = vpack.c.bf16 %v3692_v39, %v3688_v38 }
 0xe0b   : > { %5765 = vmatpush1.bf16.msra.mxu0 %v5764_v21  ;;  %v3701_v55 = vld [vmem:[%s6786_s16 + $0x128] sm:$0xff]  ;;  %v3687_v46 = vld [vmem:[%s6786_s16 + $0xb8] sm:$0xff]  ;;  %v3686_v48 = vld [vmem:[%s6786_s16 + $0xb0] sm:$0xff] }
 0xe0c   : > { %5767 = vmatprep.subr.bf16.mxu0 %v5766_v24  ;;  %v3696_v53 = vld [vmem:[%s6786_s16 + $0x100] sm:$0xff]  ;;  %v5798_v49 = vpack.c.bf16 %v3687_v46, %v3683_v45  ;;  %v5774_v50 = vpack.c.bf16 %v3701_v55, %v3697_v42  ;;  %5797 = vmatpush1.bf16.msra.mxu1 %v5796_v43  ;;  %v3705_v51 = vld [vmem:[%s6786_s16 + $0x148] sm:$0xff]  ;;  %v5800_v56 = vpack.c.bf16 %v3686_v48, %v3682_v47  ;;  %v3691_v52 = vld [vmem:[%s6786_s16 + $0xd8] sm:$0xff] }
 0xe0d   : > { %v3700_v54 = vld [vmem:[%s6786_s16 + $0x120] sm:$0xff]  ;;  %v3695_v57 = vld [vmem:[%s6786_s16 + $0xf8] sm:$0xff]  ;;  %v3709_v58 = vld [vmem:[%s6786_s16 + $0x168] sm:$0xff] }
 0xe0e   : > { %5799 = vmatprep.subr.bf16.mxu1 %v5798_v49  ;;  %v5802_v60 = vpack.c.bf16 %v3695_v57, %v3691_v52  ;;  %v3690_v61 = vld [vmem:[%s6786_s16 + $0xd0] sm:$0xff]  ;;  %v5776_v63 = vpack.c.bf16 %v3700_v54, %v3696_v53  ;;  %v3699_v0 = vld [vmem:[%s6786_s16 + $0x118] sm:$0xff]  ;;  %v5778_v2 = vpack.c.bf16 %v3709_v58, %v3705_v51  ;;  %v3704_v3 = vld [vmem:[%s6786_s16 + $0x140] sm:$0xff] }
 0xe0f   : > { %5769 = vmatpush1.bf16.msra.mxu0 %v5768_v33  ;;  %v3694_v62 = vld [vmem:[%s6786_s16 + $0xf0] sm:$0xff]  ;;  %v3703_v1 = vld [vmem:[%s6786_s16 + $0x138] sm:$0xff]  ;;  %v3708_v4 = vld [vmem:[%s6786_s16 + $0x160] sm:$0xff] }
 0xe10   : > { %5771 = vmatprep.subr.bf16.mxu0 %v5770_v36  ;;  %5801 = vmatpush1.bf16.msra.mxu1 %v5800_v56  ;;  %v3713_v5 = vld [vmem:[%s6786_s16 + $0x188] sm:$0xff]  ;;  %v5804_v6 = vpack.c.bf16 %v3694_v62, %v3690_v61  ;;  %v5806_v8 = vpack.c.bf16 %v3703_v1, %v3699_v0  ;;  %v3698_v9 = vld [vmem:[%s6786_s16 + $0x110] sm:$0xff]  ;;  %v3707_v11 = vld [vmem:[%s6786_s16 + $0x158] sm:$0xff]  ;;  %v5780_v13 = vpack.c.bf16 %v3708_v4, %v3704_v3 }
 0xe11   : > { %v3717_v16 = vld [vmem:[%s6786_s16 + $0x1a8] sm:$0xff]  ;;  %5803 = vmatprep.subr.bf16.mxu1 %v5802_v60  ;;  %v3702_v10 = vld [vmem:[%s6786_s16 + $0x130] sm:$0xff]  ;;  %v3711_v12 = vld [vmem:[%s6786_s16 + $0x178] sm:$0xff] }
 0xe12   : > { %v5782_v14 = vpack.c.bf16 %v3717_v16, %v3713_v5  ;;  %v3712_v23 = vld [vmem:[%s6786_s16 + $0x180] sm:$0xff]  ;;  %v3721_v17 = vld [vmem:[%s6786_s16 + $0x1c8] sm:$0xff]  ;;  %v5808_v18 = vpack.c.bf16 %v3702_v10, %v3698_v9  ;;  %v5810_v20 = vpack.c.bf16 %v3711_v12, %v3707_v11  ;;  %v3706_v21 = vld [vmem:[%s6786_s16 + $0x150] sm:$0xff] }
 0xe13   : > { %5773 = vmatpush1.bf16.msra.mxu0 %v5772_v7  ;;  %v3716_v15 = vld [vmem:[%s6786_s16 + $0x1a0] sm:$0xff]  ;;  %v3725_v19 = vld [vmem:[%s6786_s16 + $0x1e8] sm:$0xff]  ;;  %v3710_v30 = vld [vmem:[%s6786_s16 + $0x170] sm:$0xff] }
 0xe14   : > { %5775 = vmatprep.subr.bf16.mxu0 %v5774_v50  ;;  %5805 = vmatpush1.bf16.msra.mxu1 %v5804_v6  ;;  %v3715_v22 = vld [vmem:[%s6786_s16 + $0x198] sm:$0xff]  ;;  %v5784_v25 = vpack.c.bf16 %v3716_v15, %v3712_v23  ;;  %v5786_v26 = vpack.c.bf16 %v3725_v19, %v3721_v17  ;;  %v3720_v27 = vld [vmem:[%s6786_s16 + $0x1c0] sm:$0xff]  ;;  %v5812_v37 = vpack.c.bf16 %v3710_v30, %v3706_v21  ;;  %v3714_v31 = vld [vmem:[%s6786_s16 + $0x190] sm:$0xff]  ;;  %v6476_v17 = vmov (!%p4839_p5), 0.0  }
 0xe15   : > { %5807 = vmatprep.subr.bf16.mxu1 %v5806_v8  ;;  %v3719_v24 = vld [vmem:[%s6786_s16 + $0x1b8] sm:$0xff]  ;;  %v3724_v28 = vld [vmem:[%s6786_s16 + $0x1e0] sm:$0xff]  ;;  %v3718_v32 = vld [vmem:[%s6786_s16 + $0x1b0] sm:$0xff] }
 0xe16   : > { %v5814_v29 = vpack.c.bf16 %v3719_v24, %v3715_v22  ;;  %v3723_v33 = vld [vmem:[%s6786_s16 + $0x1d8] sm:$0xff]  ;;  %v5788_v35 = vpack.c.bf16 %v3724_v28, %v3720_v27  ;;  %v5816_v44 = vpack.c.bf16 %v3718_v32, %v3714_v31  ;;  %v3722_v38 = vld [vmem:[%s6786_s16 + $0x1d0] sm:$0xff]  ;;  %v3663_v53 = vld [vmem:[#allocation2 + $0xd8] sm:$0xff] }
 0xe17   : > { %5777 = vmatpush1.bf16.msra.mxu0 %v5776_v63  ;;  %v3727_v34 = vld [vmem:[%s6786_s16 + $0x1f8] sm:$0xff]  ;;  %v3726_v39 = vld [vmem:[%s6786_s16 + $0x1f0] sm:$0xff]  ;;  %v3662_v51 = vld [vmem:[#allocation2 + $0xd0] sm:$0xff] }
 0xe18   : > { %5779 = vmatprep.subr.bf16.mxu0 %v5778_v2  ;;  %5809 = vmatpush1.bf16.msra.mxu1 %v5808_v18  ;;  %v5818_v36 = vpack.c.bf16 %v3727_v34, %v3723_v33  ;;  %v3656_v40 = vld [vmem:[#allocation3] sm:$0xff]  ;;  %v5820_v41 = vpack.c.bf16 %v3726_v39, %v3722_v38  ;;  %v3661_v55 = vld [vmem:[#allocation2 + $0xc8] sm:$0xff]  ;;  %v3905_v10 = vld [vmem:[%s6779_s1 + $0x8] sm:$0xff] (!%p4839_p5) }
 0xe19   : > { %5811 = vmatprep.subr.bf16.mxu1 %v5810_v20  ;;  %v3660_v42 = vld [vmem:[#allocation2 + $0xc0] sm:$0xff]  ;;  %v3893_v0 = vld [vmem:[#allocation4] sm:$0xff]  ;;  %v3909_v11 = vld [vmem:[%s6779_s1 + $0x28] sm:$0xff] (!%p4839_p5) }
 0xe1a   : > { %v3907_v12 = vld [vmem:[%s6779_s1 + $0x18] sm:$0xff] (!%p4839_p5)  ;;  %v3904_v23 = vld [vmem:[%s6779_s1] sm:$0xff] (!%p4839_p5)  ;;  %v3906_v20 = vld [vmem:[%s6779_s1 + $0x10] sm:$0xff] (!%p4839_p5) }
 0xe1b   : > { %5781 = vmatpush1.bf16.msra.mxu0 %v5780_v13  ;;  %v5822_v13 = vpack.c.bf16 (!%p4839_p5), %v3909_v11, %v3905_v10  ;;  %v3908_v15 = vld [vmem:[%s6779_s1 + $0x20] sm:$0xff] (!%p4839_p5)  ;;  %v3910_v21 = vld [vmem:[%s6779_s1 + $0x30] sm:$0xff] (!%p4839_p5)  ;;  %v3913_v30 = vld [vmem:[%s6779_s1 + $0x48] sm:$0xff] (!%p4839_p5) }
 0xe1c   : > { %5783 = vmatprep.subr.bf16.mxu0 %v5782_v14  ;;  %5813 = vmatpush1.bf16.msra.mxu1 %v5812_v37  ;;  %v3911_v14 = vld [vmem:[%s6779_s1 + $0x38] sm:$0xff] (!%p4839_p5)  ;;  %v5824_v19 = vpack.c.bf16 (!%p4839_p5), %v3908_v15, %v3904_v23  ;;  %v5856_v22 = vpack.c.bf16 (!%p4839_p5), %v3910_v21, %v3906_v20  ;;  %v3917_v24 = vld [vmem:[%s6779_s1 + $0x68] sm:$0xff] (!%p4839_p5)  ;;  %v3912_v37 = vld [vmem:[%s6779_s1 + $0x40] sm:$0xff] (!%p4839_p5) }
 0xe1d   : > { %5815 = vmatprep.subr.bf16.mxu1 %v5814_v29  ;;  %v5854_v18 = vpack.c.bf16 (!%p4839_p5), %v3911_v14, %v3907_v12  ;;  %v5826_v27 = vpack.c.bf16 (!%p4839_p5), %v3917_v24, %v3913_v30  ;;  %v3916_v29 = vld [vmem:[%s6779_s1 + $0x60] sm:$0xff] (!%p4839_p5)  ;;  %v3914_v31 = vld [vmem:[%s6779_s1 + $0x50] sm:$0xff] (!%p4839_p5)  ;;  %v3921_v34 = vld [vmem:[%s6779_s1 + $0x88] sm:$0xff] (!%p4839_p5) }
 0xe1e   : > { %v5828_v32 = vpack.c.bf16 (!%p4839_p5), %v3916_v29, %v3912_v37  ;;  %v3918_v33 = vld [vmem:[%s6779_s1 + $0x70] sm:$0xff] (!%p4839_p5)  ;;  %v3923_v38 = vld [vmem:[%s6779_s1 + $0x98] sm:$0xff] (!%p4839_p5)  ;;  %v3944_v14 = vld [vmem:[%s6779_s1 + $0x140] sm:$0xff] (!%p4839_p5) }
 0xe1f   : > { %5785 = vmatpush1.bf16.msra.mxu0 %v5784_v25  ;;  %v3915_v25 = vld [vmem:[%s6779_s1 + $0x58] sm:$0xff] (!%p4839_p5)  ;;  %v3948_v23 = vld [vmem:[%s6779_s1 + $0x160] sm:$0xff] (!%p4839_p5)  ;;  %v3946_v15 = vld [vmem:[%s6779_s1 + $0x150] sm:$0xff] (!%p4839_p5) }
 0xe20   : > { %5787 = vmatprep.subr.bf16.mxu0 %v5786_v26  ;;  %5817 = vmatpush1.bf16.msra.mxu1 %v5816_v44  ;;  %v3919_v26 = vld [vmem:[%s6779_s1 + $0x78] sm:$0xff] (!%p4839_p5)  ;;  %v5860_v44 = vpack.c.bf16 (!%p4839_p5), %v3918_v33, %v3914_v31  ;;  %v3957_v20 = vld [vmem:[%s6779_s1 + $0x1a8] sm:$0xff] (!%p4839_p5)  ;;  %v3958_v29 = vld [vmem:[%s6779_s1 + $0x1b0] sm:$0xff] (!%p4839_p5) }
 0xe21   : > { %5819 = vmatprep.subr.bf16.mxu1 %v5818_v36  ;;  %v5858_v28 = vpack.c.bf16 (!%p4839_p5), %v3919_v26, %v3915_v25  ;;  %v3927_v39 = vld [vmem:[%s6779_s1 + $0xb8] sm:$0xff] (!%p4839_p5)  ;;  %v3952_v26 = vld [vmem:[%s6779_s1 + $0x180] sm:$0xff] (!%p4839_p5)  ;;  %v3961_v31 = vld [vmem:[%s6779_s1 + $0x1c8] sm:$0xff] (!%p4839_p5) }
 0xe22   : > { %v3951_v10 = vld [vmem:[%s6779_s1 + $0x178] sm:$0xff] (!%p4839_p5) }
 0xe23   : > { %5789 = vmatpush1.bf16.msra.mxu0 %v5788_v35  ;;  %v3925_v35 = vld [vmem:[%s6779_s1 + $0xa8] sm:$0xff] (!%p4839_p5)  ;;  %v3955_v21 = vld [vmem:[%s6779_s1 + $0x198] sm:$0xff] (!%p4839_p5) }
 0xe24   : > { %5821 = vmatpush1.bf16.msra.mxu1 %v5820_v41  ;;  %5823 = vmatprep.subr.bf16.mxu0 (!%p4839_p5), %v5822_v13  ;;  %v5830_v36 = vpack.c.bf16 (!%p4839_p5), %v3925_v35, %v3921_v34  ;;  %v5862_v41 = vpack.c.bf16 (!%p4839_p5), %v3927_v39, %v3923_v38  ;;  %v3959_v30 = vld [vmem:[%s6779_s1 + $0x1b8] sm:$0xff] (!%p4839_p5)  ;;  %v3960_v38 = vld [vmem:[%s6779_s1 + $0x1c0] sm:$0xff] (!%p4839_p5) }
 0xe25   : > { %5855 = vmatprep.subr.bf16.mxu1 (!%p4839_p5), %v5854_v18  ;;  %v3950_v18 = vld [vmem:[%s6779_s1 + $0x170] sm:$0xff] (!%p4839_p5)  ;;  %v5878_v37 = vpack.c.bf16 (!%p4839_p5), %v3959_v30, %v3955_v21  ;;  %v3963_v33 = vld [vmem:[%s6779_s1 + $0x1d8] sm:$0xff] (!%p4839_p5)  ;;  %v3964_v39 = vld [vmem:[%s6779_s1 + $0x1e0] sm:$0xff] (!%p4839_p5) }
 0xe26   : > { %3793 = vmatmul.mubr.f32.vlgmr.msra.gmra.mrb[0].mxu0 %v3656_v40  ;;  %v5876_v24 = vpack.c.bf16 (!%p4839_p5), %v3950_v18, %v3946_v15  ;;  %v3967_v34 = vld [vmem:[%s6779_s1 + $0x1f8] sm:$0xff] (!%p4839_p5) }
 0xe27   : > { %3864 = vmatmul.mubr.f32.vlgmr.msra.gmra.mrb[0].mxu1 %v3656_v40  ;;  %4054 = vmatprep.mubr.f32.mxu0 (!%p4839_p5), %v6476_v17  ;;  %v3920_v40 = vld [vmem:[%s6779_s1 + $0x80] sm:$0xff] (!%p4839_p5) }
 0xe28   : > { %4125 = vmatprep.mubr.f32.mxu1 (!%p4839_p5), %v6476_v17  ;;  %5825 = vmatpush1.bf16.msra.mxu0 (!%p4839_p5), %v5824_v19  ;;  %v3953_v19 = vld [vmem:[%s6779_s1 + $0x188] sm:$0xff] (!%p4839_p5) }
 0xe29   : > { %5857 = vmatpush1.bf16.msra.mxu1 (!%p4839_p5), %v5856_v22  ;;  %5827 = vmatprep.subr.bf16.mxu0 (!%p4839_p5), %v5826_v27  ;;  %v5844_v22 = vpack.c.bf16 (!%p4839_p5), %v3948_v23, %v3944_v14  ;;  %v5846_v25 = vpack.c.bf16 (!%p4839_p5), %v3957_v20, %v3953_v19  ;;  %v3956_v27 = vld [vmem:[%s6779_s1 + $0x1a0] sm:$0xff] (!%p4839_p5) }
 0xe2a   : > { %5859 = vmatprep.subr.bf16.mxu1 (!%p4839_p5), %v5858_v28  ;;  %v3954_v28 = vld [vmem:[%s6779_s1 + $0x190] sm:$0xff] (!%p4839_p5)  ;;  %v5848_v35 = vpack.c.bf16 (!%p4839_p5), %v3956_v27, %v3952_v26 }
 0xe2c   : > { %5829 = vmatpush1.bf16.msra.mxu0 (!%p4839_p5), %v5828_v32  ;;  %v3965_v32 = vld [vmem:[%s6779_s1 + $0x1e8] sm:$0xff] (!%p4839_p5) }
 0xe2d   : > { %5861 = vmatpush1.bf16.msra.mxu1 (!%p4839_p5), %v5860_v44  ;;  %5831 = vmatprep.subr.bf16.mxu0 (!%p4839_p5), %v5830_v36  ;;  %v5880_v44 = vpack.c.bf16 (!%p4839_p5), %v3958_v29, %v3954_v28  ;;  %v5850_v36 = vpack.c.bf16 (!%p4839_p5), %v3965_v32, %v3961_v31 }
 0xe2e   : > { %5863 = vmatprep.subr.bf16.mxu1 (!%p4839_p5), %v5862_v41  ;;  %v3962_v41 = vld [vmem:[%s6779_s1 + $0x1d0] sm:$0xff] (!%p4839_p5) }
 0xef9   : > { %v3794_v43 = vpop.f32.mrb[0].mxu0 }
 0xefa   : > { %v3870_v45 = vadd.f32 %v3794_v43, %v3660_v42  ;;  %v3796_v46 = vpop.f32.mrb[1].mxu0  ;;  %v3865_v54 = vpop.f32.mrb[0].mxu1  ;;  %v3924_v42 = vld [vmem:[%s6779_s1 + $0xa0] sm:$0xff] (!%p4839_p5)  ;;  %v3926_v43 = vld [vmem:[%s6779_s1 + $0xb0] sm:$0xff] (!%p4839_p5) }
 0xefb   : > { %v3871_v47 = vadd.f32 %v3796_v46, %v3661_v55  ;;  %v3867_v49 = vpop.f32.mrb[1].mxu1  ;;  %v3872_v52 = vadd.f32 %v3865_v54, %v3662_v51  ;;  %v3922_v55 = vld [vmem:[%s6779_s1 + $0x90] sm:$0xff] (!%p4839_p5)  ;;  %v3929_v46 = vld [vmem:[%s6779_s1 + $0xc8] sm:$0xff] (!%p4839_p5)  ;;  %v3935_v54 = vld [vmem:[%s6779_s1 + $0xf8] sm:$0xff] (!%p4839_p5) }
 0xefc   : > { %v4860_v48 = vmul.f32 -1.442695, %v3870_v45  ;;  %v3873_v50 = vadd.f32 %v3867_v49, %v3663_v53  ;;  %v5832_v45 = vpack.c.bf16 (!%p4839_p5), %v3924_v42, %v3920_v40  ;;  %v3928_v49 = vld [vmem:[%s6779_s1 + $0xc0] sm:$0xff] (!%p4839_p5)  ;;  %v5882_v40 = vpack.c.bf16 (!%p4839_p5), %v3967_v34, %v3963_v33  ;;  %v3966_v42 = vld [vmem:[%s6779_s1 + $0x1f0] sm:$0xff] (!%p4839_p5) }
 0xefd   : > { %v4861_v7 = vmul.f32 -1.442695, %v3871_v47  ;;  %v3933_v47 = vld [vmem:[%s6779_s1 + $0xe8] sm:$0xff] (!%p4839_p5) }
 0xefe   : > { %6240 = vpow2.f32 %v4860_v48  ;;  %v4862_v56 = vmul.f32 -1.442695, %v3873_v50  ;;  %v3931_v48 = vld [vmem:[%s6779_s1 + $0xd8] sm:$0xff] (!%p4839_p5)  ;;  %v5834_v53 = vpack.c.bf16 (!%p4839_p5), %v3933_v47, %v3929_v46  ;;  %v3932_v50 = vld [vmem:[%s6779_s1 + $0xe0] sm:$0xff] (!%p4839_p5)  ;;  %5833 = vmatpush1.bf16.msra.mxu0 (!%p4839_p5), %v5832_v45  ;;  %v3970_v45 = vlaneseq (!%p4839_p5) }
 0xeff   : > { %6242 = vpow2.f32 %v4861_v7  ;;  %v5864_v7 = vpack.c.bf16 (!%p4839_p5), %v3926_v43, %v3922_v55  ;;  %v5866_v51 = vpack.c.bf16 (!%p4839_p5), %v3935_v54, %v3931_v48  ;;  %v5852_v55 = vpack.c.bf16 (!%p4839_p5), %v3964_v39, %v3960_v38  ;;  %v3968_v48 = vld [vmem:[%s6801_s11] sm:$0xf] (!%p4839_p5) }
 0xf00   : > { %6244 = vpow2.f32 %v4862_v56  ;;  %v3930_v56 = vld [vmem:[%s6779_s1 + $0xd0] sm:$0xff] (!%p4839_p5)  ;;  %5835 = vmatprep.subr.bf16.mxu0 (!%p4839_p5), %v5834_v53  ;;  %v5884_v43 = vpack.c.bf16 (!%p4839_p5), %v3966_v42, %v3962_v41  ;;  %v3971_v46 = vshrl.u32 (!%p4839_p5), %v3970_v45, 7 }
 0xf01   : > { %6246 = vtanh.f32 %v3872_v52  ;;  %v3934_v52 = vld [vmem:[%s6779_s1 + $0xf0] sm:$0xff] (!%p4839_p5)  ;;  %5865 = vmatpush1.bf16.msra.mxu1 (!%p4839_p5), %v5864_v7 }
 0xf02   : > { %5867 = vmatprep.subr.bf16.mxu1 (!%p4839_p5), %v5866_v51  ;;  %v3972_v47 = vsub.s32 (!%p4839_p5), 0, %v3971_v46  ;;  %v3980_v7 = vsub.s32 (!%p4839_p5), 2, %v3971_v46  ;;  %v3976_v53 = vsub.s32 (!%p4839_p5), 1, %v3971_v46  ;;  %v3984_v54 = vsub.s32 (!%p4839_p5), 3, %v3971_v46 }
 0xf04   : > { %v3977_v51 = vrot.slane (!%p4839_p5), %v3968_v48, %v3976_v53 }
 0xf08   : > { %v6241_v57 = vpop.eup %6240 }
 0xf09   : > { %v6243_v58 = vpop.eup %6242  ;;  %v3877_v60 = vadd.f32 1.0, %v6241_v57  ;;  %v3937_v57 = vld [vmem:[%s6779_s1 + $0x108] sm:$0xff] (!%p4839_p5) }
 0xf0a   : > { %v3883_v61 = vadd.f32 1.0, %v6243_v58  ;;  %v6245_v62 = vpop.eup %6244  ;;  %v3941_v58 = vld [vmem:[%s6779_s1 + $0x128] sm:$0xff] (!%p4839_p5) }
 0xf0b   : > { %6248 = vrcp.f32 %v3877_v60  ;;  %v6247_v63 = vpop.eup %6246  ;;  %v3890_v2 = vadd.f32 1.0, %v6245_v62  ;;  %v3939_v60 = vld [vmem:[%s6779_s1 + $0x118] sm:$0xff] (!%p4839_p5)  ;;  %v5836_v62 = vpack.c.bf16 (!%p4839_p5), %v3932_v50, %v3928_v49  ;;  %v3973_v49 = vrot.slane (!%p4839_p5), %v3968_v48, %v3972_v47 }
 0xf0c   : > { %6250 = vrcp.f32 %v3883_v61  ;;  %v3943_v61 = vld [vmem:[%s6779_s1 + $0x138] sm:$0xff] (!%p4839_p5)  ;;  %v3981_v50 = vrot.slane (!%p4839_p5), %v3968_v48, %v3980_v7 }
 0xf0d   : > { %6252 = vrcp.f32 %v3890_v2  ;;  %v3940_v2 = vld [vmem:[%s6779_s1 + $0x120] sm:$0xff] (!%p4839_p5)  ;;  %5837 = vmatpush1.bf16.msra.mxu0 (!%p4839_p5), %v5836_v62 }
 0xf15   : > { %v6249_v1 = vpop.eup %6248 }
 0xf16   : > { %v6251_v3 = vpop.eup %6250  ;;  %v3895_v4 = vmul.f32 %v6249_v1, %v6247_v63  ;;  %v5868_v63 = vpack.c.bf16 (!%p4839_p5), %v3934_v52, %v3930_v56  ;;  %v3936_v1 = vld [vmem:[%s6779_s1 + $0x100] sm:$0xff] (!%p4839_p5)  ;;  %v3985_v56 = vrot.slane (!%p4839_p5), %v3968_v48, %v3984_v54 }
 0xf17   : > { %v3894_v5 = vmul.f32 %v6251_v3, %v3893_v0  ;;  %v6253_v16 = vpop.eup %6252  ;;  %v5838_v0 = vpack.c.bf16 (!%p4839_p5), %v3941_v58, %v3937_v57  ;;  %v3938_v3 = vld [vmem:[%s6779_s1 + $0x110] sm:$0xff] (!%p4839_p5)  ;;  %v5840_v11 = vpack.c.bf16 (!%p4839_p5), %v3940_v2, %v3936_v1 }
 0xf18   : > { %5869 = vmatpush1.bf16.msra.mxu1 (!%p4839_p5), %v5868_v63 }
 0xf19   : > { %v3896_v6 = vadd.f32 %v3895_v4, %v3894_v5  ;;  %v5870_v4 = vpack.c.bf16 (!%p4839_p5), %v3943_v61, %v3939_v60  ;;  %v3942_v5 = vld [vmem:[%s6779_s1 + $0x130] sm:$0xff] (!%p4839_p5)  ;;  %5839 = vmatprep.subr.bf16.mxu0 (!%p4839_p5), %v5838_v0 }
 0xf1a   : > { %v5872_v12 = vpack.c.bf16 (!%p4839_p5), %v3942_v5, %v3938_v3  ;;  %5841 = vmatpush1.bf16.msra.mxu0 (!%p4839_p5), %v5840_v11 }
 0xf1b   : > { %6254 = vtanh.f32 %v3896_v6  ;;  %3899 = vst [vmem:[#allocation4] sm:$0xff] %v3896_v6  ;;  %v3945_v6 = vld [vmem:[%s6779_s1 + $0x148] sm:$0xff] (!%p4839_p5)  ;;  %5871 = vmatprep.subr.bf16.mxu1 (!%p4839_p5), %v5870_v4 }
 0xf1c   : > { %5873 = vmatpush1.bf16.msra.mxu1 (!%p4839_p5), %v5872_v12 }
 0xf22   : > { %3903 = sbr.rel (%p4839_p5) target bundleno = 4109 (0x100d), region = 100 }
 0xf25   : > { %v6255_v8 = vpop.eup %6254 }
 0xf26   : > { %v7785_v9 = vmul.f32 %v6255_v8, %v6253_v16  ;;  %v3949_v16 = vld [vmem:[%s6779_s1 + $0x168] sm:$0xff] (!%p4839_p5)  ;;  %v3947_v8 = vld [vmem:[%s6779_s1 + $0x158] sm:$0xff] (!%p4839_p5) }
 0xf27   : > { %v5842_v13 = vpack.c.bf16 (!%p4839_p5), %v3949_v16, %v3945_v6  ;;  %v5874_v17 = vpack.c.bf16 (!%p4839_p5), %v3951_v10, %v3947_v8 }
 0xf28   : > { %3900 = vst [vmem:[#allocation3] sm:$0xff] %v7785_v9 }
 0xf29   : > { %5843 = vmatprep.subr.bf16.mxu0 %v5842_v13  ;;  %5875 = vmatprep.subr.bf16.mxu1 %v5874_v17 }
 0xf2a   : > { %5845 = vmatpush1.bf16.msra.mxu0 %v5844_v22  ;;  %5877 = vmatpush1.bf16.msra.mxu1 %v5876_v24 }
 0xf2b   : > { %5847 = vmatprep.subr.bf16.mxu0 %v5846_v25  ;;  %5879 = vmatprep.subr.bf16.mxu1 %v5878_v37 }
 0xf2e   : > { %5849 = vmatpush1.bf16.msra.mxu0 %v5848_v35  ;;  %5881 = vmatpush1.bf16.msra.mxu1 %v5880_v44 }
 0xf2f   : > { %5851 = vmatprep.subr.bf16.mxu0 %v5850_v36  ;;  %5883 = vmatprep.subr.bf16.mxu1 %v5882_v40 }
 0xf32   : > { %5853 = vmatpush1.bf16.msra.mxu0 %v5852_v55  ;;  %5885 = vmatpush1.bf16.msra.mxu1 %v5884_v43 }
 0xf35   : > { %4055 = vmatmul.mubr.f32.vlgmr.msra.gmra.mrb[0].mxu0 %v7785_v9  ;;  %4126 = vmatmul.mubr.f32.vlgmr.msra.gmra.mrb[0].mxu1 %v7785_v9 }
0x1008   : > { %v4056_v52 = vpop.f32.mrb[0].mxu0  ;;  %v4127_v58 = vpop.f32.mrb[0].mxu1 }
0x1009   : > { %v4057_v57 = vadd.f32 %v4056_v52, %v3973_v49  ;;  %v4058_v60 = vpop.f32.mrb[1].mxu0  ;;  %v4128_v61 = vadd.f32 %v4127_v58, %v3981_v50  ;;  %v4129_v63 = vpop.f32.mrb[1].mxu1 }
0x100a   : > { %v4059_v62 = vadd.f32 %v4058_v60, %v3977_v51  ;;  %v4130_v9 = vadd.f32 %v4129_v63, %v3985_v56 }
0x100b   : > { %4132 = vst [vmem:[#allocation2 + $0xc0] sm:$0xff] %v4057_v57  ;;  %4134 = vst [vmem:[#allocation2 + $0xd0] sm:$0xff] %v4128_v61 }
0x100c   : > { %4133 = vst [vmem:[#allocation2 + $0xc8] sm:$0xff] %v4059_v62  ;;  %4135 = vst [vmem:[#allocation2 + $0xd8] sm:$0xff] %v4130_v9 }
0x100d PF: > { %v4145_v0 = vld [vmem:[%s6786_s16 + $0x8] sm:$0xff]  ;;  %v4144_v2 = vld [vmem:[%s6786_s16] sm:$0xff]  ;;  %4272 = vmatprep.mubr.f32.mxu0 %v6469_v59  ;;  %4343 = vmatprep.mubr.f32.mxu1 %v6469_v59  ;;  %v4147_v18 = vld [vmem:[%s6786_s16 + $0x18] sm:$0xff] }
0x100e   : > { %v4149_v1 = vld [vmem:[%s6786_s16 + $0x28] sm:$0xff]  ;;  %v4148_v4 = vld [vmem:[%s6786_s16 + $0x20] sm:$0xff]  ;;  %v4151_v19 = vld [vmem:[%s6786_s16 + $0x38] sm:$0xff] }
0x100f   : > { %v5886_v3 = vpack.c.bf16 %v4149_v1, %v4145_v0  ;;  %v4153_v5 = vld [vmem:[%s6786_s16 + $0x48] sm:$0xff]  ;;  %v5888_v16 = vpack.c.bf16 %v4148_v4, %v4144_v2  ;;  %v4152_v10 = vld [vmem:[%s6786_s16 + $0x40] sm:$0xff]  ;;  %v5918_v21 = vpack.c.bf16 %v4151_v19, %v4147_v18  ;;  %v4146_v30 = vld [vmem:[%s6786_s16 + $0x10] sm:$0xff] }
0x1010   : > { %v4157_v6 = vld [vmem:[%s6786_s16 + $0x68] sm:$0xff]  ;;  %v4156_v11 = vld [vmem:[%s6786_s16 + $0x60] sm:$0xff]  ;;  %v4150_v22 = vld [vmem:[%s6786_s16 + $0x30] sm:$0xff] }
0x1011   : > { %v5890_v8 = vpack.c.bf16 %v4157_v6, %v4153_v5  ;;  %v4161_v12 = vld [vmem:[%s6786_s16 + $0x88] sm:$0xff]  ;;  %5887 = vmatprep.subr.bf16.mxu0 %v5886_v3  ;;  %v5892_v14 = vpack.c.bf16 %v4156_v11, %v4152_v10  ;;  %v4160_v59 = vld [vmem:[%s6786_s16 + $0x80] sm:$0xff]  ;;  %v5920_v24 = vpack.c.bf16 %v4150_v22, %v4146_v30  ;;  %5919 = vmatprep.subr.bf16.mxu1 %v5918_v21  ;;  %v4155_v26 = vld [vmem:[%s6786_s16 + $0x58] sm:$0xff] }
0x1012   : > { %v4165_v13 = vld [vmem:[%s6786_s16 + $0xa8] sm:$0xff]  ;;  %5889 = vmatpush1.bf16.msra.mxu0 %v5888_v16  ;;  %v4164_v23 = vld [vmem:[%s6786_s16 + $0xa0] sm:$0xff]  ;;  %v4159_v27 = vld [vmem:[%s6786_s16 + $0x78] sm:$0xff] }
0x1013   : > { %5891 = vmatprep.subr.bf16.mxu0 %v5890_v8  ;;  %v5894_v15 = vpack.c.bf16 %v4165_v13, %v4161_v12  ;;  %v4169_v17 = vld [vmem:[%s6786_s16 + $0xc8] sm:$0xff]  ;;  %v5896_v25 = vpack.c.bf16 %v4164_v23, %v4160_v59  ;;  %v4154_v28 = vld [vmem:[%s6786_s16 + $0x50] sm:$0xff]  ;;  %v4168_v29 = vld [vmem:[%s6786_s16 + $0xc0] sm:$0xff]  ;;  %5921 = vmatpush1.bf16.msra.mxu1 %v5920_v24  ;;  %v5922_v32 = vpack.c.bf16 %v4159_v27, %v4155_v26 }
0x1014   : > { %v4173_v20 = vld [vmem:[%s6786_s16 + $0xe8] sm:$0xff]  ;;  %v4172_v31 = vld [vmem:[%s6786_s16 + $0xe0] sm:$0xff]  ;;  %v4158_v33 = vld [vmem:[%s6786_s16 + $0x70] sm:$0xff] }
0x1015   : > { %v5898_v37 = vpack.c.bf16 %v4173_v20, %v4169_v17  ;;  %v4177_v34 = vld [vmem:[%s6786_s16 + $0x108] sm:$0xff]  ;;  %v5924_v44 = vpack.c.bf16 %v4158_v33, %v4154_v28  ;;  %v4163_v36 = vld [vmem:[%s6786_s16 + $0x98] sm:$0xff]  ;;  %5923 = vmatprep.subr.bf16.mxu1 %v5922_v32  ;;  %v4162_v39 = vld [vmem:[%s6786_s16 + $0x90] sm:$0xff]  ;;  %v5900_v41 = vpack.c.bf16 %v4172_v31, %v4168_v29 }
0x1016   : > { %5893 = vmatpush1.bf16.msra.mxu0 %v5892_v14  ;;  %v4181_v35 = vld [vmem:[%s6786_s16 + $0x128] sm:$0xff]  ;;  %v4167_v38 = vld [vmem:[%s6786_s16 + $0xb8] sm:$0xff]  ;;  %v4166_v40 = vld [vmem:[%s6786_s16 + $0xb0] sm:$0xff] }
0x1017   : > { %5895 = vmatprep.subr.bf16.mxu0 %v5894_v15  ;;  %v4176_v42 = vld [vmem:[%s6786_s16 + $0x100] sm:$0xff]  ;;  %v5926_v43 = vpack.c.bf16 %v4167_v38, %v4163_v36  ;;  %v5902_v45 = vpack.c.bf16 %v4181_v35, %v4177_v34  ;;  %5925 = vmatpush1.bf16.msra.mxu1 %v5924_v44  ;;  %v4185_v46 = vld [vmem:[%s6786_s16 + $0x148] sm:$0xff]  ;;  %v5928_v47 = vpack.c.bf16 %v4166_v40, %v4162_v39  ;;  %v4171_v48 = vld [vmem:[%s6786_s16 + $0xd8] sm:$0xff] }
0x1018   : > { %v4180_v55 = vld [vmem:[%s6786_s16 + $0x120] sm:$0xff]  ;;  %v4175_v7 = vld [vmem:[%s6786_s16 + $0xf8] sm:$0xff]  ;;  %v4189_v53 = vld [vmem:[%s6786_s16 + $0x168] sm:$0xff] }
0x1019   : > { %5927 = vmatprep.subr.bf16.mxu1 %v5926_v43  ;;  %v5930_v54 = vpack.c.bf16 %v4175_v7, %v4171_v48  ;;  %v4170_v49 = vld [vmem:[%s6786_s16 + $0xd0] sm:$0xff]  ;;  %v5904_v51 = vpack.c.bf16 %v4180_v55, %v4176_v42  ;;  %v4179_v56 = vld [vmem:[%s6786_s16 + $0x118] sm:$0xff]  ;;  %v5906_v57 = vpack.c.bf16 %v4189_v53, %v4185_v46  ;;  %v4184_v58 = vld [vmem:[%s6786_s16 + $0x140] sm:$0xff] }
0x101a   : > { %5897 = vmatpush1.bf16.msra.mxu0 %v5896_v25  ;;  %v4174_v50 = vld [vmem:[%s6786_s16 + $0xf0] sm:$0xff]  ;;  %v4183_v52 = vld [vmem:[%s6786_s16 + $0x138] sm:$0xff]  ;;  %v4188_v60 = vld [vmem:[%s6786_s16 + $0x160] sm:$0xff] }
0x101b   : > { %5899 = vmatprep.subr.bf16.mxu0 %v5898_v37  ;;  %5929 = vmatpush1.bf16.msra.mxu1 %v5928_v47  ;;  %v4193_v61 = vld [vmem:[%s6786_s16 + $0x188] sm:$0xff]  ;;  %v5932_v62 = vpack.c.bf16 %v4174_v50, %v4170_v49  ;;  %v5934_v9 = vpack.c.bf16 %v4183_v52, %v4179_v56  ;;  %v4178_v0 = vld [vmem:[%s6786_s16 + $0x110] sm:$0xff]  ;;  %v4187_v2 = vld [vmem:[%s6786_s16 + $0x158] sm:$0xff]  ;;  %v5908_v4 = vpack.c.bf16 %v4188_v60, %v4184_v58 }
0x101c   : > { %v4197_v63 = vld [vmem:[%s6786_s16 + $0x1a8] sm:$0xff]  ;;  %5931 = vmatprep.subr.bf16.mxu1 %v5930_v54  ;;  %v4182_v1 = vld [vmem:[%s6786_s16 + $0x130] sm:$0xff]  ;;  %v4191_v3 = vld [vmem:[%s6786_s16 + $0x178] sm:$0xff] }
0x101d   : > { %v5910_v5 = vpack.c.bf16 %v4197_v63, %v4193_v61  ;;  %v4192_v6 = vld [vmem:[%s6786_s16 + $0x180] sm:$0xff]  ;;  %v4201_v8 = vld [vmem:[%s6786_s16 + $0x1c8] sm:$0xff]  ;;  %v5936_v10 = vpack.c.bf16 %v4182_v1, %v4178_v0  ;;  %v5938_v12 = vpack.c.bf16 %v4191_v3, %v4187_v2  ;;  %v4186_v13 = vld [vmem:[%s6786_s16 + $0x150] sm:$0xff] }
0x101e   : > { %5901 = vmatpush1.bf16.msra.mxu0 %v5900_v41  ;;  %v4196_v16 = vld [vmem:[%s6786_s16 + $0x1a0] sm:$0xff]  ;;  %v4205_v11 = vld [vmem:[%s6786_s16 + $0x1e8] sm:$0xff]  ;;  %v4190_v14 = vld [vmem:[%s6786_s16 + $0x170] sm:$0xff] }
0x101f   : > { %5903 = vmatprep.subr.bf16.mxu0 %v5902_v45  ;;  %5933 = vmatpush1.bf16.msra.mxu1 %v5932_v62  ;;  %v4195_v59 = vld [vmem:[%s6786_s16 + $0x198] sm:$0xff]  ;;  %v5912_v15 = vpack.c.bf16 %v4196_v16, %v4192_v6  ;;  %v5914_v17 = vpack.c.bf16 %v4205_v11, %v4201_v8  ;;  %v4200_v18 = vld [vmem:[%s6786_s16 + $0x1c0] sm:$0xff]  ;;  %v5940_v20 = vpack.c.bf16 %v4190_v14, %v4186_v13  ;;  %v4194_v30 = vld [vmem:[%s6786_s16 + $0x190] sm:$0xff]  ;;  %v6477_v16 = vmov (!%p4839_p5), 0.0  }
0x1020   : > { %5935 = vmatprep.subr.bf16.mxu1 %v5934_v9  ;;  %v4199_v23 = vld [vmem:[%s6786_s16 + $0x1b8] sm:$0xff]  ;;  %v4204_v19 = vld [vmem:[%s6786_s16 + $0x1e0] sm:$0xff]  ;;  %v4198_v22 = vld [vmem:[%s6786_s16 + $0x1b0] sm:$0xff] }
0x1021   : > { %v5942_v21 = vpack.c.bf16 %v4199_v23, %v4195_v59  ;;  %v4203_v24 = vld [vmem:[%s6786_s16 + $0x1d8] sm:$0xff]  ;;  %v5916_v26 = vpack.c.bf16 %v4204_v19, %v4200_v18  ;;  %v5944_v27 = vpack.c.bf16 %v4198_v22, %v4194_v30  ;;  %v4202_v37 = vld [vmem:[%s6786_s16 + $0x1d0] sm:$0xff]  ;;  %v4143_v41 = vld [vmem:[#allocation2 + $0xf8] sm:$0xff] }
0x1022   : > { %5905 = vmatpush1.bf16.msra.mxu0 %v5904_v51  ;;  %v4207_v25 = vld [vmem:[%s6786_s16 + $0x1f8] sm:$0xff]  ;;  %v4206_v29 = vld [vmem:[%s6786_s16 + $0x1f0] sm:$0xff]  ;;  %v4142_v45 = vld [vmem:[#allocation2 + $0xf0] sm:$0xff] }
0x1023   : > { %5907 = vmatprep.subr.bf16.mxu0 %v5906_v57  ;;  %5937 = vmatpush1.bf16.msra.mxu1 %v5936_v10  ;;  %v5946_v28 = vpack.c.bf16 %v4207_v25, %v4203_v24  ;;  %v4136_v31 = vld [vmem:[#allocation3] sm:$0xff]  ;;  %v5948_v32 = vpack.c.bf16 %v4206_v29, %v4202_v37  ;;  %v4141_v34 = vld [vmem:[#allocation2 + $0xe8] sm:$0xff]  ;;  %v4385_v0 = vld [vmem:[%s6779_s1 + $0x8] sm:$0xff] (!%p4839_p5) }
0x1024   : > { %5939 = vmatprep.subr.bf16.mxu1 %v5938_v12  ;;  %v4140_v33 = vld [vmem:[#allocation2 + $0xe0] sm:$0xff]  ;;  %v4373_v51 = vld [vmem:[#allocation4] sm:$0xff]  ;;  %v4389_v1 = vld [vmem:[%s6779_s1 + $0x28] sm:$0xff] (!%p4839_p5) }
0x1025   : > { %v4387_v2 = vld [vmem:[%s6779_s1 + $0x18] sm:$0xff] (!%p4839_p5)  ;;  %v5950_v3 = vpack.c.bf16 (!%p4839_p5), %v4389_v1, %v4385_v0  ;;  %v4388_v6 = vld [vmem:[%s6779_s1 + $0x20] sm:$0xff] (!%p4839_p5)  ;;  %v4386_v11 = vld [vmem:[%s6779_s1 + $0x10] sm:$0xff] (!%p4839_p5) }
0x1026   : > { %5909 = vmatpush1.bf16.msra.mxu0 %v5908_v4  ;;  %v4391_v4 = vld [vmem:[%s6779_s1 + $0x38] sm:$0xff] (!%p4839_p5)  ;;  %v4390_v12 = vld [vmem:[%s6779_s1 + $0x30] sm:$0xff] (!%p4839_p5)  ;;  %v4393_v13 = vld [vmem:[%s6779_s1 + $0x48] sm:$0xff] (!%p4839_p5) }
0x1027   : > { %5911 = vmatprep.subr.bf16.mxu0 %v5910_v5  ;;  %5941 = vmatpush1.bf16.msra.mxu1 %v5940_v20  ;;  %v4384_v5 = vld [vmem:[%s6779_s1] sm:$0xff] (!%p4839_p5)  ;;  %v5982_v8 = vpack.c.bf16 (!%p4839_p5), %v4391_v4, %v4387_v2  ;;  %v5984_v14 = vpack.c.bf16 (!%p4839_p5), %v4390_v12, %v4386_v11  ;;  %v4397_v59 = vld [vmem:[%s6779_s1 + $0x68] sm:$0xff] (!%p4839_p5)  ;;  %v4395_v23 = vld [vmem:[%s6779_s1 + $0x58] sm:$0xff] (!%p4839_p5) }
0x1028   : > { %5943 = vmatprep.subr.bf16.mxu1 %v5942_v21  ;;  %v5952_v10 = vpack.c.bf16 (!%p4839_p5), %v4388_v6, %v4384_v5  ;;  %v4392_v19 = vld [vmem:[%s6779_s1 + $0x40] sm:$0xff] (!%p4839_p5)  ;;  %v4394_v21 = vld [vmem:[%s6779_s1 + $0x50] sm:$0xff] (!%p4839_p5)  ;;  %v4401_v24 = vld [vmem:[%s6779_s1 + $0x88] sm:$0xff] (!%p4839_p5) }
0x1029   : > { %v4396_v20 = vld [vmem:[%s6779_s1 + $0x60] sm:$0xff] (!%p4839_p5)  ;;  %v4398_v22 = vld [vmem:[%s6779_s1 + $0x70] sm:$0xff] (!%p4839_p5)  ;;  %v4405_v25 = vld [vmem:[%s6779_s1 + $0xa8] sm:$0xff] (!%p4839_p5) }
0x102a   : > { %5913 = vmatpush1.bf16.msra.mxu0 %v5912_v15  ;;  %v4399_v15 = vld [vmem:[%s6779_s1 + $0x78] sm:$0xff] (!%p4839_p5)  ;;  %v5956_v30 = vpack.c.bf16 (!%p4839_p5), %v4396_v20, %v4392_v19  ;;  %v4400_v29 = vld [vmem:[%s6779_s1 + $0x80] sm:$0xff] (!%p4839_p5)  ;;  %v4426_v5 = vld [vmem:[%s6779_s1 + $0x150] sm:$0xff] (!%p4839_p5) }
0x102b   : > { %5915 = vmatprep.subr.bf16.mxu0 %v5914_v17  ;;  %5945 = vmatpush1.bf16.msra.mxu1 %v5944_v27  ;;  %v5954_v17 = vpack.c.bf16 (!%p4839_p5), %v4397_v59, %v4393_v13  ;;  %v5986_v18 = vpack.c.bf16 (!%p4839_p5), %v4399_v15, %v4395_v23  ;;  %v5958_v27 = vpack.c.bf16 (!%p4839_p5), %v4405_v25, %v4401_v24  ;;  %v4407_v37 = vld [vmem:[%s6779_s1 + $0xb8] sm:$0xff] (!%p4839_p5)  ;;  %v4428_v4 = vld [vmem:[%s6779_s1 + $0x160] sm:$0xff] (!%p4839_p5)  ;;  %v4438_v19 = vld [vmem:[%s6779_s1 + $0x1b0] sm:$0xff] (!%p4839_p5) }
0x102c   : > { %5947 = vmatprep.subr.bf16.mxu1 %v5946_v28  ;;  %v4403_v28 = vld [vmem:[%s6779_s1 + $0x98] sm:$0xff] (!%p4839_p5)  ;;  %v4432_v23 = vld [vmem:[%s6779_s1 + $0x180] sm:$0xff] (!%p4839_p5)  ;;  %v4441_v20 = vld [vmem:[%s6779_s1 + $0x1c8] sm:$0xff] (!%p4839_p5) }
0x102d   : > { %v4435_v11 = vld [vmem:[%s6779_s1 + $0x198] sm:$0xff] (!%p4839_p5)  ;;  %v4436_v15 = vld [vmem:[%s6779_s1 + $0x1a0] sm:$0xff] (!%p4839_p5) }
0x102e   : > { %5917 = vmatpush1.bf16.msra.mxu0 %v5916_v26  ;;  %v5988_v26 = vpack.c.bf16 (!%p4839_p5), %v4398_v22, %v4394_v21  ;;  %v4439_v12 = vld [vmem:[%s6779_s1 + $0x1b8] sm:$0xff] (!%p4839_p5)  ;;  %v4445_v21 = vld [vmem:[%s6779_s1 + $0x1e8] sm:$0xff] (!%p4839_p5)  ;;  %v5976_v24 = vpack.c.bf16 (!%p4839_p5), %v4436_v15, %v4432_v23 }
0x102f   : > { %5949 = vmatpush1.bf16.msra.mxu1 %v5948_v32  ;;  %5951 = vmatprep.subr.bf16.mxu0 (!%p4839_p5), %v5950_v3  ;;  %v4404_v32 = vld [vmem:[%s6779_s1 + $0xa0] sm:$0xff] (!%p4839_p5)  ;;  %v4447_v22 = vld [vmem:[%s6779_s1 + $0x1f8] sm:$0xff] (!%p4839_p5) }
0x1030   : > { %5983 = vmatprep.subr.bf16.mxu1 (!%p4839_p5), %v5982_v8  ;;  %v4424_v3 = vld [vmem:[%s6779_s1 + $0x140] sm:$0xff] (!%p4839_p5)  ;;  %v4433_v8 = vld [vmem:[%s6779_s1 + $0x188] sm:$0xff] (!%p4839_p5) }
0x1031   : > { %4273 = vmatmul.mubr.f32.vlgmr.msra.gmra.mrb[0].mxu0 %v4136_v31  ;;  %v5972_v13 = vpack.c.bf16 (!%p4839_p5), %v4428_v4, %v4424_v3 }
0x1032   : > { %4344 = vmatmul.mubr.f32.vlgmr.msra.gmra.mrb[0].mxu1 %v4136_v31  ;;  %4534 = vmatprep.mubr.f32.mxu0 (!%p4839_p5), %v6477_v16  ;;  %v5990_v31 = vpack.c.bf16 (!%p4839_p5), %v4407_v37, %v4403_v28  ;;  %v4444_v28 = vld [vmem:[%s6779_s1 + $0x1e0] sm:$0xff] (!%p4839_p5) }
0x1033   : > { %4605 = vmatprep.mubr.f32.mxu1 (!%p4839_p5), %v6477_v16  ;;  %5953 = vmatpush1.bf16.msra.mxu0 (!%p4839_p5), %v5952_v10  ;;  %v4430_v16 = vld [vmem:[%s6779_s1 + $0x170] sm:$0xff] (!%p4839_p5)  ;;  %v4437_v10 = vld [vmem:[%s6779_s1 + $0x1a8] sm:$0xff] (!%p4839_p5) }
0x1034   : > { %5985 = vmatpush1.bf16.msra.mxu1 (!%p4839_p5), %v5984_v14  ;;  %5955 = vmatprep.subr.bf16.mxu0 (!%p4839_p5), %v5954_v17  ;;  %v6004_v14 = vpack.c.bf16 (!%p4839_p5), %v4430_v16, %v4426_v5  ;;  %v5974_v59 = vpack.c.bf16 (!%p4839_p5), %v4437_v10, %v4433_v8  ;;  %v4434_v17 = vld [vmem:[%s6779_s1 + $0x190] sm:$0xff] (!%p4839_p5) }
0x1035   : > { %5987 = vmatprep.subr.bf16.mxu1 (!%p4839_p5), %v5986_v18  ;;  %v6006_v18 = vpack.c.bf16 (!%p4839_p5), %v4439_v12, %v4435_v11  ;;  %v6008_v25 = vpack.c.bf16 (!%p4839_p5), %v4438_v19, %v4434_v17 }
0x1037   : > { %5957 = vmatpush1.bf16.msra.mxu0 (!%p4839_p5), %v5956_v30  ;;  %v4443_v30 = vld [vmem:[%s6779_s1 + $0x1d8] sm:$0xff] (!%p4839_p5) }
0x1038   : > { %5989 = vmatpush1.bf16.msra.mxu1 (!%p4839_p5), %v5988_v26  ;;  %5959 = vmatprep.subr.bf16.mxu0 (!%p4839_p5), %v5958_v27  ;;  %v5978_v26 = vpack.c.bf16 (!%p4839_p5), %v4445_v21, %v4441_v20  ;;  %v4440_v27 = vld [vmem:[%s6779_s1 + $0x1c0] sm:$0xff] (!%p4839_p5)  ;;  %v6010_v37 = vpack.c.bf16 (!%p4839_p5), %v4447_v22, %v4443_v30 }
0x1039   : > { %5991 = vmatprep.subr.bf16.mxu1 (!%p4839_p5), %v5990_v31  ;;  %v4446_v31 = vld [vmem:[%s6779_s1 + $0x1f0] sm:$0xff] (!%p4839_p5) }
0x1104   : > { %v4274_v35 = vpop.f32.mrb[0].mxu0 }
0x1105   : > { %v4350_v44 = vadd.f32 %v4274_v35, %v4140_v33  ;;  %v4276_v36 = vpop.f32.mrb[1].mxu0  ;;  %v4345_v42 = vpop.f32.mrb[0].mxu1  ;;  %v4402_v33 = vld [vmem:[%s6779_s1 + $0x90] sm:$0xff] (!%p4839_p5)  ;;  %v5960_v35 = vpack.c.bf16 (!%p4839_p5), %v4404_v32, %v4400_v29  ;;  %v5980_v32 = vpack.c.bf16 (!%p4839_p5), %v4444_v28, %v4440_v27 }
0x1106   : > { %v4351_v38 = vadd.f32 %v4276_v36, %v4141_v34  ;;  %v4347_v55 = vpop.f32.mrb[1].mxu1  ;;  %v4352_v47 = vadd.f32 %v4345_v42, %v4142_v45  ;;  %v4406_v34 = vld [vmem:[%s6779_s1 + $0xb0] sm:$0xff] (!%p4839_p5)  ;;  %v4413_v36 = vld [vmem:[%s6779_s1 + $0xe8] sm:$0xff] (!%p4839_p5)  ;;  %v4408_v42 = vld [vmem:[%s6779_s1 + $0xc0] sm:$0xff] (!%p4839_p5) }
0x1107   : > { %v4864_v39 = vmul.f32 -1.442695, %v4350_v44  ;;  %v4353_v43 = vadd.f32 %v4347_v55, %v4143_v41  ;;  %v4409_v44 = vld [vmem:[%s6779_s1 + $0xc8] sm:$0xff] (!%p4839_p5)  ;;  %v4415_v41 = vld [vmem:[%s6779_s1 + $0xf8] sm:$0xff] (!%p4839_p5)  ;;  %v4412_v55 = vld [vmem:[%s6779_s1 + $0xe0] sm:$0xff] (!%p4839_p5)  ;;  %5961 = vmatpush1.bf16.msra.mxu0 (!%p4839_p5), %v5960_v35 }
0x1108   : > { %v4865_v40 = vmul.f32 -1.442695, %v4351_v38  ;;  %v4411_v38 = vld [vmem:[%s6779_s1 + $0xd8] sm:$0xff] (!%p4839_p5)  ;;  %v4410_v45 = vld [vmem:[%s6779_s1 + $0xd0] sm:$0xff] (!%p4839_p5) }
0x1109   : > { %6256 = vpow2.f32 %v4864_v39  ;;  %v4866_v46 = vmul.f32 -1.442695, %v4353_v43  ;;  %v5992_v39 = vpack.c.bf16 (!%p4839_p5), %v4406_v34, %v4402_v33  ;;  %v5994_v43 = vpack.c.bf16 (!%p4839_p5), %v4415_v41, %v4411_v38  ;;  %v4442_v29 = vld [vmem:[%s6779_s1 + $0x1d0] sm:$0xff] (!%p4839_p5) }
0x110a   : > { %6258 = vpow2.f32 %v4865_v40  ;;  %v5962_v40 = vpack.c.bf16 (!%p4839_p5), %v4413_v36, %v4409_v44  ;;  %v6012_v33 = vpack.c.bf16 (!%p4839_p5), %v4446_v31, %v4442_v29  ;;  %v4450_v34 = vlaneseq (!%p4839_p5)  ;;  %v4448_v36 = vld [vmem:[%s6801_s11] sm:$0xf] (!%p4839_p5) }
0x110b   : > { %6260 = vpow2.f32 %v4866_v46  ;;  %v4414_v46 = vld [vmem:[%s6779_s1 + $0xf0] sm:$0xff] (!%p4839_p5)  ;;  %5993 = vmatpush1.bf16.msra.mxu1 (!%p4839_p5), %v5992_v39 }
0x110c   : > { %6262 = vtanh.f32 %v4352_v47  ;;  %v4417_v47 = vld [vmem:[%s6779_s1 + $0x108] sm:$0xff] (!%p4839_p5)  ;;  %5963 = vmatprep.subr.bf16.mxu0 (!%p4839_p5), %v5962_v40  ;;  %5995 = vmatprep.subr.bf16.mxu1 (!%p4839_p5), %v5994_v43  ;;  %v4451_v35 = vshrl.u32 (!%p4839_p5), %v4450_v34, 7 }
0x110e   : > { %v4452_v44 = vsub.s32 (!%p4839_p5), 0, %v4451_v35  ;;  %v4460_v38 = vsub.s32 (!%p4839_p5), 2, %v4451_v35  ;;  %v4456_v39 = vsub.s32 (!%p4839_p5), 1, %v4451_v35  ;;  %v4464_v40 = vsub.s32 (!%p4839_p5), 3, %v4451_v35 }
0x1110   : > { %v4453_v41 = vrot.slane (!%p4839_p5), %v4448_v36, %v4452_v44  ;;  %v4465_v43 = vrot.slane (!%p4839_p5), %v4448_v36, %v4464_v40 }
0x1113   : > { %v6257_v48 = vpop.eup %6256 }
0x1114   : > { %v6259_v7 = vpop.eup %6258  ;;  %v4357_v53 = vadd.f32 1.0, %v6257_v48  ;;  %v4421_v48 = vld [vmem:[%s6779_s1 + $0x128] sm:$0xff] (!%p4839_p5) }
0x1115   : > { %v4363_v54 = vadd.f32 1.0, %v6259_v7  ;;  %v6261_v49 = vpop.eup %6260  ;;  %v4419_v7 = vld [vmem:[%s6779_s1 + $0x118] sm:$0xff] (!%p4839_p5) }
0x1116   : > { %6264 = vrcp.f32 %v4357_v53  ;;  %v6263_v50 = vpop.eup %6262  ;;  %v4370_v52 = vadd.f32 1.0, %v6261_v49  ;;  %v4423_v53 = vld [vmem:[%s6779_s1 + $0x138] sm:$0xff] (!%p4839_p5)  ;;  %v5996_v49 = vpack.c.bf16 (!%p4839_p5), %v4414_v46, %v4410_v45 }
0x1117   : > { %6266 = vrcp.f32 %v4363_v54  ;;  %v5964_v54 = vpack.c.bf16 (!%p4839_p5), %v4412_v55, %v4408_v42  ;;  %v4461_v42 = vrot.slane (!%p4839_p5), %v4448_v36, %v4460_v38  ;;  %v4457_v55 = vrot.slane (!%p4839_p5), %v4448_v36, %v4456_v39 }
0x1118   : > { %6268 = vrcp.f32 %v4370_v52  ;;  %v4418_v52 = vld [vmem:[%s6779_s1 + $0x110] sm:$0xff] (!%p4839_p5)  ;;  %5997 = vmatpush1.bf16.msra.mxu1 (!%p4839_p5), %v5996_v49 }
0x1119   : > { %5965 = vmatpush1.bf16.msra.mxu0 (!%p4839_p5), %v5964_v54 }
0x1120   : > { %v6265_v56 = vpop.eup %6264 }
0x1121   : > { %v6267_v57 = vpop.eup %6266  ;;  %v4375_v58 = vmul.f32 %v6265_v56, %v6263_v50  ;;  %v5966_v50 = vpack.c.bf16 (!%p4839_p5), %v4421_v48, %v4417_v47  ;;  %v4420_v56 = vld [vmem:[%s6779_s1 + $0x120] sm:$0xff] (!%p4839_p5) }
0x1122   : > { %v4374_v60 = vmul.f32 %v6267_v57, %v4373_v51  ;;  %v6269_v62 = vpop.eup %6268  ;;  %v4416_v51 = vld [vmem:[%s6779_s1 + $0x100] sm:$0xff] (!%p4839_p5)  ;;  %v5998_v57 = vpack.c.bf16 (!%p4839_p5), %v4423_v53, %v4419_v7 }
0x1123   : > { %v5968_v0 = vpack.c.bf16 (!%p4839_p5), %v4420_v56, %v4416_v51  ;;  %5967 = vmatprep.subr.bf16.mxu0 (!%p4839_p5), %v5966_v50 }
0x1124   : > { %v4376_v61 = vadd.f32 %v4375_v58, %v4374_v60  ;;  %v4422_v58 = vld [vmem:[%s6779_s1 + $0x130] sm:$0xff] (!%p4839_p5)  ;;  %v4425_v60 = vld [vmem:[%s6779_s1 + $0x148] sm:$0xff] (!%p4839_p5)  ;;  %5999 = vmatprep.subr.bf16.mxu1 (!%p4839_p5), %v5998_v57 }
0x1125   : > { %v6000_v1 = vpack.c.bf16 (!%p4839_p5), %v4422_v58, %v4418_v52  ;;  %5969 = vmatpush1.bf16.msra.mxu0 (!%p4839_p5), %v5968_v0 }
0x1126   : > { %6270 = vtanh.f32 %v4376_v61  ;;  %4379 = vst [vmem:[#allocation4] sm:$0xff] %v4376_v61  ;;  %v4429_v61 = vld [vmem:[%s6779_s1 + $0x168] sm:$0xff] (!%p4839_p5) }
0x1127   : > { %v5970_v2 = vpack.c.bf16 (!%p4839_p5), %v4429_v61, %v4425_v60  ;;  %6001 = vmatpush1.bf16.msra.mxu1 (!%p4839_p5), %v6000_v1 }
0x1129   : > { %5971 = vmatprep.subr.bf16.mxu0 (!%p4839_p5), %v5970_v2 }
0x112a   : > { %5973 = vmatpush1.bf16.msra.mxu0 (!%p4839_p5), %v5972_v13 }
0x112b   : > { %5975 = vmatprep.subr.bf16.mxu0 (!%p4839_p5), %v5974_v59 }
0x112d   : > { %4383 = sbr.rel (%p4839_p5) target bundleno = 4633 (0x1219), region = 104 }
0x112e   : > { %5977 = vmatpush1.bf16.msra.mxu0 (!%p4839_p5), %v5976_v24 }
0x112f   : > { %5979 = vmatprep.subr.bf16.mxu0 (!%p4839_p5), %v5978_v26 }
0x1130   : > { %v6271_v63 = vpop.eup %6270 }
0x1131   : > { %v7923_v9 = vmul.f32 %v6271_v63, %v6269_v62  ;;  %v4427_v62 = vld [vmem:[%s6779_s1 + $0x158] sm:$0xff] (!%p4839_p5) }
0x1132   : > { %v4431_v63 = vld [vmem:[%s6779_s1 + $0x178] sm:$0xff] (!%p4839_p5)  ;;  %5981 = vmatpush1.bf16.msra.mxu0 (!%p4839_p5), %v5980_v32 }
0x1133   : > { %4380 = vst [vmem:[#allocation3] sm:$0xff] %v7923_v9  ;;  %v6002_v6 = vpack.c.bf16 (!%p4839_p5), %v4431_v63, %v4427_v62 }
0x1135   : > { %6003 = vmatprep.subr.bf16.mxu1 %v6002_v6  ;;  %4535 = vmatmul.mubr.f32.vlgmr.msra.gmra.mrb[0].mxu0 %v7923_v9 }
0x1136   : > { %6005 = vmatpush1.bf16.msra.mxu1 %v6004_v14 }
0x1137   : > { %6007 = vmatprep.subr.bf16.mxu1 %v6006_v18 }
0x113a   : > { %6009 = vmatpush1.bf16.msra.mxu1 %v6008_v25 }
0x113b   : > { %6011 = vmatprep.subr.bf16.mxu1 %v6010_v37 }
0x113e   : > { %6013 = vmatpush1.bf16.msra.mxu1 %v6012_v33 }
0x1141   : > { %4606 = vmatmul.mubr.f32.vlgmr.msra.gmra.mrb[0].mxu1 %v7923_v9 }
0x1208   : > { %v4536_v45 = vpop.f32.mrb[0].mxu0 }
0x1209   : > { %v4537_v46 = vadd.f32 %v4536_v45, %v4453_v41  ;;  %v4538_v48 = vpop.f32.mrb[1].mxu0 }
0x120a   : > { %v4539_v53 = vadd.f32 %v4538_v48, %v4457_v55 }
0x120b   : > { %4612 = vst [vmem:[#allocation2 + $0xe0] sm:$0xff] %v4537_v46 }
0x120c   : > { %4613 = vst [vmem:[#allocation2 + $0xe8] sm:$0xff] %v4539_v53 }
0x1214   : > { %v4607_v47 = vpop.f32.mrb[0].mxu1 }
0x1215   : > { %v4608_v7 = vadd.f32 %v4607_v47, %v4461_v42  ;;  %v4609_v54 = vpop.f32.mrb[1].mxu1 }
0x1216   : > { %v4610_v9 = vadd.f32 %v4609_v54, %v4465_v43 }
0x1217   : > { %4614 = vst [vmem:[#allocation2 + $0xf0] sm:$0xff] %v4608_v7 }
0x1218   : > { %4615 = vst [vmem:[#allocation2 + $0xf8] sm:$0xff] %v4610_v9 }
0x1219 PF: > { %p4868_p8 = scmp.ne.s32.totalorder %s6631_s24, 1 }
0x121a   : > { %v4621_v49 = vld [vmem:[#allocation10] sm:$0xff] (!%p4868_p8)  ;;  %v4622_v50 = vld [vmem:[#allocation10 + $0x8] sm:$0xff] (!%p4868_p8)  ;;  %v4623_v51 = vld [vmem:[#allocation10 + $0x10] sm:$0xff] (!%p4868_p8)  ;;  %v6478_v56 = vmov (!%p4868_p8), 0.0|0.0   ;;  %vm6479_vm0 = vmmov (!%p4868_p8), 0   ;;  %v6480_v58 = vmov (!%p4868_p8), 0.0  }
0x121b   : > { %4619 = sbr.rel (%p4868_p8) target bundleno = 4883 (0x1313), region = 108  ;;  %6014 = vmatprep.subr.bf16.mxu0 (!%p4868_p8), %v6478_v56  ;;  %v6015_v52 = vpack.c.bf16 (!%p4868_p8), %v4622_v50, %v4621_v49  ;;  %v4624_v57 = vld [vmem:[#allocation10 + $0x18] sm:$0xff] (!%p4868_p8)  ;;  %4923 = vmatprep.mubr.msk.f32.mxu0 (!%p4868_p8), %vm6479_vm0, %v6480_v58  ;;  %v4625_v61 = vld [vmem:[#allocation10 + $0x20] sm:$0xff] (!%p4868_p8)  ;;  %v4626_v62 = vld [vmem:[#allocation10 + $0x28] sm:$0xff] (!%p4868_p8)  ;;  %s8075_s16 = sld [smem:[#allocation21_spill]] (!%p4868_p8) }
0x121c   : > { %v6018_v60 = vpack.c.bf16 (!%p4868_p8), %v4624_v57, %v4623_v51  ;;  %v6021_v63 = vpack.c.bf16 (!%p4868_p8), %v4626_v62, %v4625_v61  ;;  %v4627_v0 = vld [vmem:[#allocation10 + $0x30] sm:$0xff] (!%p4868_p8)  ;;  %v4628_v1 = vld [vmem:[#allocation10 + $0x38] sm:$0xff] (!%p4868_p8)  ;;  %v4629_v3 = vld [vmem:[#allocation10 + $0x40] sm:$0xff] (!%p4868_p8)  ;;  %s8076_s10 = sld [smem:[#allocation22_spill]] (!%p4868_p8) }
0x121d   : > { %6016 = vmatpush3.bf16.msra.mxu0 (!%p4868_p8), %v6015_v52  ;;  %v6024_v2 = vpack.c.bf16 (!%p4868_p8), %v4628_v1, %v4627_v0  ;;  %v4630_v4 = vld [vmem:[#allocation10 + $0x48] sm:$0xff] (!%p4868_p8)  ;;  %v4631_v6 = vld [vmem:[#allocation10 + $0x50] sm:$0xff] (!%p4868_p8)  ;;  %v4632_v16 = vld [vmem:[#allocation10 + $0x58] sm:$0xff] (!%p4868_p8) }
0x121e   : > { %6017 = vmatprep.subr.bf16.mxu0 (!%p4868_p8), %v6478_v56  ;;  %v6027_v5 = vpack.c.bf16 (!%p4868_p8), %v4630_v4, %v4629_v3  ;;  %v6030_v8 = vpack.c.bf16 (!%p4868_p8), %v4632_v16, %v4631_v6  ;;  %v4633_v10 = vld [vmem:[#allocation10 + $0x60] sm:$0xff] (!%p4868_p8)  ;;  %v4634_v11 = vld [vmem:[#allocation10 + $0x68] sm:$0xff] (!%p4868_p8)  ;;  %v4635_v13 = vld [vmem:[#allocation10 + $0x70] sm:$0xff] (!%p4868_p8) }
0x121f   : > { %v6033_v12 = vpack.c.bf16 (!%p4868_p8), %v4634_v11, %v4633_v10  ;;  %v4636_v14 = vld [vmem:[#allocation10 + $0x78] sm:$0xff] (!%p4868_p8)  ;;  %v4620_v23 = vld [vmem:[#allocation3] sm:$0xff] (!%p4868_p8) }
0x1220   : > { %v6036_v59 = vpack.c.bf16 (!%p4868_p8), %v4636_v14, %v4635_v13 }
0x1221   : > { %6019 = vmatpush3.bf16.msra.mxu0 (!%p4868_p8), %v6018_v60  ;;  %v4869_v15 = vld [vmem:[%s8075_s16] ss:$0 sm:$0xff] (!%p4868_p8) }
0x1222   : > { %6020 = vmatprep.subr.bf16.mxu0 %v6478_v56 }
0x1225   : > { %6022 = vmatpush3.bf16.msra.mxu0 %v6021_v63 }
0x1226   : > { %6023 = vmatprep.subr.bf16.mxu0 %v6478_v56 }
0x1229   : > { %6025 = vmatpush3.bf16.msra.mxu0 %v6024_v2 }
0x122a   : > { %6026 = vmatprep.subr.bf16.mxu0 %v6478_v56 }
0x122d   : > { %6028 = vmatpush3.bf16.msra.mxu0 %v6027_v5 }
0x122e   : > { %6029 = vmatprep.subr.bf16.mxu0 %v6478_v56 }
0x1231   : > { %6031 = vmatpush3.bf16.msra.mxu0 %v6030_v8 }
0x1232   : > { %6032 = vmatprep.subr.bf16.mxu0 %v6478_v56 }
0x1235   : > { %6034 = vmatpush3.bf16.msra.mxu0 %v6033_v12 }
0x1236   : > { %6035 = vmatprep.subr.bf16.mxu0 %v6478_v56 }
0x1239   : > { %6037 = vmatpush3.bf16.msra.mxu0 %v6036_v59 }
0x123c   : > { %4924 = vmatmul.mubr.f32.vlgmr.msra.gmra.mrb[0].mxu0 %v4620_v23 }
0x130f   : > { %v4710_v17 = vpop.f32.mrb[0].mxu0 }
0x1310   : > { %v4711_v18 = vadd.f32 %v4869_v15, %v4710_v17  ;;  %v4925_v19 = vpop.f32.mrb[1].mxu0 }
0x1312   : > { %4714 = vst [vmem:[%s8076_s10] sm:$0xff] %v4711_v18 }
0x1313 PF: > { %s8077_s11 = sld [smem:[#allocation17_spill]]  ;;  %s8078_s12 = smov %s6724_s27 }
0x1314   : > { %s8079_s17 = sld [smem:[#allocation16_spill]]  ;;  %s8080_s10 = sld [smem:[#allocation18_spill]] }
0x1315   : > { %s8081_s27 = smov %s6438_s28  ;;  %s8082_s28 = smov %s6442_s29 }
0x1316   : > { %s8083_s29 = smov %s8078_s12  ;;  %s8084_s30 = smov %s6450_s9 }
0x1319   : > { %p20_p0 = scmp.ge.s32.totalorder %s8077_s11, 4  }
0x131a   : > { %s8085_s9 = smov %s8079_s17 }
0x131b   :  { %22 = sbr.rel (!%p20_p0) target bundleno = 12 (0xc), region = 159 }
0x1322   :  { %4726 = vsyncpa [#allocation6], 1 }
0x1323   :  { %4728 = vsyncpa [#allocation6 + $0x1], 1 }
0x1324   :  { %4729 = vsyncpa [#allocation8], 1 }
0x1325   :  { %4731 = vsyncpa [#allocation8 + $0x1], 1 }
0x1326   :  { %4732 = vsyncpa [#allocation11], 1 }

</bundles_post_ra>
